<compile_context>
chip_gen: v7x
topology: tpu7x:2x2x1
jax: 0.10.0
libtpu: 0.0.40
codegen_flags: <defaults>
</compile_context>

<pallas_src>
import functools

import jax
import jax.numpy as jnp
from jax.experimental import pallas as pl
from jax.experimental.pallas import tpu as pltpu


def _disc_kernel(x_ref, w1_ref, b1_ref, w2_ref, b2_ref, w3_ref, b3_ref, o_ref,
                 *, layer1_bf16):
    """Fused 3-layer MLP for one batch tile.

    x_ref : (TB, 2)  f32   (batch on sublanes)
    w1_ref: (2, H)   f32   b1_ref: (1, H) f32
    w2_ref: (H, H)   bf16  b2_ref: (1, H) f32
    w3_ref: (1, H)   f32   b3_ref: (1, 1) f32
    o_ref : (1, TB)  f32   (lane-dense: batch on lanes)
    """
    x = x_ref[...]
    b2 = b2_ref[...]

    # Layer 1 (in_features = 2): depth-2 contraction as VPU FMAs instead of a
    # 2/256-utilized MXU pass.  On bf16-native VPUs (v6e/v7x) do it in bf16 so
    # the (TB, H) f32->bf16 cast before the MXU disappears.
    if layer1_bf16:
        x0 = x[:, 0:1].astype(jnp.bfloat16)
        x1 = x[:, 1:2].astype(jnp.bfloat16)
        w1 = w1_ref[...].astype(jnp.bfloat16)
        b1 = b1_ref[...].astype(jnp.bfloat16)
        h = x0 * w1[0:1, :] + x1 * w1[1:2, :] + b1
        h = jnp.maximum(h, 0.0)                       # bf16, feeds MXU directly
    else:
        w1 = w1_ref[...]
        b1 = b1_ref[...]
        h = x[:, 0:1] * w1[0:1, :] + x[:, 1:2] * w1[1:2, :] + b1
        h = jnp.maximum(h, 0.0).astype(w2_ref.dtype)  # single cast before MXU

    # Layer 2: the one real matmul.  bf16 operands, f32 accumulation on MXU.
    h = jnp.dot(h, w2_ref[...], preferred_element_type=jnp.float32) + b2
    h = jnp.maximum(h, 0.0)

    # Layer 3 (out_features = 1): VPU multiply + lane reduction.  The result
    # is a lane-dense (1, TB) row, so the final store is unmasked.
    logits = jnp.sum(h * w3_ref[...], axis=-1)[None, :] + b3_ref[...]
    o_ref[...] = jax.nn.sigmoid(logits).astype(o_ref.dtype)


def _use_bf16_layer1():
    """bf16 layer-1 only on bf16-native-VPU generations (v6e / v7x)."""
    kind = jax.devices()[0].device_kind.lower()
    return ("v6" in kind) or ("v7" in kind)


def _select_tile(batch, *, preferred_tile=1024, lane=128):
    """Pick a batch tile (multiple of 128, <= preferred_tile).

    Tiny cost model: padded_rows * (layer-2 MXU ns/row) + steps * step-overhead,
    with a 2x penalty for single-step grids (one idle TensorCore on dual-core
    parts such as v7x).  This both amortizes the ~0.35us/step overhead at large
    batch (tile -> 1024) and avoids gross zero-row padding at small batch.
    """
    row_ns = 2.3      # ~2*1024*1024 bf16 flops / ~918 TF/s
    step_ns = 350.0   # per-grid-step pipeline overhead
    best = None
    for units in range(1, max(1, preferred_tile // lane) + 1):
        tile = units * lane
        padded = pl.cdiv(batch, tile) * tile
        steps = padded // tile
        cost = padded * row_ns + steps * step_ns
        if steps < 2 and batch > lane:
            cost *= 2.0   # one TensorCore idle on 2-TC chips
        if best is None or cost < best[0]:
            best = (cost, tile, padded)
    return best[1], best[2]


def discriminator_forward(x, params, *, preferred_tile=1024, layer1_bf16=None):
    """x: (B, 2) float32 (already flattened). Returns (B, 1) float32 probs."""
    w1, b1, w2, b2, w3, b3 = params
    B, D_in = x.shape
    assert D_in == 2
    H = w1.shape[1]

    if layer1_bf16 is None:
        layer1_bf16 = _use_bf16_layer1()

    batch_tile, padded_b = _select_tile(B, preferred_tile=preferred_tile)
    if padded_b != B:
        x = jnp.pad(x, ((0, padded_b - B), (0, 0)))
    num_tiles = padded_b // batch_tile

    flops = padded_b * (2 * D_in * H + 2 * H * H + 2 * H)
    bytes_accessed = (x.size * 4 + w1.size * 4 + b1.size * 4 + w2.size * 2 +
                      b2.size * 4 + w3.size * 4 + b3.size * 4 + padded_b * 4)

    def param_spec(shape):
        # Full array, constant index map -> resident in VMEM across the grid.
        return pl.BlockSpec(shape, lambda i: (0,) * len(shape))

    out = pl.pallas_call(
        functools.partial(_disc_kernel, layer1_bf16=layer1_bf16),
        # Lane-dense output: a single (1, padded_b) row written in
        # (1, batch_tile) slabs; reshaped to (B, 1) by the wrapper.
        out_shape=jax.ShapeDtypeStruct((1, padded_b), jnp.float32),
        grid_spec=pltpu.PrefetchScalarGridSpec(
            num_scalar_prefetch=0,
            grid=(num_tiles,),
            in_specs=[
                # activations: tiled along the (padded) batch
                pl.BlockSpec((batch_tile, D_in), lambda i: (i, 0)),
                # weights / biases: full arrays, resident across the grid
                param_spec((D_in, H)),
                param_spec((1, H)),
                param_spec((H, H)),
                param_spec((1, H)),
                param_spec((1, H)),
                param_spec((1, 1)),
            ],
            out_specs=pl.BlockSpec((1, batch_tile), lambda i: (0, i)),
        ),
        compiler_params=pltpu.CompilerParams(
            dimension_semantics=("parallel",),
            # ~18-20 MiB peak at TB=1024; 48 MiB leaves headroom yet stays
            # within v7x's 64 MiB physical VMEM per TensorCore.
            vmem_limit_bytes=48 * 1024 * 1024,
        ),
        cost_estimate=pl.CostEstimate(
            flops=flops,
            transcendentals=padded_b,
            bytes_accessed=bytes_accessed,
        ),
    )(x, w1, b1, w2, b2, w3, b3)

    return out.reshape(padded_b, 1)[:B]


def init_params(key):
    """nn.Linear-style init (uniform +/- 1/sqrt(fan_in)); w2 stored in bf16."""
    k1, k2, k3, k4, k5, k6 = jax.random.split(key, 6)

    def uinit(k, shape, fan_in):
        bound = 1.0 / jnp.sqrt(jnp.float32(fan_in))
        return jax.random.uniform(k, shape, jnp.float32, -bound, bound)

    w1 = uinit(k1, (2, 1024), 2)            # (in, out): kernel computes x @ w1
    b1 = uinit(k2, (1, 1024), 2)
    # Big layer-2 weight in bf16: halves HBM/VMEM traffic, 2x MXU throughput.
    w2 = uinit(k3, (1024, 1024), 1024).astype(jnp.bfloat16)
    b2 = uinit(k4, (1, 1024), 1024)
    w3 = uinit(k5, (1, 1024), 1024)         # PyTorch (out=1, in) row layout
    b3 = uinit(k6, (1, 1), 1024)
    return (w1, b1, w2, b2, w3, b3)


def reference_forward(x, params, *, layer1_bf16):
    """Pure-JAX reference with the same precision choices as the kernel."""
    w1, b1, w2, b2, w3, b3 = params
    if layer1_bf16:
        x0 = x[:, 0:1].astype(jnp.bfloat16)
        x1 = x[:, 1:2].astype(jnp.bfloat16)
        w1b = w1.astype(jnp.bfloat16)
        h = x0 * w1b[0:1, :] + x1 * w1b[1:2, :] + b1.astype(jnp.bfloat16)
        h = jnp.maximum(h, 0.0)
    else:
        h = x[:, 0:1] * w1[0:1, :] + x[:, 1:2] * w1[1:2, :] + b1
        h = jnp.maximum(h, 0.0).astype(w2.dtype)
    h = jnp.dot(h, w2, preferred_element_type=jnp.float32) + b2
    h = jnp.maximum(h, 0.0)
    logits = jnp.sum(h * w3, axis=-1, keepdims=True) + b3
    return jax.nn.sigmoid(logits)


def reference_forward_f32(x, params):
    """Full-f32 reference mirroring the original PyTorch module."""
    w1, b1, w2, b2, w3, b3 = params
    hp = jax.lax.Precision.HIGHEST
    h = jnp.maximum(jnp.dot(x, w1, precision=hp) + b1, 0.0)
    h = jnp.maximum(jnp.dot(h, w2.astype(jnp.float32), precision=hp) + b2, 0.0)
    logits = jnp.dot(h, w3.astype(jnp.float32).T, precision=hp) + b3
    return jax.nn.sigmoid(logits)


if __name__ == "__main__":
    key = jax.random.PRNGKey(0)
    pkey, xkey = jax.random.split(key)
    params = init_params(pkey)

    # Discriminator input is a 2-D latent code: (batch, 2).  B=300 is
    # deliberately not a 128-multiple: it exercises the padding path and the
    # adaptive tile selection (>=2 grid steps so both v7x TCs get work).
    B = 300
    x = jax.random.normal(xkey, (B, 2), jnp.float32)
    x = x.reshape(x.shape[0], -1)           # Flatten (no-op here)

    layer1_bf16 = _use_bf16_layer1()
    out = jax.block_until_ready(
        discriminator_forward(x, params, layer1_bf16=layer1_bf16))
    assert out.shape == (B, 1)

    # Matched-precision reference (bf16 layer-2 weight, f32 accumulation; bf16
    # layer 1 only where the kernel uses it).
    ref = reference_forward(x, params, layer1_bf16=layer1_bf16)
    assert jnp.allclose(out, ref, atol=5e-3, rtol=5e-3), "mismatch vs reference"

    # Full-f32 reference (original PyTorch semantics); bf16 weights shift the
    # sigmoid outputs only by O(1e-3).
    ref32 = reference_forward_f32(x, params)
    assert jnp.allclose(out, ref32, atol=5e-2), "mismatch vs f32 reference"

    print("KERNEL_OK")
</pallas_src>

<mosaic_0001>
module attributes {stable_mosaic.version = 11 : i64} {
  func.func @_disc_kernel(%arg0: i32, %arg1: memref<256x2xf32, #tpu.memory_space<vmem>>, %arg2: memref<2x1024xf32, #tpu.memory_space<vmem>>, %arg3: memref<1x1024xf32, #tpu.memory_space<vmem>>, %arg4: memref<1024x1024xbf16, #tpu.memory_space<vmem>>, %arg5: memref<1x1024xf32, #tpu.memory_space<vmem>>, %arg6: memref<1x1024xf32, #tpu.memory_space<vmem>>, %arg7: memref<1x1xf32, #tpu.memory_space<vmem>>, %arg8: memref<1x256xf32, #tpu.memory_space<vmem>>) attributes {dimension_semantics = [#tpu.dimension_semantics<parallel>], iteration_bounds = array<i64: 2>, scalar_prefetch = 0 : i64, scratch_operands = 0 : i64, tpu.core_type = #tpu.core_type<tc>, window_params = [{transform_indices = @transform_0, window_bounds = array<i64: 256, 2>}, {pipeline_mode = #tpu.pipeline_mode<synchronous>, transform_indices = @transform_1, window_bounds = array<i64: 2, 1024>}, {pipeline_mode = #tpu.pipeline_mode<synchronous>, transform_indices = @transform_2, window_bounds = array<i64: 1, 1024>}, {pipeline_mode = #tpu.pipeline_mode<synchronous>, transform_indices = @transform_3, window_bounds = array<i64: 1024, 1024>}, {pipeline_mode = #tpu.pipeline_mode<synchronous>, transform_indices = @transform_4, window_bounds = array<i64: 1, 1024>}, {pipeline_mode = #tpu.pipeline_mode<synchronous>, transform_indices = @transform_5, window_bounds = array<i64: 1, 1024>}, {pipeline_mode = #tpu.pipeline_mode<synchronous>, transform_indices = @transform_6, window_bounds = array<i64: 1, 1>}, {transform_indices = @transform_7, window_bounds = array<i64: 1, 256>}]} {
    %c0 = arith.constant 0 : index
    %c0_0 = arith.constant 0 : index
    %0 = vector.load %arg1[%c0, %c0_0] : memref<256x2xf32, #tpu.memory_space<vmem>>, vector<256x2xf32>
    %c0_1 = arith.constant 0 : index
    %c0_2 = arith.constant 0 : index
    %1 = vector.load %arg5[%c0_1, %c0_2] : memref<1x1024xf32, #tpu.memory_space<vmem>>, vector<1x1024xf32>
    %c0_3 = arith.constant 0 : index
    %c0_4 = arith.constant 0 : index
    %2 = vector.load %arg2[%c0_3, %c0_4] : memref<2x1024xf32, #tpu.memory_space<vmem>>, vector<2x1024xf32>
    %c0_5 = arith.constant 0 : index
    %c0_6 = arith.constant 0 : index
    %3 = vector.load %arg3[%c0_5, %c0_6] : memref<1x1024xf32, #tpu.memory_space<vmem>>, vector<1x1024xf32>
    %4 = vector.extract_strided_slice %0 {offsets = [0, 0], sizes = [256, 1], strides = [1, 1]} : vector<256x2xf32> to vector<256x1xf32>
    %5 = vector.extract_strided_slice %2 {offsets = [0, 0], sizes = [1, 1024], strides = [1, 1]} : vector<2x1024xf32> to vector<1x1024xf32>
    %6 = vector.broadcast %4 : vector<256x1xf32> to vector<256x1024xf32>
    %7 = vector.broadcast %5 : vector<1x1024xf32> to vector<256x1024xf32>
    %8 = arith.mulf %6, %7 : vector<256x1024xf32>
    %9 = vector.extract_strided_slice %0 {offsets = [0, 1], sizes = [256, 1], strides = [1, 1]} : vector<256x2xf32> to vector<256x1xf32>
    %10 = vector.extract_strided_slice %2 {offsets = [1, 0], sizes = [1, 1024], strides = [1, 1]} : vector<2x1024xf32> to vector<1x1024xf32>
    %11 = vector.broadcast %9 : vector<256x1xf32> to vector<256x1024xf32>
    %12 = vector.broadcast %10 : vector<1x1024xf32> to vector<256x1024xf32>
    %13 = arith.mulf %11, %12 : vector<256x1024xf32>
    %14 = arith.addf %8, %13 : vector<256x1024xf32>
    %15 = vector.broadcast %3 : vector<1x1024xf32> to vector<256x1024xf32>
    %16 = arith.addf %14, %15 : vector<256x1024xf32>
    %cst = arith.constant 0.000000e+00 : f32
    %17 = vector.broadcast %cst : f32 to vector<256x1024xf32>
    %18 = arith.maximumf %16, %17 : vector<256x1024xf32>
    %19 = arith.truncf %18 : vector<256x1024xf32> to vector<256x1024xbf16>
    %c0_7 = arith.constant 0 : index
    %c0_8 = arith.constant 0 : index
    %20 = vector.load %arg4[%c0_7, %c0_8] : memref<1024x1024xbf16, #tpu.memory_space<vmem>>, vector<1024x1024xbf16>
    %cst_9 = arith.constant dense<0.000000e+00> : vector<256x1024xf32>
    %21 = tpu.matmul %19, %20, %cst_9 {dimension_numbers = #tpu.dot_dimension_numbers<[1], [0], [0], [1], [0, 0, 1, 1], [], []>} : vector<256x1024xbf16>, vector<1024x1024xbf16>, vector<256x1024xf32> -> vector<256x1024xf32>
    %22 = vector.broadcast %1 : vector<1x1024xf32> to vector<256x1024xf32>
    %23 = arith.addf %21, %22 : vector<256x1024xf32>
    %cst_10 = arith.constant 0.000000e+00 : f32
    %24 = vector.broadcast %cst_10 : f32 to vector<256x1024xf32>
    %25 = arith.maximumf %23, %24 : vector<256x1024xf32>
    %c0_11 = arith.constant 0 : index
    %c0_12 = arith.constant 0 : index
    %26 = vector.load %arg6[%c0_11, %c0_12] : memref<1x1024xf32, #tpu.memory_space<vmem>>, vector<1x1024xf32>
    %27 = vector.broadcast %26 : vector<1x1024xf32> to vector<256x1024xf32>
    %28 = arith.mulf %25, %27 : vector<256x1024xf32>
    %cst_13 = arith.constant dense<0.000000e+00> : vector<256xf32>
    %29 = vector.multi_reduction <add>, %28, %cst_13 [1] : vector<256x1024xf32> to vector<256xf32>
    %30 = vector.shape_cast %29 : vector<256xf32> to vector<1x256xf32>
    %c0_14 = arith.constant 0 : index
    %c0_15 = arith.constant 0 : index
    %31 = vector.load %arg7[%c0_14, %c0_15] : memref<1x1xf32, #tpu.memory_space<vmem>>, vector<1x1xf32>
    %32 = vector.broadcast %31 : vector<1x1xf32> to vector<1x256xf32>
    %33 = arith.addf %30, %32 : vector<1x256xf32>
    %34 = arith.negf %33 : vector<1x256xf32>
    %35 = math.exp %34 : vector<1x256xf32>
    %cst_16 = arith.constant 1.000000e+00 : f32
    %36 = vector.broadcast %cst_16 : f32 to vector<1x256xf32>
    %37 = arith.addf %36, %35 : vector<1x256xf32>
    %38 = arith.divf %36, %37 : vector<1x256xf32>
    %c0_17 = arith.constant 0 : index
    %c0_18 = arith.constant 0 : index
    %39 = vector.load %arg8[%c0_17, %c0_18] : memref<1x256xf32, #tpu.memory_space<vmem>>, vector<1x256xf32>
    tpu.vector_store %arg8[%c0_17, %c0_18], %38 {strides = array<i32>} : memref<1x256xf32, #tpu.memory_space<vmem>>, vector<1x256xf32>,
    return
  }
  func.func @transform_0(%arg0: i32) -> (i32, i32) {
    %c0_i32 = arith.constant 0 : i32
    %c0_i32_0 = arith.constant 0 : i32
    return %arg0, %c0_i32 : i32, i32
  }
  func.func @transform_1(%arg0: i32) -> (i32, i32) {
    %c0_i32 = arith.constant 0 : i32
    %c0_i32_0 = arith.constant 0 : i32
    %c0_i32_1 = arith.constant 0 : i32
    return %c0_i32, %c0_i32_0 : i32, i32
  }
  func.func @transform_2(%arg0: i32) -> (i32, i32) {
    %c0_i32 = arith.constant 0 : i32
    %c0_i32_0 = arith.constant 0 : i32
    %c0_i32_1 = arith.constant 0 : i32
    return %c0_i32, %c0_i32_0 : i32, i32
  }
  func.func @transform_3(%arg0: i32) -> (i32, i32) {
    %c0_i32 = arith.constant 0 : i32
    %c0_i32_0 = arith.constant 0 : i32
    %c0_i32_1 = arith.constant 0 : i32
    return %c0_i32, %c0_i32_0 : i32, i32
  }
  func.func @transform_4(%arg0: i32) -> (i32, i32) {
    %c0_i32 = arith.constant 0 : i32
    %c0_i32_0 = arith.constant 0 : i32
    %c0_i32_1 = arith.constant 0 : i32
    return %c0_i32, %c0_i32_0 : i32, i32
  }
  func.func @transform_5(%arg0: i32) -> (i32, i32) {
    %c0_i32 = arith.constant 0 : i32
    %c0_i32_0 = arith.constant 0 : i32
    %c0_i32_1 = arith.constant 0 : i32
    return %c0_i32, %c0_i32_0 : i32, i32
  }
  func.func @transform_6(%arg0: i32) -> (i32, i32) {
    %c0_i32 = arith.constant 0 : i32
    %c0_i32_0 = arith.constant 0 : i32
    %c0_i32_1 = arith.constant 0 : i32
    return %c0_i32, %c0_i32_0 : i32, i32
  }
  func.func @transform_7(%arg0: i32) -> (i32, i32) {
    %c0_i32 = arith.constant 0 : i32
    %c0_i32_0 = arith.constant 0 : i32
    return %c0_i32, %arg0 : i32, i32
  }
}

</mosaic_0001>

<bundles_post_ra>
// kernel: tpu_custom_call.1
= control target key start
LH: loop header
LB: loop body
LE: loop exit
PB: predicated region body
PF: predicated region fallthrough
CT: control target
= control target key end

     0   :  { %s19862_s0 = inlined_call_operand.vmem [shape: f32[512,2], index: 0, kind: input, shape index: {}]   ;;  %s19863_s1 = inlined_call_operand.hbm [shape: f32[2,1024], index: 1, kind: input, shape index: {}]   ;;  %s19864_s2 = inlined_call_operand.hbm [shape: f32[1,1024], index: 2, kind: input, shape index: {}]   ;;  %s19865_s3 = inlined_call_operand.hbm [shape: bf16[1024,1024], index: 3, kind: input, shape index: {}]   ;;  %s19866_s4 = inlined_call_operand.hbm [shape: f32[1,1024], index: 4, kind: input, shape index: {}]   ;;  %s19867_s5 = inlined_call_operand.hbm [shape: f32[1,1024], index: 5, kind: input, shape index: {}]   ;;  %s19868_s6 = inlined_call_operand.<no memory space> [shape: f32[1,1], index: 6, kind: input, shape index: {}]   ;;  %s19869_s7 = inlined_call_operand.hbm [shape: f32[1,512], index: 7, kind: output, shape index: {}]  }
   0x1   :  { %20418 = sst [smem:[#allocation169_spill]] %s19863_s1  ;;  %v12_v0 = vstv %s19868_s6 }
   0x2   :  { %20419 = sst [smem:[#allocation170_spill]] %s19864_s2  ;;  %13 = vst [vmem:[#allocation2] sm:$0x1] %v12_v0 }
   0x3   :  { %14 = vsyncpa [#allocation4], 0 }
   0x4   :  { %15 = vsyncpa [#allocation7], 0 }
   0x5   :  { %16 = vsyncpa [#allocation10], 0 }
   0x6   :  { %17 = vsyncpa [#allocation5], 0 }
   0x7   :  { %19 = vsyncpa [#allocation5 + $0x1], 0  ;;  %s14732_s26 = smov 0   ;;  %s14734_s27 = smov 0  }
   0x8   :  { %s14736_s28 = smov 0   ;;  %s14738_s29 = smov 0  }
   0x9 LB: > { %s14753_s6 = sadd.s32 4294967295, %s14676_s29   ;;  %s12598_s30 = sadd.s32 4294967294, %s14676_s29   ;;  %s14676_s29 = sphi %s14738_s29, %s21075_s29   ;;  %s14672_s28 = sphi %s14736_s28, %s21074_s28   ;;  %s14668_s27 = sphi %s14734_s27, %s21073_s27   ;;  %s14664_s26 = sphi %s14732_s26, %s21072_s26  }
   0xa   : > { %s14757_s8 = sadd.s32 1, %s14676_s29   ;;  %s184_s9 = sadd.s32 1, %s14672_s28 }
   0xb   : > { %s181_s10 = ssub.s32 %s14676_s29, %s14757_s8  ;;  %p194_p0 = scmp.ne.s32.totalorder %s14672_s28, %s14668_s27 }
   0xc   : > { %p182_p1 = scmp.eq.s32.totalorder %s181_s10, 0  ;;  %p195_p2 = scmp.eq.s32.totalorder %s14753_s6, 1 }
   0xd   : > { %p200_p3 = scmp.ne.s32.totalorder %s14668_s27, %s14664_s26  ;;  %p201_p4 = scmp.eq.s32.totalorder %s12598_s30, 1 }
   0xe   : > { %s14768_s11 = scalar_select %p182_p1, %s14672_s28, %s184_s9  }
   0xf   : > { %p14770_p5 = por %p195_p2, %p194_p0  ;;  %p14774_p6 = por %p201_p4, %p200_p3 }
  0x10   : > { %p12599_p7 = scmp.ge.s32.totalorder %s14676_s29, 1  ;;  %p208_p8 = scmp.lt.s32.totalorder %s14676_s29, 3 }
  0x11   : > { %s20420_s12 = scalar_select %p14770_p5, 1, 0 }
  0x12   : > { %s20421_s13 = scalar_select %p14774_p6, 1, 0 }
  0x13   : > { %p19870_p9 = scmp.eq.s32.totalorder %s14753_s6, 0  ;;  %p14781_p10 = pnand %p12599_p7, %p208_p8 }
  0x14   : > { %s14678_s15 = smov [#allocation6]   ;;  %s14679_s17 = smov [#allocation9]  }
  0x15   : > { %s20422_s14 = scalar_select %p14781_p10, 1, 0 }
  0x16   : > { %s232_s16 = sshll.u32 %s14678_s15, 4  ;;  %p14211_p11 = pneg %p14781_p10  ;;  %s233_s16 = int_to_ptr.vmem [resolvable:$true] %s232_s16 }
  0x17   : > { %s256_s18 = sshll.u32 %s14679_s17, 4  ;;  %s14680_s20 = smov [#allocation3]   ;;  %s14793_s18 = int_to_ptr.vmem [resolvable:$true] %s256_s18 }
  0x18   : > { %p14789_p12 = pnand %p19870_p9, %p14211_p11  ;;  %s221_s21 = sshll.u32 %s14680_s20, 4  ;;  %s14795_s21 = int_to_ptr.vmem [resolvable:$true] %s221_s21 }
  0x19   : > { %s20424_s2 = sld [smem:[#allocation170_spill]] }
  0x1a   : > { %p14805_p0 = pneg %p14789_p12 }
  0x1f   : > { %s14462_s24 = scalar_lea.hbm %s20424_s2, 128 }
  0x20   : > { %p14463_p13 = scmp.ne.s32.totalorder %s20424_s2, %s14462_s24  ;;  %p14469_p3 = scmp.lt.u32.totalorder %s14462_s24, %s20424_s2 }
  0x22   : > { %p14465_p1 = pnand %p14805_p0, %p14463_p13 }
  0x24   : > { %p14466_p2 = pneg %p14465_p1 }
  0x26   : > { %p14471_p4 = pnand %p14469_p3, %p14466_p2 }
  0x28   : > { %14474 = shalt.err (!%p14471_p4)
}
  0x29   : > { %s14475_s17 = scalar_lea.vmem %s233_s16, 128  ;;  %p14483_p9 = scmp.lt.s32.totalorder %s233_s16, %s233_s16 }
  0x2a   : > { %p14476_p7 = scmp.ne.s32.totalorder %s233_s16, %s14475_s17  ;;  %p14484_p6 = scmp.lt.s32.totalorder %s14475_s17, %s14475_s17 }
  0x2c   : > { %p14478_p8 = pnand %p14476_p7, %p14805_p0  ;;  %p14485_p5 = por %p14484_p6, %p14483_p9 }
  0x2e   : > { %p14479_p11 = pneg %p14478_p8 }
  0x30   : > { %p14486_p10 = pnand %p14485_p5, %p14479_p11 }
  0x32   : > { %14489 = shalt.err (!%p14486_p10)
}
  0x33   : > { %14217 = dma.hbm_to_vmem [thread:$0]  (!%p14789_p12), %s20424_s2, 128, %s233_s16, [#allocation7]  }
  0x34   : > { %s14490_s25 = scalar_lea.hbm %s19866_s4, 128 }
  0x35   : > { %p14491_p13 = scmp.ne.s32.totalorder %s19866_s4, %s14490_s25  ;;  %p14497_p5 = scmp.lt.u32.totalorder %s14490_s25, %s19866_s4 }
  0x37   : > { %p14493_p1 = pnand %p14491_p13, %p14805_p0 }
  0x39   : > { %p14494_p6 = pneg %p14493_p1 }
  0x3b   : > { %p14499_p9 = pnand %p14497_p5, %p14494_p6 }
  0x3d   : > { %14502 = shalt.err (!%p14499_p9)
}
  0x3e   : > { %s14503_s16 = scalar_lea.vmem %s14793_s18, 128  ;;  %p14511_p4 = scmp.lt.s32.totalorder %s14793_s18, %s14793_s18 }
  0x3f   : > { %p14504_p10 = scmp.ne.s32.totalorder %s14793_s18, %s14503_s16  ;;  %p14512_p7 = scmp.lt.s32.totalorder %s14503_s16, %s14503_s16 }
  0x41   : > { %p14506_p2 = pnand %p14504_p10, %p14805_p0  ;;  %p14513_p8 = por %p14512_p7, %p14511_p4 }
  0x43   : > { %p14507_p3 = pneg %p14506_p2 }
  0x45   : > { %p14514_p11 = pnand %p14513_p8, %p14507_p3 }
  0x47   : > { %14517 = shalt.err (!%p14514_p11)
}
  0x48   : > { %14223 = dma.hbm_to_vmem [thread:$0]  (!%p14789_p12), %s19866_s4, 128, %s14793_s18, [#allocation10]  }
  0x49   : > { %s20426_s1 = sld [smem:[#allocation169_spill]] }
  0x4f   : > { %s14518_s25 = scalar_lea.hbm %s20426_s1, 256 }
  0x50   : > { %p14519_p13 = scmp.ne.s32.totalorder %s20426_s1, %s14518_s25  ;;  %p14525_p5 = scmp.lt.u32.totalorder %s14518_s25, %s20426_s1 }
  0x52   : > { %p14521_p1 = pnand %p14519_p13, %p14805_p0 }
  0x54   : > { %p14522_p6 = pneg %p14521_p1 }
  0x56   : > { %p14527_p9 = pnand %p14525_p5, %p14522_p6 }
  0x58   : > { %14530 = shalt.err (!%p14527_p9)
}
  0x59   : > { %s14531_s18 = scalar_lea.vmem %s14795_s21, 256  ;;  %p14539_p4 = scmp.lt.s32.totalorder %s14795_s21, %s14795_s21 }
  0x5a   : > { %p14532_p10 = scmp.ne.s32.totalorder %s14795_s21, %s14531_s18  ;;  %p14540_p7 = scmp.lt.s32.totalorder %s14531_s18, %s14531_s18 }
  0x5c   : > { %p14534_p2 = pnand %p14532_p10, %p14805_p0  ;;  %p14541_p8 = por %p14540_p7, %p14539_p4 }
  0x5e   : > { %p14535_p3 = pneg %p14534_p2 }
  0x60   : > { %p14542_p11 = pnand %p14541_p8, %p14535_p3 }
  0x62   : > { %14545 = shalt.err (!%p14542_p11)
}
  0x63   : > { %14214 = dma.hbm_to_vmem [thread:$0]  (!%p14789_p12), %s20426_s1, 256, %s14795_s21, [#allocation4]  }
  0x64   : > { %s14681_s22 = smov [#allocation8]   ;;  %s14546_s30 = scalar_lea.hbm %s19865_s3, 65536 }
  0x65   : > { %s242_s23 = sshll.u32 %s14681_s22, 4  ;;  %p14547_p13 = scmp.ne.s32.totalorder %s19865_s3, %s14546_s30  ;;  %s243_s23 = int_to_ptr.vmem [resolvable:$true] %s242_s23 }
  0x66   : > { %p14553_p5 = scmp.lt.u32.totalorder %s14546_s30, %s19865_s3 }
  0x67   : > { %p14549_p1 = pnand %p14547_p13, %p14805_p0 }
  0x69   : > { %p14550_p6 = pneg %p14549_p1 }
  0x6b   : > { %p14555_p9 = pnand %p14553_p5, %p14550_p6 }
  0x6d   : > { %14558 = shalt.err (!%p14555_p9)
}
  0x6e   : > { %s14559_s21 = scalar_lea.vmem %s243_s23, 65536  ;;  %p14567_p4 = scmp.lt.s32.totalorder %s243_s23, %s243_s23 }
  0x6f   : > { %p14560_p10 = scmp.ne.s32.totalorder %s243_s23, %s14559_s21  ;;  %p14568_p7 = scmp.lt.s32.totalorder %s14559_s21, %s14559_s21 }
  0x71   : > { %p14562_p2 = pnand %p14560_p10, %p14805_p0  ;;  %p14569_p8 = por %p14568_p7, %p14567_p4 }
  0x73   : > { %p14563_p3 = pneg %p14562_p2 }
  0x75   : > { %p14570_p11 = pnand %p14569_p8, %p14563_p3 }
  0x77   : > { %14573 = shalt.err (!%p14570_p11)
}
  0x78   : > { %s14682_s16 = smov 512   ;;  %s14683_s20 = smov 32  }
  0x79   : > { %14220 = dma.hbm_to_vmem [thread:$0]  (!%p14789_p12), %s19865_s3, 65536, %s243_s23, [#allocation7], %s14682_s16, %s14682_s16, %s14683_s20  }
  0x7a   : > { %s14684_s25 = smov [#allocation11]   ;;  %s14574_s17 = scalar_lea.hbm %s19867_s5, 128 }
  0x7b   : > { %s267_s30 = sshll.u32 %s14684_s25, 4  ;;  %p14575_p13 = scmp.ne.s32.totalorder %s19867_s5, %s14574_s17  ;;  %s268_s30 = int_to_ptr.vmem [resolvable:$true] %s267_s30 }
  0x7c   : > { %p14581_p5 = scmp.lt.u32.totalorder %s14574_s17, %s19867_s5 }
  0x7d   : > { %p14577_p1 = pnand %p14575_p13, %p14805_p0 }
  0x7f   : > { %p14578_p6 = pneg %p14577_p1 }
  0x81   : > { %p14583_p9 = pnand %p14581_p5, %p14578_p6 }
  0x83   : > { %14586 = shalt.err (!%p14583_p9)
}
  0x84   : > { %s14587_s23 = scalar_lea.vmem %s268_s30, 128  ;;  %p14595_p4 = scmp.lt.s32.totalorder %s268_s30, %s268_s30 }
  0x85   : > { %p14588_p10 = scmp.ne.s32.totalorder %s268_s30, %s14587_s23  ;;  %p14596_p7 = scmp.lt.s32.totalorder %s14587_s23, %s14587_s23 }
  0x87   : > { %p14590_p2 = pnand %p14588_p10, %p14805_p0  ;;  %p14597_p8 = por %p14596_p7, %p14595_p4 }
  0x89   : > { %p14591_p3 = pneg %p14590_p2 }
  0x8b   : > { %p14598_p11 = pnand %p14597_p8, %p14591_p3 }
  0x8d   : > { %14601 = shalt.err (!%p14598_p11)
}
  0x8e   : > { %14226 = dma.hbm_to_vmem [thread:$0]  (!%p14789_p12), %s19867_s5, 128, %s268_s30, [#allocation10]  }
  0x8f   : > { %p20427_p13 = scmp.ne.s32.totalorder %s20422_s14, 0 }
  0x91   : > { %292 = sbr.rel (%p20427_p13) target bundleno = 2118 (0x846), region = 48 }
  0x98   : > { %p20428_p1 = scmp.eq.s32.totalorder %s14753_s6, 0 }
  0x9a   : > { %14647 = dma.done.wait (%p20428_p1), [#allocation4], 256   ;;  %p20429_p0 = pmov %p20428_p1 }
  0x9c   : > { %14649 = vsyncadd (%p20429_p0), [#allocation4], 4294967040  ;;  %p20430_p6 = pmov %p20429_p0 }
  0x9d   : > { %p20431_p5 = pmov %p20429_p0 }
  0x9e   : > { %14651 = dma.done.wait (%p20430_p6), [#allocation7], 65664  }
  0x9f   : > { %14653 = vsyncadd (%p20431_p5), [#allocation7], 4294901632  ;;  %p20432_p9 = pmov %p20429_p0 }
  0xa0   : > { %p20433_p12 = pmov %p20429_p0 }
  0xa1   : > { %14655 = dma.done.wait (%p20432_p9), [#allocation10], 256  }
  0xa2   : > { %14657 = vsyncadd (%p20433_p12), [#allocation10], 4294967040  ;;  %s14918_s1 = sshll.u32 %s14753_s6, 5  ;;  %v19875_v1 = vmov 1   ;;  %v19877_v2 = vmov 0   ;;  %v2266_v6 = vld [vmem:[#allocation8] sm:$0xff] }
  0xa3   : > { %14285 = vset.pattern.permute.xlu1 %v19875_v1  ;;  %14284 = vset.pattern.permute.xlu0 %v19877_v2  ;;  %p341_p10 = scmp.lt.s32.totalorder %s14918_s1, 63  ;;  %v2270_v7 = vld [vmem:[#allocation8 + $0x20] sm:$0xff]  ;;  %v2267_v8 = vld [vmem:[#allocation8 + $0x8] sm:$0xff]  ;;  %vm12274_vm0 = vcmask 130112   ;;  %vm12281_vm1 = vcmask 195712   ;;  %vm12288_vm2 = vcmask 261312   ;;  %s19818_s17 = scalar_lea.hbm %s19869_s7, %s14918_s1 }
  0xa4   : > { %v12616_v10 = vcombine.high %v2266_v6, %v2270_v7  ;;  %v2271_v11 = vld [vmem:[#allocation8 + $0x28] sm:$0xff]  ;;  %v2274_v12 = vld [vmem:[#allocation8 + $0x40] sm:$0xff]  ;;  %v12615_v14 = vcombine.low %v2266_v6, %v2270_v7  ;;  %vm12295_vm3 = vcmask 326912   ;;  %vm12302_vm4 = vcmask 392512   ;;  %s337_s6 = sand.u32 1, %s14668_s27   ;;  %p21070_p3 = scmp.ne.s32.totalorder %s20420_s12, 0 }
  0xa5   : > { %s342_s2 = scalar_select %p341_p10, %s14918_s1, 63  ;;  %v12618_v13 = vcombine.high %v2267_v8, %v2271_v11  ;;  %v12617_v15 = vcombine.low %v2267_v8, %v2271_v11  ;;  %v2278_v16 = vld [vmem:[#allocation8 + $0x60] sm:$0xff]  ;;  %v2275_v17 = vld [vmem:[#allocation8 + $0x48] sm:$0xff]  ;;  %vm12309_vm5 = vcmask 458112   ;;  %vm12316_vm6 = vcmask 523712  }
  0xa6   : > { %v2279_v18 = vld [vmem:[#allocation8 + $0x68] sm:$0xff]  ;;  %5379 = vmatprep.subr.bf16.mxu0 %v12616_v10  ;;  %v12624_v19 = vcombine.high %v2274_v12, %v2278_v16  ;;  %v2282_v21 = vld [vmem:[#allocation8 + $0x80] sm:$0xff]  ;;  %v12623_v25 = vcombine.low %v2274_v12, %v2278_v16  ;;  %vm12323_vm7 = vcmask 589312   ;;  %vm12330_vm8 = vcmask 654912   ;;  %s12612_s24 = sshll.u32 %s337_s6, 1  ;;  %s12475_s18 = scalar_lea.sflag [#allocation5], %s337_s6 }
  0xa7   : > { %s12614_s14 = sshll.u32 %s342_s2, 3  ;;  %v12626_v20 = vcombine.high %v2275_v17, %v2279_v18  ;;  %v2286_v22 = vld [vmem:[#allocation8 + $0xa0] sm:$0xff]  ;;  %6151 = vmatprep.subr.bf16.mxu1 %v12618_v13  ;;  %v2283_v23 = vld [vmem:[#allocation8 + $0x88] sm:$0xff]  ;;  %5380 = vmatpush1.bf16.msra.mxu0 %v12615_v14  ;;  %v12625_v26 = vcombine.low %v2275_v17, %v2279_v18  ;;  %vm12337_vm9 = vcmask 720512   ;;  %vm12344_vm10 = vcmask 786112   ;;  %s339_s25 = scalar_lea.vmem [#allocation12], %s12612_s24 }
  0xa8   : > { %s14927_s22 = scalar_lea.vmem %s19862_s0, %s12614_s14  ;;  %v2287_v24 = vld [vmem:[#allocation8 + $0xa8] sm:$0xff]  ;;  %6152 = vmatpush1.bf16.msra.mxu1 %v12617_v15  ;;  %5381 = vmatprep.subr.bf16.mxu0 %v12624_v19  ;;  %v12632_v27 = vcombine.high %v2282_v21, %v2286_v22  ;;  %v2290_v29 = vld [vmem:[#allocation8 + $0xc0] sm:$0xff]  ;;  %v12631_v34 = vcombine.low %v2282_v21, %v2286_v22  ;;  %vm12351_vm11 = vcmask 851712   ;;  %vm12358_vm12 = vcmask 917312   ;;  %s12489_s30 = sshll.u32 %s339_s25, 4  ;;  %s19820_s30 = int_to_ptr.vmem [resolvable:$true] %s12489_s30 }
  0xa9   : > { %v347_v3 = vld [vmem:[%s14927_s22] sm:$0xff]  ;;  %v348_v4 = vld [vmem:[%s14927_s22 + $0x8] sm:$0xff]  ;;  %v350_v5 = vld [vmem:[%s14927_s22 + $0x18] sm:$0xff]  ;;  %6153 = vmatprep.subr.bf16.mxu1 %v12626_v20  ;;  %v12634_v28 = vcombine.high %v2283_v23, %v2287_v24  ;;  %v12633_v35 = vcombine.low %v2283_v23, %v2287_v24  ;;  %vm12365_vm13 = vcmask 982912   ;;  %vm12372_vm14 = vcmask 1048512   ;;  %s14602_s21 = scalar_lea.vmem %s19820_s30, 32 }
  0xaa   : > { %874 = vperm.xlu1 %14285, %v347_v3   ;;  %385 = vperm.xlu0 %14284, %v347_v3   ;;  %v349_v9 = vld [vmem:[%s14927_s22 + $0x10] sm:$0xff]  ;;  %v2294_v30 = vld [vmem:[#allocation8 + $0xe0] sm:$0xff]  ;;  %v2291_v31 = vld [vmem:[#allocation8 + $0xc8] sm:$0xff]  ;;  %p14603_p2 = scmp.ne.s32.totalorder %s19820_s30, %s14602_s21  ;;  %s14688_s23 = smov [#allocation12]  }
  0xab   : > { %v2295_v32 = vld [vmem:[#allocation8 + $0xe8] sm:$0xff]  ;;  %v353_v33 = vld [vmem:[%s14927_s22 + $0x30] sm:$0xff]  ;;  %5382 = vmatpush1.bf16.msra.mxu0 %v12623_v25  ;;  %v12640_v37 = vcombine.high %v2290_v29, %v2294_v30  ;;  %v2298_v39 = vld [vmem:[#allocation8 + $0x100] sm:$0xff]  ;;  %v12639_v41 = vcombine.low %v2290_v29, %v2294_v30  ;;  %s14606_s16 = sshll.u32 %s14688_s23, 4  ;;  %s14607_s16 = int_to_ptr.vmem [resolvable:$false] %s14606_s16 }
  0xac   : > { %6154 = vmatpush1.bf16.msra.mxu1 %v12625_v26  ;;  %5383 = vmatprep.subr.bf16.mxu0 %v12632_v27  ;;  %v351_v36 = vld [vmem:[%s14927_s22 + $0x20] sm:$0xff]  ;;  %v12642_v38 = vcombine.high %v2291_v31, %v2295_v32  ;;  %v352_v44 = vld [vmem:[%s14927_s22 + $0x28] sm:$0xff]  ;;  %v12641_v45 = vcombine.low %v2291_v31, %v2295_v32  ;;  %v354_v7 = vld [vmem:[%s14927_s22 + $0x38] sm:$0xff]  ;;  %p14604_p4 = pnand %p14603_p2, %p21070_p3  ;;  %s14608_s20 = scalar_lea.vmem %s14607_s16, 64 }
  0xad   : > { %6155 = vmatprep.subr.bf16.mxu1 %v12634_v28  ;;  %v2302_v40 = vld [vmem:[#allocation8 + $0x120] sm:$0xff]  ;;  %v2299_v42 = vld [vmem:[#allocation8 + $0x108] sm:$0xff]  ;;  %v361_v26 = vld [vmem:[%s14927_s22 + $0x70] sm:$0xff]  ;;  %p14609_p8 = scmp.lt.s32.totalorder %s19820_s30, %s14607_s16  ;;  %p14610_p11 = scmp.lt.s32.totalorder %s14608_s20, %s14602_s21 }
  0xae   : > { %878 = vperm.xlu1 %14285, %v348_v4   ;;  %390 = vperm.xlu0 %14284, %v348_v4   ;;  %v2303_v43 = vld [vmem:[#allocation8 + $0x128] sm:$0xff]  ;;  %v12648_v46 = vcombine.high %v2298_v39, %v2302_v40  ;;  %v2306_v47 = vld [vmem:[#allocation8 + $0x140] sm:$0xff]  ;;  %v12647_v52 = vcombine.low %v2298_v39, %v2302_v40  ;;  %p14605_p7 = pneg %p14604_p4 }
  0xaf   : > { %5384 = vmatpush1.bf16.msra.mxu0 %v12631_v34  ;;  %v2310_v48 = vld [vmem:[#allocation8 + $0x160] sm:$0xff]  ;;  %v12650_v49 = vcombine.high %v2299_v42, %v2303_v43  ;;  %v2307_v50 = vld [vmem:[#allocation8 + $0x148] sm:$0xff]  ;;  %v12649_v53 = vcombine.low %v2299_v42, %v2303_v43  ;;  %p14611_p13 = por %p14610_p11, %p14609_p8 }
  0xb0   : > { %6156 = vmatpush1.bf16.msra.mxu1 %v12633_v35  ;;  %5385 = vmatprep.subr.bf16.mxu0 %v12640_v37  ;;  %v2311_v51 = vld [vmem:[#allocation8 + $0x168] sm:$0xff]  ;;  %v12656_v54 = vcombine.high %v2306_v47, %v2310_v48  ;;  %v2314_v56 = vld [vmem:[#allocation8 + $0x180] sm:$0xff]  ;;  %v12655_v60 = vcombine.low %v2306_v47, %v2310_v48 }
  0xb1   : > { %6157 = vmatprep.subr.bf16.mxu1 %v12642_v38  ;;  %v12658_v55 = vcombine.high %v2307_v50, %v2311_v51  ;;  %v2318_v57 = vld [vmem:[#allocation8 + $0x1a0] sm:$0xff]  ;;  %v2315_v58 = vld [vmem:[#allocation8 + $0x188] sm:$0xff]  ;;  %v12657_v62 = vcombine.low %v2307_v50, %v2311_v51  ;;  %p14612_p1 = pnand %p14611_p13, %p14605_p7 }
  0xb2   : > { %14286 = vset.pattern.permute.xlu1 %v19877_v2  ;;  %395 = vperm.xlu0 %14284, %v349_v9   ;;  %v2319_v59 = vld [vmem:[#allocation8 + $0x1a8] sm:$0xff]  ;;  %v12664_v63 = vcombine.high %v2314_v56, %v2318_v57  ;;  %v2322_v3 = vld [vmem:[#allocation8 + $0x1c0] sm:$0xff]  ;;  %v12663_v8 = vcombine.low %v2314_v56, %v2318_v57 }
  0xb3   : > { %400 = vperm.xlu1 %14286, %v350_v5   ;;  %5386 = vmatpush1.bf16.msra.mxu0 %v12639_v41  ;;  %v14943_v61 = vld [vmem:[%s14927_s22 + $0x48] sm:$0xff]  ;;  %v12666_v0 = vcombine.high %v2315_v58, %v2319_v59  ;;  %v2326_v4 = vld [vmem:[#allocation8 + $0x1e0] sm:$0xff]  ;;  %v12665_v10 = vcombine.low %v2315_v58, %v2319_v59 }
  0xb4   : > { %6158 = vmatpush1.bf16.msra.mxu1 %v12641_v45  ;;  %5387 = vmatprep.subr.bf16.mxu0 %v12648_v46  ;;  %v2327_v6 = vld [vmem:[#allocation8 + $0x1e8] sm:$0xff]  ;;  %v12672_v11 = vcombine.high %v2322_v3, %v2326_v4  ;;  %v2330_v13 = vld [vmem:[#allocation8 + $0x200] sm:$0xff]  ;;  %v12671_v17 = vcombine.low %v2322_v3, %v2326_v4 }
  0xb5   : > { %6159 = vmatprep.subr.bf16.mxu1 %v12650_v49  ;;  %v2334_v14 = vld [vmem:[#allocation8 + $0x220] sm:$0xff]  ;;  %v2331_v15 = vld [vmem:[#allocation8 + $0x208] sm:$0xff] }
  0xb6   : > { %14287 = vset.pattern.permute.xlu0 %v19875_v1  ;;  %v2335_v16 = vld [vmem:[#allocation8 + $0x228] sm:$0xff]  ;;  %v12680_v19 = vcombine.high %v2330_v13, %v2334_v14  ;;  %v2338_v21 = vld [vmem:[#allocation8 + $0x240] sm:$0xff]  ;;  %v12679_v27 = vcombine.low %v2330_v13, %v2334_v14 }
  0xb7   : > { %14288 = vset.pattern.permute.xlu1 %v19875_v1  ;;  %882 = vperm.xlu0 %14287, %v349_v9   ;;  %v357_v9 = vld [vmem:[%s14927_s22 + $0x50] sm:$0xff]  ;;  %v12682_v20 = vcombine.high %v2331_v15, %v2335_v16  ;;  %v2342_v22 = vld [vmem:[#allocation8 + $0x260] sm:$0xff]  ;;  %v2339_v23 = vld [vmem:[#allocation8 + $0x248] sm:$0xff]  ;;  %v12681_v28 = vcombine.low %v2331_v15, %v2335_v16 }
  0xb8   : > { %886 = vperm.xlu1 %14288, %v350_v5   ;;  %5388 = vmatpush1.bf16.msra.mxu0 %v12647_v52  ;;  %v2323_v5 = vld [vmem:[#allocation8 + $0x1c8] sm:$0xff]  ;;  %v12688_v29 = vcombine.high %v2338_v21, %v2342_v22  ;;  %v2346_v31 = vld [vmem:[#allocation8 + $0x280] sm:$0xff] }
  0xb9   : > { %6160 = vmatpush1.bf16.msra.mxu1 %v12649_v53  ;;  %5389 = vmatprep.subr.bf16.mxu0 %v12656_v54  ;;  %v12674_v12 = vcombine.high %v2323_v5, %v2327_v6  ;;  %v12673_v18 = vcombine.low %v2323_v5, %v2327_v6  ;;  %v2343_v24 = vld [vmem:[#allocation8 + $0x268] sm:$0xff]  ;;  %v2350_v32 = vld [vmem:[#allocation8 + $0x2a0] sm:$0xff] }
  0xba   : > { %6161 = vmatprep.subr.bf16.mxu1 %v12658_v55  ;;  %v355_v25 = vld [vmem:[%s14927_s22 + $0x40] sm:$0xff]  ;;  %v12690_v30 = vcombine.high %v2339_v23, %v2343_v24  ;;  %v14955_v35 = vld [vmem:[%s14927_s22 + $0x68] sm:$0xff]  ;;  %v12689_v37 = vcombine.low %v2339_v23, %v2343_v24  ;;  %v12696_v38 = vcombine.high %v2346_v31, %v2350_v32  ;;  %v358_v54 = vld [vmem:[%s14927_s22 + $0x58] sm:$0xff] }
  0xbb   : > { %898 = vperm.xlu0 %14287, %v353_v33   ;;  %v2351_v34 = vld [vmem:[#allocation8 + $0x2a8] sm:$0xff]  ;;  %v2354_v40 = vld [vmem:[#allocation8 + $0x2c0] sm:$0xff] }
  0xbc   : > { %14289 = vset.pattern.permute.xlu1 %v19877_v2  ;;  %5390 = vmatpush1.bf16.msra.mxu0 %v12655_v60  ;;  %v2358_v41 = vld [vmem:[#allocation8 + $0x2e0] sm:$0xff]  ;;  %v2355_v42 = vld [vmem:[#allocation8 + $0x2c8] sm:$0xff] }
  0xbd   : > { %405 = vperm.xlu1 %14289, %v351_v36   ;;  %6162 = vmatpush1.bf16.msra.mxu1 %v12657_v62  ;;  %v2359_v43 = vld [vmem:[#allocation8 + $0x2e8] sm:$0xff]  ;;  %v12704_v46 = vcombine.high %v2354_v40, %v2358_v41  ;;  %v2362_v48 = vld [vmem:[#allocation8 + $0x300] sm:$0xff]  ;;  %v12703_v53 = vcombine.low %v2354_v40, %v2358_v41  ;;  %v365_v62 = vld [vmem:[%s14927_s22 + $0x90] sm:$0xff]  ;;  %v19873_v41 = vlaneseq }
  0xbe   : > { %5391 = vmatprep.subr.bf16.mxu0 %v12664_v63  ;;  %6163 = vmatprep.subr.bf16.mxu1 %v12666_v0  ;;  %v12706_v47 = vcombine.high %v2355_v42, %v2359_v43  ;;  %v2366_v49 = vld [vmem:[#allocation8 + $0x320] sm:$0xff]  ;;  %v2363_v50 = vld [vmem:[#allocation8 + $0x308] sm:$0xff]  ;;  %v12705_v55 = vcombine.low %v2355_v42, %v2359_v43 }
  0xbf   : > { %14292 = vset.pattern.permute.xlu0 %v19877_v2  ;;  %v2367_v51 = vld [vmem:[#allocation8 + $0x328] sm:$0xff]  ;;  %v12712_v56 = vcombine.high %v2362_v48, %v2366_v49  ;;  %v2370_v58 = vld [vmem:[#allocation8 + $0x340] sm:$0xff]  ;;  %v12711_v63 = vcombine.low %v2362_v48, %v2366_v49  ;;  %v15022_v43 = vshrl.u32 %v19873_v41, 7 }
  0xc0   : > { %410 = vperm.xlu0 %14292, %v352_v44   ;;  %5392 = vmatpush1.bf16.msra.mxu0 %v12663_v8  ;;  %v14962_v52 = vld [vmem:[%s14927_s22 + $0x88] sm:$0xff]  ;;  %v12714_v57 = vcombine.high %v2363_v50, %v2367_v51  ;;  %v2374_v59 = vld [vmem:[#allocation8 + $0x360] sm:$0xff]  ;;  %v12713_v0 = vcombine.low %v2363_v50, %v2367_v51 }
  0xc1   : > { %14290 = vset.pattern.permute.xlu1 %v19875_v1  ;;  %6164 = vmatpush1.bf16.msra.mxu1 %v12665_v10  ;;  %v2371_v60 = vld [vmem:[#allocation8 + $0x348] sm:$0xff]  ;;  %v12720_v3 = vcombine.high %v2370_v58, %v2374_v59  ;;  %v2378_v5 = vld [vmem:[#allocation8 + $0x380] sm:$0xff]  ;;  %20434 = vst [vmem:[#allocation17_spill] sm:$0xff] %v15022_v43 }
  0xc2   : > { %890 = vperm.xlu1 %14290, %v351_v36   ;;  %5393 = vmatprep.subr.bf16.mxu0 %v12672_v11  ;;  %v12687_v36 = vcombine.low %v2338_v21, %v2342_v22  ;;  %v2382_v6 = vld [vmem:[#allocation8 + $0x3a0] sm:$0xff]  ;;  %v2379_v8 = vld [vmem:[#allocation8 + $0x388] sm:$0xff] }
  0xc3   : > { %6165 = vmatprep.subr.bf16.mxu1 %v12674_v12  ;;  %v12728_v11 = vcombine.high %v2378_v5, %v2382_v6  ;;  %v2386_v12 = vld [vmem:[#allocation8 + $0x3c0] sm:$0xff]  ;;  %v2387_v16 = vld [vmem:[#allocation8 + $0x3c8] sm:$0xff] }
  0xc4   : > { %415 = vperm.xlu0 %14292, %v353_v33   ;;  %5394 = vmatpush1.bf16.msra.mxu0 %v12671_v17  ;;  %v2347_v33 = vld [vmem:[#allocation8 + $0x288] sm:$0xff]  ;;  %v2390_v13 = vld [vmem:[#allocation8 + $0x3e0] sm:$0xff] }
  0xc5   : > { %6166 = vmatpush1.bf16.msra.mxu1 %v12673_v18  ;;  %5395 = vmatprep.subr.bf16.mxu0 %v12680_v19  ;;  %v12698_v39 = vcombine.high %v2347_v33, %v2351_v34  ;;  %v12697_v45 = vcombine.low %v2347_v33, %v2351_v34  ;;  %v359_v14 = vld [vmem:[%s14927_s22 + $0x60] sm:$0xff]  ;;  %v12727_v18 = vcombine.low %v2378_v5, %v2382_v6  ;;  %v369_v19 = vld [vmem:[%s14927_s22 + $0xb0] sm:$0xff]  ;;  %v362_v34 = vld [vmem:[%s14927_s22 + $0x78] sm:$0xff] }
  0xc6   : > { %894 = vperm.xlu1 %14290, %v352_v44   ;;  %6167 = vmatprep.subr.bf16.mxu1 %v12682_v20  ;;  %v12695_v44 = vcombine.low %v2346_v31, %v2350_v32  ;;  %v2391_v17 = vld [vmem:[#allocation8 + $0x3e8] sm:$0xff]  ;;  %v12736_v21 = vcombine.high %v2386_v12, %v2390_v13  ;;  %v12735_v23 = vcombine.low %v2386_v12, %v2390_v13  ;;  %v366_v40 = vld [vmem:[%s14927_s22 + $0x98] sm:$0xff] }
  0xc7   : > { %v12738_v22 = vcombine.high %v2387_v16, %v2391_v17  ;;  %v12737_v24 = vcombine.low %v2387_v16, %v2391_v17  ;;  %v14989_v31 = vld [vmem:[#allocation8 + $0x428] sm:$0xff] }
  0xc8   : > { %430 = vperm.xlu0 %14292, %v14943_v61   ;;  %5396 = vmatpush1.bf16.msra.mxu0 %v12679_v27  ;;  %v14979_v27 = vld [vmem:[#allocation8 + $0x420] sm:$0xff]  ;;  %v380_v48 = vld [vmem:[#allocation3] sm:$0xff] }
  0xc9   : > { %6168 = vmatpush1.bf16.msra.mxu1 %v12681_v28  ;;  %5397 = vmatprep.subr.bf16.mxu0 %v12688_v29  ;;  %v367_v42 = vld [vmem:[%s14927_s22 + $0xa0] sm:$0xff] }
  0xca   : > { %14291 = vset.pattern.permute.xlu1 %v19877_v2  ;;  %6169 = vmatprep.subr.bf16.mxu1 %v12690_v30  ;;  %v14987_v30 = vld [vmem:[#allocation8 + $0x408] sm:$0xff] }
  0xcb   : > { %420 = vperm.xlu1 %14291, %v354_v7   ;;  %v12745_v32 = vcombine.low %v14987_v30, %v14989_v31  ;;  %v12746_v33 = vcombine.high %v14987_v30, %v14989_v31  ;;  %v374_v30 = vld [vmem:[%s14927_s22 + $0xd8] sm:$0xff] }
  0xcc   : > { %435 = vperm.xlu0 %14292, %v357_v9   ;;  %5398 = vmatpush1.bf16.msra.mxu0 %v12687_v36  ;;  %v14998_v36 = vld [vmem:[%s14927_s22 + $0xc8] sm:$0xff] }
  0xcd   : > { %6170 = vmatpush1.bf16.msra.mxu1 %v12689_v37  ;;  %5399 = vmatprep.subr.bf16.mxu0 %v12696_v38  ;;  %v373_v37 = vld [vmem:[%s14927_s22 + $0xd0] sm:$0xff]  ;;  %v15009_v38 = vld [vmem:[%s14927_s22 + $0xe8] sm:$0xff] }
  0xce   : > { %6171 = vmatprep.subr.bf16.mxu1 %v12698_v39  ;;  %v377_v39 = vld [vmem:[%s14927_s22 + $0xf0] sm:$0xff] }
  0xcf   : > { %14293 = vset.pattern.permute.xlu1 %v19875_v1 }
  0xd0   : > { %902 = vperm.xlu1 %14293, %v354_v7   ;;  %14297 = vset.pattern.permute.xlu0 %v19875_v1  ;;  %v12719_v7 = vcombine.low %v2370_v58, %v2374_v59 }
  0xd1   : > { %914 = vperm.xlu0 %14297, %v357_v9   ;;  %5400 = vmatpush1.bf16.msra.mxu0 %v12695_v44  ;;  %v2383_v9 = vld [vmem:[#allocation8 + $0x3a8] sm:$0xff]  ;;  %v15026_v44 = vsub.s32 0, %v15022_v43 }
  0xd2   : > { %6172 = vmatpush1.bf16.msra.mxu1 %v12697_v45  ;;  %5401 = vmatprep.subr.bf16.mxu0 %v12704_v46  ;;  %v12730_v15 = vcombine.high %v2379_v8, %v2383_v9  ;;  %v12729_v20 = vcombine.low %v2379_v8, %v2383_v9  ;;  %v15029_v45 = vsub.s32 2, %v15022_v43  ;;  %v15032_v46 = vsub.s32 1, %v15022_v43 }
  0xd3   : > { %6173 = vmatprep.subr.bf16.mxu1 %v12706_v47  ;;  %20435 = vst [vmem:[#allocation18_spill] sm:$0xff] %v15026_v44  ;;  %v15035_v47 = vsub.s32 3, %v15022_v43  ;;  %v548_v51 = vrot.slane %v380_v48, %v15026_v44 }
  0xd4   : > { %14294 = vset.pattern.permute.xlu1 %v19877_v2  ;;  %20436 = vst [vmem:[#allocation19_spill] sm:$0xff] %v15029_v45  ;;  %20437 = vst [vmem:[#allocation20_spill] sm:$0xff] %v15032_v46  ;;  %v552_v49 = vrot.slane %v380_v48, %v15029_v45 }
  0xd5   : > { %425 = vperm.xlu1 %14294, %v355_v25   ;;  %930 = vperm.xlu0 %14297, %v361_v26   ;;  %20438 = vst [vmem:[#allocation21_spill] sm:$0xff] %v15035_v47  ;;  %v1008_v50 = vrot.slane %v380_v48, %v15035_v47 }
  0xd6   : > { %5402 = vmatpush1.bf16.msra.mxu0 %v12703_v53  ;;  %6174 = vmatpush1.bf16.msra.mxu1 %v12705_v55  ;;  %v15044_v53 = vrot.slane %v552_v49, %v15026_v44  ;;  %v15050_v55 = vrot.slane %v548_v51, %v15026_v44 }
  0xd7   : > { %5403 = vmatprep.subr.bf16.mxu0 %v12712_v56  ;;  %6175 = vmatprep.subr.bf16.mxu1 %v12714_v57  ;;  %v370_v57 = vld [vmem:[%s14927_s22 + $0xb8] sm:$0xff] }
  0xd9   : > { %14295 = vset.pattern.permute.xlu1 %v19875_v1  ;;  %14302 = vset.pattern.permute.xlu0 %v19877_v2 }
  0xda   : > { %906 = vperm.xlu1 %14295, %v355_v25   ;;  %450 = vperm.xlu0 %14302, %v14955_v35   ;;  %v14975_v25 = vld [vmem:[%s14927_s22 + $0xa8] sm:$0xff] }
  0xdb   : > { %5404 = vmatpush1.bf16.msra.mxu0 %v12711_v63  ;;  %6176 = vmatpush1.bf16.msra.mxu1 %v12713_v0 }
  0xdc   : > { %5405 = vmatprep.subr.bf16.mxu0 %v12720_v3 }
  0xde   : > { %910 = vperm.xlu1 %14295, %v14943_v61   ;;  %455 = vperm.xlu0 %14302, %v361_v26   ;;  %v2375_v61 = vld [vmem:[#allocation8 + $0x368] sm:$0xff]  ;;  %v14977_v26 = vld [vmem:[#allocation8 + $0x400] sm:$0xff] }
  0xdf   : > { %v12722_v4 = vcombine.high %v2371_v60, %v2375_v61  ;;  %v12721_v10 = vcombine.low %v2371_v60, %v2375_v61  ;;  %5406 = vmatpush1.bf16.msra.mxu0 %v12719_v7  ;;  %v12743_v28 = vcombine.low %v14977_v26, %v14979_v27  ;;  %v12744_v29 = vcombine.high %v14977_v26, %v14979_v27  ;;  %v382_v60 = vld [vmem:[#allocation6] sm:$0xff] }
  0xe0   : > { %5407 = vmatprep.subr.bf16.mxu0 %v12728_v11  ;;  %v15077_v8 = vrot.slane %v382_v60, %v15026_v44 }
  0xe1   : > { %6177 = vmatprep.subr.bf16.mxu1 %v12722_v4  ;;  %v15070_v4 = vrot.slane %v382_v60, %v15032_v46 }
  0xe2   : > { %14296 = vset.pattern.permute.xlu1 %v19877_v2  ;;  %470 = vperm.xlu0 %14302, %v14962_v52  }
  0xe3   : > { %440 = vperm.xlu1 %14296, %v358_v54   ;;  %6178 = vmatpush1.bf16.msra.mxu1 %v12721_v10 }
  0xe4   : > { %6179 = vmatprep.subr.bf16.mxu1 %v12730_v15  ;;  %5408 = vmatpush1.bf16.msra.mxu0 %v12727_v18 }
  0xe5   : > { %5409 = vmatprep.subr.bf16.mxu0 %v12736_v21 }
  0xe6   : > { %475 = vperm.xlu0 %14302, %v365_v62  }
  0xe7   : > { %14298 = vset.pattern.permute.xlu1 %v19875_v1  ;;  %6180 = vmatpush1.bf16.msra.mxu1 %v12729_v20 }
  0xe8   : > { %918 = vperm.xlu1 %14298, %v358_v54   ;;  %6181 = vmatprep.subr.bf16.mxu1 %v12738_v22  ;;  %v15047_v54 = vrot.slane %v1008_v50, %v15032_v46  ;;  %v2402_v22 = vld [vmem:[#allocation8 + $0x440] sm:$0xff] }
  0xe9   : > { %5410 = vmatpush1.bf16.msra.mxu0 %v12735_v23  ;;  %v2406_v23 = vld [vmem:[#allocation8 + $0x460] sm:$0xff] }
  0xea   : > { %14307 = vset.pattern.permute.xlu0 %v19875_v1  ;;  %5572 = vmatprep.subr.bf16.mxu0 %v12744_v29 }
  0xeb   : > { %946 = vperm.xlu0 %14307, %v365_v62   ;;  %6182 = vmatpush1.bf16.msra.mxu1 %v12737_v24 }
  0xec   : > { %14299 = vset.pattern.permute.xlu1 %v19877_v2  ;;  %6344 = vmatprep.subr.bf16.mxu1 %v12746_v33 }
  0xed   : > { %445 = vperm.xlu1 %14299, %v359_v14  }
  0xef   : > { %962 = vperm.xlu0 %14307, %v369_v19  }
  0xf1   : > { %14300 = vset.pattern.permute.xlu1 %v19875_v1 }
  0xf2   : > { %922 = vperm.xlu1 %14300, %v359_v14  }
  0xf3   : > { %14312 = vset.pattern.permute.xlu0 %v19877_v2 }
  0xf4   : > { %490 = vperm.xlu0 %14312, %v14975_v25  }
  0xf6   : > { %926 = vperm.xlu1 %14300, %v14955_v35   ;;  %v363_v35 = vld [vmem:[%s14927_s22 + $0x80] sm:$0xff] }
  0xf8   : > { %495 = vperm.xlu0 %14312, %v369_v19   ;;  %v371_v19 = vld [vmem:[%s14927_s22 + $0xc0] sm:$0xff] }
  0xfa   : > { %14301 = vset.pattern.permute.xlu1 %v19877_v2 }
  0xfb   : > { %460 = vperm.xlu1 %14301, %v362_v34  }
  0xfc   : > { %510 = vperm.xlu0 %14312, %v14998_v36  }
  0xff   : > { %14303 = vset.pattern.permute.xlu1 %v19875_v1 }
 0x100   : > { %934 = vperm.xlu1 %14303, %v362_v34   ;;  %14317 = vset.pattern.permute.xlu0 %v19875_v1 }
 0x101   : > { %978 = vperm.xlu0 %14317, %v373_v37  }
 0x104   : > { %14304 = vset.pattern.permute.xlu1 %v19877_v2 }
 0x105   : > { %465 = vperm.xlu1 %14304, %v363_v35   ;;  %14318 = vset.pattern.permute.xlu0 %v19877_v2 }
 0x106   : > { %515 = vperm.xlu0 %14318, %v373_v37  }
 0x109   : > { %14305 = vset.pattern.permute.xlu1 %v19875_v1 }
 0x10a   : > { %938 = vperm.xlu1 %14305, %v363_v35   ;;  %530 = vperm.xlu0 %14318, %v15009_v38  }
 0x10e   : > { %942 = vperm.xlu1 %14305, %v14962_v52   ;;  %535 = vperm.xlu0 %14318, %v377_v39   ;;  %v1004_v52 = vrot.slane %v380_v48, %v15032_v46  ;;  %v2407_v48 = vld [vmem:[#allocation8 + $0x468] sm:$0xff] }
 0x110   : > { %v15053_v56 = vrot.slane %v1004_v52, %v15032_v46 }
 0x112   : > { %14306 = vset.pattern.permute.xlu1 %v19877_v2  ;;  %14323 = vset.pattern.permute.xlu0 %v19875_v1 }
 0x113   : > { %480 = vperm.xlu1 %14306, %v366_v40   ;;  %994 = vperm.xlu0 %14323, %v377_v39  }
 0x117   : > { %14308 = vset.pattern.permute.xlu1 %v19875_v1  ;;  %14325 = vset.pattern.permute.xlu0 %v19877_v2 }
 0x118   : > { %950 = vperm.xlu1 %14308, %v366_v40   ;;  %v12752_v40 = vcombine.high %v2402_v22, %v2406_v23 }
 0x11c   : > { %14309 = vset.pattern.permute.xlu1 %v19877_v2 }
 0x11d   : > { %485 = vperm.xlu1 %14309, %v367_v42  }
 0x121   : > { %14310 = vset.pattern.permute.xlu1 %v19875_v1 }
 0x122   : > { %954 = vperm.xlu1 %14310, %v367_v42   ;;  %v2403_v42 = vld [vmem:[#allocation8 + $0x448] sm:$0xff] }
 0x126   : > { %958 = vperm.xlu1 %14310, %v14975_v25  }
 0x129   : > { %v15056_v58 = vpop.permute.xlu1 %874  ;;  %v15058_v59 = vpop.permute.xlu0 %385 }
 0x12a   : > { %20439 = vst [vmem:[#allocation22_spill] sm:$0xff] %v15056_v58  ;;  %20440 = vst [vmem:[#allocation23_spill] sm:$0xff] %v15058_v59  ;;  %14311 = vset.pattern.permute.xlu1 %v19877_v2  ;;  %v618_v61 = vmul.f32 %v15044_v53, %v15058_v59  ;;  %v1074_v62 = vmul.f32 %v15047_v54, %v15056_v58  ;;  %v617_v63 = vmul.f32 %v15050_v55, %v15058_v59 }
 0x12b   : > { %v1073_v0 = vmul.f32 %v15053_v56, %v15056_v58  ;;  %500 = vperm.xlu1 %14311, %v370_v57  }
 0x12c   : > { %v1330_v3 = vadd.f32 %v1074_v62, %v618_v61 }
 0x12d   : > { %v15072_v5 = vpop.permute.xlu1 %878  ;;  %v15074_v6 = vpop.permute.xlu0 %390  ;;  %v1329_v7 = vadd.f32 %v1073_v0, %v617_v63 }
 0x12e   : > { %20441 = vst [vmem:[#allocation24_spill] sm:$0xff] %v15072_v5  ;;  %20442 = vst [vmem:[#allocation25_spill] sm:$0xff] %v15074_v6  ;;  %v626_v9 = vmul.f32 %v15044_v53, %v15074_v6  ;;  %v1082_v10 = vmul.f32 %v15047_v54, %v15072_v5  ;;  %v625_v11 = vmul.f32 %v15050_v55, %v15074_v6 }
 0x12f   : > { %14313 = vset.pattern.permute.xlu1 %v19875_v1  ;;  %v1081_v12 = vmul.f32 %v15053_v56, %v15072_v5  ;;  %v1627_v14 = vadd.f32 %v15070_v4, %v1330_v3  ;;  %v1626_v17 = vadd.f32 %v15077_v8, %v1329_v7  ;;  %v12754_v3 = vcombine.high %v2403_v42, %v2407_v48  ;;  %v15126_v7 = vld [vmem:[#allocation8 + $0x480] sm:$0xff] }
 0x130   : > { %966 = vperm.xlu1 %14313, %v370_v57   ;;  %v1338_v13 = vadd.f32 %v1082_v10, %v626_v9 }
 0x131   : > { %v15089_v15 = vpop.permute.xlu0 %395  ;;  %v1337_v16 = vadd.f32 %v1081_v12, %v625_v11  ;;  %v1883_v24 = vmax.f32 %v1627_v14, 0.0  ;;  %v1882_v29 = vmax.f32 %v1626_v17, 0.0  ;;  %v2414_v12 = vld [vmem:[#allocation8 + $0x4a0] sm:$0xff]  ;;  %v2415_v14 = vld [vmem:[#allocation8 + $0x4a8] sm:$0xff] }
 0x132   : > { %20443 = vst [vmem:[#allocation26_spill] sm:$0xff] %v15089_v15  ;;  %v15092_v18 = vpop.permute.xlu1 %400  ;;  %v1635_v20 = vadd.f32 %v15070_v4, %v1338_v13  ;;  %v634_v34 = vmul.f32 %v15044_v53, %v15089_v15  ;;  %v633_v37 = vmul.f32 %v15050_v55, %v15089_v15  ;;  %v2411_v13 = vld [vmem:[#allocation8 + $0x488] sm:$0xff]  ;;  %v12760_v26 = vcombine.high %v15126_v7, %v2414_v12 }
 0x133   : > { %20444 = vst [vmem:[#allocation27_spill] sm:$0xff] %v15092_v18  ;;  %v1634_v21 = vadd.f32 %v15077_v8, %v1337_v16  ;;  %v642_v51 = vmul.f32 %v15044_v53, %v15092_v18  ;;  %v641_v61 = vmul.f32 %v15050_v55, %v15092_v18  ;;  %v12762_v27 = vcombine.high %v2411_v13, %v2415_v14 }
 0x134   : > { %14314 = vset.pattern.permute.xlu1 %v19877_v2  ;;  %v1891_v25 = vmax.f32 %v1635_v20, 0.0  ;;  %v12751_v20 = vcombine.low %v2402_v22, %v2406_v23  ;;  %v2418_v23 = vld [vmem:[#allocation8 + $0x4c0] sm:$0xff] }
 0x135   : > { %505 = vperm.xlu1 %14314, %v371_v19   ;;  %v1890_v33 = vmax.f32 %v1634_v21, 0.0 }
 0x136   : > { %v15102_v35 = vpop.permute.xlu0 %882  ;;  %v15104_v39 = vpack.c.bf16 %v1891_v25, %v1883_v24  ;;  %v12753_v25 = vcombine.low %v2403_v42, %v2407_v48  ;;  %v2419_v42 = vld [vmem:[#allocation8 + $0x4c8] sm:$0xff] }
 0x137   : > { %20445 = vst [vmem:[#allocation28_spill] sm:$0xff] %v15102_v35  ;;  %v15106_v49 = vpop.permute.xlu1 %886  ;;  %v15108_v50 = vpack.c.bf16 %v1890_v33, %v1882_v29  ;;  %v1090_v52 = vmul.f32 %v15047_v54, %v15102_v35  ;;  %v1089_v57 = vmul.f32 %v15053_v56, %v15102_v35  ;;  %v2423_v48 = vld [vmem:[#allocation8 + $0x4e8] sm:$0xff] }
 0x138   : > { %20446 = vst [vmem:[#allocation29_spill] sm:$0xff] %v15104_v39  ;;  %20447 = vst [vmem:[#allocation30_spill] sm:$0xff] %v15106_v49  ;;  %5411 = vmatprep.mubr.bf16.mxu0 %v15104_v39  ;;  %6183 = vmatprep.mubr.bf16.mxu1 %v15104_v39  ;;  %v1098_v60 = vmul.f32 %v15047_v54, %v15106_v49  ;;  %v1097_v62 = vmul.f32 %v15053_v56, %v15106_v49 }
 0x139   : > { %20448 = vst [vmem:[#allocation31_spill] sm:$0xff] %v15108_v50  ;;  %14315 = vset.pattern.permute.xlu1 %v19875_v1  ;;  %5412 = vmatmul.mubr.bf16.vlgmr.msra.gmra.mrb[0].mxu0 %v15108_v50  ;;  %v1346_v63 = vadd.f32 %v1090_v52, %v634_v34  ;;  %v1345_v0 = vadd.f32 %v1089_v57, %v633_v37  ;;  %v2422_v34 = vld [vmem:[#allocation8 + $0x4e0] sm:$0xff] }
 0x13a   : > { %6184 = vmatmul.mubr.bf16.vlgmr.msra.gmra.mrb[0].mxu1 %v15108_v50  ;;  %970 = vperm.xlu1 %14315, %v371_v19   ;;  %v15129_v9 = vpop.permute.xlu0 %898  ;;  %v1354_v10 = vadd.f32 %v1098_v60, %v642_v51  ;;  %v1353_v11 = vadd.f32 %v1097_v62, %v641_v61  ;;  %v12761_v52 = vcombine.low %v2411_v13, %v2415_v14 }
 0x13b   : > { %20449 = vst [vmem:[#allocation32_spill] sm:$0xff] %v15129_v9  ;;  %v1643_v16 = vadd.f32 %v15070_v4, %v1346_v63  ;;  %v1642_v17 = vadd.f32 %v15077_v8, %v1345_v0  ;;  %5573 = vmatpush1.bf16.msra.mxu0 %v12743_v28  ;;  %6345 = vmatpush1.bf16.msra.mxu1 %v12745_v32  ;;  %v15165_v63 = vld [vmem:[#allocation8 + $0x500] sm:$0xff] }
 0x13c   : > { %v15136_v21 = vpop.permute.xlu1 %405  ;;  %v1651_v19 = vadd.f32 %v15070_v4, %v1354_v10  ;;  %v1650_v24 = vadd.f32 %v15077_v8, %v1353_v11  ;;  %5574 = vmatprep.subr.bf16.mxu0 %v12752_v40  ;;  %6346 = vmatprep.subr.bf16.mxu1 %v12754_v3  ;;  %v12759_v40 = vcombine.low %v15126_v7, %v2414_v12  ;;  %v2430_v0 = vld [vmem:[#allocation8 + $0x520] sm:$0xff]  ;;  %v2427_v10 = vld [vmem:[#allocation8 + $0x508] sm:$0xff] }
 0x13d   : > { %20450 = vst [vmem:[#allocation33_spill] sm:$0xff] %v15136_v21  ;;  %v1899_v29 = vmax.f32 %v1643_v16, 0.0  ;;  %v1898_v33 = vmax.f32 %v1642_v17, 0.0  ;;  %v12768_v57 = vcombine.high %v2418_v23, %v2422_v34  ;;  %v649_v61 = vmul.f32 %v15050_v55, %v15136_v21  ;;  %v2431_v11 = vld [vmem:[#allocation8 + $0x528] sm:$0xff] }
 0x13e   : > { %974 = vperm.xlu1 %14315, %v14998_v36   ;;  %v1907_v28 = vmax.f32 %v1651_v19, 0.0  ;;  %v1906_v22 = vmax.f32 %v1650_v24, 0.0  ;;  %v650_v36 = vmul.f32 %v15044_v53, %v15136_v21  ;;  %v12770_v7 = vcombine.high %v2419_v42, %v2423_v48 }
 0x13f   : > { %5575 = vmatpush1.bf16.msra.mxu0 %v12751_v20  ;;  %v15150_v32 = vpop.permute.xlu0 %410  ;;  %6347 = vmatpush1.bf16.msra.mxu1 %v12753_v25  ;;  %v12767_v20 = vcombine.low %v2418_v23, %v2422_v34  ;;  %v12769_v19 = vcombine.low %v2419_v42, %v2423_v48  ;;  %v12776_v24 = vcombine.high %v15165_v63, %v2430_v0  ;;  %v15192_v23 = vld [vmem:[#allocation8 + $0x540] sm:$0xff] }
 0x140   : > { %v15145_v37 = vpack.c.bf16 %v1907_v28, %v1899_v29  ;;  %v15148_v31 = vpack.c.bf16 %v1906_v22, %v1898_v33  ;;  %20453 = vst [vmem:[#allocation36_spill] sm:$0xff] %v15150_v32  ;;  %5576 = vmatprep.subr.bf16.mxu0 %v12760_v26  ;;  %6348 = vmatprep.subr.bf16.mxu1 %v12762_v27  ;;  %v15194_v34 = vld [vmem:[#allocation8 + $0x560] sm:$0xff] }
 0x141   : > { %v15153_v51 = vpop.permute.xlu1 %890  ;;  %v658_v3 = vmul.f32 %v15044_v53, %v15150_v32  ;;  %v657_v14 = vmul.f32 %v15050_v55, %v15150_v32  ;;  %v1122_v33 = vmul.f32 %v15047_v54, %v15129_v9  ;;  %v12778_v26 = vcombine.high %v2427_v10, %v2431_v11 }
 0x142   : > { %20451 = vst [vmem:[#allocation34_spill] sm:$0xff] %v15145_v37  ;;  %20452 = vst [vmem:[#allocation35_spill] sm:$0xff] %v15148_v31  ;;  %14316 = vset.pattern.permute.xlu1 %v19877_v2  ;;  %5421 = vmatprep.mubr.bf16.mxu0 %v15145_v37  ;;  %v1106_v60 = vmul.f32 %v15047_v54, %v15153_v51  ;;  %v1105_v62 = vmul.f32 %v15053_v56, %v15153_v51 }
 0x143   : > { %20454 = vst [vmem:[#allocation37_spill] sm:$0xff] %v15153_v51  ;;  %6193 = vmatprep.mubr.bf16.mxu1 %v15145_v37  ;;  %520 = vperm.xlu1 %14316, %v374_v30   ;;  %v15172_v12 = vpop.permute.xlu0 %415  ;;  %v1121_v22 = vmul.f32 %v15053_v56, %v15129_v9  ;;  %v2479_v37 = vld [vmem:[#allocation8 + $0x6a8] sm:$0xff] }
 0x144   : > { %5422 = vmatmul.mubr.bf16.gmra.mrb[4].mxu0 %v15148_v31  ;;  %6194 = vmatmul.mubr.bf16.gmra.mrb[4].mxu1 %v15148_v31  ;;  %20455 = vst [vmem:[#allocation38_spill] sm:$0xff] %v15172_v12  ;;  %v1362_v13 = vadd.f32 %v1106_v60, %v650_v36  ;;  %v1361_v16 = vadd.f32 %v1105_v62, %v649_v61 }
 0x145   : > { %v15176_v17 = vpop.permute.xlu1 %894  ;;  %5577 = vmatpush1.bf16.msra.mxu0 %v12759_v40  ;;  %6349 = vmatpush1.bf16.msra.mxu1 %v12761_v52  ;;  %v666_v27 = vmul.f32 %v15044_v53, %v15172_v12  ;;  %v665_v28 = vmul.f32 %v15050_v55, %v15172_v12  ;;  %v2435_v52 = vld [vmem:[#allocation8 + $0x548] sm:$0xff]  ;;  %v12775_v60 = vcombine.low %v15165_v63, %v2430_v0 }
 0x146   : > { %20456 = vst [vmem:[#allocation39_spill] sm:$0xff] %v15176_v17  ;;  %v1114_v25 = vmul.f32 %v15047_v54, %v15176_v17  ;;  %v1113_v29 = vmul.f32 %v15053_v56, %v15176_v17  ;;  %5578 = vmatprep.subr.bf16.mxu0 %v12768_v57  ;;  %6350 = vmatprep.subr.bf16.mxu1 %v12770_v7  ;;  %v2439_v57 = vld [vmem:[#allocation8 + $0x568] sm:$0xff] }
 0x147   : > { %14319 = vset.pattern.permute.xlu1 %v19875_v1  ;;  %v1659_v42 = vadd.f32 %v15070_v4, %v1362_v13  ;;  %v1658_v36 = vadd.f32 %v15077_v8, %v1361_v16  ;;  %v12777_v61 = vcombine.low %v2427_v10, %v2431_v11  ;;  %v375_v7 = vld [vmem:[%s14927_s22 + $0xe0] sm:$0xff]  ;;  %v1377_v13 = vadd.f32 %v1121_v22, %v665_v28 }
 0x148   : > { %982 = vperm.xlu1 %14319, %v374_v30   ;;  %v1370_v40 = vadd.f32 %v1114_v25, %v658_v3  ;;  %v1369_v48 = vadd.f32 %v1113_v29, %v657_v14  ;;  %v12784_v30 = vcombine.high %v15192_v23, %v15194_v34  ;;  %v1378_v3 = vadd.f32 %v1122_v33, %v666_v27  ;;  %v2442_v16 = vld [vmem:[#allocation8 + $0x580] sm:$0xff]  ;;  %v2443_v25 = vld [vmem:[#allocation8 + $0x588] sm:$0xff] }
 0x149   : > { %5579 = vmatpush1.bf16.msra.mxu0 %v12767_v20  ;;  %6351 = vmatpush1.bf16.msra.mxu1 %v12769_v19  ;;  %v12786_v14 = vcombine.high %v2435_v52, %v2439_v57  ;;  %v2446_v20 = vld [vmem:[#allocation8 + $0x5a0] sm:$0xff]  ;;  %v1915_v63 = vmax.f32 %v1659_v42, 0.0  ;;  %v1914_v10 = vmax.f32 %v1658_v36, 0.0  ;;  %v2447_v29 = vld [vmem:[#allocation8 + $0x5a8] sm:$0xff]  ;;  %v12783_v19 = vcombine.low %v15192_v23, %v15194_v34 }
 0x14a   : > { %v15199_v62 = vpop.permute.xlu1 %420  ;;  %v1667_v41 = vadd.f32 %v15070_v4, %v1370_v40  ;;  %v1666_v1 = vadd.f32 %v15077_v8, %v1369_v48  ;;  %5580 = vmatprep.subr.bf16.mxu0 %v12776_v24  ;;  %6352 = vmatprep.subr.bf16.mxu1 %v12778_v26  ;;  %v12785_v24 = vcombine.low %v2435_v52, %v2439_v57  ;;  %v15219_v23 = vld [vmem:[#allocation8 + $0x5c0] sm:$0xff]  ;;  %v15231_v52 = vld [vmem:[#allocation8 + $0x5c8] sm:$0xff] }
 0x14b   : > { %20457 = vst [vmem:[#allocation40_spill] sm:$0xff] %v15199_v62  ;;  %v12792_v27 = vcombine.high %v2442_v16, %v2446_v20  ;;  %v1674_v22 = vadd.f32 %v15077_v8, %v1377_v13  ;;  %v12794_v40 = vcombine.high %v2443_v25, %v2447_v29  ;;  %v673_v42 = vmul.f32 %v15050_v55, %v15199_v62  ;;  %v15229_v36 = vld [vmem:[#allocation8 + $0x5e0] sm:$0xff]  ;;  %v2455_v57 = vld [vmem:[#allocation8 + $0x5e8] sm:$0xff] }
 0x14c   : > { %14320 = vset.pattern.permute.xlu1 %v19877_v2  ;;  %v1923_v0 = vmax.f32 %v1667_v41, 0.0  ;;  %v1922_v11 = vmax.f32 %v1666_v1, 0.0  ;;  %v674_v1 = vmul.f32 %v15044_v53, %v15199_v62  ;;  %v1675_v41 = vadd.f32 %v15070_v4, %v1378_v3  ;;  %v15236_v3 = vpop.permute.xlu0 %430 }
 0x14d   : > { %525 = vperm.xlu1 %14320, %v375_v7   ;;  %5581 = vmatpush1.bf16.msra.mxu0 %v12775_v60  ;;  %v20461_v60 = vmov 1   ;;  %20462 = vst [vmem:[#allocation44_spill] sm:$0xff] %v15236_v3  ;;  %v12791_v13 = vcombine.low %v2442_v16, %v2446_v20 }
 0x14e   : > { %v15209_v33 = vpack.c.bf16 %v1923_v0, %v1915_v63  ;;  %v15211_v26 = vpack.c.bf16 %v1922_v11, %v1914_v10  ;;  %6353 = vmatpush1.bf16.msra.mxu1 %v12777_v61  ;;  %5582 = vmatprep.subr.bf16.mxu0 %v12784_v30  ;;  %v12800_v63 = vcombine.high %v15219_v23, %v15229_v36  ;;  %v1931_v2 = vmax.f32 %v1675_v41, 0.0  ;;  %v2459_v41 = vld [vmem:[#allocation8 + $0x608] sm:$0xff] }
 0x14f   : > { %v15213_v28 = vpop.permute.xlu1 %902  ;;  %6354 = vmatprep.subr.bf16.mxu1 %v12786_v14  ;;  %v12793_v14 = vcombine.low %v2443_v25, %v2447_v29  ;;  %v12802_v0 = vcombine.high %v15231_v52, %v2455_v57  ;;  %v2458_v29 = vld [vmem:[#allocation8 + $0x600] sm:$0xff] }
 0x150   : > { %20458 = vst [vmem:[#allocation41_spill] sm:$0xff] %v15209_v33  ;;  %20459 = vst [vmem:[#allocation42_spill] sm:$0xff] %v15211_v26  ;;  %5431 = vmatprep.mubr.bf16.mxu0 %v15209_v33  ;;  %6203 = vmatprep.mubr.bf16.mxu1 %v15209_v33  ;;  %v1130_v34 = vmul.f32 %v15047_v54, %v15213_v28  ;;  %v1129_v48 = vmul.f32 %v15053_v56, %v15213_v28  ;;  %v15246_v25 = vpop.permute.xlu0 %435 }
 0x151   : > { %20460 = vst [vmem:[#allocation43_spill] sm:$0xff] %v15213_v28  ;;  %14321 = vset.pattern.permute.xlu1 %v20461_v60  ;;  %5432 = vmatmul.mubr.bf16.gmra.mrb[8].mxu0 %v15211_v26  ;;  %20464 = vst [vmem:[#allocation46_spill] sm:$0xff] %v15246_v25 }
 0x152   : > { %6204 = vmatmul.mubr.bf16.gmra.mrb[8].mxu1 %v15211_v26  ;;  %986 = vperm.xlu1 %14321, %v375_v7   ;;  %v1386_v61 = vadd.f32 %v1130_v34, %v674_v1  ;;  %v1385_v30 = vadd.f32 %v1129_v48, %v673_v42  ;;  %v1930_v1 = vmax.f32 %v1674_v22, 0.0  ;;  %v378_v34 = vld [vmem:[%s14927_s22 + $0xf8] sm:$0xff]  ;;  %v12801_v48 = vcombine.low %v15231_v52, %v2455_v57  ;;  %v2467_v52 = vld [vmem:[#allocation8 + $0x648] sm:$0xff] }
 0x153   : > { %5583 = vmatpush1.bf16.msra.mxu0 %v12783_v19  ;;  %6355 = vmatpush1.bf16.msra.mxu1 %v12785_v24  ;;  %v2462_v19 = vld [vmem:[#allocation8 + $0x620] sm:$0xff]  ;;  %v2471_v57 = vld [vmem:[#allocation8 + $0x668] sm:$0xff] }
 0x154   : > { %v15241_v10 = vpop.permute.xlu1 %425  ;;  %v1683_v11 = vadd.f32 %v15070_v4, %v1386_v61  ;;  %v1682_v7 = vadd.f32 %v15077_v8, %v1385_v30  ;;  %5584 = vmatprep.subr.bf16.mxu0 %v12792_v27  ;;  %6356 = vmatprep.subr.bf16.mxu1 %v12794_v40  ;;  %v2463_v27 = vld [vmem:[#allocation8 + $0x628] sm:$0xff]  ;;  %v12799_v40 = vcombine.low %v15219_v23, %v15229_v36 }
 0x155   : > { %20463 = vst [vmem:[#allocation45_spill] sm:$0xff] %v15241_v10  ;;  %v12808_v61 = vcombine.high %v2458_v29, %v2462_v19  ;;  %v690_v23 = vmul.f32 %v15044_v53, %v15236_v3  ;;  %v12810_v36 = vcombine.high %v2459_v41, %v2463_v27  ;;  %v12809_v26 = vcombine.low %v2459_v41, %v2463_v27  ;;  %v2474_v41 = vld [vmem:[#allocation8 + $0x680] sm:$0xff] }
 0x156   : > { %990 = vperm.xlu1 %14321, %v15009_v38   ;;  %v1939_v16 = vmax.f32 %v1683_v11, 0.0  ;;  %v1938_v20 = vmax.f32 %v1682_v7, 0.0  ;;  %v682_v38 = vmul.f32 %v15044_v53, %v15241_v10  ;;  %v15273_v11 = vpop.permute.xlu0 %914  ;;  %v2478_v27 = vld [vmem:[#allocation8 + $0x6a0] sm:$0xff]  ;;  %v12817_v39 = vcombine.low %v2467_v52, %v2471_v57 }
 0x157   : > { %5585 = vmatpush1.bf16.msra.mxu0 %v12791_v13  ;;  %6357 = vmatpush1.bf16.msra.mxu1 %v12793_v14  ;;  %v681_v13 = vmul.f32 %v15050_v55, %v15241_v10  ;;  %20469 = vst [vmem:[#allocation50_spill] sm:$0xff] %v15273_v11 }
 0x158   : > { %v15248_v24 = vpack.c.bf16 %v1939_v16, %v1931_v2  ;;  %v15251_v42 = vpack.c.bf16 %v1938_v20, %v1930_v1  ;;  %5586 = vmatprep.subr.bf16.mxu0 %v12800_v63  ;;  %6358 = vmatprep.subr.bf16.mxu1 %v12802_v0  ;;  %v20468_v2 = vmov 0   ;;  %v2466_v63 = vld [vmem:[#allocation8 + $0x640] sm:$0xff]  ;;  %v689_v1 = vmul.f32 %v15050_v55, %v15236_v3 }
 0x159   : > { %v15253_v22 = vpop.permute.xlu1 %906  ;;  %v2470_v0 = vld [vmem:[#allocation8 + $0x660] sm:$0xff] }
 0x15a   : > { %20465 = vst [vmem:[#allocation47_spill] sm:$0xff] %v15248_v24  ;;  %20466 = vst [vmem:[#allocation48_spill] sm:$0xff] %v15251_v42  ;;  %14322 = vset.pattern.permute.xlu1 %v20468_v2  ;;  %5441 = vmatprep.mubr.bf16.mxu0 %v15248_v24  ;;  %v1138_v30 = vmul.f32 %v15047_v54, %v15253_v22  ;;  %v1137_v14 = vmul.f32 %v15053_v56, %v15253_v22 }
 0x15b   : > { %20467 = vst [vmem:[#allocation49_spill] sm:$0xff] %v15253_v22  ;;  %6213 = vmatprep.mubr.bf16.mxu1 %v15248_v24  ;;  %540 = vperm.xlu1 %14322, %v378_v34   ;;  %v12807_v24 = vcombine.low %v2458_v29, %v2462_v19  ;;  %v12816_v33 = vcombine.high %v2466_v63, %v2470_v0 }
 0x15c   : > { %5442 = vmatmul.mubr.bf16.gmra.mrb[12].mxu0 %v15251_v42  ;;  %6214 = vmatmul.mubr.bf16.gmra.mrb[12].mxu1 %v15251_v42  ;;  %v1394_v7 = vadd.f32 %v1138_v30, %v682_v38  ;;  %v1393_v16 = vadd.f32 %v1137_v14, %v681_v13  ;;  %v698_v38 = vmul.f32 %v15044_v53, %v15246_v25 }
 0x15d   : > { %v15277_v20 = vpop.permute.xlu1 %910  ;;  %5587 = vmatpush1.bf16.msra.mxu0 %v12799_v40  ;;  %6359 = vmatpush1.bf16.msra.mxu1 %v12801_v48  ;;  %v12818_v30 = vcombine.high %v2467_v52, %v2471_v57  ;;  %v1154_v40 = vmul.f32 %v15047_v54, %v15273_v11  ;;  %v697_v29 = vmul.f32 %v15050_v55, %v15246_v25 }
 0x15e   : > { %20470 = vst [vmem:[#allocation51_spill] sm:$0xff] %v15277_v20  ;;  %v1146_v31 = vmul.f32 %v15047_v54, %v15277_v20  ;;  %v1145_v42 = vmul.f32 %v15053_v56, %v15277_v20  ;;  %5588 = vmatprep.subr.bf16.mxu0 %v12808_v61  ;;  %v1153_v19 = vmul.f32 %v15053_v56, %v15273_v11 }
 0x15f   : > { %14324 = vset.pattern.permute.xlu1 %v20461_v60  ;;  %6360 = vmatprep.subr.bf16.mxu1 %v12810_v36  ;;  %v1691_v13 = vadd.f32 %v15070_v4, %v1394_v7  ;;  %v1690_v14 = vadd.f32 %v15077_v8, %v1393_v16  ;;  %v2475_v60 = vld [vmem:[#allocation8 + $0x688] sm:$0xff]  ;;  %v12815_v50 = vcombine.low %v2466_v63, %v2470_v0  ;;  %v2482_v7 = vld [vmem:[#allocation8 + $0x6c0] sm:$0xff] }
 0x160   : > { %998 = vperm.xlu1 %14324, %v378_v34   ;;  %v1402_v48 = vadd.f32 %v1146_v31, %v690_v23  ;;  %v1401_v61 = vadd.f32 %v1145_v42, %v689_v1  ;;  %v12824_v34 = vcombine.high %v2474_v41, %v2478_v27  ;;  %v1410_v31 = vadd.f32 %v1154_v40, %v698_v38  ;;  %v2486_v1 = vld [vmem:[#allocation8 + $0x6e0] sm:$0xff]  ;;  %v2483_v63 = vld [vmem:[#allocation8 + $0x6c8] sm:$0xff] }
 0x161   : > { %5589 = vmatpush1.bf16.msra.mxu0 %v12807_v24  ;;  %6361 = vmatpush1.bf16.msra.mxu1 %v12809_v26  ;;  %v1409_v23 = vadd.f32 %v1153_v19, %v697_v29  ;;  %v12826_v42 = vcombine.high %v2475_v60, %v2479_v37  ;;  %v1947_v16 = vmax.f32 %v1691_v13, 0.0  ;;  %v1946_v24 = vmax.f32 %v1690_v14, 0.0  ;;  %v2487_v0 = vld [vmem:[#allocation8 + $0x6e8] sm:$0xff] }
 0x162   : > { %v15294_v25 = vpop.permute.xlu1 %440  ;;  %v1699_v11 = vadd.f32 %v15070_v4, %v1402_v48  ;;  %v1698_v36 = vadd.f32 %v15077_v8, %v1401_v61  ;;  %5590 = vmatprep.subr.bf16.mxu0 %v12816_v33  ;;  %6362 = vmatprep.subr.bf16.mxu1 %v12818_v30  ;;  %v12823_v52 = vcombine.low %v2474_v41, %v2478_v27  ;;  %v2490_v41 = vld [vmem:[#allocation8 + $0x700] sm:$0xff]  ;;  %v2491_v13 = vld [vmem:[#allocation8 + $0x708] sm:$0xff] }
 0x163   : > { %20471 = vst [vmem:[#allocation52_spill] sm:$0xff] %v15294_v25  ;;  %v12825_v38 = vcombine.low %v2475_v60, %v2479_v37  ;;  %v12832_v30 = vcombine.high %v2482_v7, %v2486_v1  ;;  %v1707_v29 = vadd.f32 %v15070_v4, %v1410_v31  ;;  %v1706_v19 = vadd.f32 %v15077_v8, %v1409_v23  ;;  %v2494_v27 = vld [vmem:[#allocation8 + $0x720] sm:$0xff]  ;;  %v2495_v61 = vld [vmem:[#allocation8 + $0x728] sm:$0xff] }
 0x164   : > { %v1955_v10 = vmax.f32 %v1699_v11, 0.0  ;;  %v1954_v26 = vmax.f32 %v1698_v36, 0.0  ;;  %14326 = vset.pattern.permute.xlu1 %v20468_v2  ;;  %v706_v11 = vmul.f32 %v15044_v53, %v15294_v25  ;;  %v12831_v48 = vcombine.low %v2482_v7, %v2486_v1  ;;  %v15325_v7 = vld [vmem:[#allocation8 + $0x740] sm:$0xff] }
 0x165   : > { %5591 = vmatpush1.bf16.msra.mxu0 %v12815_v50  ;;  %6363 = vmatpush1.bf16.msra.mxu1 %v12817_v39  ;;  %v12834_v50 = vcombine.high %v2483_v63, %v2487_v0  ;;  %v15311_v39 = vpop.permute.xlu0 %930  ;;  %v12833_v36 = vcombine.low %v2483_v63, %v2487_v0  ;;  %v12840_v31 = vcombine.high %v2490_v41, %v2494_v27  ;;  %v15327_v1 = vld [vmem:[#allocation8 + $0x800] sm:$0xff] }
 0x166   : > { %v15299_v57 = vpack.c.bf16 %v1955_v10, %v1947_v16  ;;  %v15301_v33 = vpack.c.bf16 %v1954_v26, %v1946_v24  ;;  %5592 = vmatprep.subr.bf16.mxu0 %v12824_v34  ;;  %6364 = vmatprep.subr.bf16.mxu1 %v12826_v42  ;;  %20475 = vst [vmem:[#allocation56_spill] sm:$0xff] %v15311_v39  ;;  %v1963_v34 = vmax.f32 %v1707_v29, 0.0  ;;  %v1962_v24 = vmax.f32 %v1706_v19, 0.0  ;;  %v2503_v29 = vld [vmem:[#allocation8 + $0x768] sm:$0xff] }
 0x167   : > { %v15303_v40 = vpop.permute.xlu1 %918  ;;  %v705_v10 = vmul.f32 %v15050_v55, %v15294_v25  ;;  %v12842_v26 = vcombine.high %v2491_v13, %v2495_v61  ;;  %v15369_v25 = vld [vmem:[#allocation8 + $0x828] sm:$0xff] }
 0x168   : > { %20472 = vst [vmem:[#allocation53_spill] sm:$0xff] %v15299_v57  ;;  %20473 = vst [vmem:[#allocation54_spill] sm:$0xff] %v15301_v33  ;;  %5451 = vmatprep.mubr.bf16.mxu0 %v15299_v57  ;;  %6223 = vmatprep.mubr.bf16.mxu1 %v15299_v57  ;;  %v1162_v37 = vmul.f32 %v15047_v54, %v15303_v40  ;;  %v1161_v2 = vmul.f32 %v15053_v56, %v15303_v40 }
 0x169   : > { %20474 = vst [vmem:[#allocation55_spill] sm:$0xff] %v15303_v40  ;;  %5452 = vmatmul.mubr.bf16.gmra.mrb[16].mxu0 %v15301_v33  ;;  %6224 = vmatmul.mubr.bf16.gmra.mrb[16].mxu1 %v15301_v33  ;;  %v15331_v0 = vpop.permute.xlu0 %450 }
 0x16a   : > { %v1418_v14 = vadd.f32 %v1162_v37, %v706_v11  ;;  %v1417_v60 = vadd.f32 %v1161_v2, %v705_v10  ;;  %5593 = vmatpush1.bf16.msra.mxu0 %v12823_v52  ;;  %6365 = vmatpush1.bf16.msra.mxu1 %v12825_v38  ;;  %v15329_v11 = vld [vmem:[#allocation8 + $0x820] sm:$0xff]  ;;  %20477 = vst [vmem:[#allocation58_spill] sm:$0xff] %v15331_v0 }
 0x16b   : > { %5594 = vmatprep.subr.bf16.mxu0 %v12832_v30  ;;  %6366 = vmatprep.subr.bf16.mxu1 %v12834_v50  ;;  %v2502_v38 = vld [vmem:[#allocation8 + $0x760] sm:$0xff]  ;;  %v2499_v30 = vld [vmem:[#allocation8 + $0x748] sm:$0xff]  ;;  %v12839_v37 = vcombine.low %v2490_v41, %v2494_v27 }
 0x16c   : > { %v15321_v23 = vpop.permute.xlu1 %445  ;;  %v1715_v42 = vadd.f32 %v15070_v4, %v1418_v14  ;;  %v1714_v16 = vadd.f32 %v15077_v8, %v1417_v60  ;;  %v12848_v60 = vcombine.high %v15325_v7, %v2502_v38  ;;  %v12849_v57 = vcombine.low %v2499_v30, %v2503_v29 }
 0x16d   : > { %20476 = vst [vmem:[#allocation57_spill] sm:$0xff] %v15321_v23  ;;  %v714_v14 = vmul.f32 %v15044_v53, %v15321_v23  ;;  %v713_v27 = vmul.f32 %v15050_v55, %v15321_v23 }
 0x16e   : > { %v1971_v52 = vmax.f32 %v1715_v42, 0.0  ;;  %v1970_v63 = vmax.f32 %v1714_v16, 0.0  ;;  %5595 = vmatpush1.bf16.msra.mxu0 %v12831_v48  ;;  %6367 = vmatpush1.bf16.msra.mxu1 %v12833_v36  ;;  %v12841_v48 = vcombine.low %v2491_v13, %v2495_v61  ;;  %v12850_v36 = vcombine.high %v2499_v30, %v2503_v29  ;;  %v2506_v42 = vld [vmem:[#allocation8 + $0x780] sm:$0xff] }
 0x16f   : > { %5596 = vmatprep.subr.bf16.mxu0 %v12840_v31  ;;  %6368 = vmatprep.subr.bf16.mxu1 %v12842_v26  ;;  %v2510_v13 = vld [vmem:[#allocation8 + $0x7a0] sm:$0xff]  ;;  %v722_v61 = vmul.f32 %v15044_v53, %v15331_v0  ;;  %v1186_v16 = vmul.f32 %v15047_v54, %v15311_v39  ;;  %v2511_v26 = vld [vmem:[#allocation8 + $0x7a8] sm:$0xff]  ;;  %v1185_v30 = vmul.f32 %v15053_v56, %v15311_v39 }
 0x170   : > { %v15333_v50 = vpack.c.bf16 %v1971_v52, %v1963_v34  ;;  %v15335_v19 = vpack.c.bf16 %v1970_v63, %v1962_v24  ;;  %v15346_v34 = vpop.permute.xlu0 %455  ;;  %v2507_v24 = vld [vmem:[#allocation8 + $0x788] sm:$0xff]  ;;  %v721_v63 = vmul.f32 %v15050_v55, %v15331_v0  ;;  %v12856_v23 = vcombine.high %v2506_v42, %v2510_v13 }
 0x171   : > { %v15339_v2 = vpop.permute.xlu1 %922  ;;  %20481 = vst [vmem:[#allocation62_spill] sm:$0xff] %v15346_v34  ;;  %v12855_v29 = vcombine.low %v2506_v42, %v2510_v13 }
 0x172   : > { %20478 = vst [vmem:[#allocation59_spill] sm:$0xff] %v15333_v50  ;;  %20479 = vst [vmem:[#allocation60_spill] sm:$0xff] %v15335_v19  ;;  %5461 = vmatprep.mubr.bf16.mxu0 %v15333_v50  ;;  %6233 = vmatprep.mubr.bf16.mxu1 %v15333_v50  ;;  %v1170_v41 = vmul.f32 %v15047_v54, %v15339_v2  ;;  %v1169_v31 = vmul.f32 %v15053_v56, %v15339_v2 }
 0x173   : > { %20480 = vst [vmem:[#allocation61_spill] sm:$0xff] %v15339_v2  ;;  %5462 = vmatmul.mubr.bf16.gmra.mrb[20].mxu0 %v15335_v19  ;;  %6234 = vmatmul.mubr.bf16.gmra.mrb[20].mxu1 %v15335_v19  ;;  %v12847_v50 = vcombine.low %v15325_v7, %v2502_v38  ;;  %v730_v19 = vmul.f32 %v15044_v53, %v15346_v34  ;;  %v15367_v2 = vld [vmem:[#allocation8 + $0x808] sm:$0xff]  ;;  %v2514_v38 = vld [vmem:[#allocation8 + $0x7c0] sm:$0xff] }
 0x174   : > { %v1426_v52 = vadd.f32 %v1170_v41, %v714_v14  ;;  %v1425_v10 = vadd.f32 %v1169_v31, %v713_v27  ;;  %5597 = vmatpush1.bf16.msra.mxu0 %v12839_v37  ;;  %6369 = vmatpush1.bf16.msra.mxu1 %v12841_v48  ;;  %v12858_v7 = vcombine.high %v2507_v24, %v2511_v26  ;;  %v2518_v41 = vld [vmem:[#allocation8 + $0x7e0] sm:$0xff]  ;;  %v2519_v27 = vld [vmem:[#allocation8 + $0x7e8] sm:$0xff] }
 0x175   : > { %v15363_v33 = vpop.permute.xlu1 %926  ;;  %5598 = vmatprep.subr.bf16.mxu0 %v12848_v60  ;;  %6370 = vmatprep.subr.bf16.mxu1 %v12850_v36  ;;  %v729_v48 = vmul.f32 %v15050_v55, %v15346_v34  ;;  %v2515_v60 = vld [vmem:[#allocation8 + $0x7c8] sm:$0xff]  ;;  %v1442_v22 = vadd.f32 %v1186_v16, %v730_v19  ;;  %v12857_v34 = vcombine.low %v2507_v24, %v2511_v26 }
 0x176   : > { %20482 = vst [vmem:[#allocation63_spill] sm:$0xff] %v15363_v33  ;;  %v1178_v14 = vmul.f32 %v15047_v54, %v15363_v33  ;;  %v1177_v37 = vmul.f32 %v15053_v56, %v15363_v33  ;;  %v1723_v40 = vadd.f32 %v15070_v4, %v1426_v52  ;;  %v1722_v36 = vadd.f32 %v15077_v8, %v1425_v10 }
 0x177   : > { %v12864_v20 = vcombine.high %v2514_v38, %v2518_v41  ;;  %v12866_v31 = vcombine.high %v2515_v60, %v2519_v27  ;;  %v12863_v19 = vcombine.low %v2514_v38, %v2518_v41  ;;  %v12872_v16 = vcombine.high %v15327_v1, %v15329_v11  ;;  %v15411_v38 = vpop.permute.xlu0 %470 }
 0x178   : > { %v1434_v0 = vadd.f32 %v1178_v14, %v722_v61  ;;  %v1433_v33 = vadd.f32 %v1177_v37, %v721_v63  ;;  %5599 = vmatpush1.bf16.msra.mxu0 %v12847_v50  ;;  %6371 = vmatpush1.bf16.msra.mxu1 %v12849_v57  ;;  %v1441_v61 = vadd.f32 %v1185_v30, %v729_v48  ;;  %v1979_v14 = vmax.f32 %v1723_v40, 0.0 }
 0x179   : > { %5600 = vmatprep.subr.bf16.mxu0 %v12856_v23  ;;  %6372 = vmatprep.subr.bf16.mxu1 %v12858_v7  ;;  %v1978_v63 = vmax.f32 %v1722_v36, 0.0  ;;  %v1739_v50 = vadd.f32 %v15070_v4, %v1442_v22  ;;  %v12874_v22 = vcombine.high %v15367_v2, %v15369_v25  ;;  %20487 = vst [vmem:[#allocation68_spill] sm:$0xff] %v15411_v38 }
 0x17a   : > { %v15383_v3 = vpop.permute.xlu1 %460  ;;  %v1731_v42 = vadd.f32 %v15070_v4, %v1434_v0  ;;  %v1730_v13 = vadd.f32 %v15077_v8, %v1433_v33  ;;  %v12865_v0 = vcombine.low %v2515_v60, %v2519_v27  ;;  %v1738_v10 = vadd.f32 %v15077_v8, %v1441_v61 }
 0x17b   : > { %20483 = vst [vmem:[#allocation64_spill] sm:$0xff] %v15383_v3  ;;  %v738_v40 = vmul.f32 %v15044_v53, %v15383_v3  ;;  %v1995_v30 = vmax.f32 %v1739_v50, 0.0  ;;  %v15417_v36 = vpop.permute.xlu0 %475 }
 0x17c   : > { %v1987_v52 = vmax.f32 %v1731_v42, 0.0  ;;  %v1986_v37 = vmax.f32 %v1730_v13, 0.0  ;;  %5601 = vmatpush1.bf16.msra.mxu0 %v12855_v29  ;;  %6373 = vmatpush1.bf16.msra.mxu1 %v12857_v34  ;;  %v737_v34 = vmul.f32 %v15050_v55, %v15383_v3  ;;  %v1994_v60 = vmax.f32 %v1738_v10, 0.0  ;;  %20489 = vst [vmem:[#allocation70_spill] sm:$0xff] %v15417_v36 }
 0x17d   : > { %5602 = vmatprep.subr.bf16.mxu0 %v12864_v20  ;;  %6374 = vmatprep.subr.bf16.mxu1 %v12866_v31 }
 0x17e   : > { %v15388_v57 = vpack.c.bf16 %v1987_v52, %v1979_v14  ;;  %v15390_v23 = vpack.c.bf16 %v1986_v37, %v1978_v63 }
 0x17f   : > { %v15392_v33 = vpop.permute.xlu1 %934  ;;  %v15437_v50 = vpop.permute.xlu0 %946 }
 0x180   : > { %20484 = vst [vmem:[#allocation65_spill] sm:$0xff] %v15388_v57  ;;  %20485 = vst [vmem:[#allocation66_spill] sm:$0xff] %v15390_v23  ;;  %5471 = vmatprep.mubr.bf16.mxu0 %v15388_v57  ;;  %6243 = vmatprep.mubr.bf16.mxu1 %v15388_v57  ;;  %v1194_v20 = vmul.f32 %v15047_v54, %v15392_v33  ;;  %v1193_v24 = vmul.f32 %v15053_v56, %v15392_v33 }
 0x181   : > { %20486 = vst [vmem:[#allocation67_spill] sm:$0xff] %v15392_v33  ;;  %5472 = vmatmul.mubr.bf16.gmra.mrb[24].mxu0 %v15390_v23  ;;  %6244 = vmatmul.mubr.bf16.gmra.mrb[24].mxu1 %v15390_v23  ;;  %20493 = vst [vmem:[#allocation74_spill] sm:$0xff] %v15437_v50 }
 0x182   : > { %v1450_v26 = vadd.f32 %v1194_v20, %v738_v40  ;;  %v1449_v7 = vadd.f32 %v1193_v24, %v737_v34  ;;  %5603 = vmatpush1.bf16.msra.mxu0 %v12863_v19  ;;  %6375 = vmatpush1.bf16.msra.mxu1 %v12865_v0  ;;  %v754_v19 = vmul.f32 %v15044_v53, %v15411_v38 }
 0x183   : > { %5765 = vmatprep.subr.bf16.mxu0 %v12872_v16  ;;  %6537 = vmatprep.subr.bf16.mxu1 %v12874_v22  ;;  %v753_v40 = vmul.f32 %v15050_v55, %v15411_v38  ;;  %v762_v34 = vmul.f32 %v15044_v53, %v15417_v36  ;;  %v1218_v24 = vmul.f32 %v15047_v54, %v15437_v50 }
 0x184   : > { %v15413_v41 = vpop.permute.xlu1 %465  ;;  %v1747_v48 = vadd.f32 %v15070_v4, %v1450_v26  ;;  %v1746_v29 = vadd.f32 %v15077_v8, %v1449_v7  ;;  %v761_v26 = vmul.f32 %v15050_v55, %v15417_v36  ;;  %v1217_v7 = vmul.f32 %v15053_v56, %v15437_v50 }
 0x185   : > { %20488 = vst [vmem:[#allocation69_spill] sm:$0xff] %v15413_v41  ;;  %v746_v14 = vmul.f32 %v15044_v53, %v15413_v41  ;;  %v745_v63 = vmul.f32 %v15050_v55, %v15413_v41 }
 0x186   : > { %v2003_v27 = vmax.f32 %v1747_v48, 0.0  ;;  %v2002_v31 = vmax.f32 %v1746_v29, 0.0 }
 0x188   : > { %v15419_v42 = vpack.c.bf16 %v2003_v27, %v1995_v30  ;;  %v15421_v13 = vpack.c.bf16 %v2002_v31, %v1994_v60 }
 0x189   : > { %v15423_v61 = vpop.permute.xlu1 %938 }
 0x18a   : > { %20490 = vst [vmem:[#allocation71_spill] sm:$0xff] %v15419_v42  ;;  %20491 = vst [vmem:[#allocation72_spill] sm:$0xff] %v15421_v13  ;;  %5481 = vmatprep.mubr.bf16.mxu0 %v15419_v42  ;;  %6253 = vmatprep.mubr.bf16.mxu1 %v15419_v42  ;;  %v1202_v52 = vmul.f32 %v15047_v54, %v15423_v61  ;;  %v1201_v37 = vmul.f32 %v15053_v56, %v15423_v61 }
 0x18b   : > { %20492 = vst [vmem:[#allocation73_spill] sm:$0xff] %v15423_v61  ;;  %5482 = vmatmul.mubr.bf16.gmra.mrb[28].mxu0 %v15421_v13  ;;  %6254 = vmatmul.mubr.bf16.gmra.mrb[28].mxu1 %v15421_v13 }
 0x18c   : > { %v1458_v0 = vadd.f32 %v1202_v52, %v746_v14  ;;  %v1457_v10 = vadd.f32 %v1201_v37, %v745_v63  ;;  %v1474_v52 = vadd.f32 %v1218_v24, %v762_v34  ;;  %v1473_v63 = vadd.f32 %v1217_v7, %v761_v26 }
 0x18d   : > { %v15443_v16 = vpop.permute.xlu1 %942 }
 0x18e   : > { %20494 = vst [vmem:[#allocation75_spill] sm:$0xff] %v15443_v16  ;;  %v1210_v22 = vmul.f32 %v15047_v54, %v15443_v16  ;;  %v1209_v20 = vmul.f32 %v15053_v56, %v15443_v16  ;;  %v1755_v30 = vadd.f32 %v15070_v4, %v1458_v0  ;;  %v1754_v60 = vadd.f32 %v15077_v8, %v1457_v10 }
 0x18f   : > { %v1771_v10 = vadd.f32 %v15070_v4, %v1474_v52 }
 0x190   : > { %v1466_v48 = vadd.f32 %v1210_v22, %v754_v19  ;;  %v1465_v29 = vadd.f32 %v1209_v20, %v753_v40  ;;  %v2011_v37 = vmax.f32 %v1755_v30, 0.0  ;;  %v2010_v42 = vmax.f32 %v1754_v60, 0.0 }
 0x191   : > { %v1770_v22 = vadd.f32 %v15077_v8, %v1473_v63 }
 0x192   : > { %v15459_v27 = vpop.permute.xlu1 %480  ;;  %v1763_v31 = vadd.f32 %v15070_v4, %v1466_v48  ;;  %v1762_v14 = vadd.f32 %v15077_v8, %v1465_v29  ;;  %v2027_v48 = vmax.f32 %v1771_v10, 0.0 }
 0x193   : > { %20495 = vst [vmem:[#allocation76_spill] sm:$0xff] %v15459_v27  ;;  %v770_v40 = vmul.f32 %v15044_v53, %v15459_v27  ;;  %v2026_v29 = vmax.f32 %v1770_v22, 0.0 }
 0x194   : > { %v2019_v13 = vmax.f32 %v1763_v31, 0.0  ;;  %v2018_v23 = vmax.f32 %v1762_v14, 0.0 }
 0x196   : > { %v15463_v57 = vpack.c.bf16 %v2019_v13, %v2011_v37  ;;  %v15465_v19 = vpack.c.bf16 %v2018_v23, %v2010_v42  ;;  %v769_v23 = vmul.f32 %v15050_v55, %v15459_v27  ;;  %v15483_v13 = vpop.permute.xlu0 %962 }
 0x197   : > { %v15467_v0 = vpop.permute.xlu1 %950  ;;  %20499 = vst [vmem:[#allocation80_spill] sm:$0xff] %v15483_v13 }
 0x198   : > { %20496 = vst [vmem:[#allocation77_spill] sm:$0xff] %v15463_v57  ;;  %20497 = vst [vmem:[#allocation78_spill] sm:$0xff] %v15465_v19  ;;  %5491 = vmatprep.mubr.bf16.mxu0 %v15463_v57  ;;  %6263 = vmatprep.mubr.bf16.mxu1 %v15463_v57  ;;  %v1226_v20 = vmul.f32 %v15047_v54, %v15467_v0  ;;  %v1225_v42 = vmul.f32 %v15053_v56, %v15467_v0 }
 0x199   : > { %20498 = vst [vmem:[#allocation79_spill] sm:$0xff] %v15467_v0  ;;  %5492 = vmatmul.mubr.bf16.gmra.mrb[32].mxu0 %v15465_v19  ;;  %6264 = vmatmul.mubr.bf16.gmra.mrb[32].mxu1 %v15465_v19 }
 0x19a   : > { %v1482_v34 = vadd.f32 %v1226_v20, %v770_v40  ;;  %v1481_v24 = vadd.f32 %v1225_v42, %v769_v23  ;;  %v15493_v63 = vpop.permute.xlu0 %490 }
 0x19b   : > { %20503 = vst [vmem:[#allocation84_spill] sm:$0xff] %v15493_v63  ;;  %v786_v42 = vmul.f32 %v15044_v53, %v15493_v63 }
 0x19c   : > { %v15485_v26 = vpop.permute.xlu1 %485  ;;  %v1779_v7 = vadd.f32 %v15070_v4, %v1482_v34  ;;  %v1778_v30 = vadd.f32 %v15077_v8, %v1481_v24  ;;  %v785_v24 = vmul.f32 %v15050_v55, %v15493_v63 }
 0x19d   : > { %20500 = vst [vmem:[#allocation81_spill] sm:$0xff] %v15485_v26  ;;  %v778_v40 = vmul.f32 %v15044_v53, %v15485_v26  ;;  %v777_v22 = vmul.f32 %v15050_v55, %v15485_v26 }
 0x19e   : > { %v2035_v60 = vmax.f32 %v1779_v7, 0.0  ;;  %v2034_v31 = vmax.f32 %v1778_v30, 0.0  ;;  %v15509_v23 = vpop.permute.xlu0 %495 }
 0x19f   : > { %20505 = vst [vmem:[#allocation86_spill] sm:$0xff] %v15509_v23 }
 0x1a0   : > { %v15489_v14 = vpack.c.bf16 %v2035_v60, %v2027_v48  ;;  %v15491_v52 = vpack.c.bf16 %v2034_v31, %v2026_v29  ;;  %v794_v60 = vmul.f32 %v15044_v53, %v15509_v23  ;;  %v1250_v31 = vmul.f32 %v15047_v54, %v15483_v13 }
 0x1a1   : > { %v15495_v37 = vpop.permute.xlu1 %954 }
 0x1a2   : > { %20501 = vst [vmem:[#allocation82_spill] sm:$0xff] %v15489_v14  ;;  %20502 = vst [vmem:[#allocation83_spill] sm:$0xff] %v15491_v52  ;;  %5501 = vmatprep.mubr.bf16.mxu0 %v15489_v14  ;;  %6273 = vmatprep.mubr.bf16.mxu1 %v15489_v14  ;;  %v1234_v10 = vmul.f32 %v15047_v54, %v15495_v37  ;;  %v1233_v20 = vmul.f32 %v15053_v56, %v15495_v37 }
 0x1a3   : > { %20504 = vst [vmem:[#allocation85_spill] sm:$0xff] %v15495_v37  ;;  %5502 = vmatmul.mubr.bf16.gmra.mrb[36].mxu0 %v15491_v52  ;;  %6274 = vmatmul.mubr.bf16.gmra.mrb[36].mxu1 %v15491_v52  ;;  %v1506_v37 = vadd.f32 %v1250_v31, %v794_v60 }
 0x1a4   : > { %v1490_v34 = vadd.f32 %v1234_v10, %v778_v40  ;;  %v1489_v7 = vadd.f32 %v1233_v20, %v777_v22  ;;  %v793_v40 = vmul.f32 %v15050_v55, %v15509_v23  ;;  %v1249_v10 = vmul.f32 %v15053_v56, %v15483_v13 }
 0x1a5   : > { %v15515_v48 = vpop.permute.xlu1 %958 }
 0x1a6   : > { %20506 = vst [vmem:[#allocation87_spill] sm:$0xff] %v15515_v48  ;;  %v1242_v30 = vmul.f32 %v15047_v54, %v15515_v48  ;;  %v1241_v29 = vmul.f32 %v15053_v56, %v15515_v48  ;;  %v1787_v20 = vadd.f32 %v15070_v4, %v1490_v34  ;;  %v1786_v14 = vadd.f32 %v15077_v8, %v1489_v7 }
 0x1a7   : > { %v1505_v48 = vadd.f32 %v1249_v10, %v793_v40  ;;  %v1803_v7 = vadd.f32 %v15070_v4, %v1506_v37 }
 0x1a8   : > { %v1498_v22 = vadd.f32 %v1242_v30, %v786_v42  ;;  %v1497_v52 = vadd.f32 %v1241_v29, %v785_v24  ;;  %v2043_v63 = vmax.f32 %v1787_v20, 0.0  ;;  %v2042_v23 = vmax.f32 %v1786_v14, 0.0 }
 0x1a9   : > { %v1802_v30 = vadd.f32 %v15077_v8, %v1505_v48 }
 0x1aa   : > { %v15531_v19 = vpop.permute.xlu1 %500  ;;  %v1795_v57 = vadd.f32 %v15070_v4, %v1498_v22  ;;  %v1794_v26 = vadd.f32 %v15077_v8, %v1497_v52 }
 0x1ab   : > { %20507 = vst [vmem:[#allocation88_spill] sm:$0xff] %v15531_v19  ;;  %v802_v24 = vmul.f32 %v15044_v53, %v15531_v19  ;;  %v2058_v29 = vmax.f32 %v1802_v30, 0.0 }
 0x1ac   : > { %v2051_v27 = vmax.f32 %v1795_v57, 0.0  ;;  %v2050_v0 = vmax.f32 %v1794_v26, 0.0 }
 0x1ae   : > { %v15535_v50 = vpack.c.bf16 %v2051_v27, %v2043_v63  ;;  %v15537_v42 = vpack.c.bf16 %v2050_v0, %v2042_v23  ;;  %v801_v27 = vmul.f32 %v15050_v55, %v15531_v19  ;;  %v15557_v63 = vpop.permute.xlu0 %510  ;;  %v2059_v23 = vmax.f32 %v1803_v7, 0.0 }
 0x1af   : > { %v15539_v34 = vpop.permute.xlu1 %966  ;;  %20512 = vst [vmem:[#allocation93_spill] sm:$0xff] %v15557_v63 }
 0x1b0   : > { %20508 = vst [vmem:[#allocation89_spill] sm:$0xff] %v15535_v50  ;;  %20509 = vst [vmem:[#allocation90_spill] sm:$0xff] %v15537_v42  ;;  %5511 = vmatprep.mubr.bf16.mxu0 %v15535_v50  ;;  %6283 = vmatprep.mubr.bf16.mxu1 %v15535_v50  ;;  %v1258_v57 = vmul.f32 %v15047_v54, %v15539_v34  ;;  %v1257_v0 = vmul.f32 %v15053_v56, %v15539_v34 }
 0x1b1   : > { %20510 = vst [vmem:[#allocation91_spill] sm:$0xff] %v15539_v34  ;;  %5512 = vmatmul.mubr.bf16.gmra.mrb[40].mxu0 %v15537_v42  ;;  %6284 = vmatmul.mubr.bf16.gmra.mrb[40].mxu1 %v15537_v42 }
 0x1b2   : > { %v1514_v26 = vadd.f32 %v1258_v57, %v802_v24  ;;  %v1513_v14 = vadd.f32 %v1257_v0, %v801_v27  ;;  %v15565_v22 = vpop.permute.xlu0 %978 }
 0x1b3   : > { %20515 = vst [vmem:[#allocation96_spill] sm:$0xff] %v15565_v22 }
 0x1b4   : > { %v15555_v52 = vpop.permute.xlu1 %505  ;;  %v1811_v37 = vadd.f32 %v15070_v4, %v1514_v26  ;;  %v1810_v48 = vadd.f32 %v15077_v8, %v1513_v14 }
 0x1b5   : > { %20511 = vst [vmem:[#allocation92_spill] sm:$0xff] %v15555_v52  ;;  %v810_v24 = vmul.f32 %v15044_v53, %v15555_v52  ;;  %v809_v30 = vmul.f32 %v15050_v55, %v15555_v52 }
 0x1b6   : > { %v2067_v60 = vmax.f32 %v1811_v37, 0.0  ;;  %v2066_v31 = vmax.f32 %v1810_v48, 0.0  ;;  %v15583_v14 = vpop.permute.xlu0 %515  ;;  %v818_v37 = vmul.f32 %v15044_v53, %v15557_v63  ;;  %v817_v48 = vmul.f32 %v15050_v55, %v15557_v63 }
 0x1b7   : > { %20518 = vst [vmem:[#allocation99_spill] sm:$0xff] %v15583_v14 }
 0x1b8   : > { %v15561_v40 = vpack.c.bf16 %v2067_v60, %v2059_v23  ;;  %v15563_v10 = vpack.c.bf16 %v2066_v31, %v2058_v29  ;;  %v826_v60 = vmul.f32 %v15044_v53, %v15583_v14  ;;  %v1282_v31 = vmul.f32 %v15047_v54, %v15565_v22 }
 0x1b9   : > { %v15567_v20 = vpop.permute.xlu1 %970 }
 0x1ba   : > { %20513 = vst [vmem:[#allocation94_spill] sm:$0xff] %v15561_v40  ;;  %20514 = vst [vmem:[#allocation95_spill] sm:$0xff] %v15563_v10  ;;  %5521 = vmatprep.mubr.bf16.mxu0 %v15561_v40  ;;  %6293 = vmatprep.mubr.bf16.mxu1 %v15561_v40  ;;  %v1266_v7 = vmul.f32 %v15047_v54, %v15567_v20  ;;  %v1265_v57 = vmul.f32 %v15053_v56, %v15567_v20 }
 0x1bb   : > { %20516 = vst [vmem:[#allocation97_spill] sm:$0xff] %v15567_v20  ;;  %5522 = vmatmul.mubr.bf16.gmra.mrb[44].mxu0 %v15563_v10  ;;  %6294 = vmatmul.mubr.bf16.gmra.mrb[44].mxu1 %v15563_v10  ;;  %v1538_v20 = vadd.f32 %v1282_v31, %v826_v60 }
 0x1bc   : > { %v1522_v27 = vadd.f32 %v1266_v7, %v810_v24  ;;  %v1521_v0 = vadd.f32 %v1265_v57, %v809_v30  ;;  %v825_v24 = vmul.f32 %v15050_v55, %v15583_v14  ;;  %v1281_v7 = vmul.f32 %v15053_v56, %v15565_v22 }
 0x1bd   : > { %v15581_v26 = vpop.permute.xlu1 %974  ;;  %v15608_v22 = vsub.s32 6, %v15022_v43 }
 0x1be   : > { %20517 = vst [vmem:[#allocation98_spill] sm:$0xff] %v15581_v26  ;;  %v1274_v23 = vmul.f32 %v15047_v54, %v15581_v26  ;;  %v1273_v29 = vmul.f32 %v15053_v56, %v15581_v26  ;;  %v1819_v57 = vadd.f32 %v15070_v4, %v1522_v27  ;;  %v1818_v40 = vadd.f32 %v15077_v8, %v1521_v0 }
 0x1bf   : > { %v1537_v63 = vadd.f32 %v1281_v7, %v825_v24  ;;  %20520 = vst [vmem:[#allocation101_spill] sm:$0xff] %v15608_v22 }
 0x1c0   : > { %v1530_v30 = vadd.f32 %v1274_v23, %v818_v37  ;;  %v1529_v10 = vadd.f32 %v1273_v29, %v817_v48  ;;  %v2075_v26 = vmax.f32 %v1819_v57, 0.0  ;;  %v2074_v14 = vmax.f32 %v1818_v40, 0.0  ;;  %v15637_v29 = vpop.permute.xlu0 %530 }
 0x1c1   : > { %v1834_v48 = vadd.f32 %v15077_v8, %v1537_v63  ;;  %v14455_v63 = vld [vmem:[#allocation3] sm:$0xff]  ;;  %20526 = vst [vmem:[#allocation107_spill] sm:$0xff] %v15637_v29 }
 0x1c2   : > { %v15603_v42 = vpop.permute.xlu1 %520  ;;  %v1827_v50 = vadd.f32 %v15070_v4, %v1530_v30  ;;  %v1826_v52 = vadd.f32 %v15077_v8, %v1529_v10  ;;  %v1835_v10 = vadd.f32 %v15070_v4, %v1538_v20  ;;  %v560_v40 = vrot.slane %v14455_v63, %v15608_v22 }
 0x1c3   : > { %20519 = vst [vmem:[#allocation100_spill] sm:$0xff] %v15603_v42  ;;  %v834_v23 = vmul.f32 %v15044_v53, %v15603_v42  ;;  %v15635_v20 = vsub.s32 4, %v15022_v43  ;;  %v2090_v57 = vmax.f32 %v1834_v48, 0.0 }
 0x1c4   : > { %v2083_v19 = vmax.f32 %v1827_v50, 0.0  ;;  %v2082_v34 = vmax.f32 %v1826_v52, 0.0  ;;  %v15621_v50 = vsub.s32 7, %v15022_v43  ;;  %v2091_v7 = vmax.f32 %v1835_v10, 0.0  ;;  %v15658_v10 = vpop.permute.xlu0 %535 }
 0x1c5   : > { %20525 = vst [vmem:[#allocation106_spill] sm:$0xff] %v15635_v20  ;;  %20531 = vst [vmem:[#allocation112_spill] sm:$0xff] %v15658_v10 }
 0x1c6   : > { %v15610_v37 = vpack.c.bf16 %v2083_v19, %v2075_v26  ;;  %v15612_v27 = vpack.c.bf16 %v2082_v34, %v2074_v14  ;;  %20524 = vst [vmem:[#allocation105_spill] sm:$0xff] %v15621_v50  ;;  %v833_v34 = vmul.f32 %v15050_v55, %v15603_v42  ;;  %v1016_v60 = vrot.slane %v14455_v63, %v15621_v50 }
 0x1c7   : > { %v15614_v0 = vpop.permute.xlu1 %982 }
 0x1c8   : > { %20521 = vst [vmem:[#allocation102_spill] sm:$0xff] %v15610_v37  ;;  %20522 = vst [vmem:[#allocation103_spill] sm:$0xff] %v15612_v27  ;;  %5531 = vmatprep.mubr.bf16.mxu0 %v15610_v37  ;;  %6303 = vmatprep.mubr.bf16.mxu1 %v15610_v37  ;;  %v1290_v19 = vmul.f32 %v15047_v54, %v15614_v0  ;;  %v1289_v52 = vmul.f32 %v15053_v56, %v15614_v0 }
 0x1c9   : > { %20523 = vst [vmem:[#allocation104_spill] sm:$0xff] %v15614_v0  ;;  %5532 = vmatmul.mubr.bf16.gmra.mrb[48].mxu0 %v15612_v27  ;;  %6304 = vmatmul.mubr.bf16.gmra.mrb[48].mxu1 %v15612_v27  ;;  %v15645_v27 = vrot.slane %v560_v40, %v15026_v44  ;;  %v556_v37 = vrot.slane %v14455_v63, %v15635_v20 }
 0x1ca   : > { %v1546_v26 = vadd.f32 %v1290_v19, %v834_v23  ;;  %v1545_v14 = vadd.f32 %v1289_v52, %v833_v34  ;;  %v15649_v23 = vsub.s32 5, %v15022_v43  ;;  %v15652_v52 = vrot.slane %v1016_v60, %v15032_v46 }
 0x1cb   : > { %v850_v20 = vmul.f32 %v15044_v53, %v15637_v29 }
 0x1cc   : > { %v15640_v31 = vpop.permute.xlu1 %525  ;;  %v1843_v24 = vadd.f32 %v15070_v4, %v1546_v26  ;;  %v1842_v30 = vadd.f32 %v15077_v8, %v1545_v14  ;;  %20528 = vst [vmem:[#allocation109_spill] sm:$0xff] %v15649_v23  ;;  %v620_v14 = vmul.f32 %v15645_v27, %v15058_v59  ;;  %v1012_v60 = vrot.slane %v14455_v63, %v15649_v23 }
 0x1cd   : > { %20527 = vst [vmem:[#allocation108_spill] sm:$0xff] %v15640_v31  ;;  %v842_v40 = vmul.f32 %v15044_v53, %v15640_v31  ;;  %v1076_v63 = vmul.f32 %v15652_v52, %v15056_v58  ;;  %v849_v23 = vmul.f32 %v15050_v55, %v15637_v29 }
 0x1ce   : > { %v2099_v19 = vmax.f32 %v1843_v24, 0.0  ;;  %v2098_v34 = vmax.f32 %v1842_v30, 0.0  ;;  %v15667_v24 = vrot.slane %v556_v37, %v15026_v44  ;;  %v841_v30 = vmul.f32 %v15050_v55, %v15640_v31  ;;  %v15699_v31 = vpop.permute.xlu0 %994 }
 0x1cf   : > { %v628_v37 = vmul.f32 %v15645_v27, %v15074_v6  ;;  %v15689_v22 = vrot.slane %v1012_v60, %v15032_v46  ;;  %20534 = vst [vmem:[#allocation115_spill] sm:$0xff] %v15699_v31 }
 0x1d0   : > { %v15654_v50 = vpack.c.bf16 %v2099_v19, %v2091_v7  ;;  %v15656_v26 = vpack.c.bf16 %v2098_v34, %v2090_v57  ;;  %v1084_v19 = vmul.f32 %v15652_v52, %v15072_v5 }
 0x1d1   : > { %v15660_v48 = vpop.permute.xlu1 %986 }
 0x1d2   : > { %20529 = vst [vmem:[#allocation110_spill] sm:$0xff] %v15654_v50  ;;  %20530 = vst [vmem:[#allocation111_spill] sm:$0xff] %v15656_v26  ;;  %5541 = vmatprep.mubr.bf16.mxu0 %v15654_v50  ;;  %6313 = vmatprep.mubr.bf16.mxu1 %v15654_v50  ;;  %v1298_v7 = vmul.f32 %v15047_v54, %v15660_v48  ;;  %v1297_v57 = vmul.f32 %v15053_v56, %v15660_v48 }
 0x1d3   : > { %20532 = vst [vmem:[#allocation113_spill] sm:$0xff] %v15660_v48  ;;  %5542 = vmatmul.mubr.bf16.gmra.mrb[52].mxu0 %v15656_v26  ;;  %6314 = vmatmul.mubr.bf16.gmra.mrb[52].mxu1 %v15656_v26 }
 0x1d4   : > { %v1554_v34 = vadd.f32 %v1298_v7, %v842_v40  ;;  %v1553_v43 = vadd.f32 %v1297_v57, %v841_v30  ;;  %v1332_v40 = vadd.f32 %v1076_v63, %v620_v14  ;;  %v1340_v7 = vadd.f32 %v1084_v19, %v628_v37  ;;  %v14456_v30 = vld [vmem:[#allocation6] sm:$0xff] }
 0x1d5   : > { %v15686_v50 = vpop.permute.xlu1 %990  ;;  %v15702_v60 = vrot.slane %v14456_v30, %v15035_v47  ;;  %v619_v57 = vmul.f32 %v15667_v24, %v15058_v59  ;;  %v857_v14 = vmul.f32 %v15050_v55, %v15658_v10  ;;  %v627_v37 = vmul.f32 %v15667_v24, %v15074_v6 }
 0x1d6   : > { %20533 = vst [vmem:[#allocation114_spill] sm:$0xff] %v15686_v50  ;;  %v1306_v26 = vmul.f32 %v15047_v54, %v15686_v50  ;;  %v1305_v44 = vmul.f32 %v15053_v56, %v15686_v50  ;;  %v1851_v48 = vadd.f32 %v15070_v4, %v1554_v34  ;;  %v1850_v29 = vadd.f32 %v15077_v8, %v1553_v43 }
 0x1d7   : > { %v858_v50 = vmul.f32 %v15044_v53, %v15658_v10  ;;  %v1075_v63 = vmul.f32 %v15689_v22, %v15056_v58  ;;  %v1314_v43 = vmul.f32 %v15047_v54, %v15699_v31  ;;  %v1083_v34 = vmul.f32 %v15689_v22, %v15072_v5 }
 0x1d8   : > { %v1562_v46 = vadd.f32 %v1306_v26, %v850_v20  ;;  %v1561_v42 = vadd.f32 %v1305_v44, %v849_v23  ;;  %v1313_v23 = vmul.f32 %v15053_v56, %v15699_v31  ;;  %v1637_v26 = vadd.f32 %v15702_v60, %v1340_v7 }
 0x1d9   : > { %v636_v58 = vmul.f32 %v15645_v27, %v15089_v15  ;;  %v1092_v6 = vmul.f32 %v15652_v52, %v15102_v35  ;;  %v1629_v10 = vadd.f32 %v15702_v60, %v1332_v40  ;;  %v1331_v0 = vadd.f32 %v1075_v63, %v619_v57 }
 0x1da   : > { %v15716_v19 = vpop.permute.xlu1 %540  ;;  %v1859_v20 = vadd.f32 %v15070_v4, %v1562_v46  ;;  %v1858_v44 = vadd.f32 %v15077_v8, %v1561_v42  ;;  %v2107_v46 = vmax.f32 %v1851_v48, 0.0  ;;  %v2106_v42 = vmax.f32 %v1850_v29, 0.0 }
 0x1db   : > { %20535 = vst [vmem:[#allocation116_spill] sm:$0xff] %v15716_v19  ;;  %v15733_v31 = vrot.slane %v14456_v30, %v15029_v45  ;;  %v1100_v7 = vmul.f32 %v15652_v52, %v15106_v49  ;;  %v1570_v36 = vadd.f32 %v1314_v43, %v858_v50  ;;  %v1569_v41 = vadd.f32 %v1313_v23, %v857_v14 }
 0x1dc   : > { %v2115_v59 = vmax.f32 %v1859_v20, 0.0  ;;  %v2114_v47 = vmax.f32 %v1858_v44, 0.0  ;;  %v866_v29 = vmul.f32 %v15044_v53, %v15716_v19  ;;  %v1339_v48 = vadd.f32 %v1083_v34, %v627_v37 }
 0x1dd   : > { %v644_v40 = vmul.f32 %v15645_v27, %v15092_v18  ;;  %v1348_v30 = vadd.f32 %v1092_v6, %v636_v58  ;;  %v1893_v57 = vmax.f32 %v1637_v26, 0.0  ;;  %v1885_v53 = vmax.f32 %v1629_v10, 0.0 }
 0x1de   : > { %v15737_v5 = vpack.c.bf16 %v2115_v59, %v2107_v46  ;;  %v15739_v13 = vpack.c.bf16 %v2114_v47, %v2106_v42  ;;  %v865_v59 = vmul.f32 %v15050_v55, %v15716_v19  ;;  %v1867_v14 = vadd.f32 %v15070_v4, %v1570_v36 }
 0x1df   : > { %v15741_v61 = vpop.permute.xlu1 %998  ;;  %v1356_v58 = vadd.f32 %v1100_v7, %v644_v40  ;;  %v1866_v63 = vadd.f32 %v15077_v8, %v1569_v41  ;;  %v1636_v55 = vadd.f32 %v15733_v31, %v1339_v48  ;;  %v1091_v20 = vmul.f32 %v15689_v22, %v15102_v35 }
 0x1e0   : > { %20536 = vst [vmem:[#allocation117_spill] sm:$0xff] %v15737_v5  ;;  %20537 = vst [vmem:[#allocation118_spill] sm:$0xff] %v15739_v13  ;;  %5551 = vmatprep.mubr.bf16.mxu0 %v15737_v5  ;;  %6323 = vmatprep.mubr.bf16.mxu1 %v15737_v5  ;;  %v1322_v47 = vmul.f32 %v15047_v54, %v15741_v61  ;;  %v1321_v50 = vmul.f32 %v15053_v56, %v15741_v61  ;;  %v2123_v34 = vmax.f32 %v1867_v14, 0.0 }
 0x1e1   : > { %20538 = vst [vmem:[#allocation119_spill] sm:$0xff] %v15741_v61  ;;  %5552 = vmatmul.mubr.bf16.gmra.mrb[56].mxu0 %v15739_v13  ;;  %6324 = vmatmul.mubr.bf16.gmra.mrb[56].mxu1 %v15739_v13  ;;  %v1628_v54 = vadd.f32 %v15733_v31, %v1331_v0  ;;  %v635_v56 = vmul.f32 %v15667_v24, %v15089_v15 }
 0x1e2   : > { %v1578_v6 = vadd.f32 %v1322_v47, %v866_v29  ;;  %v1577_v37 = vadd.f32 %v1321_v50, %v865_v59  ;;  %v15767_v43 = vpack.c.bf16 %v1893_v57, %v1885_v53  ;;  %v1645_v36 = vadd.f32 %v15702_v60, %v1348_v30 }
 0x1e3   : > { %v1653_v41 = vadd.f32 %v15702_v60, %v1356_v58  ;;  %v643_v0 = vmul.f32 %v15667_v24, %v15092_v18  ;;  %v1099_v23 = vmul.f32 %v15689_v22, %v15106_v49  ;;  %v1108_v26 = vmul.f32 %v15652_v52, %v15153_v51 }
 0x1e4   : > { %v1875_v44 = vadd.f32 %v15070_v4, %v1578_v6  ;;  %v1874_v10 = vadd.f32 %v15077_v8, %v1577_v37  ;;  %20539 = vst [vmem:[#allocation120_spill] sm:$0xff] %v15767_v43  ;;  %v2122_v4 = vmax.f32 %v1866_v63, 0.0  ;;  %v1347_v8 = vadd.f32 %v1091_v20, %v635_v56 }
 0x1e5   : > { %v652_v7 = vmul.f32 %v15645_v27, %v15136_v21  ;;  %v660_v29 = vmul.f32 %v15645_v27, %v15150_v32  ;;  %v1116_v48 = vmul.f32 %v15652_v52, %v15176_v17  ;;  %v659_v47 = vmul.f32 %v15667_v24, %v15150_v32 }
 0x1e6   : > { %v2131_v46 = vmax.f32 %v1875_v44, 0.0  ;;  %v2130_v42 = vmax.f32 %v1874_v10, 0.0  ;;  %v1115_v59 = vmul.f32 %v15689_v22, %v15176_v17  ;;  %v1355_v50 = vadd.f32 %v1099_v23, %v643_v0 }
 0x1e7   : > { %v1107_v57 = vmul.f32 %v15689_v22, %v15153_v51  ;;  %v668_v53 = vmul.f32 %v15645_v27, %v15172_v12  ;;  %v1124_v58 = vmul.f32 %v15652_v52, %v15129_v9  ;;  %v1364_v6 = vadd.f32 %v1108_v26, %v652_v7  ;;  %v2530_v7 = vld [vmem:[#allocation8 + $0x840] sm:$0xff] }
 0x1e8   : > { %v15783_v40 = vpack.c.bf16 %v2131_v46, %v2123_v34  ;;  %v15785_v30 = vpack.c.bf16 %v2130_v42, %v2122_v4  ;;  %v651_v14 = vmul.f32 %v15667_v24, %v15136_v21  ;;  %v1132_v37 = vmul.f32 %v15652_v52, %v15213_v28 }
 0x1e9   : > { %v1892_v63 = vmax.f32 %v1636_v55, 0.0  ;;  %v667_v56 = vmul.f32 %v15667_v24, %v15172_v12  ;;  %v1123_v20 = vmul.f32 %v15689_v22, %v15129_v9  ;;  %v1131_v44 = vmul.f32 %v15689_v22, %v15213_v28  ;;  %v15958_v9 = vld [vmem:[#allocation8 + $0xa00] sm:$0xff] }
 0x1ea   : > { %20540 = vst [vmem:[#allocation121_spill] sm:$0xff] %v15783_v40  ;;  %20541 = vst [vmem:[#allocation122_spill] sm:$0xff] %v15785_v30  ;;  %5561 = vmatprep.mubr.bf16.mxu0 %v15783_v40  ;;  %6333 = vmatprep.mubr.bf16.mxu1 %v15783_v40  ;;  %v1901_v10 = vmax.f32 %v1645_v36, 0.0  ;;  %v1372_v0 = vadd.f32 %v1116_v48, %v660_v29  ;;  %v1371_v23 = vadd.f32 %v1115_v59, %v659_v47  ;;  %v2531_v36 = vld [vmem:[#allocation8 + $0x848] sm:$0xff] }
 0x1eb   : > { %5562 = vmatmul.mubr.bf16.gmra.mrb[60].mxu0 %v15785_v30  ;;  %6334 = vmatmul.mubr.bf16.gmra.mrb[60].mxu1 %v15785_v30  ;;  %v676_v26 = vmul.f32 %v15645_v27, %v15199_v62  ;;  %v1909_v55 = vmax.f32 %v1653_v41, 0.0  ;;  %v1363_v34 = vadd.f32 %v1107_v57, %v651_v14  ;;  %v1380_v46 = vadd.f32 %v1124_v58, %v668_v53  ;;  %v2534_v30 = vld [vmem:[#allocation8 + $0x860] sm:$0xff]  ;;  %v2535_v29 = vld [vmem:[#allocation8 + $0x868] sm:$0xff] }
 0x1ec   : > { %5604 = vmatprep.mubr.bf16.mxu0 %v15767_v43  ;;  %6376 = vmatprep.mubr.bf16.mxu1 %v15767_v43  ;;  %v675_v4 = vmul.f32 %v15667_v24, %v15199_v62  ;;  %v1884_v42 = vmax.f32 %v1628_v54, 0.0  ;;  %v1644_v13 = vadd.f32 %v15733_v31, %v1347_v8  ;;  %v1652_v43 = vadd.f32 %v15733_v31, %v1355_v50 }
 0x1ed   : > { %v1388_v40 = vadd.f32 %v1132_v37, %v676_v26  ;;  %v1379_v48 = vadd.f32 %v1123_v20, %v667_v56  ;;  %v1661_v41 = vadd.f32 %v15702_v60, %v1364_v6  ;;  %v1669_v57 = vadd.f32 %v15702_v60, %v1372_v0  ;;  %v15828_v37 = vld [vmem:[#allocation8 + $0x880] sm:$0xff]  ;;  %v20544_v20 = vld [vmem:[#allocation44_spill] sm:$0xff] }
 0x1ee   : > { %v1387_v47 = vadd.f32 %v1131_v44, %v675_v4  ;;  %v15819_v59 = vpack.c.bf16 %v1892_v63, %v1884_v42  ;;  %v1668_v53 = vadd.f32 %v15733_v31, %v1371_v23  ;;  %v15824_v54 = vpack.c.bf16 %v1909_v55, %v1901_v10  ;;  %v15830_v56 = vld [vmem:[#allocation8 + $0x8a0] sm:$0xff]  ;;  %v2539_v26 = vld [vmem:[#allocation8 + $0x888] sm:$0xff] }
 0x1ef   : > { %v12880_v58 = vcombine.high %v2530_v7, %v2534_v30  ;;  %v1660_v14 = vadd.f32 %v15733_v31, %v1363_v34  ;;  %v1677_v8 = vadd.f32 %v15702_v60, %v1380_v46  ;;  %v12882_v50 = vcombine.high %v2531_v36, %v2535_v29  ;;  %v20545_v44 = vld [vmem:[#allocation51_spill] sm:$0xff] }
 0x1f0   : > { %20542 = vst [vmem:[#allocation123_spill] sm:$0xff] %v15819_v59  ;;  %20543 = vst [vmem:[#allocation124_spill] sm:$0xff] %v15824_v54  ;;  %v1685_v63 = vadd.f32 %v15702_v60, %v1388_v40  ;;  %v692_v6 = vmul.f32 %v15645_v27, %v20544_v20  ;;  %v1148_v0 = vmul.f32 %v15652_v52, %v20545_v44  ;;  %v1900_v10 = vmax.f32 %v1644_v13, 0.0  ;;  %v2543_v55 = vld [vmem:[#allocation8 + $0x8a8] sm:$0xff] }
 0x1f1   : > { %v1908_v23 = vmax.f32 %v1652_v43, 0.0  ;;  %v1676_v34 = vadd.f32 %v15733_v31, %v1379_v48  ;;  %v1684_v46 = vadd.f32 %v15733_v31, %v1387_v47  ;;  %v20546_v40 = vcombine.low %v15327_v1, %v15329_v11 }
 0x1f2   : > { %v12879_v4 = vcombine.low %v2530_v7, %v2534_v30  ;;  %v1917_v42 = vmax.f32 %v1661_v41, 0.0  ;;  %v1925_v5 = vmax.f32 %v1669_v57, 0.0  ;;  %v1924_v62 = vmax.f32 %v1668_v53, 0.0  ;;  %v2546_v41 = vld [vmem:[#allocation8 + $0x8c0] sm:$0xff] }
 0x1f3   : > { %5605 = vmatmul.mubr.bf16.vlgmr.msra.gmra.mrb[0].mxu0 %v15819_v59  ;;  %6377 = vmatmul.mubr.bf16.vlgmr.msra.gmra.mrb[0].mxu1 %v15819_v59  ;;  %v20547_v13 = vcombine.low %v15367_v2, %v15369_v25  ;;  %v12881_v43 = vcombine.low %v2531_v36, %v2535_v29  ;;  %v12888_v48 = vcombine.high %v15828_v37, %v15830_v56  ;;  %v1916_v47 = vmax.f32 %v1660_v14, 0.0  ;;  %v20548_v59 = vld [vmem:[#allocation49_spill] sm:$0xff]  ;;  %v2550_v53 = vld [vmem:[#allocation8 + $0x8e0] sm:$0xff]  ;;  %v2547_v36 = vld [vmem:[#allocation8 + $0x8c8] sm:$0xff] }
 0x1f4   : > { %5766 = vmatpush1.bf16.msra.mxu0 %v20546_v40  ;;  %5614 = vmatprep.mubr.bf16.mxu0 %v15824_v54  ;;  %v1140_v1 = vmul.f32 %v15652_v52, %v20548_v59  ;;  %v1933_v11 = vmax.f32 %v1677_v8, 0.0  ;;  %v1941_v30 = vmax.f32 %v1685_v63, 0.0  ;;  %v12890_v7 = vcombine.high %v2539_v26, %v2543_v55  ;;  %v20549_v25 = vld [vmem:[#allocation45_spill] sm:$0xff]  ;;  %v2551_v29 = vld [vmem:[#allocation8 + $0x8e8] sm:$0xff] }
 0x1f5   : > { %6386 = vmatprep.mubr.bf16.mxu1 %v15824_v54  ;;  %6538 = vmatpush1.bf16.msra.mxu1 %v20547_v13  ;;  %v1404_v57 = vadd.f32 %v1148_v0, %v692_v6  ;;  %v1932_v40 = vmax.f32 %v1676_v34, 0.0  ;;  %v1940_v54 = vmax.f32 %v1684_v46, 0.0  ;;  %v684_v2 = vmul.f32 %v15645_v27, %v20549_v25  ;;  %v15878_v46 = vld [vmem:[#allocation8 + $0xc00] sm:$0xff] }
 0x1f6   : > { %5767 = vmatprep.subr.bf16.mxu0 %v12880_v58  ;;  %6539 = vmatprep.subr.bf16.mxu1 %v12882_v50  ;;  %v15855_v13 = vpack.c.bf16 %v1908_v23, %v1900_v10  ;;  %v15857_v14 = vpack.c.bf16 %v1925_v5, %v1917_v42  ;;  %v15859_v58 = vpack.c.bf16 %v1924_v62, %v1916_v47  ;;  %v15866_v23 = vld [vmem:[#allocation8 + $0x900] sm:$0xff]  ;;  %v15870_v62 = vld [vmem:[#allocation8 + $0x908] sm:$0xff] }
 0x1f7   : > { %v12887_v8 = vcombine.low %v15828_v37, %v15830_v56  ;;  %v12889_v50 = vcombine.low %v2539_v26, %v2543_v55  ;;  %v1396_v63 = vadd.f32 %v1140_v1, %v684_v2  ;;  %v15863_v6 = vpack.c.bf16 %v1941_v30, %v1933_v11  ;;  %v15868_v5 = vld [vmem:[#allocation8 + $0x920] sm:$0xff]  ;;  %v2559_v55 = vld [vmem:[#allocation8 + $0x928] sm:$0xff] }
 0x1f8   : > { %20550 = vst [vmem:[#allocation125_spill] sm:$0xff] %v15855_v13  ;;  %5768 = vmatpush1.bf16.msra.mxu0 %v12879_v4  ;;  %20551 = vst [vmem:[#allocation126_spill] sm:$0xff] %v15857_v14  ;;  %v12896_v0 = vcombine.high %v2546_v41, %v2550_v53  ;;  %v1701_v34 = vadd.f32 %v15702_v60, %v1404_v57  ;;  %v12898_v10 = vcombine.high %v2547_v36, %v2551_v29  ;;  %v15880_v4 = vld [vmem:[#allocation8 + $0xc20] sm:$0xff] }
 0x1f9   : > { %20552 = vst [vmem:[#allocation127_spill] sm:$0xff] %v15859_v58  ;;  %6540 = vmatpush1.bf16.msra.mxu1 %v12881_v43  ;;  %5769 = vmatprep.subr.bf16.mxu0 %v12888_v48  ;;  %20553 = vst [vmem:[#allocation128_spill] sm:$0xff] %v15863_v6  ;;  %v12895_v37 = vcombine.low %v2546_v41, %v2550_v53  ;;  %v15874_v56 = vpack.c.bf16 %v1940_v54, %v1932_v40  ;;  %v20555_v43 = vld [vmem:[#allocation46_spill] sm:$0xff]  ;;  %v20557_v30 = vld [vmem:[#allocation55_spill] sm:$0xff] }
 0x1fa   : > { %6541 = vmatprep.subr.bf16.mxu1 %v12890_v7  ;;  %v691_v26 = vmul.f32 %v15667_v24, %v20544_v20  ;;  %v1147_v42 = vmul.f32 %v15689_v22, %v20545_v44  ;;  %v700_v48 = vmul.f32 %v15645_v27, %v20555_v43  ;;  %v20556_v54 = vld [vmem:[#allocation50_spill] sm:$0xff]  ;;  %v1693_v1 = vadd.f32 %v15702_v60, %v1396_v63 }
 0x1fb   : > { %5615 = vmatmul.mubr.bf16.gmra.mrb[4].mxu0 %v15855_v13  ;;  %6387 = vmatmul.mubr.bf16.gmra.mrb[4].mxu1 %v15855_v13  ;;  %20554 = vst [vmem:[#allocation129_spill] sm:$0xff] %v15874_v56  ;;  %v1156_v47 = vmul.f32 %v15652_v52, %v20556_v54  ;;  %v12897_v11 = vcombine.low %v2547_v36, %v2551_v29  ;;  %v1957_v41 = vmax.f32 %v1701_v34, 0.0  ;;  %v2562_v40 = vld [vmem:[#allocation8 + $0x940] sm:$0xff]  ;;  %v2563_v34 = vld [vmem:[#allocation8 + $0x948] sm:$0xff] }
 0x1fc   : > { %5624 = vmatprep.mubr.bf16.mxu0 %v15857_v14  ;;  %6396 = vmatprep.mubr.bf16.mxu1 %v15857_v14  ;;  %v1164_v7 = vmul.f32 %v15652_v52, %v20557_v30  ;;  %v12904_v57 = vcombine.high %v15866_v23, %v15868_v5  ;;  %v12906_v53 = vcombine.high %v15870_v62, %v2559_v55  ;;  %v2566_v29 = vld [vmem:[#allocation8 + $0x960] sm:$0xff]  ;;  %v1949_v44 = vmax.f32 %v1693_v1, 0.0 }
 0x1fd   : > { %5770 = vmatpush1.bf16.msra.mxu0 %v12887_v8  ;;  %6542 = vmatpush1.bf16.msra.mxu1 %v12889_v50  ;;  %v1139_v8 = vmul.f32 %v15689_v22, %v20548_v59  ;;  %v20558_v50 = vld [vmem:[#allocation52_spill] sm:$0xff]  ;;  %v699_v63 = vmul.f32 %v15667_v24, %v20555_v43  ;;  %v683_v14 = vmul.f32 %v15667_v24, %v20549_v25 }
 0x1fe   : > { %5771 = vmatprep.subr.bf16.mxu0 %v12896_v0  ;;  %6543 = vmatprep.subr.bf16.mxu1 %v12898_v10  ;;  %v708_v36 = vmul.f32 %v15645_v27, %v20558_v50  ;;  %v1155_v0 = vmul.f32 %v15689_v22, %v20556_v54  ;;  %v2567_v10 = vld [vmem:[#allocation8 + $0x968] sm:$0xff]  ;;  %v1403_v13 = vadd.f32 %v1147_v42, %v691_v26  ;;  %v15915_v42 = vld [vmem:[#allocation8 + $0x980] sm:$0xff] }
 0x1ff   : > { %v1412_v2 = vadd.f32 %v1156_v47, %v700_v48  ;;  %v1163_v59 = vmul.f32 %v15689_v22, %v20557_v30  ;;  %v12903_v20 = vcombine.low %v15866_v23, %v15868_v5  ;;  %v12905_v28 = vcombine.low %v15870_v62, %v2559_v55  ;;  %v2574_v5 = vld [vmem:[#allocation8 + $0x9a0] sm:$0xff]  ;;  %v2571_v47 = vld [vmem:[#allocation8 + $0x988] sm:$0xff] }
 0x200   : > { %v1420_v43 = vadd.f32 %v1164_v7, %v708_v36  ;;  %v12912_v54 = vcombine.high %v2562_v40, %v2566_v29  ;;  %v707_v25 = vmul.f32 %v15667_v24, %v20558_v50  ;;  %v12914_v26 = vcombine.high %v2563_v34, %v2567_v10  ;;  %v2575_v62 = vld [vmem:[#allocation8 + $0x9a8] sm:$0xff]  ;;  %v15937_v36 = vld [vmem:[#allocation8 + $0x9c0] sm:$0xff] }
 0x201   : > { %5772 = vmatpush1.bf16.msra.mxu0 %v12895_v37  ;;  %6544 = vmatpush1.bf16.msra.mxu1 %v12897_v11  ;;  %v15919_v37 = vpack.c.bf16 %v1957_v41, %v1949_v44  ;;  %v1395_v48 = vadd.f32 %v1139_v8, %v683_v14  ;;  %v1411_v23 = vadd.f32 %v1155_v0, %v699_v63  ;;  %v15929_v7 = vld [vmem:[#allocation8 + $0xc08] sm:$0xff] }
 0x202   : > { %5773 = vmatprep.subr.bf16.mxu0 %v12904_v57  ;;  %6545 = vmatprep.subr.bf16.mxu1 %v12906_v53  ;;  %v15924_v55 = vadd.f32 %v15733_v31, %v1403_v13  ;;  %v15927_v1 = vadd.f32 %v15702_v60, %v1412_v2  ;;  %v1419_v11 = vadd.f32 %v1163_v59, %v707_v25  ;;  %v15931_v44 = vld [vmem:[#allocation8 + $0xc28] sm:$0xff]  ;;  %v20560_v53 = vld [vmem:[#allocation58_spill] sm:$0xff]  ;;  %v20561_v25 = vld [vmem:[#allocation61_spill] sm:$0xff] }
 0x203   : > { %5625 = vmatmul.mubr.bf16.gmra.mrb[8].mxu0 %v15859_v58  ;;  %6397 = vmatmul.mubr.bf16.gmra.mrb[8].mxu1 %v15859_v58  ;;  %20559 = vst [vmem:[#allocation130_spill] sm:$0xff] %v15919_v37  ;;  %v1717_v14 = vadd.f32 %v15702_v60, %v1420_v43  ;;  %v12911_v41 = vcombine.low %v2562_v40, %v2566_v29  ;;  %v20562_v63 = vld [vmem:[#allocation63_spill] sm:$0xff] }
 0x204   : > { %5634 = vmatprep.mubr.bf16.mxu0 %v15863_v6  ;;  %6406 = vmatprep.mubr.bf16.mxu1 %v15863_v6  ;;  %v12913_v57 = vcombine.low %v2563_v34, %v2567_v10  ;;  %v724_v8 = vmul.f32 %v15645_v27, %v20560_v53  ;;  %v12920_v13 = vcombine.high %v15915_v42, %v2574_v5  ;;  %v2582_v43 = vld [vmem:[#allocation8 + $0x9e0] sm:$0xff]  ;;  %v2579_v40 = vld [vmem:[#allocation8 + $0x9c8] sm:$0xff]  ;;  %v20563_v10 = vld [vmem:[#allocation57_spill] sm:$0xff]  ;;  %v1956_v29 = vmax.f32 %v15924_v55, 0.0 }
 0x205   : > { %5774 = vmatpush1.bf16.msra.mxu0 %v12903_v20  ;;  %6546 = vmatpush1.bf16.msra.mxu1 %v12905_v28  ;;  %v12922_v2 = vcombine.high %v2571_v47, %v2575_v62  ;;  %v1708_v59 = vadd.f32 %v15733_v31, %v1411_v23  ;;  %v1172_v20 = vmul.f32 %v15652_v52, %v20561_v25  ;;  %v2591_v55 = vld [vmem:[#allocation8 + $0xa28] sm:$0xff] }
 0x206   : > { %5775 = vmatprep.subr.bf16.mxu0 %v12912_v54  ;;  %6547 = vmatprep.subr.bf16.mxu1 %v12914_v26  ;;  %v1180_v28 = vmul.f32 %v15652_v52, %v20562_v63  ;;  %v2583_v54 = vld [vmem:[#allocation8 + $0x9e8] sm:$0xff]  ;;  %v1692_v0 = vadd.f32 %v15733_v31, %v1395_v48  ;;  %v1716_v34 = vadd.f32 %v15733_v31, %v1419_v11  ;;  %v1965_v48 = vmax.f32 %v15927_v1, 0.0 }
 0x207   : > { %v716_v26 = vmul.f32 %v15645_v27, %v20563_v10  ;;  %v12919_v23 = vcombine.low %v15915_v42, %v2574_v5  ;;  %v723_v6 = vmul.f32 %v15667_v24, %v20560_v53  ;;  %v1179_v58 = vmul.f32 %v15689_v22, %v20562_v63  ;;  %v20564_v63 = vld [vmem:[#allocation62_spill] sm:$0xff]  ;;  %v2635_v53 = vld [vmem:[#allocation8 + $0xb88] sm:$0xff] }
 0x208   : > { %v12921_v50 = vcombine.low %v2571_v47, %v2575_v62  ;;  %v12928_v11 = vcombine.high %v15937_v36, %v2582_v43  ;;  %v12930_v30 = vcombine.high %v2579_v40, %v2583_v54  ;;  %v1973_v42 = vmax.f32 %v1717_v14, 0.0  ;;  %v2590_v47 = vld [vmem:[#allocation8 + $0xa20] sm:$0xff]  ;;  %v2587_v62 = vld [vmem:[#allocation8 + $0xa08] sm:$0xff] }
 0x209   : > { %5776 = vmatpush1.bf16.msra.mxu0 %v12911_v41  ;;  %6548 = vmatpush1.bf16.msra.mxu1 %v12913_v57  ;;  %v1964_v5 = vmax.f32 %v1708_v59, 0.0  ;;  %v1428_v41 = vadd.f32 %v1172_v20, %v716_v26  ;;  %v1436_v57 = vadd.f32 %v1180_v28, %v724_v8  ;;  %v1972_v1 = vmax.f32 %v1716_v34, 0.0 }
 0x20a   : > { %5777 = vmatprep.subr.bf16.mxu0 %v12920_v13  ;;  %6549 = vmatprep.subr.bf16.mxu1 %v12922_v2  ;;  %v715_v13 = vmul.f32 %v15667_v24, %v20563_v10  ;;  %v1171_v2 = vmul.f32 %v15689_v22, %v20561_v25  ;;  %v732_v14 = vmul.f32 %v15645_v27, %v20564_v63  ;;  %v1948_v59 = vmax.f32 %v1692_v0, 0.0 }
 0x20b   : > { %5635 = vmatmul.mubr.bf16.gmra.mrb[12].mxu0 %v15874_v56  ;;  %6407 = vmatmul.mubr.bf16.gmra.mrb[12].mxu1 %v15874_v56  ;;  %v1435_v20 = vadd.f32 %v1179_v58, %v723_v6  ;;  %v12927_v8 = vcombine.low %v15937_v36, %v2582_v43  ;;  %v12929_v28 = vcombine.low %v2579_v40, %v2583_v54  ;;  %v2594_v56 = vld [vmem:[#allocation8 + $0xa40] sm:$0xff]  ;;  %v2595_v36 = vld [vmem:[#allocation8 + $0xa48] sm:$0xff] }
 0x20c   : > { %5644 = vmatprep.mubr.bf16.mxu0 %v15919_v37  ;;  %6416 = vmatprep.mubr.bf16.mxu1 %v15919_v37  ;;  %v1188_v26 = vmul.f32 %v15652_v52, %v15311_v39  ;;  %v12936_v34 = vcombine.high %v15958_v9, %v2590_v47  ;;  %v12938_v37 = vcombine.high %v2587_v62, %v2591_v55  ;;  %v2599_v43 = vld [vmem:[#allocation8 + $0xa68] sm:$0xff] }
 0x20d   : > { %5778 = vmatpush1.bf16.msra.mxu0 %v12919_v23  ;;  %6550 = vmatpush1.bf16.msra.mxu1 %v12921_v50  ;;  %v15974_v25 = vpack.c.bf16 %v1956_v29, %v1948_v59  ;;  %v15976_v10 = vpack.c.bf16 %v1973_v42, %v1965_v48  ;;  %v1725_v58 = vadd.f32 %v15702_v60, %v1428_v41  ;;  %v2598_v50 = vld [vmem:[#allocation8 + $0xa60] sm:$0xff] }
 0x20e   : > { %5779 = vmatprep.subr.bf16.mxu0 %v12928_v11  ;;  %6551 = vmatprep.subr.bf16.mxu1 %v12930_v30  ;;  %v1196_v6 = vmul.f32 %v15652_v52, %v15392_v33  ;;  %v15981_v40 = vpack.c.bf16 %v1972_v1, %v1964_v5  ;;  %v1733_v30 = vadd.f32 %v15702_v60, %v1436_v57  ;;  %v15988_v5 = vld [vmem:[#allocation8 + $0xa80] sm:$0xff] }
 0x20f   : > { %20565 = vst [vmem:[#allocation131_spill] sm:$0xff] %v15974_v25  ;;  %20566 = vst [vmem:[#allocation132_spill] sm:$0xff] %v15976_v10  ;;  %v1427_v54 = vadd.f32 %v1171_v2, %v715_v13  ;;  %v740_v0 = vmul.f32 %v15645_v27, %v15383_v3  ;;  %v1732_v29 = vadd.f32 %v15733_v31, %v1435_v20 }
 0x210   : > { %20567 = vst [vmem:[#allocation133_spill] sm:$0xff] %v15981_v40  ;;  %v12935_v23 = vcombine.low %v15958_v9, %v2590_v47  ;;  %v12937_v48 = vcombine.low %v2587_v62, %v2591_v55  ;;  %v1444_v11 = vadd.f32 %v1188_v26, %v732_v14  ;;  %v12944_v42 = vcombine.high %v2594_v56, %v2598_v50  ;;  %v2606_v9 = vld [vmem:[#allocation8 + $0xaa0] sm:$0xff]  ;;  %v2603_v47 = vld [vmem:[#allocation8 + $0xa88] sm:$0xff] }
 0x211   : > { %5780 = vmatpush1.bf16.msra.mxu0 %v12927_v8  ;;  %6552 = vmatpush1.bf16.msra.mxu1 %v12929_v28  ;;  %v12946_v41 = vcombine.high %v2595_v36, %v2599_v43  ;;  %v1452_v57 = vadd.f32 %v1196_v6, %v740_v0  ;;  %v731_v1 = vmul.f32 %v15667_v24, %v20564_v63  ;;  %v2607_v62 = vld [vmem:[#allocation8 + $0xaa8] sm:$0xff]  ;;  %v1989_v14 = vmax.f32 %v1733_v30, 0.0  ;;  %v2610_v6 = vld [vmem:[#allocation8 + $0xac0] sm:$0xff] }
 0x212   : > { %5781 = vmatprep.subr.bf16.mxu0 %v12936_v34  ;;  %6553 = vmatprep.subr.bf16.mxu1 %v12938_v37  ;;  %v1187_v13 = vmul.f32 %v15689_v22, %v15311_v39  ;;  %v1195_v37 = vmul.f32 %v15689_v22, %v15392_v33  ;;  %v756_v55 = vmul.f32 %v15645_v27, %v15411_v38  ;;  %v1981_v0 = vmax.f32 %v1725_v58, 0.0  ;;  %v2614_v33 = vld [vmem:[#allocation8 + $0xae0] sm:$0xff] }
 0x213   : > { %5645 = vmatmul.mubr.bf16.gmra.mrb[16].mxu0 %v15974_v25  ;;  %6417 = vmatmul.mubr.bf16.gmra.mrb[16].mxu1 %v15974_v25  ;;  %v1212_v2 = vmul.f32 %v15652_v52, %v15443_v16  ;;  %v1724_v59 = vadd.f32 %v15733_v31, %v1427_v54  ;;  %v12943_v20 = vcombine.low %v2594_v56, %v2598_v50  ;;  %v2611_v54 = vld [vmem:[#allocation8 + $0xac8] sm:$0xff]  ;;  %v2638_v63 = vld [vmem:[#allocation8 + $0xba0] sm:$0xff] }
 0x214   : > { %5654 = vmatprep.mubr.bf16.mxu0 %v15976_v10  ;;  %6426 = vmatprep.mubr.bf16.mxu1 %v15976_v10  ;;  %v12945_v8 = vcombine.low %v2595_v36, %v2599_v43  ;;  %v739_v28 = vmul.f32 %v15667_v24, %v15383_v3  ;;  %v12952_v26 = vcombine.high %v15988_v5, %v2606_v9  ;;  %v1988_v10 = vmax.f32 %v1732_v29, 0.0  ;;  %v20568_v36 = vld [vmem:[#allocation73_spill] sm:$0xff] }
 0x215   : > { %5782 = vmatpush1.bf16.msra.mxu0 %v12935_v23  ;;  %6554 = vmatpush1.bf16.msra.mxu1 %v12937_v48  ;;  %v12954_v34 = vcombine.high %v2603_v47, %v2607_v62  ;;  %v1741_v25 = vadd.f32 %v15702_v60, %v1444_v11  ;;  %v1443_v30 = vadd.f32 %v1187_v13, %v731_v1  ;;  %v2615_v23 = vld [vmem:[#allocation8 + $0xae8] sm:$0xff]  ;;  %v20570_v11 = vld [vmem:[#allocation69_spill] sm:$0xff] }
 0x216   : > { %5783 = vmatprep.subr.bf16.mxu0 %v12944_v42  ;;  %6555 = vmatprep.subr.bf16.mxu1 %v12946_v41  ;;  %v1749_v56 = vadd.f32 %v15702_v60, %v1452_v57  ;;  %v1451_v50 = vadd.f32 %v1195_v37, %v739_v28  ;;  %v1204_v43 = vmul.f32 %v15652_v52, %v20568_v36  ;;  %v1980_v41 = vmax.f32 %v1724_v59, 0.0  ;;  %v2618_v37 = vld [vmem:[#allocation8 + $0xb00] sm:$0xff] }
 0x217   : > { %v1468_v48 = vadd.f32 %v1212_v2, %v756_v55  ;;  %v16012_v42 = vpack.c.bf16 %v1989_v14, %v1981_v0  ;;  %v12951_v58 = vcombine.low %v15988_v5, %v2606_v9  ;;  %v12953_v29 = vcombine.low %v2603_v47, %v2607_v62  ;;  %v2622_v59 = vld [vmem:[#allocation8 + $0xb20] sm:$0xff]  ;;  %v2619_v5 = vld [vmem:[#allocation8 + $0xb08] sm:$0xff] }
 0x218   : > { %v748_v1 = vmul.f32 %v15645_v27, %v20570_v11  ;;  %v12960_v13 = vcombine.high %v2610_v6, %v2614_v33  ;;  %v12962_v57 = vcombine.high %v2611_v54, %v2615_v23  ;;  %v16019_v55 = vpack.c.bf16 %v1988_v10, %v1980_v41  ;;  %v2623_v9 = vld [vmem:[#allocation8 + $0xb28] sm:$0xff] }
 0x219   : > { %20569 = vst [vmem:[#allocation134_spill] sm:$0xff] %v16012_v42  ;;  %5784 = vmatpush1.bf16.msra.mxu0 %v12943_v20  ;;  %6556 = vmatpush1.bf16.msra.mxu1 %v12945_v8  ;;  %v1997_v2 = vmax.f32 %v1741_v25, 0.0  ;;  %v1740_v14 = vadd.f32 %v15733_v31, %v1443_v30  ;;  %v2005_v47 = vmax.f32 %v1749_v56, 0.0  ;;  %v1748_v62 = vadd.f32 %v15733_v31, %v1451_v50  ;;  %v2626_v30 = vld [vmem:[#allocation8 + $0xb40] sm:$0xff] }
 0x21a   : > { %5785 = vmatprep.subr.bf16.mxu0 %v12952_v26  ;;  %6557 = vmatprep.subr.bf16.mxu1 %v12954_v34  ;;  %20571 = vst [vmem:[#allocation135_spill] sm:$0xff] %v16019_v55  ;;  %v1460_v20 = vadd.f32 %v1204_v43, %v748_v1  ;;  %v1765_v8 = vadd.f32 %v15702_v60, %v1468_v48  ;;  %v20572_v50 = vld [vmem:[#allocation70_spill] sm:$0xff] }
 0x21b   : > { %5655 = vmatmul.mubr.bf16.gmra.mrb[20].mxu0 %v15981_v40  ;;  %6427 = vmatmul.mubr.bf16.gmra.mrb[20].mxu1 %v15981_v40  ;;  %v755_v10 = vmul.f32 %v15667_v24, %v15411_v38  ;;  %v12959_v25 = vcombine.low %v2610_v6, %v2614_v33  ;;  %v12961_v28 = vcombine.low %v2611_v54, %v2615_v23  ;;  %v20573_v48 = vld [vmem:[#allocation74_spill] sm:$0xff]  ;;  %v2627_v54 = vld [vmem:[#allocation8 + $0xb48] sm:$0xff]  ;;  %v1996_v1 = vmax.f32 %v1740_v14, 0.0 }
 0x21c   : > { %5664 = vmatprep.mubr.bf16.mxu0 %v16012_v42  ;;  %6436 = vmatprep.mubr.bf16.mxu1 %v16012_v42  ;;  %v1203_v26 = vmul.f32 %v15689_v22, %v20568_v36  ;;  %v12968_v34 = vcombine.high %v2618_v37, %v2622_v59  ;;  %v12970_v0 = vcombine.high %v2619_v5, %v2623_v9  ;;  %v2630_v6 = vld [vmem:[#allocation8 + $0xb60] sm:$0xff]  ;;  %v2631_v23 = vld [vmem:[#allocation8 + $0xb68] sm:$0xff]  ;;  %v2004_v42 = vmax.f32 %v1748_v62, 0.0 }
 0x21d   : > { %5786 = vmatpush1.bf16.msra.mxu0 %v12951_v58  ;;  %6558 = vmatpush1.bf16.msra.mxu1 %v12953_v29  ;;  %v1211_v56 = vmul.f32 %v15689_v22, %v15443_v16  ;;  %v764_v43 = vmul.f32 %v15645_v27, %v20572_v50  ;;  %v1220_v41 = vmul.f32 %v15652_v52, %v20573_v48  ;;  %v20574_v58 = vld [vmem:[#allocation79_spill] sm:$0xff]  ;;  %v20576_v40 = vld [vmem:[#allocation76_spill] sm:$0xff]  ;;  %v2021_v3 = vmax.f32 %v1765_v8, 0.0 }
 0x21e   : > { %5787 = vmatprep.subr.bf16.mxu0 %v12960_v13  ;;  %6559 = vmatprep.subr.bf16.mxu1 %v12962_v57  ;;  %v1228_v33 = vmul.f32 %v15652_v52, %v20574_v58  ;;  %v16038_v29 = vpack.c.bf16 %v2005_v47, %v1997_v2  ;;  %v1757_v13 = vadd.f32 %v15702_v60, %v1460_v20  ;;  %v2634_v14 = vld [vmem:[#allocation8 + $0xb80] sm:$0xff] }
 0x21f   : > { %v747_v57 = vmul.f32 %v15667_v24, %v20570_v11  ;;  %v772_v36 = vmul.f32 %v15645_v27, %v20576_v40  ;;  %v12967_v16 = vcombine.low %v2618_v37, %v2622_v59  ;;  %v12969_v38 = vcombine.low %v2619_v5, %v2623_v9 }
 0x220   : > { %20575 = vst [vmem:[#allocation70_spill] sm:$0xff] %v16038_v29  ;;  %v12976_v2 = vcombine.high %v2626_v30, %v2630_v6  ;;  %v12978_v47 = vcombine.high %v2627_v54, %v2631_v23  ;;  %v1467_v20 = vadd.f32 %v1211_v56, %v755_v10  ;;  %v1476_v62 = vadd.f32 %v1220_v41, %v764_v43  ;;  %v2646_v56 = vld [vmem:[#allocation8 + $0xbe0] sm:$0xff]  ;;  %v20579_v41 = vld [vmem:[#allocation84_spill] sm:$0xff] }
 0x221   : > { %5788 = vmatpush1.bf16.msra.mxu0 %v12959_v25  ;;  %6560 = vmatpush1.bf16.msra.mxu1 %v12961_v28  ;;  %v1459_v39 = vadd.f32 %v1203_v26, %v747_v57  ;;  %v1484_v11 = vadd.f32 %v1228_v33, %v772_v36  ;;  %v2639_v25 = vld [vmem:[#allocation8 + $0xba8] sm:$0xff]  ;;  %v2013_v37 = vmax.f32 %v1757_v13, 0.0  ;;  %v16049_v59 = vpack.c.bf16 %v2004_v42, %v1996_v1  ;;  %v2642_v28 = vld [vmem:[#allocation8 + $0xbc0] sm:$0xff] }
 0x222   : > { %5789 = vmatprep.subr.bf16.mxu0 %v12968_v34  ;;  %6561 = vmatprep.subr.bf16.mxu1 %v12970_v0  ;;  %v12975_v5 = vcombine.low %v2626_v30, %v2630_v6  ;;  %v12977_v9 = vcombine.low %v2627_v54, %v2631_v23  ;;  %v12984_v10 = vcombine.high %v2634_v14, %v2638_v63  ;;  %v20580_v33 = vld [vmem:[#allocation87_spill] sm:$0xff] }
 0x223   : > { %5665 = vmatmul.mubr.bf16.gmra.mrb[24].mxu0 %v16019_v55  ;;  %6437 = vmatmul.mubr.bf16.gmra.mrb[24].mxu1 %v16019_v55  ;;  %20577 = vst [vmem:[#allocation74_spill] sm:$0xff] %v16049_v59  ;;  %v16051_v8 = vpack.c.bf16 %v2021_v3, %v2013_v37  ;;  %v12986_v36 = vcombine.high %v2635_v53, %v2639_v25 }
 0x224   : > { %5674 = vmatprep.mubr.bf16.mxu0 %v16038_v29  ;;  %6446 = vmatprep.mubr.bf16.mxu1 %v16038_v29  ;;  %v1756_v26 = vadd.f32 %v15733_v31, %v1459_v39  ;;  %v1764_v34 = vadd.f32 %v15733_v31, %v1467_v20  ;;  %v1773_v0 = vadd.f32 %v15702_v60, %v1476_v62 }
 0x225   : > { %5790 = vmatpush1.bf16.msra.mxu0 %v12967_v16  ;;  %6562 = vmatpush1.bf16.msra.mxu1 %v12969_v38  ;;  %20578 = vst [vmem:[#allocation79_spill] sm:$0xff] %v16051_v8  ;;  %v1781_v42 = vadd.f32 %v15702_v60, %v1484_v11  ;;  %v2643_v16 = vld [vmem:[#allocation8 + $0xbc8] sm:$0xff]  ;;  %v763_v3 = vmul.f32 %v15667_v24, %v20572_v50 }
 0x226   : > { %5791 = vmatprep.subr.bf16.mxu0 %v12976_v2  ;;  %6563 = vmatprep.subr.bf16.mxu1 %v12978_v47  ;;  %v2647_v38 = vld [vmem:[#allocation8 + $0xbe8] sm:$0xff]  ;;  %v1219_v30 = vmul.f32 %v15689_v22, %v20573_v48  ;;  %v1227_v43 = vmul.f32 %v15689_v22, %v20574_v58  ;;  %v788_v39 = vmul.f32 %v15645_v27, %v20579_v41  ;;  %v2020_v57 = vmax.f32 %v1764_v34, 0.0 }
 0x227   : > { %v1244_v6 = vmul.f32 %v15652_v52, %v20580_v33  ;;  %v12983_v11 = vcombine.low %v2634_v14, %v2638_v63  ;;  %v12985_v54 = vcombine.low %v2635_v53, %v2639_v25  ;;  %v771_v23 = vmul.f32 %v15667_v24, %v20576_v40  ;;  %v20581_v14 = vld [vmem:[#allocation85_spill] sm:$0xff] }
 0x228   : > { %v12992_v1 = vcombine.high %v2642_v28, %v2646_v56  ;;  %v12994_v13 = vcombine.high %v2643_v16, %v2647_v38  ;;  %v2029_v2 = vmax.f32 %v1773_v0, 0.0  ;;  %v2037_v47 = vmax.f32 %v1781_v42, 0.0 }
 0x229   : > { %5792 = vmatpush1.bf16.msra.mxu0 %v12975_v5  ;;  %6564 = vmatpush1.bf16.msra.mxu1 %v12977_v9  ;;  %v1475_v63 = vadd.f32 %v1219_v30, %v763_v3  ;;  %v1483_v53 = vadd.f32 %v1227_v43, %v771_v23  ;;  %v1236_v20 = vmul.f32 %v15652_v52, %v20581_v14  ;;  %v2012_v62 = vmax.f32 %v1756_v26, 0.0  ;;  %v20582_v9 = vld [vmem:[#allocation81_spill] sm:$0xff]  ;;  %v20585_v43 = vld [vmem:[#allocation86_spill] sm:$0xff] }
 0x22a   : > { %5793 = vmatprep.subr.bf16.mxu0 %v12984_v10  ;;  %6565 = vmatprep.subr.bf16.mxu1 %v12986_v36  ;;  %v1500_v25 = vadd.f32 %v1244_v6, %v788_v39  ;;  %v12991_v37 = vcombine.low %v2642_v28, %v2646_v56  ;;  %v12993_v5 = vcombine.low %v2643_v16, %v2647_v38  ;;  %v20586_v6 = vld [vmem:[#allocation80_spill] sm:$0xff] }
 0x22b   : > { %5675 = vmatmul.mubr.bf16.gmra.mrb[28].mxu0 %v16049_v59  ;;  %6447 = vmatmul.mubr.bf16.gmra.mrb[28].mxu1 %v16049_v59  ;;  %v780_v10 = vmul.f32 %v15645_v27, %v20582_v9  ;;  %v13000_v36 = vcombine.high %v15878_v46, %v15880_v4  ;;  %v13002_v34 = vcombine.high %v15929_v7, %v15931_v44 }
 0x22c   : > { %5684 = vmatprep.mubr.bf16.mxu0 %v16051_v8  ;;  %6456 = vmatprep.mubr.bf16.mxu1 %v16051_v8  ;;  %v16081_v0 = vpack.c.bf16 %v2020_v57, %v2012_v62  ;;  %v16083_v42 = vpack.c.bf16 %v2037_v47, %v2029_v2  ;;  %v1772_v26 = vadd.f32 %v15733_v31, %v1475_v63  ;;  %v20588_v2 = vld [vmem:[#allocation88_spill] sm:$0xff] }
 0x22d   : > { %5794 = vmatpush1.bf16.msra.mxu0 %v12983_v11  ;;  %6566 = vmatpush1.bf16.msra.mxu1 %v12985_v54  ;;  %v1492_v3 = vadd.f32 %v1236_v20, %v780_v10  ;;  %v787_v28 = vmul.f32 %v15667_v24, %v20579_v41  ;;  %v1243_v56 = vmul.f32 %v15689_v22, %v20580_v33  ;;  %v20587_v54 = vld [vmem:[#allocation91_spill] sm:$0xff] }
 0x22e   : > { %5795 = vmatprep.subr.bf16.mxu0 %v12992_v1  ;;  %6567 = vmatprep.subr.bf16.mxu1 %v12994_v13  ;;  %20583 = vst [vmem:[#allocation76_spill] sm:$0xff] %v16081_v0  ;;  %20584 = vst [vmem:[#allocation84_spill] sm:$0xff] %v16083_v42  ;;  %v1780_v16 = vadd.f32 %v15733_v31, %v1483_v53  ;;  %v1797_v38 = vadd.f32 %v15702_v60, %v1500_v25  ;;  %v2028_v63 = vmax.f32 %v1772_v26, 0.0 }
 0x22f   : > { %v1235_v30 = vmul.f32 %v15689_v22, %v20581_v14  ;;  %v796_v39 = vmul.f32 %v15645_v27, %v20585_v43  ;;  %v1252_v11 = vmul.f32 %v15652_v52, %v20586_v6  ;;  %v1260_v23 = vmul.f32 %v15652_v52, %v20587_v54 }
 0x230   : > { %v779_v1 = vmul.f32 %v15667_v24, %v20582_v9  ;;  %v1789_v13 = vadd.f32 %v15702_v60, %v1492_v3  ;;  %v1499_v57 = vadd.f32 %v1243_v56, %v787_v28  ;;  %v804_v47 = vmul.f32 %v15645_v27, %v20588_v2 }
 0x231   : > { %5796 = vmatpush1.bf16.msra.mxu0 %v12991_v37  ;;  %6568 = vmatpush1.bf16.msra.mxu1 %v12993_v5  ;;  %v2036_v53 = vmax.f32 %v1780_v16, 0.0  ;;  %v2053_v62 = vmax.f32 %v1797_v38, 0.0  ;;  %v1508_v25 = vadd.f32 %v1252_v11, %v796_v39  ;;  %v1259_v26 = vmul.f32 %v15689_v22, %v20587_v54  ;;  %v2723_v54 = vld [vmem:[#allocation8 + $0xe48] sm:$0xff] }
 0x232   : > { %5958 = vmatprep.subr.bf16.mxu0 %v13000_v36  ;;  %6730 = vmatprep.subr.bf16.mxu1 %v13002_v34  ;;  %v1491_v20 = vadd.f32 %v1235_v30, %v779_v1  ;;  %v1516_v37 = vadd.f32 %v1260_v23, %v804_v47  ;;  %v2045_v5 = vmax.f32 %v1789_v13, 0.0  ;;  %v1796_v10 = vadd.f32 %v15733_v31, %v1499_v57  ;;  %v20591_v30 = vld [vmem:[#allocation98_spill] sm:$0xff]  ;;  %v20592_v13 = vld [vmem:[#allocation93_spill] sm:$0xff] }
 0x233   : > { %5685 = vmatmul.mubr.bf16.gmra.mrb[32].mxu0 %v16081_v0  ;;  %6457 = vmatmul.mubr.bf16.gmra.mrb[32].mxu1 %v16081_v0  ;;  %v795_v36 = vmul.f32 %v15667_v24, %v20585_v43  ;;  %v1251_v34 = vmul.f32 %v15689_v22, %v20586_v6  ;;  %v16114_v3 = vpack.c.bf16 %v2036_v53, %v2028_v63  ;;  %v20593_v47 = vld [vmem:[#allocation97_spill] sm:$0xff]  ;;  %v20597_v0 = vld [vmem:[#allocation104_spill] sm:$0xff] }
 0x234   : > { %5694 = vmatprep.mubr.bf16.mxu0 %v16083_v42  ;;  %6466 = vmatprep.mubr.bf16.mxu1 %v16083_v42  ;;  %v1788_v28 = vadd.f32 %v15733_v31, %v1491_v20  ;;  %v16119_v56 = vpack.c.bf16 %v2053_v62, %v2045_v5  ;;  %v1805_v16 = vadd.f32 %v15702_v60, %v1508_v25  ;;  %v2052_v23 = vmax.f32 %v1796_v10, 0.0 }
 0x235   : > { %20589 = vst [vmem:[#allocation87_spill] sm:$0xff] %v16114_v3  ;;  %v1813_v38 = vadd.f32 %v15702_v60, %v1516_v37  ;;  %v1276_v39 = vmul.f32 %v15652_v52, %v20591_v30  ;;  %v803_v11 = vmul.f32 %v15667_v24, %v20588_v2  ;;  %v1507_v1 = vadd.f32 %v1251_v34, %v795_v36  ;;  %v20594_v37 = vld [vmem:[#allocation92_spill] sm:$0xff] }
 0x236   : > { %20590 = vst [vmem:[#allocation136_spill] sm:$0xff] %v16119_v56  ;;  %v820_v57 = vmul.f32 %v15645_v27, %v20592_v13  ;;  %v1268_v63 = vmul.f32 %v15652_v52, %v20593_v47  ;;  %v2044_v53 = vmax.f32 %v1788_v28, 0.0  ;;  %v2061_v62 = vmax.f32 %v1805_v16, 0.0  ;;  %v20596_v36 = vld [vmem:[#allocation96_spill] sm:$0xff] }
 0x237   : > { %v1515_v20 = vadd.f32 %v1259_v26, %v803_v11  ;;  %v2069_v25 = vmax.f32 %v1813_v38, 0.0  ;;  %v812_v5 = vmul.f32 %v15645_v27, %v20594_v37  ;;  %v1275_v42 = vmul.f32 %v15689_v22, %v20591_v30 }
 0x238   : > { %v1284_v34 = vmul.f32 %v15652_v52, %v20596_v36  ;;  %v1292_v8 = vmul.f32 %v15652_v52, %v20597_v0  ;;  %v16145_v28 = vpack.c.bf16 %v2052_v23, %v2044_v53  ;;  %v1804_v26 = vadd.f32 %v15733_v31, %v1507_v1 }
 0x239   : > { %v1524_v16 = vadd.f32 %v1268_v63, %v812_v5  ;;  %v1812_v38 = vadd.f32 %v15733_v31, %v1515_v20  ;;  %v1267_v11 = vmul.f32 %v15689_v22, %v20593_v47  ;;  %v16155_v29 = vpack.c.bf16 %v2069_v25, %v2061_v62  ;;  %v20621_v47 = vld [vmem:[#allocation106_spill] sm:$0xff] }
 0x23a   : > { %20598 = vst [vmem:[#allocation137_spill] sm:$0xff] %v16145_v28  ;;  %v811_v23 = vmul.f32 %v15667_v24, %v20594_v37  ;;  %v2060_v25 = vmax.f32 %v1804_v26, 0.0 }
 0x23b   : > { %5695 = vmatmul.mubr.bf16.gmra.mrb[36].mxu0 %v16114_v3  ;;  %6467 = vmatmul.mubr.bf16.gmra.mrb[36].mxu1 %v16114_v3  ;;  %v1532_v3 = vadd.f32 %v1276_v39, %v820_v57  ;;  %v819_v39 = vmul.f32 %v15667_v24, %v20592_v13  ;;  %v20599_v57 = vld [vmem:[#allocation100_spill] sm:$0xff]  ;;  %20600 = vst [vmem:[#allocation138_spill] sm:$0xff] %v16155_v29  ;;  %v2068_v5 = vmax.f32 %v1812_v38, 0.0  ;;  %v20602_v38 = vld [vmem:[#allocation107_spill] sm:$0xff] }
 0x23c   : > { %5704 = vmatprep.mubr.bf16.mxu0 %v16119_v56  ;;  %6476 = vmatprep.mubr.bf16.mxu1 %v16119_v56  ;;  %v20595_v56 = vld [vmem:[#allocation99_spill] sm:$0xff]  ;;  %v836_v59 = vmul.f32 %v15645_v27, %v20599_v57  ;;  %v1821_v20 = vadd.f32 %v15702_v60, %v1524_v16  ;;  %v1523_v13 = vadd.f32 %v1267_v11, %v811_v23  ;;  %v20603_v23 = vld [vmem:[#allocation113_spill] sm:$0xff] }
 0x23d   : > { %v828_v10 = vmul.f32 %v15645_v27, %v20595_v56  ;;  %v1829_v55 = vadd.f32 %v15702_v60, %v1532_v3  ;;  %v1531_v1 = vadd.f32 %v1275_v42, %v819_v39  ;;  %v827_v62 = vmul.f32 %v15667_v24, %v20595_v56 }
 0x23e   : > { %v1548_v53 = vadd.f32 %v1292_v8, %v836_v59  ;;  %v1283_v3 = vmul.f32 %v15689_v22, %v20596_v36  ;;  %v1291_v42 = vmul.f32 %v15689_v22, %v20597_v0  ;;  %v20601_v59 = vld [vmem:[#allocation114_spill] sm:$0xff]  ;;  %v852_v11 = vmul.f32 %v15645_v27, %v20602_v38  ;;  %v381_v0 = vld [vmem:[#allocation3 + $0x8] sm:$0xff] }
 0x23f   : > { %v1540_v63 = vadd.f32 %v1284_v34, %v828_v10  ;;  %v2085_v10 = vmax.f32 %v1829_v55, 0.0  ;;  %v1308_v8 = vmul.f32 %v15652_v52, %v20601_v59  ;;  %v1828_v34 = vadd.f32 %v15733_v31, %v1531_v1 }
 0x240   : > { %v1845_v39 = vadd.f32 %v15702_v60, %v1548_v53  ;;  %v1539_v26 = vadd.f32 %v1283_v3, %v827_v62  ;;  %v1300_v55 = vmul.f32 %v15652_v52, %v20603_v23  ;;  %v16182_v36 = vpack.c.bf16 %v2068_v5, %v2060_v25  ;;  %v20606_v53 = vld [vmem:[#allocation108_spill] sm:$0xff] }
 0x241   : > { %v1837_v16 = vadd.f32 %v15702_v60, %v1540_v63  ;;  %v1820_v1 = vadd.f32 %v15733_v31, %v1523_v13  ;;  %v844_v37 = vmul.f32 %v15645_v27, %v20606_v53  ;;  %v568_v30 = vrot.slane %v381_v0, %v15029_v45 }
 0x242   : > { %20604 = vst [vmem:[#allocation139_spill] sm:$0xff] %v16182_v36  ;;  %v2101_v3 = vmax.f32 %v1845_v39, 0.0 }
 0x243   : > { %5705 = vmatmul.mubr.bf16.gmra.mrb[40].mxu0 %v16145_v28  ;;  %6477 = vmatmul.mubr.bf16.gmra.mrb[40].mxu1 %v16145_v28  ;;  %v2077_v28 = vmax.f32 %v1821_v20, 0.0  ;;  %v2084_v20 = vmax.f32 %v1828_v34, 0.0  ;;  %v2093_v62 = vmax.f32 %v1837_v16, 0.0  ;;  %v1556_v13 = vadd.f32 %v1300_v55, %v844_v37  ;;  %v20609_v16 = vld [vmem:[#allocation18_spill] sm:$0xff] }
 0x244   : > { %5714 = vmatprep.mubr.bf16.mxu0 %v16155_v29  ;;  %6486 = vmatprep.mubr.bf16.mxu1 %v16155_v29  ;;  %v835_v29 = vmul.f32 %v15667_v24, %v20599_v57  ;;  %v1564_v57 = vadd.f32 %v1308_v8, %v852_v11  ;;  %v1307_v34 = vmul.f32 %v15689_v22, %v20601_v59 }
 0x245   : > { %v16185_v63 = vpack.c.bf16 %v2085_v10, %v2077_v28  ;;  %v2076_v28 = vmax.f32 %v1820_v1, 0.0  ;;  %v16201_v8 = vpack.c.bf16 %v2101_v3, %v2093_v62  ;;  %v16206_v39 = vrot.slane %v568_v30, %v20609_v16  ;;  %v20610_v1 = vld [vmem:[#allocation112_spill] sm:$0xff]  ;;  %v20611_v62 = vld [vmem:[#allocation21_spill] sm:$0xff] }
 0x246   : > { %v1547_v56 = vadd.f32 %v1291_v42, %v835_v29  ;;  %v1836_v29 = vadd.f32 %v15733_v31, %v1539_v26  ;;  %v1861_v5 = vadd.f32 %v15702_v60, %v1564_v57  ;;  %v1299_v42 = vmul.f32 %v15689_v22, %v20603_v23 }
 0x247   : > { %20605 = vst [vmem:[#allocation140_spill] sm:$0xff] %v16185_v63  ;;  %v16199_v10 = vpack.c.bf16 %v2084_v20, %v2076_v28  ;;  %20608 = vst [vmem:[#allocation142_spill] sm:$0xff] %v16201_v8  ;;  %v1853_v37 = vadd.f32 %v15702_v60, %v1556_v13  ;;  %v1324_v57 = vmul.f32 %v15652_v52, %v15741_v61  ;;  %v20612_v13 = vld [vmem:[#allocation115_spill] sm:$0xff] }
 0x248   : > { %v1844_v25 = vadd.f32 %v15733_v31, %v1547_v56  ;;  %v2092_v26 = vmax.f32 %v1836_v29, 0.0  ;;  %v843_v56 = vmul.f32 %v15667_v24, %v20606_v53  ;;  %v851_v55 = vmul.f32 %v15667_v24, %v20602_v38 }
 0x249   : > { %20607 = vst [vmem:[#allocation141_spill] sm:$0xff] %v16199_v10  ;;  %v860_v20 = vmul.f32 %v15645_v27, %v20610_v1  ;;  %v1024_v3 = vrot.slane %v381_v0, %v20611_v62  ;;  %v2117_v30 = vmax.f32 %v1861_v5, 0.0  ;;  %v868_v29 = vmul.f32 %v15645_v27, %v15716_v19  ;;  %v20614_v62 = vld [vmem:[#allocation23_spill] sm:$0xff] }
 0x24a   : > { %v2100_v11 = vmax.f32 %v1844_v25, 0.0  ;;  %v1555_v28 = vadd.f32 %v1299_v42, %v843_v56  ;;  %v1563_v25 = vadd.f32 %v1307_v34, %v851_v55  ;;  %v564_v5 = vrot.slane %v381_v0, %v20609_v16  ;;  %v20613_v42 = vld [vmem:[#allocation20_spill] sm:$0xff] }
 0x24b   : > { %5715 = vmatmul.mubr.bf16.gmra.mrb[44].mxu0 %v16182_v36  ;;  %6487 = vmatmul.mubr.bf16.gmra.mrb[44].mxu1 %v16182_v36  ;;  %v2109_v36 = vmax.f32 %v1853_v37, 0.0  ;;  %v1580_v45 = vadd.f32 %v1324_v57, %v868_v29  ;;  %v1020_v56 = vrot.slane %v381_v0, %v20613_v42  ;;  %v622_v27 = vmul.f32 %v16206_v39, %v20614_v62  ;;  %v20617_v29 = vld [vmem:[#allocation25_spill] sm:$0xff] }
 0x24c   : > { %5724 = vmatprep.mubr.bf16.mxu0 %v16185_v63  ;;  %6496 = vmatprep.mubr.bf16.mxu1 %v16185_v63  ;;  %v1316_v63 = vmul.f32 %v15652_v52, %v20612_v13  ;;  %v16231_v52 = vrot.slane %v1024_v3, %v20613_v42  ;;  %v16233_v53 = vpack.c.bf16 %v2100_v11, %v2092_v26 }
 0x24d   : > { %v1852_v34 = vadd.f32 %v15733_v31, %v1555_v28  ;;  %v1860_v37 = vadd.f32 %v15733_v31, %v1563_v25  ;;  %v1323_v57 = vmul.f32 %v15689_v22, %v15741_v61  ;;  %v630_v0 = vmul.f32 %v16206_v39, %v20617_v29  ;;  %v14457_v61 = vld [vmem:[#allocation6] sm:$0xff] }
 0x24e   : > { %20615 = vst [vmem:[#allocation143_spill] sm:$0xff] %v16233_v53  ;;  %v1572_v55 = vadd.f32 %v1316_v63, %v860_v20  ;;  %v1877_v3 = vadd.f32 %v15702_v60, %v1580_v45  ;;  %v16249_v26 = vrot.slane %v564_v5, %v20609_v16  ;;  %v16252_v63 = vrot.slane %v1020_v56, %v20613_v42 }
 0x24f   : > { %v867_v11 = vmul.f32 %v15667_v24, %v15716_v19  ;;  %v1315_v20 = vmul.f32 %v15689_v22, %v20612_v13  ;;  %v638_v45 = vmul.f32 %v16206_v39, %v15089_v15  ;;  %v1094_v56 = vmul.f32 %v16231_v52, %v15102_v35 }
 0x250   : > { %v629_v25 = vmul.f32 %v16249_v26, %v20617_v29  ;;  %v1869_v22 = vadd.f32 %v15702_v60, %v1572_v55  ;;  %v646_v13 = vmul.f32 %v16206_v39, %v15092_v18  ;;  %v2116_v19 = vmax.f32 %v1860_v37, 0.0  ;;  %v20620_v60 = vld [vmem:[#allocation109_spill] sm:$0xff] }
 0x251   : > { %v1579_v42 = vadd.f32 %v1323_v57, %v867_v11  ;;  %v16282_v55 = vrot.slane %v14457_v61, %v20620_v60  ;;  %v16287_v2 = vrot.slane %v14457_v61, %v20621_v47 }
 0x252   : > { %v2125_v38 = vmax.f32 %v1869_v22, 0.0  ;;  %v653_v22 = vmul.f32 %v16249_v26, %v15136_v21 }
 0x253   : > { %5725 = vmatmul.mubr.bf16.gmra.mrb[48].mxu0 %v16199_v10  ;;  %6497 = vmatmul.mubr.bf16.gmra.mrb[48].mxu1 %v16199_v10  ;;  %v16235_v10 = vpack.c.bf16 %v2117_v30, %v2109_v36  ;;  %v859_v36 = vmul.f32 %v15667_v24, %v20610_v1  ;;  %v20619_v30 = vld [vmem:[#allocation22_spill] sm:$0xff]  ;;  %v1102_v24 = vmul.f32 %v16231_v52, %v15106_v49 }
 0x254   : > { %5734 = vmatprep.mubr.bf16.mxu0 %v16201_v8  ;;  %6506 = vmatprep.mubr.bf16.mxu1 %v16201_v8  ;;  %v20618_v8 = vld [vmem:[#allocation24_spill] sm:$0xff]  ;;  %v1078_v28 = vmul.f32 %v16231_v52, %v20619_v30  ;;  %v1077_v29 = vmul.f32 %v16252_v63, %v20619_v30 }
 0x255   : > { %20616 = vst [vmem:[#allocation144_spill] sm:$0xff] %v16235_v10  ;;  %v1086_v23 = vmul.f32 %v16231_v52, %v20618_v8  ;;  %v1085_v5 = vmul.f32 %v16252_v63, %v20618_v8  ;;  %v621_v8 = vmul.f32 %v16249_v26, %v20614_v62  ;;  %v1571_v1 = vadd.f32 %v1315_v20, %v859_v36  ;;  %v16307_v20 = vld [vmem:[#allocation8 + $0xc40] sm:$0xff] }
 0x256   : > { %v1358_v11 = vadd.f32 %v1102_v24, %v646_v13  ;;  %v1876_v62 = vadd.f32 %v15733_v31, %v1579_v42  ;;  %v669_v24 = vmul.f32 %v16249_v26, %v15172_v12 }
 0x257   : > { %v1342_v16 = vadd.f32 %v1086_v23, %v630_v0  ;;  %v2133_v23 = vmax.f32 %v1877_v3, 0.0  ;;  %v1341_v57 = vadd.f32 %v1085_v5, %v629_v25  ;;  %v1350_v0 = vadd.f32 %v1094_v56, %v638_v45 }
 0x258   : > { %v1333_v59 = vadd.f32 %v1077_v29, %v621_v8  ;;  %v1655_v42 = vadd.f32 %v16282_v55, %v1358_v11  ;;  %v2132_v61 = vmax.f32 %v1876_v62, 0.0  ;;  %v1093_v8 = vmul.f32 %v16252_v63, %v15102_v35 }
 0x259   : > { %v1639_v30 = vadd.f32 %v16282_v55, %v1342_v16  ;;  %v16293_v3 = vpack.c.bf16 %v2133_v23, %v2125_v38  ;;  %v1638_v13 = vadd.f32 %v16287_v2, %v1341_v57  ;;  %v1101_v62 = vmul.f32 %v16252_v63, %v15106_v49  ;;  %v16430_v49 = vld [vmem:[#allocation8 + $0x18] sm:$0xff] }
 0x25a   : > { %v1911_v29 = vmax.f32 %v1655_v42, 0.0  ;;  %v645_v56 = vmul.f32 %v16249_v26, %v15092_v18  ;;  %v1110_v57 = vmul.f32 %v16231_v52, %v15153_v51  ;;  %v20634_v18 = vcombine.low %v15878_v46, %v15880_v4  ;;  %v16415_v46 = vld [vmem:[#allocation8 + $0xcc0] sm:$0xff] }
 0x25b   : > { %5735 = vmatmul.mubr.bf16.gmra.mrb[52].mxu0 %v16233_v53  ;;  %6507 = vmatmul.mubr.bf16.gmra.mrb[52].mxu1 %v16233_v53  ;;  %v1334_v53 = vadd.f32 %v1078_v28, %v622_v27  ;;  %v1868_v27 = vadd.f32 %v15733_v31, %v1571_v1  ;;  %20623 = vst [vmem:[#allocation146_spill] sm:$0xff] %v16293_v3  ;;  %v1895_v31 = vmax.f32 %v1639_v30, 0.0  ;;  %v1894_v16 = vmax.f32 %v1638_v13, 0.0  ;;  %v16309_v28 = vld [vmem:[#allocation8 + $0xc60] sm:$0xff]  ;;  %v16335_v13 = vld [vmem:[#allocation8 + $0xc48] sm:$0xff] }
 0x25c   : > { %5744 = vmatprep.mubr.bf16.mxu0 %v16235_v10  ;;  %6516 = vmatprep.mubr.bf16.mxu1 %v16235_v10  ;;  %v2108_v10 = vmax.f32 %v1852_v34, 0.0  ;;  %v1647_v34 = vadd.f32 %v16282_v55, %v1350_v0  ;;  %v1118_v30 = vmul.f32 %v16231_v52, %v15176_v17 }
 0x25d   : > { %v1631_v36 = vadd.f32 %v16282_v55, %v1334_v53  ;;  %v2124_v38 = vmax.f32 %v1868_v27, 0.0  ;;  %v1357_v27 = vadd.f32 %v1101_v62, %v645_v56  ;;  %v1109_v62 = vmul.f32 %v16252_v63, %v15153_v51  ;;  %v20631_v51 = vld [vmem:[#allocation44_spill] sm:$0xff] }
 0x25e   : > { %v16289_v37 = vpack.c.bf16 %v2116_v19, %v2108_v10  ;;  %v1630_v19 = vadd.f32 %v16287_v2, %v1333_v59  ;;  %v637_v10 = vmul.f32 %v16249_v26, %v15089_v15  ;;  %v1903_v1 = vmax.f32 %v1647_v34, 0.0  ;;  %v16337_v34 = vld [vmem:[#allocation8 + $0xc68] sm:$0xff] }
 0x25f   : > { %v1887_v53 = vmax.f32 %v1631_v36, 0.0  ;;  %v662_v59 = vmul.f32 %v16206_v39, %v15150_v32  ;;  %v16317_v45 = vpack.c.bf16 %v2132_v61, %v2124_v38  ;;  %v654_v36 = vmul.f32 %v16206_v39, %v15136_v21  ;;  %v20628_v38 = vld [vmem:[#allocation32_spill] sm:$0xff] }
 0x260   : > { %20622 = vst [vmem:[#allocation145_spill] sm:$0xff] %v16289_v37  ;;  %v1886_v5 = vmax.f32 %v1630_v19, 0.0  ;;  %v1349_v23 = vadd.f32 %v1093_v8, %v637_v10  ;;  %v16331_v11 = vpack.c.bf16 %v1911_v29, %v1903_v1  ;;  %v661_v61 = vmul.f32 %v16249_v26, %v15150_v32  ;;  %v20629_v10 = vld [vmem:[#allocation43_spill] sm:$0xff] }
 0x261   : > { %20624 = vst [vmem:[#allocation147_spill] sm:$0xff] %v16317_v45  ;;  %v16319_v25 = vpack.c.bf16 %v1895_v31, %v1887_v53  ;;  %v1374_v42 = vadd.f32 %v1118_v30, %v662_v59  ;;  %v1117_v31 = vmul.f32 %v16252_v63, %v15176_v17  ;;  %v670_v19 = vmul.f32 %v16206_v39, %v15172_v12  ;;  %v16358_v59 = vld [vmem:[#allocation8 + $0x10] sm:$0xff] }
 0x262   : > { %v16329_v0 = vpack.c.bf16 %v1894_v16, %v1886_v5  ;;  %20627 = vst [vmem:[#allocation150_spill] sm:$0xff] %v16331_v11  ;;  %v1126_v53 = vmul.f32 %v16231_v52, %v20628_v38  ;;  %v1134_v8 = vmul.f32 %v16231_v52, %v20629_v10  ;;  %v1646_v16 = vadd.f32 %v16287_v2, %v1349_v23  ;;  %v16360_v30 = vld [vmem:[#allocation8 + $0x30] sm:$0xff] }
 0x263   : > { %5745 = vmatmul.mubr.bf16.gmra.mrb[56].mxu0 %v16289_v37  ;;  %6517 = vmatmul.mubr.bf16.gmra.mrb[56].mxu1 %v16289_v37  ;;  %20625 = vst [vmem:[#allocation148_spill] sm:$0xff] %v16319_v25  ;;  %v1366_v1 = vadd.f32 %v1110_v57, %v654_v36  ;;  %v20630_v5 = vld [vmem:[#allocation40_spill] sm:$0xff]  ;;  %v1125_v23 = vmul.f32 %v16252_v63, %v20628_v38 }
 0x264   : > { %5754 = vmatprep.mubr.bf16.mxu0 %v16293_v3  ;;  %6526 = vmatprep.mubr.bf16.mxu1 %v16293_v3  ;;  %20626 = vst [vmem:[#allocation149_spill] sm:$0xff] %v16329_v0  ;;  %v678_v56 = vmul.f32 %v16206_v39, %v20630_v5  ;;  %v1133_v57 = vmul.f32 %v16252_v63, %v20629_v10  ;;  %v16376_v3 = vld [vmem:[#allocation8 + $0xca0] sm:$0xff] }
 0x265   : > { %v1654_v36 = vadd.f32 %v16287_v2, %v1357_v27  ;;  %v1671_v29 = vadd.f32 %v16282_v55, %v1374_v42  ;;  %v1382_v37 = vadd.f32 %v1126_v53, %v670_v19  ;;  %v677_v38 = vmul.f32 %v16249_v26, %v20630_v5  ;;  %v16389_v19 = vld [vmem:[#allocation8 + $0xc88] sm:$0xff]  ;;  %v20633_v5 = vld [vmem:[#allocation49_spill] sm:$0xff] }
 0x266   : > { %v1390_v12 = vadd.f32 %v1134_v8, %v678_v56  ;;  %v13010_v27 = vcombine.high %v16335_v13, %v16337_v34  ;;  %v1365_v42 = vadd.f32 %v1109_v62, %v653_v22  ;;  %v694_v21 = vmul.f32 %v16206_v39, %v20631_v51  ;;  %v16391_v53 = vld [vmem:[#allocation8 + $0xca8] sm:$0xff] }
 0x267   : > { %v1663_v17 = vadd.f32 %v16282_v55, %v1366_v1  ;;  %v1381_v8 = vadd.f32 %v1125_v23, %v669_v24  ;;  %v1389_v56 = vadd.f32 %v1133_v57, %v677_v38  ;;  %v1142_v10 = vmul.f32 %v16231_v52, %v20633_v5  ;;  %v20635_v57 = vld [vmem:[#allocation45_spill] sm:$0xff] }
 0x268   : > { %v1902_v22 = vmax.f32 %v1646_v16, 0.0  ;;  %v1910_v62 = vmax.f32 %v1654_v36, 0.0  ;;  %v1927_v24 = vmax.f32 %v1671_v29, 0.0  ;;  %v1679_v38 = vadd.f32 %v16282_v55, %v1382_v37  ;;  %v16420_v29 = vld [vmem:[#allocation8 + $0xce0] sm:$0xff] }
 0x269   : > { %v1687_v23 = vadd.f32 %v16282_v55, %v1390_v12  ;;  %v686_v16 = vmul.f32 %v16206_v39, %v20635_v57  ;;  %v20636_v36 = vcombine.low %v15929_v7, %v15931_v44  ;;  %v20637_v12 = vcombine.high %v16307_v20, %v16309_v28 }
 0x26a   : > { %v1919_v37 = vmax.f32 %v1663_v17, 0.0  ;;  %v1686_v7 = vadd.f32 %v16287_v2, %v1389_v56  ;;  %v16432_v17 = vld [vmem:[#allocation8 + $0x38] sm:$0xff] }
 0x26b   : > { %5755 = vmatmul.mubr.bf16.gmra.mrb[60].mxu0 %v16317_v45  ;;  %6527 = vmatmul.mubr.bf16.gmra.mrb[60].mxu1 %v16317_v45  ;;  %v16374_v45 = vld [vmem:[#allocation8 + $0xc80] sm:$0xff]  ;;  %v1398_v44 = vadd.f32 %v1142_v10, %v686_v16  ;;  %v1935_v10 = vmax.f32 %v1679_v38, 0.0  ;;  %v1943_v56 = vmax.f32 %v1687_v23, 0.0  ;;  %v1141_v23 = vmul.f32 %v16252_v63, %v20633_v5  ;;  %v2683_v16 = vld [vmem:[#allocation8 + $0xd08] sm:$0xff] }
 0x26c   : > { %5797 = vmatprep.mubr.bf16.mxu0 %v16319_v25  ;;  %6569 = vmatprep.mubr.bf16.mxu1 %v16319_v25  ;;  %v1373_v25 = vadd.f32 %v1117_v31, %v661_v61  ;;  %v20632_v61 = vld [vmem:[#allocation51_spill] sm:$0xff]  ;;  %v13016_v32 = vcombine.high %v16374_v45, %v16376_v3 }
 0x26d   : > { %v1150_v31 = vmul.f32 %v16231_v52, %v20632_v61 }
 0x26e   : > { %v1670_v1 = vadd.f32 %v16287_v2, %v1373_v25  ;;  %v1662_v25 = vadd.f32 %v16287_v2, %v1365_v42  ;;  %v16424_v42 = vld [vmem:[#allocation8 + $0xcc8] sm:$0xff] }
 0x26f   : > { %v1406_v4 = vadd.f32 %v1150_v31, %v694_v21  ;;  %v13015_v21 = vcombine.low %v16374_v45, %v16376_v3  ;;  %v13024_v45 = vcombine.high %v16415_v46, %v16420_v29 }
 0x270   : > { %v1926_v31 = vmax.f32 %v1670_v1, 0.0  ;;  %v1918_v3 = vmax.f32 %v1662_v25, 0.0  ;;  %v16465_v25 = vpack.c.bf16 %v1943_v56, %v1935_v10  ;;  %v20646_v56 = vld [vmem:[#allocation50_spill] sm:$0xff] }
 0x271   : > { %v1703_v1 = vadd.f32 %v16282_v55, %v1406_v4 }
 0x272   : > { %20643 = vst [vmem:[#allocation154_spill] sm:$0xff] %v16465_v25 }
 0x273   : > { %5798 = vmatmul.mubr.bf16.vlgmr.msra.gmra.mrb[0].mxu0 %v16329_v0  ;;  %6570 = vmatmul.mubr.bf16.vlgmr.msra.gmra.mrb[0].mxu1 %v16329_v0  ;;  %v16426_v0 = vpack.c.bf16 %v1910_v62, %v1902_v22  ;;  %v13017_v22 = vcombine.low %v16389_v19, %v16391_v53  ;;  %v20641_v62 = vcombine.low %v16335_v13, %v16337_v34 }
 0x274   : > { %5959 = vmatpush1.bf16.msra.mxu0 %v20634_v18  ;;  %5807 = vmatprep.mubr.bf16.mxu0 %v16331_v11  ;;  %v13018_v18 = vcombine.high %v16389_v19, %v16391_v53  ;;  %v1942_v19 = vmax.f32 %v1686_v7, 0.0  ;;  %v1695_v53 = vadd.f32 %v16282_v55, %v1398_v44  ;;  %v16457_v13 = vpack.c.bf16 %v1926_v31, %v1918_v3 }
 0x275   : > { %6579 = vmatprep.mubr.bf16.mxu1 %v16331_v11  ;;  %6731 = vmatpush1.bf16.msra.mxu1 %v20636_v36  ;;  %v1678_v11 = vadd.f32 %v16287_v2, %v1381_v8  ;;  %v2679_v36 = vld [vmem:[#allocation8 + $0xce8] sm:$0xff]  ;;  %20638 = vst [vmem:[#allocation151_spill] sm:$0xff] %v16426_v0  ;;  %v16437_v8 = vpack.c.bf16 %v1927_v24, %v1919_v37  ;;  %v16450_v24 = vld [vmem:[#allocation8 + $0xd20] sm:$0xff] }
 0x276   : > { %5960 = vmatprep.subr.bf16.mxu0 %v20637_v12  ;;  %6732 = vmatprep.subr.bf16.mxu1 %v13010_v27  ;;  %v20639_v27 = vcombine.low %v16307_v20, %v16309_v28  ;;  %v13026_v20 = vcombine.high %v16424_v42, %v2679_v36  ;;  %v16448_v28 = vld [vmem:[#allocation8 + $0xd00] sm:$0xff]  ;;  %20642 = vst [vmem:[#allocation153_spill] sm:$0xff] %v16457_v13  ;;  %v1959_v12 = vmax.f32 %v1703_v1, 0.0  ;;  %v1951_v44 = vmax.f32 %v1695_v53, 0.0  ;;  %v2691_v1 = vld [vmem:[#allocation8 + $0xd48] sm:$0xff] }
 0x277   : > { %20640 = vst [vmem:[#allocation152_spill] sm:$0xff] %v16437_v8  ;;  %v1934_v38 = vmax.f32 %v1678_v11, 0.0  ;;  %v13023_v34 = vcombine.low %v16415_v46, %v16420_v29  ;;  %v2687_v11 = vld [vmem:[#allocation8 + $0xd28] sm:$0xff]  ;;  %v13031_v4 = vcombine.low %v16448_v28, %v16450_v24  ;;  %v685_v46 = vmul.f32 %v16249_v26, %v20635_v57 }
 0x278   : > { %5961 = vmatpush1.bf16.msra.mxu0 %v20639_v27  ;;  %v693_v37 = vmul.f32 %v16249_v26, %v20631_v51  ;;  %v1149_v29 = vmul.f32 %v16252_v63, %v20632_v61  ;;  %v20645_v27 = vld [vmem:[#allocation46_spill] sm:$0xff]  ;;  %v20657_v61 = vld [vmem:[#allocation64_spill] sm:$0xff] }
 0x279   : > { %6733 = vmatpush1.bf16.msra.mxu1 %v20641_v62  ;;  %5962 = vmatprep.subr.bf16.mxu0 %v13016_v32  ;;  %v16476_v7 = vpack.c.bf16 %v1942_v19, %v1934_v38  ;;  %v1397_v31 = vadd.f32 %v1141_v23, %v685_v46  ;;  %v702_v10 = vmul.f32 %v16206_v39, %v20645_v27  ;;  %v20647_v62 = vld [vmem:[#allocation55_spill] sm:$0xff]  ;;  %v20648_v19 = vld [vmem:[#allocation52_spill] sm:$0xff] }
 0x27a   : > { %6734 = vmatprep.subr.bf16.mxu1 %v13018_v18  ;;  %v13025_v18 = vcombine.low %v16424_v42, %v2679_v36  ;;  %v13032_v42 = vcombine.high %v16448_v28, %v16450_v24  ;;  %v13034_v36 = vcombine.high %v2683_v16, %v2687_v11  ;;  %v1166_v3 = vmul.f32 %v16231_v52, %v20647_v62  ;;  %v2695_v38 = vld [vmem:[#allocation8 + $0xd68] sm:$0xff] }
 0x27b   : > { %5808 = vmatmul.mubr.bf16.gmra.mrb[4].mxu0 %v16426_v0  ;;  %6580 = vmatmul.mubr.bf16.gmra.mrb[4].mxu1 %v16426_v0  ;;  %20644 = vst [vmem:[#allocation155_spill] sm:$0xff] %v16476_v7  ;;  %v701_v28 = vmul.f32 %v16249_v26, %v20645_v27  ;;  %v1157_v24 = vmul.f32 %v16252_v63, %v20646_v56  ;;  %v16498_v27 = vld [vmem:[#allocation8 + $0xd80] sm:$0xff] }
 0x27c   : > { %5817 = vmatprep.mubr.bf16.mxu0 %v16437_v8  ;;  %6589 = vmatprep.mubr.bf16.mxu1 %v16437_v8  ;;  %v1165_v53 = vmul.f32 %v16252_v63, %v20647_v62  ;;  %v16494_v23 = vpack.c.bf16 %v1959_v12, %v1951_v44  ;;  %v1405_v46 = vadd.f32 %v1149_v29, %v693_v37  ;;  %v20650_v12 = vld [vmem:[#allocation58_spill] sm:$0xff] }
 0x27d   : > { %5963 = vmatpush1.bf16.msra.mxu0 %v13015_v21  ;;  %6735 = vmatpush1.bf16.msra.mxu1 %v13017_v22  ;;  %v2690_v21 = vld [vmem:[#allocation8 + $0xd40] sm:$0xff]  ;;  %v1158_v22 = vmul.f32 %v16231_v52, %v20646_v56  ;;  %v13033_v32 = vcombine.low %v2683_v16, %v2687_v11  ;;  %v709_v0 = vmul.f32 %v16249_v26, %v20648_v19  ;;  %v2699_v16 = vld [vmem:[#allocation8 + $0xd88] sm:$0xff] }
 0x27e   : > { %5964 = vmatprep.subr.bf16.mxu0 %v13024_v45  ;;  %6736 = vmatprep.subr.bf16.mxu1 %v13026_v20  ;;  %v2694_v45 = vld [vmem:[#allocation8 + $0xd60] sm:$0xff]  ;;  %v710_v20 = vmul.f32 %v16206_v39, %v20648_v19  ;;  %20649 = vst [vmem:[#allocation156_spill] sm:$0xff] %v16494_v23  ;;  %v13042_v57 = vcombine.high %v2691_v1, %v2695_v38  ;;  %v2703_v11 = vld [vmem:[#allocation8 + $0xda8] sm:$0xff] }
 0x27f   : > { %v13040_v8 = vcombine.high %v2690_v21, %v2694_v45  ;;  %v1414_v62 = vadd.f32 %v1158_v22, %v702_v10  ;;  %v2702_v37 = vld [vmem:[#allocation8 + $0xda0] sm:$0xff]  ;;  %v1413_v29 = vadd.f32 %v1157_v24, %v701_v28  ;;  %v1421_v44 = vadd.f32 %v1165_v53, %v709_v0 }
 0x280   : > { %v16509_v19 = vadd.f32 %v16287_v2, %v1397_v31  ;;  %v13039_v10 = vcombine.low %v2690_v21, %v2694_v45  ;;  %v13041_v22 = vcombine.low %v2691_v1, %v2695_v38  ;;  %v16515_v28 = vld [vmem:[#allocation8 + $0xdc0] sm:$0xff]  ;;  %v20652_v31 = vld [vmem:[#allocation57_spill] sm:$0xff]  ;;  %v2707_v1 = vld [vmem:[#allocation8 + $0xdc8] sm:$0xff]  ;;  %v742_v51 = vmul.f32 %v16206_v39, %v20657_v61 }
 0x281   : > { %5965 = vmatpush1.bf16.msra.mxu0 %v13023_v34  ;;  %6737 = vmatpush1.bf16.msra.mxu1 %v13025_v18  ;;  %v1422_v34 = vadd.f32 %v1166_v3, %v710_v20  ;;  %v726_v18 = vmul.f32 %v16206_v39, %v20650_v12  ;;  %v16512_v3 = vadd.f32 %v16287_v2, %v1405_v46  ;;  %v2710_v45 = vld [vmem:[#allocation8 + $0xde0] sm:$0xff]  ;;  %v2711_v38 = vld [vmem:[#allocation8 + $0xde8] sm:$0xff] }
 0x282   : > { %5966 = vmatprep.subr.bf16.mxu0 %v13032_v42  ;;  %6738 = vmatprep.subr.bf16.mxu1 %v13034_v36  ;;  %v20651_v42 = vld [vmem:[#allocation63_spill] sm:$0xff]  ;;  %v13048_v20 = vcombine.high %v16498_v27, %v2702_v37  ;;  %v1711_v0 = vadd.f32 %v16282_v55, %v1414_v62  ;;  %v13047_v46 = vcombine.low %v16498_v27, %v2702_v37  ;;  %v1950_v60 = vmax.f32 %v16509_v19, 0.0 }
 0x283   : > { %5818 = vmatmul.mubr.bf16.gmra.mrb[8].mxu0 %v16457_v13  ;;  %6590 = vmatmul.mubr.bf16.gmra.mrb[8].mxu1 %v16457_v13  ;;  %v1182_v36 = vmul.f32 %v16231_v52, %v20651_v42  ;;  %v1719_v24 = vadd.f32 %v16282_v55, %v1422_v34  ;;  %v725_v62 = vmul.f32 %v16249_v26, %v20650_v12  ;;  %v1958_v56 = vmax.f32 %v16512_v3, 0.0  ;;  %v16534_v27 = vld [vmem:[#allocation8 + $0xe00] sm:$0xff] }
 0x284   : > { %5827 = vmatprep.mubr.bf16.mxu0 %v16465_v25  ;;  %6599 = vmatprep.mubr.bf16.mxu1 %v16465_v25  ;;  %v13050_v25 = vcombine.high %v2699_v16, %v2703_v11  ;;  %v13049_v13 = vcombine.low %v2699_v16, %v2703_v11  ;;  %v1967_v37 = vmax.f32 %v1711_v0, 0.0  ;;  %v20655_v11 = vld [vmem:[#allocation56_spill] sm:$0xff]  ;;  %v717_v0 = vmul.f32 %v16249_v26, %v20652_v31 }
 0x285   : > { %5967 = vmatpush1.bf16.msra.mxu0 %v13031_v4  ;;  %6739 = vmatpush1.bf16.msra.mxu1 %v13033_v32  ;;  %v718_v4 = vmul.f32 %v16206_v39, %v20652_v31  ;;  %v20653_v32 = vld [vmem:[#allocation61_spill] sm:$0xff]  ;;  %v1438_v53 = vadd.f32 %v1182_v36, %v726_v18  ;;  %v13056_v18 = vcombine.high %v16515_v28, %v2710_v45  ;;  %v20654_v36 = vld [vmem:[#allocation62_spill] sm:$0xff] }
 0x286   : > { %5968 = vmatprep.subr.bf16.mxu0 %v13040_v8  ;;  %6740 = vmatprep.subr.bf16.mxu1 %v13042_v57  ;;  %v1174_v21 = vmul.f32 %v16231_v52, %v20653_v32  ;;  %v1710_v57 = vadd.f32 %v16287_v2, %v1413_v29  ;;  %v1718_v8 = vadd.f32 %v16287_v2, %v1421_v44  ;;  %v2726_v31 = vld [vmem:[#allocation8 + $0xe60] sm:$0xff] }
 0x287   : > { %v1173_v34 = vmul.f32 %v16252_v63, %v20653_v32  ;;  %v1181_v29 = vmul.f32 %v16252_v63, %v20651_v42  ;;  %v13058_v44 = vcombine.high %v2707_v1, %v2711_v38  ;;  %v734_v16 = vmul.f32 %v16206_v39, %v20654_v36  ;;  %v2719_v32 = vld [vmem:[#allocation8 + $0xe28] sm:$0xff] }
 0x288   : > { %v1975_v42 = vmax.f32 %v1719_v24, 0.0  ;;  %v1966_v12 = vmax.f32 %v1710_v57, 0.0  ;;  %v1974_v5 = vmax.f32 %v1718_v8, 0.0  ;;  %v13055_v35 = vcombine.low %v16515_v28, %v2710_v45 }
 0x289   : > { %5969 = vmatpush1.bf16.msra.mxu0 %v13039_v10  ;;  %6741 = vmatpush1.bf16.msra.mxu1 %v13041_v22  ;;  %v1190_v10 = vmul.f32 %v16231_v52, %v20655_v11  ;;  %v20656_v22 = vld [vmem:[#allocation67_spill] sm:$0xff]  ;;  %v13057_v15 = vcombine.low %v2707_v1, %v2711_v38  ;;  %v1429_v47 = vadd.f32 %v1173_v34, %v717_v0 }
 0x28a   : > { %5970 = vmatprep.subr.bf16.mxu0 %v13048_v20  ;;  %6742 = vmatprep.subr.bf16.mxu1 %v13050_v25  ;;  %v1198_v3 = vmul.f32 %v16231_v52, %v20656_v22  ;;  %v2718_v25 = vld [vmem:[#allocation8 + $0xe20] sm:$0xff]  ;;  %v2715_v20 = vld [vmem:[#allocation8 + $0xe08] sm:$0xff]  ;;  %v1735_v57 = vadd.f32 %v16282_v55, %v1438_v53  ;;  %v1437_v8 = vadd.f32 %v1181_v29, %v725_v62 }
 0x28b   : > { %5828 = vmatmul.mubr.bf16.gmra.mrb[12].mxu0 %v16476_v7  ;;  %6600 = vmatmul.mubr.bf16.gmra.mrb[12].mxu1 %v16476_v7  ;;  %v1430_v7 = vadd.f32 %v1174_v21, %v718_v4  ;;  %v13064_v24 = vcombine.high %v16534_v27, %v2718_v25  ;;  %v13066_v4 = vcombine.high %v2715_v20, %v2719_v32  ;;  %v2722_v21 = vld [vmem:[#allocation8 + $0xe40] sm:$0xff] }
 0x28c   : > { %5837 = vmatprep.mubr.bf16.mxu0 %v16494_v23  ;;  %6609 = vmatprep.mubr.bf16.mxu1 %v16494_v23  ;;  %v1454_v23 = vadd.f32 %v1198_v3, %v742_v51  ;;  %v16554_v6 = vpack.c.bf16 %v1958_v56, %v1950_v60  ;;  %v16556_v28 = vpack.c.bf16 %v1975_v42, %v1967_v37  ;;  %v2730_v60 = vld [vmem:[#allocation8 + $0xe80] sm:$0xff] }
 0x28d   : > { %5971 = vmatpush1.bf16.msra.mxu0 %v13047_v46  ;;  %6743 = vmatpush1.bf16.msra.mxu1 %v13049_v13  ;;  %v1446_v46 = vadd.f32 %v1190_v10, %v734_v16  ;;  %v2727_v13 = vld [vmem:[#allocation8 + $0xe68] sm:$0xff]  ;;  %v1727_v19 = vadd.f32 %v16282_v55, %v1430_v7  ;;  %v16559_v45 = vpack.c.bf16 %v1974_v5, %v1966_v12  ;;  %v1991_v7 = vmax.f32 %v1735_v57, 0.0  ;;  %v2734_v56 = vld [vmem:[#allocation8 + $0xea0] sm:$0xff] }
 0x28e   : > { %5972 = vmatprep.subr.bf16.mxu0 %v13056_v18  ;;  %6744 = vmatprep.subr.bf16.mxu1 %v13058_v44  ;;  %20658 = vst [vmem:[#allocation62_spill] sm:$0xff] %v16554_v6  ;;  %20659 = vst [vmem:[#allocation56_spill] sm:$0xff] %v16556_v28  ;;  %v13063_v1 = vcombine.low %v16534_v27, %v2718_v25  ;;  %v13065_v38 = vcombine.low %v2715_v20, %v2719_v32  ;;  %v2731_v12 = vld [vmem:[#allocation8 + $0xe88] sm:$0xff]  ;;  %v2738_v25 = vld [vmem:[#allocation8 + $0xec0] sm:$0xff] }
 0x28f   : > { %20660 = vst [vmem:[#allocation67_spill] sm:$0xff] %v16559_v45  ;;  %v16563_v53 = vadd.f32 %v16287_v2, %v1429_v47  ;;  %v13072_v51 = vcombine.high %v2722_v21, %v2726_v31  ;;  %v13074_v62 = vcombine.high %v2723_v54, %v2727_v13  ;;  %v1734_v5 = vadd.f32 %v16287_v2, %v1437_v8  ;;  %v2735_v47 = vld [vmem:[#allocation8 + $0xea8] sm:$0xff]  ;;  %v2742_v8 = vld [vmem:[#allocation8 + $0xee0] sm:$0xff] }
 0x290   : > { %v733_v42 = vmul.f32 %v16249_v26, %v20654_v36  ;;  %v1189_v32 = vmul.f32 %v16252_v63, %v20655_v11  ;;  %v1197_v34 = vmul.f32 %v16252_v63, %v20656_v22  ;;  %v1983_v29 = vmax.f32 %v1727_v19, 0.0  ;;  %v20661_v18 = vld [vmem:[#allocation68_spill] sm:$0xff]  ;;  %v20662_v37 = vld [vmem:[#allocation75_spill] sm:$0xff]  ;;  %v20665_v19 = vld [vmem:[#allocation69_spill] sm:$0xff] }
 0x291   : > { %5973 = vmatpush1.bf16.msra.mxu0 %v13055_v35  ;;  %6745 = vmatpush1.bf16.msra.mxu1 %v13057_v15  ;;  %v1743_v15 = vadd.f32 %v16282_v55, %v1446_v46  ;;  %v1751_v35 = vadd.f32 %v16282_v55, %v1454_v23  ;;  %v758_v23 = vmul.f32 %v16206_v39, %v20661_v18  ;;  %v1990_v0 = vmax.f32 %v1734_v5, 0.0 }
 0x292   : > { %5974 = vmatprep.subr.bf16.mxu0 %v13064_v24  ;;  %6746 = vmatprep.subr.bf16.mxu1 %v13066_v4  ;;  %v13071_v44 = vcombine.low %v2722_v21, %v2726_v31  ;;  %v13073_v27 = vcombine.low %v2723_v54, %v2727_v13  ;;  %v1214_v16 = vmul.f32 %v16231_v52, %v20662_v37  ;;  %v20664_v4 = vld [vmem:[#allocation73_spill] sm:$0xff]  ;;  %v2739_v31 = vld [vmem:[#allocation8 + $0xec8] sm:$0xff] }
 0x293   : > { %5838 = vmatmul.mubr.bf16.gmra.mrb[16].mxu0 %v16554_v6  ;;  %6610 = vmatmul.mubr.bf16.gmra.mrb[16].mxu1 %v16554_v6  ;;  %v13080_v10 = vcombine.high %v2730_v60, %v2734_v56  ;;  %v13082_v3 = vcombine.high %v2731_v12, %v2735_v47  ;;  %v16582_v20 = vpack.c.bf16 %v1991_v7, %v1983_v29  ;;  %v2743_v54 = vld [vmem:[#allocation8 + $0xee8] sm:$0xff]  ;;  %v1999_v21 = vmax.f32 %v1743_v15, 0.0  ;;  %v2746_v6 = vld [vmem:[#allocation8 + $0xf00] sm:$0xff] }
 0x294   : > { %5847 = vmatprep.mubr.bf16.mxu0 %v16556_v28  ;;  %6619 = vmatprep.mubr.bf16.mxu1 %v16556_v28  ;;  %v741_v24 = vmul.f32 %v16249_v26, %v20657_v61  ;;  %v1206_v57 = vmul.f32 %v16231_v52, %v20664_v4  ;;  %v2007_v46 = vmax.f32 %v1751_v35, 0.0  ;;  %v1445_v13 = vadd.f32 %v1189_v32, %v733_v42  ;;  %v2750_v35 = vld [vmem:[#allocation8 + $0xf20] sm:$0xff]  ;;  %v2747_v42 = vld [vmem:[#allocation8 + $0xf08] sm:$0xff] }
 0x295   : > { %5975 = vmatpush1.bf16.msra.mxu0 %v13063_v1  ;;  %6747 = vmatpush1.bf16.msra.mxu1 %v13065_v38  ;;  %20663 = vst [vmem:[#allocation64_spill] sm:$0xff] %v16582_v20  ;;  %v750_v1 = vmul.f32 %v16206_v39, %v20665_v19  ;;  %v1982_v7 = vmax.f32 %v16563_v53, 0.0  ;;  %v1470_v5 = vadd.f32 %v1214_v16, %v758_v23  ;;  %v2751_v32 = vld [vmem:[#allocation8 + $0xf28] sm:$0xff]  ;;  %v2754_v16 = vld [vmem:[#allocation8 + $0xf40] sm:$0xff] }
 0x296   : > { %5976 = vmatprep.subr.bf16.mxu0 %v13072_v51  ;;  %6748 = vmatprep.subr.bf16.mxu1 %v13074_v62  ;;  %v1453_v38 = vadd.f32 %v1197_v34, %v741_v24  ;;  %v13079_v51 = vcombine.low %v2730_v60, %v2734_v56  ;;  %v13081_v62 = vcombine.low %v2731_v12, %v2735_v47 }
 0x297   : > { %v13088_v29 = vcombine.high %v2738_v25, %v2742_v8  ;;  %v13090_v28 = vcombine.high %v2739_v31, %v2743_v54  ;;  %v1462_v15 = vadd.f32 %v1206_v57, %v750_v1  ;;  %v16595_v60 = vpack.c.bf16 %v1990_v0, %v1982_v7  ;;  %v2755_v57 = vld [vmem:[#allocation8 + $0xf48] sm:$0xff] }
 0x298   : > { %v16597_v53 = vpack.c.bf16 %v2007_v46, %v1999_v21  ;;  %v1742_v56 = vadd.f32 %v16287_v2, %v1445_v13  ;;  %v1750_v12 = vadd.f32 %v16287_v2, %v1453_v38  ;;  %v13087_v47 = vcombine.low %v2738_v25, %v2742_v8  ;;  %v2758_v25 = vld [vmem:[#allocation8 + $0xf60] sm:$0xff]  ;;  %v2759_v8 = vld [vmem:[#allocation8 + $0xf68] sm:$0xff] }
 0x299   : > { %5977 = vmatpush1.bf16.msra.mxu0 %v13071_v44  ;;  %6749 = vmatpush1.bf16.msra.mxu1 %v13073_v27  ;;  %20666 = vst [vmem:[#allocation68_spill] sm:$0xff] %v16595_v60  ;;  %v13089_v34 = vcombine.low %v2739_v31, %v2743_v54  ;;  %v1767_v23 = vadd.f32 %v16282_v55, %v1470_v5 }
 0x29a   : > { %5978 = vmatprep.subr.bf16.mxu0 %v13080_v10  ;;  %6750 = vmatprep.subr.bf16.mxu1 %v13082_v3  ;;  %20667 = vst [vmem:[#allocation75_spill] sm:$0xff] %v16597_v53  ;;  %v13096_v44 = vcombine.high %v2746_v6, %v2750_v35  ;;  %v13098_v27 = vcombine.high %v2747_v42, %v2751_v32  ;;  %v1998_v46 = vmax.f32 %v1742_v56, 0.0  ;;  %v2006_v13 = vmax.f32 %v1750_v12, 0.0  ;;  %v2766_v56 = vld [vmem:[#allocation8 + $0xfa0] sm:$0xff]  ;;  %v2763_v12 = vld [vmem:[#allocation8 + $0xf88] sm:$0xff] }
 0x29b   : > { %5848 = vmatmul.mubr.bf16.gmra.mrb[20].mxu0 %v16559_v45  ;;  %6620 = vmatmul.mubr.bf16.gmra.mrb[20].mxu1 %v16559_v45  ;;  %v1759_v10 = vadd.f32 %v16282_v55, %v1462_v15  ;;  %v749_v3 = vmul.f32 %v16249_v26, %v20665_v19  ;;  %v757_v0 = vmul.f32 %v16249_v26, %v20661_v18 }
 0x29c   : > { %5857 = vmatprep.mubr.bf16.mxu0 %v16582_v20  ;;  %6629 = vmatprep.mubr.bf16.mxu1 %v16582_v20  ;;  %v1205_v24 = vmul.f32 %v16252_v63, %v20664_v4  ;;  %v766_v31 = vmul.f32 %v16206_v39, %v20572_v50  ;;  %v1222_v54 = vmul.f32 %v16231_v52, %v20573_v48 }
 0x29d   : > { %5979 = vmatpush1.bf16.msra.mxu0 %v13079_v51  ;;  %6751 = vmatpush1.bf16.msra.mxu1 %v13081_v62  ;;  %v1230_v21 = vmul.f32 %v16231_v52, %v20574_v58  ;;  %v13095_v1 = vcombine.low %v2746_v6, %v2750_v35  ;;  %v13097_v38 = vcombine.low %v2747_v42, %v2751_v32  ;;  %v2023_v51 = vmax.f32 %v1767_v23, 0.0 }
 0x29e   : > { %5980 = vmatprep.subr.bf16.mxu0 %v13088_v29  ;;  %6752 = vmatprep.subr.bf16.mxu1 %v13090_v28  ;;  %v1213_v28 = vmul.f32 %v16252_v63, %v20662_v37  ;;  %v774_v62 = vmul.f32 %v16206_v39, %v20576_v40  ;;  %v13104_v7 = vcombine.high %v2754_v16, %v2758_v25  ;;  %v2762_v29 = vld [vmem:[#allocation8 + $0xf80] sm:$0xff]  ;;  %v2015_v6 = vmax.f32 %v1759_v10, 0.0 }
 0x29f   : > { %v13106_v5 = vcombine.high %v2755_v57, %v2759_v8  ;;  %v1461_v15 = vadd.f32 %v1205_v24, %v749_v3  ;;  %v1478_v42 = vadd.f32 %v1222_v54, %v766_v31  ;;  %v13103_v23 = vcombine.low %v2754_v16, %v2758_v25  ;;  %v2774_v16 = vld [vmem:[#allocation8 + $0xfe0] sm:$0xff]  ;;  %v2771_v25 = vld [vmem:[#allocation8 + $0xfc8] sm:$0xff] }
 0x2a0   : > { %v1469_v35 = vadd.f32 %v1213_v28, %v757_v0  ;;  %v1486_v32 = vadd.f32 %v1230_v21, %v774_v62  ;;  %v13112_v3 = vcombine.high %v2762_v29, %v2766_v56  ;;  %v765_v10 = vmul.f32 %v16249_v26, %v20572_v50 }
 0x2a1   : > { %5981 = vmatpush1.bf16.msra.mxu0 %v13087_v47  ;;  %6753 = vmatpush1.bf16.msra.mxu1 %v13089_v34  ;;  %v2767_v47 = vld [vmem:[#allocation8 + $0xfa8] sm:$0xff]  ;;  %v16623_v34 = vpack.c.bf16 %v2006_v13, %v1998_v46  ;;  %v1758_v20 = vadd.f32 %v16287_v2, %v1461_v15  ;;  %v1221_v0 = vmul.f32 %v16252_v63, %v20573_v48 }
 0x2a2   : > { %5982 = vmatprep.subr.bf16.mxu0 %v13096_v44  ;;  %6754 = vmatprep.subr.bf16.mxu1 %v13098_v27  ;;  %v13105_v44 = vcombine.low %v2755_v57, %v2759_v8  ;;  %v16625_v27 = vpack.c.bf16 %v2023_v51, %v2015_v6  ;;  %v13114_v24 = vcombine.high %v2763_v12, %v2767_v47  ;;  %v2775_v57 = vld [vmem:[#allocation8 + $0xfe8] sm:$0xff] }
 0x2a3   : > { %5858 = vmatmul.mubr.bf16.gmra.mrb[24].mxu0 %v16595_v60  ;;  %6630 = vmatmul.mubr.bf16.gmra.mrb[24].mxu1 %v16595_v60  ;;  %20668 = vst [vmem:[#allocation73_spill] sm:$0xff] %v16623_v34  ;;  %v2770_v60 = vld [vmem:[#allocation8 + $0xfc0] sm:$0xff]  ;;  %v1229_v28 = vmul.f32 %v16252_v63, %v20574_v58  ;;  %v1766_v8 = vadd.f32 %v16287_v2, %v1469_v35 }
 0x2a4   : > { %5867 = vmatprep.mubr.bf16.mxu0 %v16597_v53  ;;  %6639 = vmatprep.mubr.bf16.mxu1 %v16597_v53  ;;  %20669 = vst [vmem:[#allocation69_spill] sm:$0xff] %v16625_v27  ;;  %v1775_v31 = vadd.f32 %v16282_v55, %v1478_v42  ;;  %v1783_v54 = vadd.f32 %v16282_v55, %v1486_v32 }
 0x2a5   : > { %5983 = vmatpush1.bf16.msra.mxu0 %v13095_v1  ;;  %6755 = vmatpush1.bf16.msra.mxu1 %v13097_v38  ;;  %v773_v21 = vmul.f32 %v16249_v26, %v20576_v40  ;;  %v790_v46 = vmul.f32 %v16206_v39, %v20579_v41  ;;  %v13111_v13 = vcombine.low %v2762_v29, %v2766_v56  ;;  %v2022_v29 = vmax.f32 %v1766_v8, 0.0 }
 0x2a6   : > { %5984 = vmatprep.subr.bf16.mxu0 %v13104_v7  ;;  %6756 = vmatprep.subr.bf16.mxu1 %v13106_v5  ;;  %v13113_v1 = vcombine.low %v2763_v12, %v2767_v47  ;;  %v1246_v38 = vmul.f32 %v16231_v52, %v20580_v33  ;;  %v13120_v51 = vcombine.high %v2770_v60, %v2774_v16  ;;  %v2031_v56 = vmax.f32 %v1775_v31, 0.0 }
 0x2a7   : > { %v13122_v62 = vcombine.high %v2771_v25, %v2775_v57  ;;  %v1477_v7 = vadd.f32 %v1221_v0, %v765_v10  ;;  %v1485_v5 = vadd.f32 %v1229_v28, %v773_v21  ;;  %v1238_v15 = vmul.f32 %v16231_v52, %v20581_v14 }
 0x2a8   : > { %v782_v12 = vmul.f32 %v16206_v39, %v20582_v9  ;;  %v13119_v47 = vcombine.low %v2770_v60, %v2774_v16  ;;  %v13121_v6 = vcombine.low %v2771_v25, %v2775_v57  ;;  %v2039_v35 = vmax.f32 %v1783_v54, 0.0  ;;  %v20670_v16 = vld [vmem:[#allocation80_spill] sm:$0xff] }
 0x2a9   : > { %5985 = vmatpush1.bf16.msra.mxu0 %v13103_v23  ;;  %6757 = vmatpush1.bf16.msra.mxu1 %v13105_v44  ;;  %v1502_v42 = vadd.f32 %v1246_v38, %v790_v46  ;;  %v12620_v32 = vcombine.high %v16358_v59, %v16360_v30  ;;  %v12622_v23 = vcombine.high %v16430_v49, %v16432_v17  ;;  %v2014_v44 = vmax.f32 %v1758_v20, 0.0  ;;  %v20672_v20 = vld [vmem:[#allocation91_spill] sm:$0xff] }
 0x2aa   : > { %5986 = vmatprep.subr.bf16.mxu0 %v13112_v3  ;;  %6758 = vmatprep.subr.bf16.mxu1 %v13114_v24  ;;  %v1774_v3 = vadd.f32 %v16287_v2, %v1477_v7  ;;  %v1782_v24 = vadd.f32 %v16287_v2, %v1485_v5  ;;  %v1494_v10 = vadd.f32 %v1238_v15, %v782_v12 }
 0x2ab   : > { %5868 = vmatmul.mubr.bf16.gmra.mrb[28].mxu0 %v16623_v34  ;;  %6640 = vmatmul.mubr.bf16.gmra.mrb[28].mxu1 %v16623_v34  ;;  %v789_v60 = vmul.f32 %v16249_v26, %v20579_v41  ;;  %v1245_v0 = vmul.f32 %v16252_v63, %v20580_v33  ;;  %v798_v28 = vmul.f32 %v16206_v39, %v20585_v43 }
 0x2ac   : > { %5877 = vmatprep.mubr.bf16.mxu0 %v16625_v27  ;;  %6649 = vmatprep.mubr.bf16.mxu1 %v16625_v27  ;;  %v1254_v25 = vmul.f32 %v16231_v52, %v20670_v16  ;;  %v16665_v57 = vpack.c.bf16 %v2022_v29, %v2014_v44  ;;  %v1262_v8 = vmul.f32 %v16231_v52, %v20672_v20  ;;  %v2030_v46 = vmax.f32 %v1774_v3, 0.0 }
 0x2ad   : > { %5987 = vmatpush1.bf16.msra.mxu0 %v13111_v13  ;;  %6759 = vmatpush1.bf16.msra.mxu1 %v13113_v1  ;;  %v16669_v31 = vpack.c.bf16 %v2039_v35, %v2031_v56  ;;  %v1799_v54 = vadd.f32 %v16282_v55, %v1502_v42  ;;  %v1237_v21 = vmul.f32 %v16252_v63, %v20581_v14  ;;  %v20674_v1 = vld [vmem:[#allocation88_spill] sm:$0xff] }
 0x2ae   : > { %5988 = vmatprep.subr.bf16.mxu0 %v13120_v51  ;;  %6760 = vmatprep.subr.bf16.mxu1 %v13122_v62  ;;  %20671 = vst [vmem:[#allocation157_spill] sm:$0xff] %v16665_v57  ;;  %v781_v13 = vmul.f32 %v16249_v26, %v20582_v9  ;;  %v806_v38 = vmul.f32 %v16206_v39, %v20674_v1  ;;  %v2038_v51 = vmax.f32 %v1782_v24, 0.0  ;;  %v20732_v9 = vld [vmem:[#allocation51_spill] sm:$0xff] }
 0x2af   : > { %20673 = vst [vmem:[#allocation158_spill] sm:$0xff] %v16669_v31  ;;  %v1791_v62 = vadd.f32 %v16282_v55, %v1494_v10  ;;  %v1501_v7 = vadd.f32 %v1245_v0, %v789_v60  ;;  %v1510_v5 = vadd.f32 %v1254_v25, %v798_v28  ;;  %v2055_v29 = vmax.f32 %v1799_v54, 0.0  ;;  %v20677_v10 = vld [vmem:[#allocation97_spill] sm:$0xff]  ;;  %v20678_v0 = vld [vmem:[#allocation98_spill] sm:$0xff]  ;;  %v20679_v54 = vld [vmem:[#allocation92_spill] sm:$0xff] }
 0x2b0   : > { %v1518_v15 = vadd.f32 %v1262_v8, %v806_v38  ;;  %v1493_v56 = vadd.f32 %v1237_v21, %v781_v13  ;;  %v16683_v12 = vpack.c.bf16 %v2038_v51, %v2030_v46  ;;  %v1261_v44 = vmul.f32 %v16252_v63, %v20672_v20  ;;  %v20680_v46 = vld [vmem:[#allocation93_spill] sm:$0xff] }
 0x2b1   : > { %5989 = vmatpush1.bf16.msra.mxu0 %v13119_v47  ;;  %6761 = vmatpush1.bf16.msra.mxu1 %v13121_v6  ;;  %v2047_v47 = vmax.f32 %v1791_v62, 0.0  ;;  %v1798_v6 = vadd.f32 %v16287_v2, %v1501_v7  ;;  %v1807_v35 = vadd.f32 %v16282_v55, %v1510_v5  ;;  %v1270_v60 = vmul.f32 %v16231_v52, %v20677_v10  ;;  %v14459_v20 = vld [vmem:[#allocation6] sm:$0xff] }
 0x2b2   : > { %6923 = vmatprep.subr.bf16.mxu0 %v12620_v32  ;;  %7695 = vmatprep.subr.bf16.mxu1 %v12622_v23  ;;  %20675 = vst [vmem:[#allocation159_spill] sm:$0xff] %v16683_v12  ;;  %v1815_v42 = vadd.f32 %v16282_v55, %v1518_v15  ;;  %v797_v32 = vmul.f32 %v16249_v26, %v20585_v43 }
 0x2b3   : > { %5878 = vmatmul.mubr.bf16.gmra.mrb[32].mxu0 %v16665_v57  ;;  %6650 = vmatmul.mubr.bf16.gmra.mrb[32].mxu1 %v16665_v57  ;;  %v1253_v23 = vmul.f32 %v16252_v63, %v20670_v16  ;;  %v16694_v3 = vpack.c.bf16 %v2055_v29, %v2047_v47  ;;  %v1790_v24 = vadd.f32 %v16287_v2, %v1493_v56  ;;  %v2054_v8 = vmax.f32 %v1798_v6, 0.0  ;;  %v20681_v47 = vld [vmem:[#allocation99_spill] sm:$0xff]  ;;  %v20682_v6 = vld [vmem:[#allocation96_spill] sm:$0xff] }
 0x2b4   : > { %5887 = vmatprep.mubr.bf16.mxu0 %v16669_v31  ;;  %6659 = vmatprep.mubr.bf16.mxu1 %v16669_v31  ;;  %v1278_v28 = vmul.f32 %v16231_v52, %v20678_v0  ;;  %v805_v25 = vmul.f32 %v16249_v26, %v20674_v1  ;;  %v814_v21 = vmul.f32 %v16206_v39, %v20679_v54  ;;  %v2063_v38 = vmax.f32 %v1807_v35, 0.0  ;;  %v20684_v57 = vld [vmem:[#allocation104_spill] sm:$0xff]  ;;  %v20714_v1 = vld [vmem:[#allocation27_spill] sm:$0xff] }
 0x2b5   : > { %20676 = vst [vmem:[#allocation160_spill] sm:$0xff] %v16694_v3  ;;  %v822_v13 = vmul.f32 %v16206_v39, %v20680_v46  ;;  %v2071_v51 = vmax.f32 %v1815_v42, 0.0  ;;  %v1509_v62 = vadd.f32 %v1253_v23, %v797_v32  ;;  %v2046_v5 = vmax.f32 %v1790_v24, 0.0 }
 0x2b6   : > { %v1517_v7 = vadd.f32 %v1261_v44, %v805_v25  ;;  %v1526_v15 = vadd.f32 %v1270_v60, %v814_v21  ;;  %v1277_v56 = vmul.f32 %v16252_v63, %v20678_v0  ;;  %v1294_v35 = vmul.f32 %v16231_v52, %v20684_v57  ;;  %v20686_v25 = vld [vmem:[#allocation100_spill] sm:$0xff] }
 0x2b7   : > { %v1534_v29 = vadd.f32 %v1278_v28, %v822_v13  ;;  %v16717_v31 = vpack.c.bf16 %v2054_v8, %v2046_v5  ;;  %v16721_v42 = vpack.c.bf16 %v2071_v51, %v2063_v38  ;;  %v1806_v32 = vadd.f32 %v16287_v2, %v1509_v62 }
 0x2b8   : > { %v1814_v23 = vadd.f32 %v16287_v2, %v1517_v7  ;;  %v821_v44 = vmul.f32 %v16249_v26, %v20680_v46  ;;  %v1823_v24 = vadd.f32 %v16282_v55, %v1526_v15  ;;  %v1269_v28 = vmul.f32 %v16252_v63, %v20677_v10  ;;  %v20703_v10 = vld [vmem:[#allocation109_spill] sm:$0xff] }
 0x2b9   : > { %20683 = vst [vmem:[#allocation161_spill] sm:$0xff] %v16717_v31  ;;  %20685 = vst [vmem:[#allocation162_spill] sm:$0xff] %v16721_v42  ;;  %v1831_v60 = vadd.f32 %v16282_v55, %v1534_v29  ;;  %v838_v8 = vmul.f32 %v16206_v39, %v20686_v25  ;;  %v813_v21 = vmul.f32 %v16249_v26, %v20679_v54  ;;  %v2062_v5 = vmax.f32 %v1806_v32, 0.0 }
 0x2ba   : > { %v1533_v13 = vadd.f32 %v1277_v56, %v821_v44  ;;  %v829_v62 = vmul.f32 %v16249_v26, %v20681_v47  ;;  %v1285_v7 = vmul.f32 %v16252_v63, %v20682_v6  ;;  %v2070_v15 = vmax.f32 %v1814_v23, 0.0 }
 0x2bb   : > { %5888 = vmatmul.mubr.bf16.gmra.mrb[36].mxu0 %v16683_v12  ;;  %6660 = vmatmul.mubr.bf16.gmra.mrb[36].mxu1 %v16683_v12  ;;  %v1286_v12 = vmul.f32 %v16231_v52, %v20682_v6  ;;  %v1550_v51 = vadd.f32 %v1294_v35, %v838_v8  ;;  %v2087_v29 = vmax.f32 %v1831_v60, 0.0  ;;  %v1293_v27 = vmul.f32 %v16252_v63, %v20684_v57  ;;  %v20689_v60 = vld [vmem:[#allocation107_spill] sm:$0xff]  ;;  %v20701_v6 = vld [vmem:[#allocation18_spill] sm:$0xff] }
 0x2bc   : > { %5897 = vmatprep.mubr.bf16.mxu0 %v16694_v3  ;;  %6669 = vmatprep.mubr.bf16.mxu1 %v16694_v3  ;;  %v830_v3 = vmul.f32 %v16206_v39, %v20681_v47  ;;  %v2079_v56 = vmax.f32 %v1823_v24, 0.0  ;;  %v1541_v32 = vadd.f32 %v1285_v7, %v829_v62  ;;  %v16752_v23 = vpack.c.bf16 %v2070_v15, %v2062_v5  ;;  %v20702_v47 = vld [vmem:[#allocation106_spill] sm:$0xff] }
 0x2bd   : > { %v1847_v8 = vadd.f32 %v16282_v55, %v1550_v51 }
 0x2be   : > { %v1542_v38 = vadd.f32 %v1286_v12, %v830_v3  ;;  %v1830_v12 = vadd.f32 %v16287_v2, %v1533_v13  ;;  %v20687_v3 = vld [vmem:[#allocation114_spill] sm:$0xff]  ;;  %20688 = vst [vmem:[#allocation163_spill] sm:$0xff] %v16752_v23  ;;  %v16758_v13 = vpack.c.bf16 %v2087_v29, %v2079_v56  ;;  %v1838_v29 = vadd.f32 %v16287_v2, %v1541_v32 }
 0x2bf   : > { %v1310_v44 = vmul.f32 %v16231_v52, %v20687_v3  ;;  %v2103_v15 = vmax.f32 %v1847_v8, 0.0  ;;  %v853_v32 = vmul.f32 %v16249_v26, %v20689_v60 }
 0x2c0   : > { %v1839_v35 = vadd.f32 %v16282_v55, %v1542_v38  ;;  %20691 = vst [vmem:[#allocation164_spill] sm:$0xff] %v16758_v13  ;;  %v20692_v38 = vld [vmem:[#allocation108_spill] sm:$0xff]  ;;  %v2086_v7 = vmax.f32 %v1830_v12, 0.0  ;;  %v2094_v12 = vmax.f32 %v1838_v29, 0.0 }
 0x2c1   : > { %v846_v51 = vmul.f32 %v16206_v39, %v20692_v38 }
 0x2c2   : > { %v2095_v5 = vmax.f32 %v1839_v35, 0.0  ;;  %v20695_v35 = vld [vmem:[#allocation119_spill] sm:$0xff] }
 0x2c3   : > { %5898 = vmatmul.mubr.bf16.gmra.mrb[40].mxu0 %v16717_v31  ;;  %6670 = vmatmul.mubr.bf16.gmra.mrb[40].mxu1 %v16717_v31  ;;  %v1525_v31 = vadd.f32 %v1269_v28, %v813_v21  ;;  %v854_v28 = vmul.f32 %v16206_v39, %v20689_v60  ;;  %v20690_v21 = vld [vmem:[#allocation113_spill] sm:$0xff]  ;;  %v1326_v8 = vmul.f32 %v16231_v52, %v20695_v35  ;;  %v20700_v60 = vld [vmem:[#allocation115_spill] sm:$0xff] }
 0x2c4   : > { %5907 = vmatprep.mubr.bf16.mxu0 %v16721_v42  ;;  %6679 = vmatprep.mubr.bf16.mxu1 %v16721_v42  ;;  %v837_v42 = vmul.f32 %v16249_v26, %v20686_v25  ;;  %v1302_v24 = vmul.f32 %v16231_v52, %v20690_v21  ;;  %v1318_v25 = vmul.f32 %v16231_v52, %v20700_v60 }
 0x2c5   : > { %v1822_v34 = vadd.f32 %v16287_v2, %v1525_v31  ;;  %v1566_v62 = vadd.f32 %v1310_v44, %v854_v28  ;;  %v1309_v44 = vmul.f32 %v16252_v63, %v20687_v3 }
 0x2c6   : > { %v1549_v53 = vadd.f32 %v1293_v27, %v837_v42  ;;  %v1558_v56 = vadd.f32 %v1302_v24, %v846_v51  ;;  %v14458_v24 = vld [vmem:[#allocation3 + $0x8] sm:$0xff] }
 0x2c7   : > { %v2078_v31 = vmax.f32 %v1822_v34, 0.0  ;;  %v1863_v42 = vadd.f32 %v16282_v55, %v1566_v62  ;;  %v20696_v51 = vld [vmem:[#allocation101_spill] sm:$0xff]  ;;  %v1565_v3 = vadd.f32 %v1309_v44, %v853_v32  ;;  %v572_v54 = vrot.slane %v14458_v24, %v20702_v47 }
 0x2c8   : > { %v1846_v27 = vadd.f32 %v16287_v2, %v1549_v53  ;;  %v1855_v34 = vadd.f32 %v16282_v55, %v1558_v56  ;;  %v845_v53 = vmul.f32 %v16249_v26, %v20692_v38  ;;  %v576_v62 = vrot.slane %v14458_v24, %v20696_v51 }
 0x2c9   : > { %v16774_v28 = vpack.c.bf16 %v2086_v7, %v2078_v31  ;;  %v20697_v7 = vld [vmem:[#allocation112_spill] sm:$0xff]  ;;  %v20699_v31 = vld [vmem:[#allocation105_spill] sm:$0xff]  ;;  %v2119_v56 = vmax.f32 %v1863_v42, 0.0  ;;  %v1028_v46 = vrot.slane %v14458_v24, %v20703_v10 }
 0x2ca   : > { %v2102_v45 = vmax.f32 %v1846_v27, 0.0  ;;  %v2111_v57 = vmax.f32 %v1855_v34, 0.0  ;;  %v861_v32 = vmul.f32 %v16249_v26, %v20697_v7  ;;  %v20712_v10 = vld [vmem:[#allocation28_spill] sm:$0xff] }
 0x2cb   : > { %5908 = vmatmul.mubr.bf16.gmra.mrb[44].mxu0 %v16752_v23  ;;  %6680 = vmatmul.mubr.bf16.gmra.mrb[44].mxu1 %v16752_v23  ;;  %v1301_v23 = vmul.f32 %v16252_v63, %v20690_v21  ;;  %20693 = vst [vmem:[#allocation165_spill] sm:$0xff] %v16774_v28  ;;  %v1032_v21 = vrot.slane %v14458_v24, %v20699_v31 }
 0x2cc   : > { %5917 = vmatprep.mubr.bf16.mxu0 %v16758_v13  ;;  %6689 = vmatprep.mubr.bf16.mxu1 %v16758_v13  ;;  %v16776_v13 = vpack.c.bf16 %v2103_v15, %v2095_v5  ;;  %v862_v5 = vmul.f32 %v16206_v39, %v20697_v7  ;;  %v20698_v15 = vld [vmem:[#allocation116_spill] sm:$0xff]  ;;  %v16807_v44 = vpack.c.bf16 %v2119_v56, %v2111_v57 }
 0x2cd   : > { %v870_v29 = vmul.f32 %v16206_v39, %v20698_v15  ;;  %v1557_v38 = vadd.f32 %v1301_v23, %v845_v53  ;;  %v16798_v39 = vrot.slane %v576_v62, %v20701_v6  ;;  %v20705_v23 = vld [vmem:[#allocation20_spill] sm:$0xff]  ;;  %v1862_v53 = vadd.f32 %v16287_v2, %v1565_v3 }
 0x2ce   : > { %20694 = vst [vmem:[#allocation166_spill] sm:$0xff] %v16776_v13  ;;  %v16805_v42 = vrot.slane %v1032_v21, %v20705_v23  ;;  %20706 = vst [vmem:[#allocation168_spill] sm:$0xff] %v16807_v44  ;;  %v869_v24 = vmul.f32 %v16249_v26, %v20698_v15  ;;  %v1325_v57 = vmul.f32 %v16252_v63, %v20695_v35  ;;  %v20707_v21 = vld [vmem:[#allocation23_spill] sm:$0xff] }
 0x2cf   : > { %v1582_v27 = vadd.f32 %v1326_v8, %v870_v29  ;;  %v1854_v52 = vadd.f32 %v16287_v2, %v1557_v38  ;;  %v1574_v8 = vadd.f32 %v1318_v25, %v862_v5  ;;  %v624_v38 = vmul.f32 %v16798_v39, %v20707_v21  ;;  %v20709_v5 = vld [vmem:[#allocation22_spill] sm:$0xff]  ;;  %v20710_v29 = vld [vmem:[#allocation24_spill] sm:$0xff] }
 0x2d0   : > { %v16823_v3 = vrot.slane %v572_v54, %v20701_v6  ;;  %v16826_v25 = vrot.slane %v1028_v46, %v20705_v23  ;;  %v1080_v26 = vmul.f32 %v16805_v42, %v20709_v5  ;;  %v1088_v56 = vmul.f32 %v16805_v42, %v20710_v29  ;;  %v20713_v6 = vld [vmem:[#allocation30_spill] sm:$0xff] }
 0x2d1   : > { %v1879_v34 = vadd.f32 %v16282_v55, %v1582_v27  ;;  %v20711_v27 = vld [vmem:[#allocation26_spill] sm:$0xff]  ;;  %v1096_v47 = vmul.f32 %v16805_v42, %v20712_v10  ;;  %v1871_v23 = vadd.f32 %v16282_v55, %v1574_v8  ;;  %v1581_v15 = vadd.f32 %v1325_v57, %v869_v24 }
 0x2d2   : > { %v1087_v46 = vmul.f32 %v16826_v25, %v20710_v29  ;;  %v1079_v29 = vmul.f32 %v16826_v25, %v20709_v5  ;;  %v16856_v55 = vrot.slane %v14459_v20, %v20699_v31  ;;  %v16951_v31 = vld [vmem:[#allocation8 + $0xb8] sm:$0xff] }
 0x2d3   : > { %5918 = vmatmul.mubr.bf16.gmra.mrb[48].mxu0 %v16774_v28  ;;  %6690 = vmatmul.mubr.bf16.gmra.mrb[48].mxu1 %v16774_v28  ;;  %v16802_v28 = vpack.c.bf16 %v2102_v45, %v2094_v12  ;;  %v1317_v45 = vmul.f32 %v16252_v63, %v20700_v60  ;;  %v20708_v12 = vld [vmem:[#allocation25_spill] sm:$0xff]  ;;  %v640_v63 = vmul.f32 %v16798_v39, %v20711_v27  ;;  %v2135_v7 = vmax.f32 %v1879_v34, 0.0 }
 0x2d4   : > { %5927 = vmatprep.mubr.bf16.mxu0 %v16776_v13  ;;  %6699 = vmatprep.mubr.bf16.mxu1 %v16776_v13  ;;  %v632_v62 = vmul.f32 %v16798_v39, %v20708_v12  ;;  %v631_v54 = vmul.f32 %v16823_v3, %v20708_v12  ;;  %v2110_v13 = vmax.f32 %v1854_v52, 0.0  ;;  %v1104_v60 = vmul.f32 %v16805_v42, %v20713_v6 }
 0x2d5   : > { %20704 = vst [vmem:[#allocation167_spill] sm:$0xff] %v16802_v28  ;;  %v623_v12 = vmul.f32 %v16823_v3, %v20707_v21  ;;  %v1573_v35 = vadd.f32 %v1317_v45, %v861_v32  ;;  %v1336_v52 = vadd.f32 %v1080_v26, %v624_v38  ;;  %v2127_v24 = vmax.f32 %v1871_v23, 0.0  ;;  %v16883_v26 = vld [vmem:[#allocation8 + $0x50] sm:$0xff] }
 0x2d6   : > { %v1344_v0 = vadd.f32 %v1088_v56, %v632_v62  ;;  %v1343_v8 = vadd.f32 %v1087_v46, %v631_v54  ;;  %v1878_v21 = vadd.f32 %v16287_v2, %v1581_v15  ;;  %v16862_v34 = vrot.slane %v14459_v20, %v20696_v51  ;;  %v16885_v56 = vld [vmem:[#allocation8 + $0x70] sm:$0xff] }
 0x2d7   : > { %v1335_v5 = vadd.f32 %v1079_v29, %v623_v12  ;;  %v16864_v32 = vpack.c.bf16 %v2135_v7, %v2127_v24  ;;  %v1870_v45 = vadd.f32 %v16287_v2, %v1573_v35  ;;  %v639_v2 = vmul.f32 %v16823_v3, %v20711_v27  ;;  %v20718_v29 = vld [vmem:[#allocation36_spill] sm:$0xff]  ;;  %v16897_v24 = vld [vmem:[#allocation8 + $0x78] sm:$0xff] }
 0x2d8   : > { %v1641_v38 = vadd.f32 %v16856_v55, %v1344_v0  ;;  %v1095_v0 = vmul.f32 %v16826_v25, %v20712_v10  ;;  %v1103_v15 = vmul.f32 %v16826_v25, %v20713_v6  ;;  %v647_v27 = vmul.f32 %v16823_v3, %v20714_v1  ;;  %v20719_v6 = vld [vmem:[#allocation39_spill] sm:$0xff] }
 0x2d9   : > { %20716 = vst [vmem:[#allocation25_spill] sm:$0xff] %v16864_v32  ;;  %v1632_v35 = vadd.f32 %v16862_v34, %v1335_v5  ;;  %v2126_v23 = vmax.f32 %v1870_v45, 0.0  ;;  %v20721_v5 = vld [vmem:[#allocation37_spill] sm:$0xff] }
 0x2da   : > { %v1897_v7 = vmax.f32 %v1641_v38, 0.0  ;;  %v1351_v10 = vadd.f32 %v1095_v0, %v639_v2  ;;  %v1112_v45 = vmul.f32 %v16805_v42, %v20721_v5 }
 0x2db   : > { %5928 = vmatmul.mubr.bf16.gmra.mrb[52].mxu0 %v16802_v28  ;;  %6700 = vmatmul.mubr.bf16.gmra.mrb[52].mxu1 %v16802_v28  ;;  %v2118_v28 = vmax.f32 %v1862_v53, 0.0  ;;  %v1352_v53 = vadd.f32 %v1096_v47, %v640_v63  ;;  %v1633_v47 = vadd.f32 %v16856_v55, %v1336_v52  ;;  %v1888_v12 = vmax.f32 %v1632_v35, 0.0  ;;  %v16922_v35 = vld [vmem:[#allocation8 + $0xb0] sm:$0xff] }
 0x2dc   : > { %5937 = vmatprep.mubr.bf16.mxu0 %v16807_v44  ;;  %6709 = vmatprep.mubr.bf16.mxu1 %v16807_v44  ;;  %v648_v44 = vmul.f32 %v16798_v39, %v20714_v1  ;;  %v664_v52 = vmul.f32 %v16798_v39, %v20718_v29  ;;  %v1359_v1 = vadd.f32 %v1103_v15, %v647_v27 }
 0x2dd   : > { %v16858_v16 = vpack.c.bf16 %v2118_v28, %v2110_v13  ;;  %v1649_v13 = vadd.f32 %v16856_v55, %v1352_v53  ;;  %v2134_v28 = vmax.f32 %v1878_v21, 0.0  ;;  %v16895_v53 = vld [vmem:[#allocation8 + $0x58] sm:$0xff]  ;;  %v1648_v2 = vadd.f32 %v16862_v34, %v1351_v10 }
 0x2de   : > { %v1360_v57 = vadd.f32 %v1104_v60, %v648_v44  ;;  %v1640_v60 = vadd.f32 %v16862_v34, %v1343_v8  ;;  %v1889_v44 = vmax.f32 %v1633_v47, 0.0  ;;  %v1120_v8 = vmul.f32 %v16805_v42, %v20719_v6  ;;  %v16949_v21 = vld [vmem:[#allocation8 + $0x98] sm:$0xff] }
 0x2df   : > { %20715 = vst [vmem:[#allocation23_spill] sm:$0xff] %v16858_v16  ;;  %v1905_v63 = vmax.f32 %v1649_v13, 0.0  ;;  %v16889_v46 = vpack.c.bf16 %v2134_v28, %v2126_v23  ;;  %v12628_v47 = vcombine.high %v16883_v26, %v16885_v56  ;;  %v16920_v28 = vld [vmem:[#allocation8 + $0x90] sm:$0xff]  ;;  %v663_v23 = vmul.f32 %v16823_v3, %v20718_v29 }
 0x2e0   : > { %v1657_v20 = vadd.f32 %v16856_v55, %v1360_v57  ;;  %v1896_v62 = vmax.f32 %v1640_v60, 0.0  ;;  %v16899_v57 = vpack.c.bf16 %v1897_v7, %v1889_v44  ;;  %v20723_v60 = vld [vmem:[#allocation33_spill] sm:$0xff]  ;;  %v1376_v15 = vadd.f32 %v1120_v8, %v664_v52  ;;  %v20727_v8 = vld [vmem:[#allocation38_spill] sm:$0xff] }
 0x2e1   : > { %20717 = vst [vmem:[#allocation22_spill] sm:$0xff] %v16889_v46  ;;  %v656_v13 = vmul.f32 %v16798_v39, %v20723_v60  ;;  %v16924_v7 = vld [vmem:[#allocation8 + $0x410] sm:$0xff]  ;;  %v1111_v44 = vmul.f32 %v16826_v25, %v20721_v5  ;;  %v12630_v10 = vcombine.high %v16895_v53, %v16897_v24  ;;  %v12636_v29 = vcombine.high %v16920_v28, %v16922_v35 }
 0x2e2   : > { %v1913_v54 = vmax.f32 %v1657_v20, 0.0  ;;  %20720 = vst [vmem:[#allocation24_spill] sm:$0xff] %v16899_v57  ;;  %v16907_v38 = vpack.c.bf16 %v1896_v62, %v1888_v12  ;;  %20725 = vst [vmem:[#allocation30_spill] sm:$0xff] %v16924_v7  ;;  %v1119_v62 = vmul.f32 %v16826_v25, %v20719_v6  ;;  %v655_v52 = vmul.f32 %v16823_v3, %v20723_v60  ;;  %v20728_v5 = vld [vmem:[#allocation32_spill] sm:$0xff] }
 0x2e3   : > { %5938 = vmatmul.mubr.bf16.gmra.mrb[56].mxu0 %v16858_v16  ;;  %6710 = vmatmul.mubr.bf16.gmra.mrb[56].mxu1 %v16858_v16  ;;  %v1368_v27 = vadd.f32 %v1112_v45, %v656_v13  ;;  %v672_v6 = vmul.f32 %v16798_v39, %v20727_v8  ;;  %v1128_v0 = vmul.f32 %v16805_v42, %v20728_v5  ;;  %v20729_v45 = vld [vmem:[#allocation43_spill] sm:$0xff]  ;;  %v20730_v16 = vld [vmem:[#allocation40_spill] sm:$0xff] }
 0x2e4   : > { %5947 = vmatprep.mubr.bf16.mxu0 %v16864_v32  ;;  %6719 = vmatprep.mubr.bf16.mxu1 %v16864_v32  ;;  %20722 = vst [vmem:[#allocation26_spill] sm:$0xff] %v16907_v38  ;;  %v16915_v20 = vpack.c.bf16 %v1913_v54, %v1905_v63  ;;  %v16932_v63 = vld [vmem:[#allocation8 + $0x430] sm:$0xff]  ;;  %v1656_v54 = vadd.f32 %v16862_v34, %v1359_v1  ;;  %v1904_v1 = vmax.f32 %v1648_v2, 0.0 }
 0x2e5   : > { %20726 = vst [vmem:[#allocation27_spill] sm:$0xff] %v16932_v63  ;;  %v1136_v13 = vmul.f32 %v16805_v42, %v20729_v45  ;;  %v671_v12 = vmul.f32 %v16823_v3, %v20727_v8  ;;  %v1127_v60 = vmul.f32 %v16826_v25, %v20728_v5  ;;  %v1673_v51 = vadd.f32 %v16856_v55, %v1376_v15  ;;  %v20731_v7 = vld [vmem:[#allocation44_spill] sm:$0xff] }
 0x2e6   : > { %20724 = vst [vmem:[#allocation28_spill] sm:$0xff] %v16915_v20  ;;  %v1135_v2 = vmul.f32 %v16826_v25, %v20729_v45  ;;  %v1665_v32 = vadd.f32 %v16856_v55, %v1368_v27  ;;  %v680_v43 = vmul.f32 %v16798_v39, %v20730_v16  ;;  %v696_v63 = vmul.f32 %v16798_v39, %v20731_v7  ;;  %v20734_v45 = vld [vmem:[#allocation49_spill] sm:$0xff] }
 0x2e7   : > { %v1152_v8 = vmul.f32 %v16805_v42, %v20732_v9  ;;  %v1912_v15 = vmax.f32 %v1656_v54, 0.0  ;;  %v20733_v27 = vcombine.low %v16358_v59, %v16360_v30  ;;  %v1383_v5 = vadd.f32 %v1127_v60, %v671_v12  ;;  %v16991_v12 = vld [vmem:[#allocation8 + $0xd0] sm:$0xff] }
 0x2e8   : > { %v1144_v14 = vmul.f32 %v16805_v42, %v20734_v45  ;;  %v1929_v54 = vmax.f32 %v1673_v51, 0.0  ;;  %v20736_v60 = vld [vmem:[#allocation45_spill] sm:$0xff] }
 0x2eb   : > { %5948 = vmatmul.mubr.bf16.gmra.mrb[60].mxu0 %v16889_v46  ;;  %6720 = vmatmul.mubr.bf16.gmra.mrb[60].mxu1 %v16889_v46  ;;  %v1375_v46 = vadd.f32 %v1119_v62, %v663_v23  ;;  %v1384_v23 = vadd.f32 %v1128_v0, %v672_v6  ;;  %v679_v62 = vmul.f32 %v16823_v3, %v20730_v16  ;;  %v16987_v6 = vld [vmem:[#allocation8 + $0x418] sm:$0xff] }
 0x2ec   : > { %5990 = vmatprep.mubr.bf16.mxu0 %v16899_v57  ;;  %6762 = vmatprep.mubr.bf16.mxu1 %v16899_v57  ;;  %v1367_v57 = vadd.f32 %v1111_v44, %v655_v52  ;;  %v12638_v44 = vcombine.high %v16949_v21, %v16951_v31  ;;  %v1392_v52 = vadd.f32 %v1136_v13, %v680_v43  ;;  %v16989_v43 = vld [vmem:[#allocation8 + $0x438] sm:$0xff]  ;;  %v16993_v13 = vld [vmem:[#allocation8 + $0xf0] sm:$0xff] }
 0x2ed   : > { %v20735_v0 = vcombine.low %v16430_v49, %v16432_v17  ;;  %v1672_v59 = vadd.f32 %v16862_v34, %v1375_v46  ;;  %v1391_v30 = vadd.f32 %v1135_v2, %v679_v62  ;;  %v688_v49 = vmul.f32 %v16798_v39, %v20736_v60  ;;  %v2297_v62 = vld [vmem:[#allocation8 + $0xf8] sm:$0xff] }
 0x2ee   : > { %v16984_v16 = vadd.f32 %v16862_v34, %v1367_v57  ;;  %v1408_v17 = vadd.f32 %v1152_v8, %v696_v63  ;;  %v16999_v57 = vpack.c.bf16 %v1912_v15, %v1904_v1  ;;  %v1921_v46 = vmax.f32 %v1665_v32, 0.0 }
 0x2ef   : > { %v12635_v2 = vcombine.low %v16920_v28, %v16922_v35  ;;  %v12637_v63 = vcombine.low %v16949_v21, %v16951_v31  ;;  %v1680_v1 = vadd.f32 %v16862_v34, %v1383_v5  ;;  %v1400_v8 = vadd.f32 %v1144_v14, %v688_v49  ;;  %v2301_v5 = vld [vmem:[#allocation8 + $0x118] sm:$0xff] }
 0x2f0   : > { %20737 = vst [vmem:[#allocation36_spill] sm:$0xff] %v16999_v57  ;;  %v17011_v32 = vpack.c.bf16 %v1929_v54, %v1921_v46  ;;  %v20740_v28 = vcombine.low %v16895_v53, %v16897_v24  ;;  %v1920_v35 = vmax.f32 %v16984_v16, 0.0  ;;  %v1928_v15 = vmax.f32 %v1672_v59, 0.0  ;;  %v2304_v24 = vld [vmem:[#allocation8 + $0x130] sm:$0xff]  ;;  %v2305_v54 = vld [vmem:[#allocation8 + $0x138] sm:$0xff] }
 0x2f1   : > { %v12644_v31 = vcombine.high %v16991_v12, %v16993_v13  ;;  %v1705_v14 = vadd.f32 %v16856_v55, %v1408_v17  ;;  %v1936_v59 = vmax.f32 %v1680_v1, 0.0  ;;  %v20742_v49 = vld [vmem:[#allocation50_spill] sm:$0xff]  ;;  %v2312_v1 = vld [vmem:[#allocation8 + $0x170] sm:$0xff] }
 0x2f2   : > { %20739 = vst [vmem:[#allocation39_spill] sm:$0xff] %v17011_v32  ;;  %v1160_v17 = vmul.f32 %v16805_v42, %v20742_v49 }
 0x2f3   : > { %5991 = vmatmul.mubr.bf16.vlgmr.msra.gmra.mrb[0].mxu0 %v16907_v38  ;;  %6763 = vmatmul.mubr.bf16.vlgmr.msra.gmra.mrb[0].mxu1 %v16907_v38  ;;  %v1961_v46 = vmax.f32 %v1705_v14, 0.0  ;;  %v20746_v14 = vld [vmem:[#allocation52_spill] sm:$0xff]  ;;  %v17644_v38 = vld [vmem:[#allocation8 + $0xa58] sm:$0xff] }
 0x2f4   : > { %6924 = vmatpush1.bf16.msra.mxu0 %v20733_v27  ;;  %6000 = vmatprep.mubr.bf16.mxu0 %v16915_v20  ;;  %v20738_v27 = vcombine.low %v16883_v26, %v16885_v56  ;;  %v12643_v26 = vcombine.low %v16991_v12, %v16993_v13  ;;  %v1688_v56 = vadd.f32 %v16862_v34, %v1391_v30  ;;  %v20741_v13 = vld [vmem:[#allocation46_spill] sm:$0xff] }
 0x2f5   : > { %6772 = vmatprep.mubr.bf16.mxu1 %v16915_v20  ;;  %7696 = vmatpush1.bf16.msra.mxu1 %v20735_v0  ;;  %v1689_v0 = vadd.f32 %v16856_v55, %v1392_v52  ;;  %v1151_v52 = vmul.f32 %v16826_v25, %v20732_v9  ;;  %v1697_v30 = vadd.f32 %v16856_v55, %v1400_v8  ;;  %v2309_v8 = vld [vmem:[#allocation8 + $0x158] sm:$0xff] }
 0x2f6   : > { %6925 = vmatprep.subr.bf16.mxu0 %v12628_v47  ;;  %7697 = vmatprep.subr.bf16.mxu1 %v12630_v10  ;;  %v1681_v47 = vadd.f32 %v16856_v55, %v1384_v23  ;;  %v2293_v10 = vld [vmem:[#allocation8 + $0xd8] sm:$0xff]  ;;  %v17023_v23 = vld [vmem:[#allocation8 + $0x110] sm:$0xff]  ;;  %v704_v9 = vmul.f32 %v16798_v39, %v20741_v13 }
 0x2f7   : > { %v12646_v21 = vcombine.high %v2293_v10, %v2297_v62  ;;  %v1945_v16 = vmax.f32 %v1689_v0, 0.0  ;;  %v12645_v12 = vcombine.low %v2293_v10, %v2297_v62  ;;  %v2308_v0 = vld [vmem:[#allocation8 + $0x150] sm:$0xff]  ;;  %v17043_v10 = vpack.c.bf16 %v1928_v15, %v1920_v35 }
 0x2f8   : > { %6926 = vmatpush1.bf16.msra.mxu0 %v20738_v27  ;;  %v1937_v53 = vmax.f32 %v1681_v47, 0.0  ;;  %v12652_v47 = vcombine.high %v17023_v23, %v2304_v24  ;;  %v12654_v27 = vcombine.high %v2301_v5, %v2305_v54  ;;  %v1953_v51 = vmax.f32 %v1697_v30, 0.0 }
 0x2f9   : > { %7698 = vmatpush1.bf16.msra.mxu1 %v20740_v28  ;;  %6927 = vmatprep.subr.bf16.mxu0 %v12636_v29  ;;  %v695_v29 = vmul.f32 %v16823_v3, %v20731_v7  ;;  %v1944_v7 = vmax.f32 %v1688_v56, 0.0  ;;  %20743 = vst [vmem:[#allocation37_spill] sm:$0xff] %v17043_v10  ;;  %v2313_v28 = vld [vmem:[#allocation8 + $0x178] sm:$0xff]  ;;  %v1416_v35 = vadd.f32 %v1160_v17, %v704_v9 }
 0x2fa   : > { %7699 = vmatprep.subr.bf16.mxu1 %v12638_v44  ;;  %v1143_v44 = vmul.f32 %v16826_v25, %v20734_v45  ;;  %v687_v45 = vmul.f32 %v16823_v3, %v20736_v60  ;;  %v17047_v56 = vpack.c.bf16 %v1945_v16, %v1937_v53  ;;  %v12653_v15 = vcombine.low %v2301_v5, %v2305_v54  ;;  %v17056_v53 = vld [vmem:[#allocation8 + $0x190] sm:$0xff]  ;;  %v2321_v54 = vld [vmem:[#allocation8 + $0x1b8] sm:$0xff] }
 0x2fb   : > { %6001 = vmatmul.mubr.bf16.gmra.mrb[4].mxu0 %v16999_v57  ;;  %6773 = vmatmul.mubr.bf16.gmra.mrb[4].mxu1 %v16999_v57  ;;  %v1407_v62 = vadd.f32 %v1151_v52, %v695_v29  ;;  %v17054_v29 = vpack.c.bf16 %v1961_v46, %v1953_v51  ;;  %v12662_v52 = vcombine.high %v2309_v8, %v2313_v28  ;;  %v2320_v5 = vld [vmem:[#allocation8 + $0x1b0] sm:$0xff]  ;;  %v2317_v51 = vld [vmem:[#allocation8 + $0x198] sm:$0xff] }
 0x2fc   : > { %6010 = vmatprep.mubr.bf16.mxu0 %v17011_v32  ;;  %6782 = vmatprep.mubr.bf16.mxu1 %v17011_v32  ;;  %20745 = vst [vmem:[#allocation33_spill] sm:$0xff] %v17047_v56  ;;  %v17052_v32 = vpack.c.bf16 %v1944_v7, %v1936_v59  ;;  %v703_v16 = vmul.f32 %v16823_v3, %v20741_v13  ;;  %v17080_v46 = vld [vmem:[#allocation8 + $0x1d0] sm:$0xff] }
 0x2fd   : > { %6928 = vmatpush1.bf16.msra.mxu0 %v12635_v2  ;;  %7700 = vmatpush1.bf16.msra.mxu1 %v12637_v63  ;;  %v1399_v2 = vadd.f32 %v1143_v44, %v687_v45  ;;  %v20744_v63 = vld [vmem:[#allocation55_spill] sm:$0xff]  ;;  %20748 = vst [vmem:[#allocation32_spill] sm:$0xff] %v17054_v29  ;;  %v12660_v44 = vcombine.high %v2308_v0, %v2312_v1 }
 0x2fe   : > { %6929 = vmatprep.subr.bf16.mxu0 %v12644_v31  ;;  %7701 = vmatprep.subr.bf16.mxu1 %v12646_v21  ;;  %v1168_v60 = vmul.f32 %v16805_v42, %v20744_v63  ;;  %v12651_v31 = vcombine.low %v17023_v23, %v2304_v24  ;;  %v712_v21 = vmul.f32 %v16798_v39, %v20746_v14 }
 0x2ff   : > { %20747 = vst [vmem:[#allocation38_spill] sm:$0xff] %v17052_v32  ;;  %v17061_v23 = vadd.f32 %v16862_v34, %v1399_v2  ;;  %v1159_v59 = vmul.f32 %v16826_v25, %v20742_v49  ;;  %v1167_v30 = vmul.f32 %v16826_v25, %v20744_v63  ;;  %v12659_v7 = vcombine.low %v2308_v0, %v2312_v1  ;;  %v20750_v2 = vld [vmem:[#allocation58_spill] sm:$0xff]  ;;  %v20751_v0 = vld [vmem:[#allocation63_spill] sm:$0xff] }
 0x300   : > { %v1424_v24 = vadd.f32 %v1168_v60, %v712_v21  ;;  %v12661_v45 = vcombine.low %v2309_v8, %v2313_v28  ;;  %v711_v9 = vmul.f32 %v16823_v3, %v20746_v14  ;;  %v12668_v13 = vcombine.high %v17056_v53, %v2320_v5  ;;  %v2328_v60 = vld [vmem:[#allocation8 + $0x1f0] sm:$0xff]  ;;  %v2325_v1 = vld [vmem:[#allocation8 + $0x1d8] sm:$0xff] }
 0x301   : > { %6930 = vmatpush1.bf16.msra.mxu0 %v12643_v26  ;;  %7702 = vmatpush1.bf16.msra.mxu1 %v12645_v12  ;;  %v17064_v26 = vadd.f32 %v16862_v34, %v1407_v62  ;;  %v17075_v12 = vadd.f32 %v16856_v55, %v1416_v35  ;;  %v12670_v17 = vcombine.high %v2317_v51, %v2321_v54  ;;  %v2329_v8 = vld [vmem:[#allocation8 + $0x1f8] sm:$0xff] }
 0x302   : > { %6931 = vmatprep.subr.bf16.mxu0 %v12652_v47  ;;  %7703 = vmatprep.subr.bf16.mxu1 %v12654_v27  ;;  %v1721_v49 = vadd.f32 %v16856_v55, %v1424_v24  ;;  %v20749_v47 = vld [vmem:[#allocation57_spill] sm:$0xff]  ;;  %v728_v62 = vmul.f32 %v16798_v39, %v20750_v2  ;;  %v1184_v63 = vmul.f32 %v16805_v42, %v20751_v0 }
 0x303   : > { %6011 = vmatmul.mubr.bf16.gmra.mrb[8].mxu0 %v17043_v10  ;;  %6783 = vmatmul.mubr.bf16.gmra.mrb[8].mxu1 %v17043_v10  ;;  %v720_v27 = vmul.f32 %v16798_v39, %v20749_v47  ;;  %v1415_v28 = vadd.f32 %v1159_v59, %v703_v16  ;;  %v20752_v14 = vld [vmem:[#allocation61_spill] sm:$0xff]  ;;  %v12667_v35 = vcombine.low %v17056_v53, %v2320_v5  ;;  %v1960_v53 = vmax.f32 %v17064_v26, 0.0 }
 0x304   : > { %6020 = vmatprep.mubr.bf16.mxu0 %v17047_v56  ;;  %6792 = vmatprep.mubr.bf16.mxu1 %v17047_v56  ;;  %v1176_v21 = vmul.f32 %v16805_v42, %v20752_v14  ;;  %v1183_v24 = vmul.f32 %v16826_v25, %v20751_v0  ;;  %v12676_v16 = vcombine.high %v17080_v46, %v2328_v60  ;;  %v1969_v5 = vmax.f32 %v17075_v12, 0.0 }
 0x305   : > { %6932 = vmatpush1.bf16.msra.mxu0 %v12651_v31  ;;  %7704 = vmatpush1.bf16.msra.mxu1 %v12653_v15  ;;  %v1423_v31 = vadd.f32 %v1167_v30, %v711_v9  ;;  %v727_v15 = vmul.f32 %v16823_v3, %v20750_v2  ;;  %v12678_v59 = vcombine.high %v2325_v1, %v2329_v8  ;;  %v17099_v30 = vld [vmem:[#allocation8 + $0x210] sm:$0xff]  ;;  %v2337_v9 = vld [vmem:[#allocation8 + $0x238] sm:$0xff]  ;;  %v1952_v0 = vmax.f32 %v17061_v23, 0.0 }
 0x306   : > { %6933 = vmatprep.subr.bf16.mxu0 %v12660_v44  ;;  %7705 = vmatprep.subr.bf16.mxu1 %v12662_v52  ;;  %v1175_v44 = vmul.f32 %v16826_v25, %v20752_v14  ;;  %v12669_v52 = vcombine.low %v2317_v51, %v2321_v54  ;;  %v719_v51 = vmul.f32 %v16823_v3, %v20749_v47  ;;  %v2336_v54 = vld [vmem:[#allocation8 + $0x230] sm:$0xff] }
 0x307   : > { %v17113_v2 = vadd.f32 %v16862_v34, %v1423_v31  ;;  %v1432_v26 = vadd.f32 %v1176_v21, %v720_v27  ;;  %v12675_v47 = vcombine.low %v17080_v46, %v2328_v60  ;;  %v736_v27 = vmul.f32 %v16798_v39, %v20654_v36  ;;  %v2344_v23 = vld [vmem:[#allocation8 + $0x270] sm:$0xff]  ;;  %v2341_v60 = vld [vmem:[#allocation8 + $0x258] sm:$0xff] }
 0x308   : > { %v1431_v12 = vadd.f32 %v1175_v44, %v719_v51  ;;  %v1192_v21 = vmul.f32 %v16805_v42, %v20655_v11  ;;  %v1200_v46 = vmul.f32 %v16805_v42, %v20656_v22  ;;  %v744_v44 = vmul.f32 %v16798_v39, %v20657_v61 }
 0x309   : > { %6934 = vmatpush1.bf16.msra.mxu0 %v12659_v7  ;;  %7706 = vmatpush1.bf16.msra.mxu1 %v12661_v45  ;;  %v1440_v7 = vadd.f32 %v1184_v63, %v728_v62  ;;  %v2333_v45 = vld [vmem:[#allocation8 + $0x218] sm:$0xff]  ;;  %v12677_v62 = vcombine.low %v2325_v1, %v2329_v8  ;;  %v1439_v63 = vadd.f32 %v1183_v24, %v727_v15 }
 0x30a   : > { %6935 = vmatprep.subr.bf16.mxu0 %v12668_v13  ;;  %7707 = vmatprep.subr.bf16.mxu1 %v12670_v17  ;;  %v1977_v13 = vmax.f32 %v1721_v49, 0.0  ;;  %v17110_v17 = vadd.f32 %v16862_v34, %v1415_v28  ;;  %v12684_v49 = vcombine.high %v17099_v30, %v2336_v54  ;;  %v12686_v14 = vcombine.high %v2333_v45, %v2337_v9  ;;  %v17118_v28 = vld [vmem:[#allocation8 + $0x250] sm:$0xff]  ;;  %v2345_v1 = vld [vmem:[#allocation8 + $0x278] sm:$0xff] }
 0x30b   : > { %6021 = vmatmul.mubr.bf16.gmra.mrb[12].mxu0 %v17052_v32  ;;  %6793 = vmatmul.mubr.bf16.gmra.mrb[12].mxu1 %v17052_v32  ;;  %v1737_v31 = vadd.f32 %v16856_v55, %v1440_v7  ;;  %v17127_v8 = vpack.c.bf16 %v1960_v53, %v1952_v0  ;;  %v1729_v15 = vadd.f32 %v16856_v55, %v1432_v26  ;;  %v1976_v53 = vmax.f32 %v17113_v2, 0.0 }
 0x30c   : > { %6030 = vmatprep.mubr.bf16.mxu0 %v17054_v29  ;;  %6802 = vmatprep.mubr.bf16.mxu1 %v17054_v29  ;;  %v17136_v24 = vadd.f32 %v16862_v34, %v1431_v12  ;;  %v12692_v7 = vcombine.high %v17118_v28, %v2344_v23  ;;  %v12694_v51 = vcombine.high %v2341_v60, %v2345_v1  ;;  %v17638_v29 = vld [vmem:[#allocation8 + $0xa70] sm:$0xff] }
 0x30d   : > { %6936 = vmatpush1.bf16.msra.mxu0 %v12667_v35  ;;  %7708 = vmatpush1.bf16.msra.mxu1 %v12669_v52  ;;  %20753 = vst [vmem:[#allocation43_spill] sm:$0xff] %v17127_v8  ;;  %v17129_v35 = vpack.c.bf16 %v1977_v13, %v1969_v5  ;;  %v1968_v52 = vmax.f32 %v17110_v17, 0.0  ;;  %v1736_v5 = vadd.f32 %v16862_v34, %v1439_v63  ;;  %v17142_v13 = vld [vmem:[#allocation8 + $0x290] sm:$0xff]  ;;  %v1993_v17 = vmax.f32 %v1737_v31, 0.0 }
 0x30e   : > { %6937 = vmatprep.subr.bf16.mxu0 %v12676_v16  ;;  %7709 = vmatprep.subr.bf16.mxu1 %v12678_v59  ;;  %v12683_v16 = vcombine.low %v17099_v30, %v2336_v54  ;;  %v12685_v59 = vcombine.low %v2333_v45, %v2337_v9  ;;  %v1448_v26 = vadd.f32 %v1192_v21, %v736_v27  ;;  %v2352_v54 = vld [vmem:[#allocation8 + $0x2b0] sm:$0xff]  ;;  %v2349_v45 = vld [vmem:[#allocation8 + $0x298] sm:$0xff]  ;;  %v1985_v0 = vmax.f32 %v1729_v15, 0.0 }
 0x30f   : > { %20754 = vst [vmem:[#allocation40_spill] sm:$0xff] %v17129_v35  ;;  %v1456_v12 = vadd.f32 %v1200_v46, %v744_v44  ;;  %v735_v30 = vmul.f32 %v16823_v3, %v20654_v36  ;;  %v2353_v9 = vld [vmem:[#allocation8 + $0x2b8] sm:$0xff]  ;;  %v1191_v2 = vmul.f32 %v16826_v25, %v20655_v11  ;;  %v1216_v36 = vmul.f32 %v16805_v42, %v20662_v37  ;;  %v2356_v31 = vld [vmem:[#allocation8 + $0x2d0] sm:$0xff] }
 0x310   : > { %v12691_v63 = vcombine.low %v17118_v28, %v2344_v23  ;;  %v12700_v11 = vcombine.high %v17142_v13, %v2352_v54  ;;  %v17162_v27 = vpack.c.bf16 %v1976_v53, %v1968_v52  ;;  %v17164_v21 = vpack.c.bf16 %v1993_v17, %v1985_v0  ;;  %v2360_v44 = vld [vmem:[#allocation8 + $0x2f0] sm:$0xff]  ;;  %v2361_v28 = vld [vmem:[#allocation8 + $0x2f8] sm:$0xff] }
 0x311   : > { %6938 = vmatpush1.bf16.msra.mxu0 %v12675_v47  ;;  %7710 = vmatpush1.bf16.msra.mxu1 %v12677_v62  ;;  %v1199_v47 = vmul.f32 %v16826_v25, %v20656_v22  ;;  %v760_v62 = vmul.f32 %v16798_v39, %v20661_v18  ;;  %v12702_v22 = vcombine.high %v2349_v45, %v2353_v9  ;;  %v1992_v46 = vmax.f32 %v1736_v5, 0.0 }
 0x312   : > { %6939 = vmatprep.subr.bf16.mxu0 %v12684_v49  ;;  %7711 = vmatprep.subr.bf16.mxu1 %v12686_v14  ;;  %v12693_v49 = vcombine.low %v2341_v60, %v2345_v1  ;;  %v743_v14 = vmul.f32 %v16823_v3, %v20657_v61  ;;  %20755 = vst [vmem:[#allocation44_spill] sm:$0xff] %v17162_v27  ;;  %20756 = vst [vmem:[#allocation51_spill] sm:$0xff] %v17164_v21 }
 0x313   : > { %6031 = vmatmul.mubr.bf16.gmra.mrb[16].mxu0 %v17127_v8  ;;  %6803 = vmatmul.mubr.bf16.gmra.mrb[16].mxu1 %v17127_v8  ;;  %v1745_v15 = vadd.f32 %v16856_v55, %v1448_v26  ;;  %v1753_v23 = vadd.f32 %v16856_v55, %v1456_v12  ;;  %v1447_v60 = vadd.f32 %v1191_v2, %v735_v30  ;;  %v2364_v26 = vld [vmem:[#allocation8 + $0x310] sm:$0xff]  ;;  %v2365_v2 = vld [vmem:[#allocation8 + $0x318] sm:$0xff] }
 0x314   : > { %6040 = vmatprep.mubr.bf16.mxu0 %v17129_v35  ;;  %6812 = vmatprep.mubr.bf16.mxu1 %v17129_v35  ;;  %v1455_v61 = vadd.f32 %v1199_v47, %v743_v14  ;;  %v1208_v1 = vmul.f32 %v16805_v42, %v20664_v4  ;;  %v12699_v52 = vcombine.low %v17142_v13, %v2352_v54  ;;  %v2368_v30 = vld [vmem:[#allocation8 + $0x330] sm:$0xff]  ;;  %v2369_v47 = vld [vmem:[#allocation8 + $0x338] sm:$0xff] }
 0x315   : > { %6940 = vmatpush1.bf16.msra.mxu0 %v12683_v16  ;;  %7712 = vmatpush1.bf16.msra.mxu1 %v12685_v59  ;;  %v2357_v16 = vld [vmem:[#allocation8 + $0x2d8] sm:$0xff]  ;;  %v1984_v59 = vmax.f32 %v17136_v24, 0.0  ;;  %v12701_v53 = vcombine.low %v2349_v45, %v2353_v9  ;;  %v752_v5 = vmul.f32 %v16798_v39, %v20665_v19  ;;  %v2001_v24 = vmax.f32 %v1745_v15, 0.0 }
 0x316   : > { %6941 = vmatprep.subr.bf16.mxu0 %v12692_v7  ;;  %7713 = vmatprep.subr.bf16.mxu1 %v12694_v51  ;;  %v1472_v7 = vadd.f32 %v1216_v36, %v760_v62  ;;  %v12708_v51 = vcombine.high %v2356_v31, %v2360_v44  ;;  %v12710_v17 = vcombine.high %v2357_v16, %v2361_v28  ;;  %v2009_v13 = vmax.f32 %v1753_v23, 0.0 }
 0x317   : > { %v17176_v12 = vpack.c.bf16 %v1992_v46, %v1984_v59  ;;  %v1744_v54 = vadd.f32 %v16862_v34, %v1447_v60  ;;  %v1752_v45 = vadd.f32 %v16862_v34, %v1455_v61  ;;  %v1464_v9 = vadd.f32 %v1208_v1, %v752_v5 }
 0x318   : > { %v1769_v62 = vadd.f32 %v16856_v55, %v1472_v7  ;;  %v12707_v0 = vcombine.low %v2356_v31, %v2360_v44  ;;  %v12709_v36 = vcombine.low %v2357_v16, %v2361_v28  ;;  %v12718_v14 = vcombine.high %v2365_v2, %v2369_v47  ;;  %v2376_v44 = vld [vmem:[#allocation8 + $0x370] sm:$0xff]  ;;  %v2373_v16 = vld [vmem:[#allocation8 + $0x358] sm:$0xff] }
 0x319   : > { %6942 = vmatpush1.bf16.msra.mxu0 %v12691_v63  ;;  %7714 = vmatpush1.bf16.msra.mxu1 %v12693_v49  ;;  %20757 = vst [vmem:[#allocation49_spill] sm:$0xff] %v17176_v12  ;;  %v759_v63 = vmul.f32 %v16823_v3, %v20661_v18  ;;  %v12716_v49 = vcombine.high %v2364_v26, %v2368_v30  ;;  %v2377_v18 = vld [vmem:[#allocation8 + $0x378] sm:$0xff]  ;;  %v2000_v23 = vmax.f32 %v1744_v54, 0.0  ;;  %v2008_v61 = vmax.f32 %v1752_v45, 0.0 }
 0x31a   : > { %6943 = vmatprep.subr.bf16.mxu0 %v12700_v11  ;;  %7715 = vmatprep.subr.bf16.mxu1 %v12702_v22  ;;  %v2372_v11 = vld [vmem:[#allocation8 + $0x350] sm:$0xff]  ;;  %v1207_v22 = vmul.f32 %v16826_v25, %v20664_v4  ;;  %v1215_v46 = vmul.f32 %v16826_v25, %v20662_v37  ;;  %v768_v15 = vmul.f32 %v16798_v39, %v20572_v50  ;;  %v2025_v7 = vmax.f32 %v1769_v62, 0.0  ;;  %v2381_v54 = vld [vmem:[#allocation8 + $0x398] sm:$0xff] }
 0x31b   : > { %6041 = vmatmul.mubr.bf16.gmra.mrb[20].mxu0 %v17162_v27  ;;  %6813 = vmatmul.mubr.bf16.gmra.mrb[20].mxu1 %v17162_v27  ;;  %v1224_v31 = vmul.f32 %v16805_v42, %v20573_v48  ;;  %v17193_v28 = vpack.c.bf16 %v2009_v13, %v2001_v24  ;;  %v1761_v60 = vadd.f32 %v16856_v55, %v1464_v9  ;;  %v2384_v13 = vld [vmem:[#allocation8 + $0x3b0] sm:$0xff] }
 0x31c   : > { %6050 = vmatprep.mubr.bf16.mxu0 %v17164_v21  ;;  %6822 = vmatprep.mubr.bf16.mxu1 %v17164_v21  ;;  %v1232_v4 = vmul.f32 %v16805_v42, %v20574_v58  ;;  %v751_v37 = vmul.f32 %v16823_v3, %v20665_v19  ;;  %v12715_v1 = vcombine.low %v2364_v26, %v2368_v30  ;;  %v2385_v26 = vld [vmem:[#allocation8 + $0x3b8] sm:$0xff] }
 0x31d   : > { %6944 = vmatpush1.bf16.msra.mxu0 %v12699_v52  ;;  %7716 = vmatpush1.bf16.msra.mxu1 %v12701_v53  ;;  %20758 = vst [vmem:[#allocation45_spill] sm:$0xff] %v17193_v28  ;;  %v12717_v59 = vcombine.low %v2365_v2, %v2369_v47  ;;  %v776_v52 = vmul.f32 %v16798_v39, %v20576_v40  ;;  %v2017_v30 = vmax.f32 %v1761_v60, 0.0 }
 0x31e   : > { %6945 = vmatprep.subr.bf16.mxu0 %v12708_v51  ;;  %7717 = vmatprep.subr.bf16.mxu1 %v12710_v17  ;;  %v12724_v53 = vcombine.high %v2372_v11, %v2376_v44  ;;  %v12726_v5 = vcombine.high %v2373_v16, %v2377_v18  ;;  %v2380_v51 = vld [vmem:[#allocation8 + $0x390] sm:$0xff]  ;;  %v1463_v17 = vadd.f32 %v1207_v22, %v751_v37 }
 0x31f   : > { %v1471_v24 = vadd.f32 %v1215_v46, %v759_v63  ;;  %v1480_v19 = vadd.f32 %v1224_v31, %v768_v15  ;;  %v1488_v2 = vadd.f32 %v1232_v4, %v776_v52  ;;  %v17206_v47 = vpack.c.bf16 %v2008_v61, %v2000_v23  ;;  %v2388_v63 = vld [vmem:[#allocation8 + $0x3d0] sm:$0xff]  ;;  %v2389_v31 = vld [vmem:[#allocation8 + $0x3d8] sm:$0xff] }
 0x320   : > { %v12723_v45 = vcombine.low %v2372_v11, %v2376_v44  ;;  %v12725_v9 = vcombine.low %v2373_v16, %v2377_v18  ;;  %v17208_v62 = vpack.c.bf16 %v2025_v7, %v2017_v30  ;;  %v767_v46 = vmul.f32 %v16823_v3, %v20572_v50  ;;  %v2392_v15 = vld [vmem:[#allocation8 + $0x3f0] sm:$0xff]  ;;  %v2393_v11 = vld [vmem:[#allocation8 + $0x3f8] sm:$0xff] }
 0x321   : > { %6946 = vmatpush1.bf16.msra.mxu0 %v12707_v0  ;;  %7718 = vmatpush1.bf16.msra.mxu1 %v12709_v36  ;;  %20759 = vst [vmem:[#allocation46_spill] sm:$0xff] %v17206_v47  ;;  %v12732_v0 = vcombine.high %v2380_v51, %v2384_v13  ;;  %v12734_v36 = vcombine.high %v2381_v54, %v2385_v26 }
 0x322   : > { %6947 = vmatprep.subr.bf16.mxu0 %v12716_v49  ;;  %7719 = vmatprep.subr.bf16.mxu1 %v12718_v14  ;;  %20760 = vst [vmem:[#allocation50_spill] sm:$0xff] %v17208_v62  ;;  %v1760_v49 = vadd.f32 %v16862_v34, %v1463_v17  ;;  %v1768_v14 = vadd.f32 %v16862_v34, %v1471_v24 }
 0x323   : > { %6051 = vmatmul.mubr.bf16.gmra.mrb[24].mxu0 %v17176_v12  ;;  %6823 = vmatmul.mubr.bf16.gmra.mrb[24].mxu1 %v17176_v12  ;;  %v1777_v22 = vadd.f32 %v16856_v55, %v1480_v19  ;;  %v1785_v44 = vadd.f32 %v16856_v55, %v1488_v2  ;;  %v775_v16 = vmul.f32 %v16823_v3, %v20576_v40 }
 0x324   : > { %6060 = vmatprep.mubr.bf16.mxu0 %v17193_v28  ;;  %6832 = vmatprep.mubr.bf16.mxu1 %v17193_v28  ;;  %v1223_v18 = vmul.f32 %v16826_v25, %v20573_v48  ;;  %v1231_v23 = vmul.f32 %v16826_v25, %v20574_v58  ;;  %v792_v60 = vmul.f32 %v16798_v39, %v20579_v41  ;;  %v2024_v48 = vmax.f32 %v1768_v14, 0.0  ;;  %v20761_v58 = vld [vmem:[#allocation85_spill] sm:$0xff]  ;;  %v20766_v14 = vld [vmem:[#allocation86_spill] sm:$0xff] }
 0x325   : > { %6948 = vmatpush1.bf16.msra.mxu0 %v12715_v1  ;;  %7720 = vmatpush1.bf16.msra.mxu1 %v12717_v59  ;;  %v12731_v50 = vcombine.low %v2380_v51, %v2384_v13  ;;  %v12733_v4 = vcombine.low %v2381_v54, %v2385_v26  ;;  %v1248_v61 = vmul.f32 %v16805_v42, %v20580_v33  ;;  %v2016_v59 = vmax.f32 %v1760_v49, 0.0  ;;  %v20763_v54 = vld [vmem:[#allocation27_spill] sm:$0xff]  ;;  %v20764_v26 = vld [vmem:[#allocation30_spill] sm:$0xff] }
 0x326   : > { %6949 = vmatprep.subr.bf16.mxu0 %v12724_v53  ;;  %7721 = vmatprep.subr.bf16.mxu1 %v12726_v5  ;;  %v12740_v37 = vcombine.high %v2388_v63, %v2392_v15  ;;  %v12742_v40 = vcombine.high %v2389_v31, %v2393_v11  ;;  %v1240_v1 = vmul.f32 %v16805_v42, %v20761_v58  ;;  %v2033_v53 = vmax.f32 %v1777_v22, 0.0  ;;  %v20762_v5 = vld [vmem:[#allocation81_spill] sm:$0xff] }
 0x327   : > { %v1479_v7 = vadd.f32 %v1223_v18, %v767_v46  ;;  %v1487_v52 = vadd.f32 %v1231_v23, %v775_v16  ;;  %v784_v51 = vmul.f32 %v16798_v39, %v20762_v5  ;;  %v12739_v17 = vcombine.low %v2388_v63, %v2392_v15  ;;  %v20767_v46 = vld [vmem:[#allocation80_spill] sm:$0xff] }
 0x328   : > { %v12741_v24 = vcombine.low %v2389_v31, %v2393_v11  ;;  %v2041_v19 = vmax.f32 %v1785_v44, 0.0  ;;  %v1504_v13 = vadd.f32 %v1248_v61, %v792_v60  ;;  %v12748_v30 = vcombine.high %v20764_v26, %v20763_v54  ;;  %v20768_v31 = vld [vmem:[#allocation91_spill] sm:$0xff] }
 0x329   : > { %6950 = vmatpush1.bf16.msra.mxu0 %v12723_v45  ;;  %7722 = vmatpush1.bf16.msra.mxu1 %v12725_v9  ;;  %v12750_v2 = vcombine.high %v16987_v6, %v16989_v43  ;;  %v17238_v45 = vpack.c.bf16 %v2024_v48, %v2016_v59  ;;  %v1496_v9 = vadd.f32 %v1240_v1, %v784_v51 }
 0x32a   : > { %6951 = vmatprep.subr.bf16.mxu0 %v12732_v0  ;;  %7723 = vmatprep.subr.bf16.mxu1 %v12734_v36  ;;  %v1776_v0 = vadd.f32 %v16862_v34, %v1479_v7  ;;  %v1784_v36 = vadd.f32 %v16862_v34, %v1487_v52  ;;  %v791_v63 = vmul.f32 %v16823_v3, %v20579_v41 }
 0x32b   : > { %6061 = vmatmul.mubr.bf16.gmra.mrb[28].mxu0 %v17206_v47  ;;  %6833 = vmatmul.mubr.bf16.gmra.mrb[28].mxu1 %v17206_v47  ;;  %20765 = vst [vmem:[#allocation55_spill] sm:$0xff] %v17238_v45  ;;  %v1247_v49 = vmul.f32 %v16826_v25, %v20580_v33  ;;  %v800_v22 = vmul.f32 %v16798_v39, %v20766_v14  ;;  %v20770_v33 = vld [vmem:[#allocation88_spill] sm:$0xff] }
 0x32c   : > { %6070 = vmatprep.mubr.bf16.mxu0 %v17208_v62  ;;  %6842 = vmatprep.mubr.bf16.mxu1 %v17208_v62  ;;  %v1256_v15 = vmul.f32 %v16805_v42, %v20767_v46  ;;  %v1264_v11 = vmul.f32 %v16805_v42, %v20768_v31  ;;  %v17252_v44 = vpack.c.bf16 %v2041_v19, %v2033_v53  ;;  %v2032_v23 = vmax.f32 %v1776_v0, 0.0 }
 0x32d   : > { %6952 = vmatpush1.bf16.msra.mxu0 %v12731_v50  ;;  %7724 = vmatpush1.bf16.msra.mxu1 %v12733_v4  ;;  %v1801_v16 = vadd.f32 %v16856_v55, %v1504_v13  ;;  %v1239_v41 = vmul.f32 %v16826_v25, %v20761_v58  ;;  %v808_v18 = vmul.f32 %v16798_v39, %v20770_v33  ;;  %v2040_v4 = vmax.f32 %v1784_v36, 0.0  ;;  %v20773_v13 = vld [vmem:[#allocation98_spill] sm:$0xff]  ;;  %v20774_v36 = vld [vmem:[#allocation93_spill] sm:$0xff] }
 0x32e   : > { %6953 = vmatprep.subr.bf16.mxu0 %v12740_v37  ;;  %7725 = vmatprep.subr.bf16.mxu1 %v12742_v40  ;;  %20769 = vst [vmem:[#allocation52_spill] sm:$0xff] %v17252_v44  ;;  %v1793_v60 = vadd.f32 %v16856_v55, %v1496_v9  ;;  %v783_v50 = vmul.f32 %v16823_v3, %v20762_v5 }
 0x32f   : > { %v1503_v61 = vadd.f32 %v1247_v49, %v791_v63  ;;  %v1512_v37 = vadd.f32 %v1256_v15, %v800_v22  ;;  %v1520_v40 = vadd.f32 %v1264_v11, %v808_v18  ;;  %v2057_v48 = vmax.f32 %v1801_v16, 0.0  ;;  %v20775_v49 = vld [vmem:[#allocation97_spill] sm:$0xff] }
 0x330   : > { %v1495_v1 = vadd.f32 %v1239_v41, %v783_v50  ;;  %v799_v58 = vmul.f32 %v16823_v3, %v20766_v14  ;;  %v1255_v59 = vmul.f32 %v16826_v25, %v20767_v46  ;;  %v2049_v7 = vmax.f32 %v1793_v60, 0.0 }
 0x331   : > { %6954 = vmatpush1.bf16.msra.mxu0 %v12739_v17  ;;  %7726 = vmatpush1.bf16.msra.mxu1 %v12741_v24  ;;  %v1263_v52 = vmul.f32 %v16826_v25, %v20768_v31  ;;  %v17272_v53 = vpack.c.bf16 %v2040_v4, %v2032_v23  ;;  %v1800_v5 = vadd.f32 %v16862_v34, %v1503_v61  ;;  %v20776_v31 = vld [vmem:[#allocation92_spill] sm:$0xff] }
 0x332   : > { %7116 = vmatprep.subr.bf16.mxu0 %v12748_v30  ;;  %7888 = vmatprep.subr.bf16.mxu1 %v12750_v2  ;;  %v1809_v51 = vadd.f32 %v16856_v55, %v1512_v37  ;;  %v1817_v17 = vadd.f32 %v16856_v55, %v1520_v40  ;;  %v17277_v24 = vpack.c.bf16 %v2057_v48, %v2049_v7  ;;  %v20779_v37 = vld [vmem:[#allocation99_spill] sm:$0xff]  ;;  %v20780_v48 = vld [vmem:[#allocation96_spill] sm:$0xff] }
 0x333   : > { %6071 = vmatmul.mubr.bf16.gmra.mrb[32].mxu0 %v17238_v45  ;;  %6843 = vmatmul.mubr.bf16.gmra.mrb[32].mxu1 %v17238_v45  ;;  %20771 = vst [vmem:[#allocation57_spill] sm:$0xff] %v17272_v53  ;;  %v807_v19 = vmul.f32 %v16823_v3, %v20770_v33  ;;  %v1280_v30 = vmul.f32 %v16805_v42, %v20773_v13  ;;  %v2056_v22 = vmax.f32 %v1800_v5, 0.0  ;;  %v17614_v45 = vld [vmem:[#allocation8 + $0xa38] sm:$0xff] }
 0x334   : > { %6080 = vmatprep.mubr.bf16.mxu0 %v17252_v44  ;;  %6852 = vmatprep.mubr.bf16.mxu1 %v17252_v44  ;;  %20772 = vst [vmem:[#allocation58_spill] sm:$0xff] %v17277_v24  ;;  %v1792_v2 = vadd.f32 %v16862_v34, %v1495_v1  ;;  %v1511_v9 = vadd.f32 %v1255_v59, %v799_v58  ;;  %v2065_v46 = vmax.f32 %v1809_v51, 0.0  ;;  %v2073_v15 = vmax.f32 %v1817_v17, 0.0  ;;  %v20781_v58 = vld [vmem:[#allocation104_spill] sm:$0xff] }
 0x335   : > { %v1519_v0 = vadd.f32 %v1263_v52, %v807_v19  ;;  %v824_v63 = vmul.f32 %v16798_v39, %v20774_v36  ;;  %v1272_v14 = vmul.f32 %v16805_v42, %v20775_v49  ;;  %v816_v11 = vmul.f32 %v16798_v39, %v20776_v31  ;;  %v20782_v19 = vld [vmem:[#allocation100_spill] sm:$0xff] }
 0x336   : > { %v2048_v41 = vmax.f32 %v1792_v2, 0.0  ;;  %v1808_v33 = vadd.f32 %v16862_v34, %v1511_v9  ;;  %v17298_v50 = vpack.c.bf16 %v2073_v15, %v2065_v46  ;;  %v1279_v4 = vmul.f32 %v16826_v25, %v20773_v13 }
 0x337   : > { %v1536_v16 = vadd.f32 %v1280_v30, %v824_v63  ;;  %v1816_v18 = vadd.f32 %v16862_v34, %v1519_v0  ;;  %v1528_v23 = vadd.f32 %v1272_v14, %v816_v11  ;;  %v832_v40 = vmul.f32 %v16798_v39, %v20779_v37 }
 0x338   : > { %v17296_v60 = vpack.c.bf16 %v2056_v22, %v2048_v41  ;;  %20778 = vst [vmem:[#allocation61_spill] sm:$0xff] %v17298_v50  ;;  %v1288_v1 = vmul.f32 %v16805_v42, %v20780_v48  ;;  %v1296_v59 = vmul.f32 %v16805_v42, %v20781_v58  ;;  %v823_v7 = vmul.f32 %v16823_v3, %v20774_v36 }
 0x339   : > { %v1833_v61 = vadd.f32 %v16856_v55, %v1536_v16  ;;  %v1271_v52 = vmul.f32 %v16826_v25, %v20775_v49  ;;  %v2064_v5 = vmax.f32 %v1808_v33, 0.0  ;;  %v2072_v51 = vmax.f32 %v1816_v18, 0.0  ;;  %v20785_v33 = vld [vmem:[#allocation114_spill] sm:$0xff] }
 0x33a   : > { %20777 = vst [vmem:[#allocation63_spill] sm:$0xff] %v17296_v60  ;;  %v1825_v17 = vadd.f32 %v16856_v55, %v1528_v23  ;;  %v840_v13 = vmul.f32 %v16798_v39, %v20782_v19  ;;  %v815_v30 = vmul.f32 %v16823_v3, %v20776_v31  ;;  %v1535_v2 = vadd.f32 %v1279_v4, %v823_v7  ;;  %v20788_v7 = vld [vmem:[#allocation108_spill] sm:$0xff] }
 0x33b   : > { %6081 = vmatmul.mubr.bf16.gmra.mrb[36].mxu0 %v17272_v53  ;;  %6853 = vmatmul.mubr.bf16.gmra.mrb[36].mxu1 %v17272_v53  ;;  %v2089_v9 = vmax.f32 %v1833_v61, 0.0  ;;  %v1544_v0 = vadd.f32 %v1288_v1, %v832_v40  ;;  %v17322_v49 = vpack.c.bf16 %v2072_v51, %v2064_v5  ;;  %v831_v46 = vmul.f32 %v16823_v3, %v20779_v37  ;;  %v20786_v61 = vld [vmem:[#allocation113_spill] sm:$0xff]  ;;  %v20787_v40 = vld [vmem:[#allocation107_spill] sm:$0xff] }
 0x33c   : > { %6090 = vmatprep.mubr.bf16.mxu0 %v17277_v24  ;;  %6862 = vmatprep.mubr.bf16.mxu1 %v17277_v24  ;;  %v1552_v36 = vadd.f32 %v1296_v59, %v840_v13  ;;  %v1527_v63 = vadd.f32 %v1271_v52, %v815_v30  ;;  %v2081_v14 = vmax.f32 %v1825_v17, 0.0  ;;  %v1832_v22 = vadd.f32 %v16862_v34, %v1535_v2  ;;  %v17602_v24 = vld [vmem:[#allocation8 + $0xa30] sm:$0xff] }
 0x33d   : > { %20783 = vst [vmem:[#allocation85_spill] sm:$0xff] %v17322_v49  ;;  %v1287_v15 = vmul.f32 %v16826_v25, %v20780_v48  ;;  %v1295_v11 = vmul.f32 %v16826_v25, %v20781_v58  ;;  %v1841_v16 = vadd.f32 %v16856_v55, %v1544_v0  ;;  %v1312_v18 = vmul.f32 %v16805_v42, %v20785_v33 }
 0x33e   : > { %v17331_v31 = vpack.c.bf16 %v2089_v9, %v2081_v14  ;;  %v1849_v41 = vadd.f32 %v16856_v55, %v1552_v36  ;;  %v1824_v23 = vadd.f32 %v16862_v34, %v1527_v63  ;;  %v839_v4 = vmul.f32 %v16823_v3, %v20782_v19  ;;  %20834 = vst [vmem:[#allocation104_spill] sm:$0xff] %v17602_v24 }
 0x33f   : > { %v1304_v37 = vmul.f32 %v16805_v42, %v20786_v61  ;;  %v856_v48 = vmul.f32 %v16798_v39, %v20787_v40  ;;  %v2088_v1 = vmax.f32 %v1832_v22, 0.0  ;;  %v1543_v58 = vadd.f32 %v1287_v15, %v831_v46  ;;  %v20791_v22 = vld [vmem:[#allocation119_spill] sm:$0xff]  ;;  %20836 = vst [vmem:[#allocation114_spill] sm:$0xff] %v17614_v45  ;;  %20838 = vst [vmem:[#allocation107_spill] sm:$0xff] %v17638_v29 }
 0x340   : > { %20784 = vst [vmem:[#allocation81_spill] sm:$0xff] %v17331_v31  ;;  %v1551_v59 = vadd.f32 %v1295_v11, %v839_v4  ;;  %v848_v52 = vmul.f32 %v16798_v39, %v20788_v7  ;;  %v2097_v5 = vmax.f32 %v1841_v16, 0.0  ;;  %v2105_v51 = vmax.f32 %v1849_v41, 0.0  ;;  %v20792_v41 = vld [vmem:[#allocation112_spill] sm:$0xff]  ;;  %v20794_v4 = vld [vmem:[#allocation115_spill] sm:$0xff]  ;;  %20839 = vst [vmem:[#allocation108_spill] sm:$0xff] %v17644_v38 }
 0x341   : > { %v1568_v17 = vadd.f32 %v1312_v18, %v856_v48  ;;  %v2080_v19 = vmax.f32 %v1824_v23, 0.0  ;;  %v1840_v2 = vadd.f32 %v16862_v34, %v1543_v58  ;;  %v1311_v0 = vmul.f32 %v16826_v25, %v20785_v33  ;;  %v20793_v18 = vld [vmem:[#allocation116_spill] sm:$0xff] }
 0x342   : > { %v1560_v13 = vadd.f32 %v1304_v37, %v848_v52  ;;  %v1848_v9 = vadd.f32 %v16862_v34, %v1551_v59  ;;  %v17356_v36 = vpack.c.bf16 %v2105_v51, %v2097_v5  ;;  %v1303_v14 = vmul.f32 %v16826_v25, %v20786_v61 }
 0x343   : > { %6091 = vmatmul.mubr.bf16.gmra.mrb[40].mxu0 %v17296_v60  ;;  %6863 = vmatmul.mubr.bf16.gmra.mrb[40].mxu1 %v17296_v60  ;;  %v17350_v30 = vpack.c.bf16 %v2088_v1, %v2080_v19  ;;  %v1865_v63 = vadd.f32 %v16856_v55, %v1568_v17  ;;  %v1328_v46 = vmul.f32 %v16805_v42, %v20791_v22  ;;  %v2096_v37 = vmax.f32 %v1840_v2, 0.0  ;;  %v20832_v60 = vld [vmem:[#allocation94_spill] sm:$0xff] }
 0x344   : > { %6100 = vmatprep.mubr.bf16.mxu0 %v17298_v50  ;;  %6872 = vmatprep.mubr.bf16.mxu1 %v17298_v50  ;;  %20790 = vst [vmem:[#allocation30_spill] sm:$0xff] %v17356_v36  ;;  %v1857_v15 = vadd.f32 %v16856_v55, %v1560_v13  ;;  %v847_v11 = vmul.f32 %v16823_v3, %v20788_v7  ;;  %v2104_v48 = vmax.f32 %v1848_v9, 0.0  ;;  %v17590_v50 = vld [vmem:[#allocation8 + $0x9f8] sm:$0xff] }
 0x345   : > { %20789 = vst [vmem:[#allocation27_spill] sm:$0xff] %v17350_v30  ;;  %v855_v16 = vmul.f32 %v16823_v3, %v20787_v40  ;;  %v864_v33 = vmul.f32 %v16798_v39, %v20792_v41  ;;  %v872_v23 = vmul.f32 %v16798_v39, %v20793_v18  ;;  %v1320_v61 = vmul.f32 %v16805_v42, %v20794_v4 }
 0x346   : > { %v2121_v58 = vmax.f32 %v1865_v63, 0.0  ;;  %v1559_v59 = vadd.f32 %v1303_v14, %v847_v11  ;;  %v2113_v40 = vmax.f32 %v1857_v15, 0.0  ;;  %v17378_v5 = vpack.c.bf16 %v2104_v48, %v2096_v37  ;;  %v2405_v37 = vld [vmem:[#allocation8 + $0x458] sm:$0xff]  ;;  %20831 = vst [vmem:[#allocation99_spill] sm:$0xff] %v17590_v50 }
 0x347   : > { %v1567_v1 = vadd.f32 %v1311_v0, %v855_v16  ;;  %v1584_v7 = vadd.f32 %v1328_v46, %v872_v23  ;;  %v1576_v52 = vadd.f32 %v1320_v61, %v864_v33  ;;  %v1327_v17 = vmul.f32 %v16826_v25, %v20791_v22  ;;  %v20800_v23 = vld [vmem:[#allocation29_spill] sm:$0xff] }
 0x348   : > { %20795 = vst [vmem:[#allocation86_spill] sm:$0xff] %v17378_v5  ;;  %v17383_v19 = vpack.c.bf16 %v2121_v58, %v2113_v40  ;;  %v1856_v39 = vadd.f32 %v16862_v34, %v1559_v59  ;;  %v863_v13 = vmul.f32 %v16823_v3, %v20792_v41  ;;  %v871_v2 = vmul.f32 %v16823_v3, %v20793_v18  ;;  %v2408_v61 = vld [vmem:[#allocation8 + $0x470] sm:$0xff]  ;;  %v2413_v40 = vld [vmem:[#allocation8 + $0x498] sm:$0xff] }
 0x349   : > { %v1864_v51 = vadd.f32 %v16862_v34, %v1567_v1  ;;  %v1881_v42 = vadd.f32 %v16856_v55, %v1584_v7  ;;  %v1319_v9 = vmul.f32 %v16826_v25, %v20794_v4  ;;  %v1873_v0 = vadd.f32 %v16856_v55, %v1576_v52  ;;  %v2404_v4 = vld [vmem:[#allocation8 + $0x450] sm:$0xff]  ;;  %v20801_v7 = vld [vmem:[#allocation31_spill] sm:$0xff]  ;;  %v2417_v52 = vld [vmem:[#allocation8 + $0x4b8] sm:$0xff] }
 0x34a   : > { %20796 = vst [vmem:[#allocation80_spill] sm:$0xff] %v17383_v19  ;;  %v1583_v14 = vadd.f32 %v1327_v17, %v871_v2  ;;  %v2112_v46 = vmax.f32 %v1856_v39, 0.0  ;;  %v12756_v48 = vcombine.high %v2404_v4, %v2408_v61  ;;  %v2412_v58 = vld [vmem:[#allocation8 + $0x490] sm:$0xff]  ;;  %v20803_v17 = vld [vmem:[#allocation34_spill] sm:$0xff]  ;;  %v12755_v39 = vcombine.low %v2404_v4, %v2408_v61 }
 0x34b   : > { %6101 = vmatmul.mubr.bf16.gmra.mrb[44].mxu0 %v17322_v49  ;;  %6873 = vmatmul.mubr.bf16.gmra.mrb[44].mxu1 %v17322_v49  ;;  %v2120_v63 = vmax.f32 %v1864_v51, 0.0  ;;  %v2137_v22 = vmax.f32 %v1881_v42, 0.0  ;;  %v1575_v15 = vadd.f32 %v1319_v9, %v863_v13  ;;  %v2129_v11 = vmax.f32 %v1873_v0, 0.0  ;;  %v2416_v59 = vld [vmem:[#allocation8 + $0x4b0] sm:$0xff]  ;;  %v17588_v49 = vld [vmem:[#allocation8 + $0x9d8] sm:$0xff] }
 0x34c   : > { %6110 = vmatprep.mubr.bf16.mxu0 %v17331_v31  ;;  %6882 = vmatprep.mubr.bf16.mxu1 %v17331_v31  ;;  %v1880_v41 = vadd.f32 %v16862_v34, %v1583_v14  ;;  %v20802_v51 = vcombine.low %v20764_v26, %v20763_v54  ;;  %v20804_v42 = vcombine.low %v16987_v6, %v16989_v43  ;;  %v2420_v0 = vld [vmem:[#allocation8 + $0x4d0] sm:$0xff]  ;;  %v2421_v14 = vld [vmem:[#allocation8 + $0x4d8] sm:$0xff]  ;;  %v20805_v6 = vld [vmem:[#allocation35_spill] sm:$0xff] }
 0x34d   : > { %v17398_v16 = vpack.c.bf16 %v2120_v63, %v2112_v46  ;;  %v17401_v3 = vpack.c.bf16 %v2137_v22, %v2129_v11  ;;  %v1872_v25 = vadd.f32 %v16862_v34, %v1575_v15  ;;  %v2409_v34 = vld [vmem:[#allocation8 + $0x478] sm:$0xff]  ;;  %v12764_v2 = vcombine.high %v2412_v58, %v2416_v59  ;;  %v2424_v63 = vld [vmem:[#allocation8 + $0x4f0] sm:$0xff]  ;;  %20830 = vst [vmem:[#allocation92_spill] sm:$0xff] %v17588_v49 }
 0x34e   : > { %v2136_v55 = vmax.f32 %v1880_v41, 0.0  ;;  %v12758_v1 = vcombine.high %v2405_v37, %v2409_v34  ;;  %v12757_v13 = vcombine.low %v2405_v37, %v2409_v34  ;;  %v12766_v9 = vcombine.high %v2413_v40, %v2417_v52  ;;  %v2425_v22 = vld [vmem:[#allocation8 + $0x4f8] sm:$0xff]  ;;  %v2428_v11 = vld [vmem:[#allocation8 + $0x510] sm:$0xff] }
 0x34f   : > { %20797 = vst [vmem:[#allocation91_spill] sm:$0xff] %v17398_v16  ;;  %20798 = vst [vmem:[#allocation88_spill] sm:$0xff] %v17401_v3  ;;  %v2128_v33 = vmax.f32 %v1872_v25, 0.0  ;;  %v12763_v54 = vcombine.low %v2412_v58, %v2416_v59  ;;  %v12765_v26 = vcombine.low %v2413_v40, %v2417_v52  ;;  %v12772_v46 = vcombine.high %v2420_v0, %v2424_v63  ;;  %v2432_v43 = vld [vmem:[#allocation8 + $0x530] sm:$0xff]  ;;  %v2429_v41 = vld [vmem:[#allocation8 + $0x518] sm:$0xff] }
 0x350   : > { %v12774_v15 = vcombine.high %v2421_v14, %v2425_v22  ;;  %v2433_v25 = vld [vmem:[#allocation8 + $0x538] sm:$0xff]  ;;  %v2436_v4 = vld [vmem:[#allocation8 + $0x550] sm:$0xff]  ;;  %v12780_v37 = vcombine.high %v2428_v11, %v2432_v43 }
 0x351   : > { %v17408_v18 = vpack.c.bf16 %v2136_v55, %v2128_v33  ;;  %v20806_v55 = vld [vmem:[#allocation41_spill] sm:$0xff]  ;;  %v12771_v33 = vcombine.low %v2420_v0, %v2424_v63  ;;  %v12782_v34 = vcombine.high %v2429_v41, %v2433_v25  ;;  %v20828_v31 = vld [vmem:[#allocation90_spill] sm:$0xff] }
 0x352   : > { %v2440_v61 = vld [vmem:[#allocation8 + $0x570] sm:$0xff]  ;;  %v17432_v58 = vld [vmem:[#allocation8 + $0x818] sm:$0xff] }
 0x353   : > { %6111 = vmatmul.mubr.bf16.gmra.mrb[48].mxu0 %v17350_v30  ;;  %6883 = vmatmul.mubr.bf16.gmra.mrb[48].mxu1 %v17350_v30  ;;  %20799 = vst [vmem:[#allocation98_spill] sm:$0xff] %v17408_v18  ;;  %v2437_v59 = vld [vmem:[#allocation8 + $0x558] sm:$0xff]  ;;  %v2448_v0 = vld [vmem:[#allocation8 + $0x5b0] sm:$0xff] }
 0x354   : > { %6120 = vmatprep.mubr.bf16.mxu0 %v17356_v36  ;;  %6892 = vmatprep.mubr.bf16.mxu1 %v17356_v36  ;;  %v17436_v52 = vld [vmem:[#allocation8 + $0x838] sm:$0xff]  ;;  %v17530_v40 = vld [vmem:[#allocation8 + $0x930] sm:$0xff] }
 0x355   : > { %v2445_v63 = vld [vmem:[#allocation8 + $0x598] sm:$0xff]  ;;  %v17576_v30 = vld [vmem:[#allocation8 + $0x9d0] sm:$0xff] }
 0x356   : > { %v17572_v36 = vld [vmem:[#allocation8 + $0x998] sm:$0xff]  ;;  %20827 = vst [vmem:[#allocation93_spill] sm:$0xff] %v17576_v30 }
 0x35b   : > { %6121 = vmatmul.mubr.bf16.gmra.mrb[52].mxu0 %v17378_v5  ;;  %6893 = vmatmul.mubr.bf16.gmra.mrb[52].mxu1 %v17378_v5  ;;  %v17612_v5 = vld [vmem:[#allocation8 + $0xa18] sm:$0xff] }
 0x35c   : > { %6130 = vmatprep.mubr.bf16.mxu0 %v17383_v19  ;;  %6902 = vmatprep.mubr.bf16.mxu1 %v17383_v19  ;;  %v17562_v19 = vld [vmem:[#allocation8 + $0x9b0] sm:$0xff]  ;;  %20835 = vst [vmem:[#allocation100_spill] sm:$0xff] %v17612_v5  ;;  %v20841_v5 = vld [vmem:[#allocation95_spill] sm:$0xff] }
 0x363   : > { %6131 = vmatmul.mubr.bf16.gmra.mrb[56].mxu0 %v17398_v16  ;;  %6903 = vmatmul.mubr.bf16.gmra.mrb[56].mxu1 %v17398_v16  ;;  %v17558_v16 = vld [vmem:[#allocation8 + $0x978] sm:$0xff] }
 0x364   : > { %6140 = vmatprep.mubr.bf16.mxu0 %v17401_v3  ;;  %6912 = vmatprep.mubr.bf16.mxu1 %v17401_v3 }
 0x36b   : > { %6141 = vmatmul.mubr.bf16.gmra.mrb[60].mxu0 %v17408_v18  ;;  %6913 = vmatmul.mubr.bf16.gmra.mrb[60].mxu1 %v17408_v18  ;;  %v17548_v18 = vld [vmem:[#allocation8 + $0x958] sm:$0xff] }
 0x36c   : > { %6955 = vmatprep.mubr.bf16.mxu0 %v20800_v23  ;;  %7727 = vmatprep.mubr.bf16.mxu1 %v20800_v23  ;;  %v12773_v23 = vcombine.low %v2421_v14, %v2425_v22  ;;  %v2449_v14 = vld [vmem:[#allocation8 + $0x5b8] sm:$0xff]  ;;  %v20808_v22 = vld [vmem:[#allocation47_spill] sm:$0xff] }
 0x373   : > { %6956 = vmatmul.mubr.bf16.vlgmr.msra.gmra.mrb[64].mxu0 %v20801_v7  ;;  %7728 = vmatmul.mubr.bf16.vlgmr.msra.gmra.mrb[64].mxu1 %v20801_v7  ;;  %v2441_v7 = vld [vmem:[#allocation8 + $0x578] sm:$0xff] }
 0x374   : > { %7117 = vmatpush1.bf16.msra.mxu0 %v20802_v51  ;;  %6965 = vmatprep.mubr.bf16.mxu0 %v20803_v17  ;;  %v17546_v51 = vld [vmem:[#allocation8 + $0x970] sm:$0xff] }
 0x375   : > { %7737 = vmatprep.mubr.bf16.mxu1 %v20803_v17  ;;  %7889 = vmatpush1.bf16.msra.mxu1 %v20804_v42  ;;  %v12779_v17 = vcombine.low %v2428_v11, %v2432_v43  ;;  %v12788_v42 = vcombine.high %v2436_v4, %v2440_v61  ;;  %v2452_v11 = vld [vmem:[#allocation8 + $0x5d0] sm:$0xff]  ;;  %v2453_v43 = vld [vmem:[#allocation8 + $0x5d8] sm:$0xff] }
 0x376   : > { %7118 = vmatprep.subr.bf16.mxu0 %v12756_v48  ;;  %7890 = vmatprep.subr.bf16.mxu1 %v12758_v1  ;;  %v17428_v48 = vld [vmem:[#allocation8 + $0x810] sm:$0xff] }
 0x377   : > { %v17430_v1 = vld [vmem:[#allocation8 + $0x830] sm:$0xff] }
 0x378   : > { %7119 = vmatpush1.bf16.msra.mxu0 %v12755_v39  ;;  %v12781_v39 = vcombine.low %v2429_v41, %v2433_v25  ;;  %v2457_v41 = vld [vmem:[#allocation8 + $0x5f8] sm:$0xff] }
 0x379   : > { %7891 = vmatpush1.bf16.msra.mxu1 %v12757_v13  ;;  %7120 = vmatprep.subr.bf16.mxu0 %v12764_v2  ;;  %v12790_v13 = vcombine.high %v2437_v59, %v2441_v7  ;;  %v2444_v2 = vld [vmem:[#allocation8 + $0x590] sm:$0xff] }
 0x37a   : > { %7892 = vmatprep.subr.bf16.mxu1 %v12766_v9  ;;  %v20807_v9 = vld [vmem:[#allocation42_spill] sm:$0xff]  ;;  %v12795_v25 = vcombine.low %v2444_v2, %v2448_v0 }
 0x37b   : > { %6966 = vmatmul.mubr.bf16.gmra.mrb[68].mxu0 %v20805_v6  ;;  %7738 = vmatmul.mubr.bf16.gmra.mrb[68].mxu1 %v20805_v6  ;;  %v2456_v6 = vld [vmem:[#allocation8 + $0x5f0] sm:$0xff] }
 0x37c   : > { %6975 = vmatprep.mubr.bf16.mxu0 %v20806_v55  ;;  %7747 = vmatprep.mubr.bf16.mxu1 %v20806_v55  ;;  %v12797_v55 = vcombine.low %v2445_v63, %v2449_v14 }
 0x37d   : > { %7121 = vmatpush1.bf16.msra.mxu0 %v12763_v54  ;;  %7893 = vmatpush1.bf16.msra.mxu1 %v12765_v26  ;;  %v12787_v54 = vcombine.low %v2436_v4, %v2440_v61  ;;  %v12789_v26 = vcombine.low %v2437_v59, %v2441_v7  ;;  %v2464_v4 = vld [vmem:[#allocation8 + $0x630] sm:$0xff]  ;;  %v2461_v61 = vld [vmem:[#allocation8 + $0x618] sm:$0xff] }
 0x37e   : > { %7122 = vmatprep.subr.bf16.mxu0 %v12772_v46  ;;  %7894 = vmatprep.subr.bf16.mxu1 %v12774_v15  ;;  %v12796_v46 = vcombine.high %v2444_v2, %v2448_v0  ;;  %v12798_v15 = vcombine.high %v2445_v63, %v2449_v14  ;;  %v2465_v59 = vld [vmem:[#allocation8 + $0x638] sm:$0xff]  ;;  %v2468_v2 = vld [vmem:[#allocation8 + $0x650] sm:$0xff] }
 0x37f   : > { %v20810_v7 = vld [vmem:[#allocation53_spill] sm:$0xff] }
 0x380   : > { %v2469_v0 = vld [vmem:[#allocation8 + $0x658] sm:$0xff] }
 0x381   : > { %7123 = vmatpush1.bf16.msra.mxu0 %v12771_v33  ;;  %7895 = vmatpush1.bf16.msra.mxu1 %v12773_v23  ;;  %v12804_v33 = vcombine.high %v2452_v11, %v2456_v6  ;;  %v12806_v23 = vcombine.high %v2453_v43, %v2457_v41  ;;  %v2473_v63 = vld [vmem:[#allocation8 + $0x678] sm:$0xff] }
 0x382   : > { %7124 = vmatprep.subr.bf16.mxu0 %v12780_v37  ;;  %7896 = vmatprep.subr.bf16.mxu1 %v12782_v34  ;;  %v2460_v37 = vld [vmem:[#allocation8 + $0x610] sm:$0xff] }
 0x383   : > { %6976 = vmatmul.mubr.bf16.gmra.mrb[72].mxu0 %v20807_v9  ;;  %7748 = vmatmul.mubr.bf16.gmra.mrb[72].mxu1 %v20807_v9  ;;  %v20809_v34 = vld [vmem:[#allocation48_spill] sm:$0xff]  ;;  %v12811_v14 = vcombine.low %v2460_v37, %v2464_v4 }
 0x384   : > { %6985 = vmatprep.mubr.bf16.mxu0 %v20808_v22  ;;  %7757 = vmatprep.mubr.bf16.mxu1 %v20808_v22  ;;  %v2472_v9 = vld [vmem:[#allocation8 + $0x670] sm:$0xff]  ;;  %v12813_v22 = vcombine.low %v2461_v61, %v2465_v59 }
 0x385   : > { %7125 = vmatpush1.bf16.msra.mxu0 %v12779_v17  ;;  %7897 = vmatpush1.bf16.msra.mxu1 %v12781_v39  ;;  %v12803_v17 = vcombine.low %v2452_v11, %v2456_v6  ;;  %v12805_v39 = vcombine.low %v2453_v43, %v2457_v41  ;;  %v2480_v11 = vld [vmem:[#allocation8 + $0x6b0] sm:$0xff]  ;;  %v2477_v6 = vld [vmem:[#allocation8 + $0x698] sm:$0xff]  ;;  %v20812_v41 = vld [vmem:[#allocation59_spill] sm:$0xff] }
 0x386   : > { %7126 = vmatprep.subr.bf16.mxu0 %v12788_v42  ;;  %7898 = vmatprep.subr.bf16.mxu1 %v12790_v13  ;;  %v12812_v42 = vcombine.high %v2460_v37, %v2464_v4  ;;  %v12814_v13 = vcombine.high %v2461_v61, %v2465_v59  ;;  %v2481_v43 = vld [vmem:[#allocation8 + $0x6b8] sm:$0xff]  ;;  %v2484_v37 = vld [vmem:[#allocation8 + $0x6d0] sm:$0xff] }
 0x387   : > { %v2485_v4 = vld [vmem:[#allocation8 + $0x6d8] sm:$0xff] }
 0x388   : > { %v2489_v61 = vld [vmem:[#allocation8 + $0x6f8] sm:$0xff] }
 0x389   : > { %7127 = vmatpush1.bf16.msra.mxu0 %v12787_v54  ;;  %7899 = vmatpush1.bf16.msra.mxu1 %v12789_v26  ;;  %v12820_v54 = vcombine.high %v2468_v2, %v2472_v9  ;;  %v12822_v26 = vcombine.high %v2469_v0, %v2473_v63 }
 0x38a   : > { %7128 = vmatprep.subr.bf16.mxu0 %v12796_v46  ;;  %7900 = vmatprep.subr.bf16.mxu1 %v12798_v15  ;;  %v2476_v46 = vld [vmem:[#allocation8 + $0x690] sm:$0xff]  ;;  %v20811_v15 = vld [vmem:[#allocation54_spill] sm:$0xff] }
 0x38b   : > { %6986 = vmatmul.mubr.bf16.gmra.mrb[76].mxu0 %v20809_v34  ;;  %7758 = vmatmul.mubr.bf16.gmra.mrb[76].mxu1 %v20809_v34  ;;  %v2488_v34 = vld [vmem:[#allocation8 + $0x6f0] sm:$0xff]  ;;  %v12827_v59 = vcombine.low %v2476_v46, %v2480_v11 }
 0x38c   : > { %6995 = vmatprep.mubr.bf16.mxu0 %v20810_v7  ;;  %7767 = vmatprep.mubr.bf16.mxu1 %v20810_v7  ;;  %v12829_v7 = vcombine.low %v2477_v6, %v2481_v43 }
 0x38d   : > { %7129 = vmatpush1.bf16.msra.mxu0 %v12795_v25  ;;  %7901 = vmatpush1.bf16.msra.mxu1 %v12797_v55  ;;  %v12819_v25 = vcombine.low %v2468_v2, %v2472_v9  ;;  %v12821_v55 = vcombine.low %v2469_v0, %v2473_v63  ;;  %v2496_v2 = vld [vmem:[#allocation8 + $0x730] sm:$0xff]  ;;  %v2493_v9 = vld [vmem:[#allocation8 + $0x718] sm:$0xff] }
 0x38e   : > { %7130 = vmatprep.subr.bf16.mxu0 %v12804_v33  ;;  %7902 = vmatprep.subr.bf16.mxu1 %v12806_v23  ;;  %v12828_v33 = vcombine.high %v2476_v46, %v2480_v11  ;;  %v12830_v23 = vcombine.high %v2477_v6, %v2481_v43  ;;  %v2497_v0 = vld [vmem:[#allocation8 + $0x738] sm:$0xff]  ;;  %v2500_v46 = vld [vmem:[#allocation8 + $0x750] sm:$0xff] }
 0x38f   : > { %v20814_v63 = vld [vmem:[#allocation65_spill] sm:$0xff] }
 0x390   : > { %v2501_v11 = vld [vmem:[#allocation8 + $0x758] sm:$0xff] }
 0x391   : > { %7131 = vmatpush1.bf16.msra.mxu0 %v12803_v17  ;;  %7903 = vmatpush1.bf16.msra.mxu1 %v12805_v39  ;;  %v12836_v17 = vcombine.high %v2484_v37, %v2488_v34  ;;  %v12838_v39 = vcombine.high %v2485_v4, %v2489_v61  ;;  %v2505_v6 = vld [vmem:[#allocation8 + $0x778] sm:$0xff] }
 0x392   : > { %7132 = vmatprep.subr.bf16.mxu0 %v12812_v42  ;;  %7904 = vmatprep.subr.bf16.mxu1 %v12814_v13  ;;  %v2492_v42 = vld [vmem:[#allocation8 + $0x710] sm:$0xff] }
 0x393   : > { %6996 = vmatmul.mubr.bf16.gmra.mrb[80].mxu0 %v20811_v15  ;;  %7768 = vmatmul.mubr.bf16.gmra.mrb[80].mxu1 %v20811_v15  ;;  %v20813_v13 = vld [vmem:[#allocation60_spill] sm:$0xff]  ;;  %v12843_v43 = vcombine.low %v2492_v42, %v2496_v2 }
 0x394   : > { %7005 = vmatprep.mubr.bf16.mxu0 %v20812_v41  ;;  %7777 = vmatprep.mubr.bf16.mxu1 %v20812_v41  ;;  %v2504_v15 = vld [vmem:[#allocation8 + $0x770] sm:$0xff]  ;;  %v12845_v41 = vcombine.low %v2493_v9, %v2497_v0 }
 0x395   : > { %7133 = vmatpush1.bf16.msra.mxu0 %v12811_v14  ;;  %7905 = vmatpush1.bf16.msra.mxu1 %v12813_v22  ;;  %v12835_v14 = vcombine.low %v2484_v37, %v2488_v34  ;;  %v12837_v22 = vcombine.low %v2485_v4, %v2489_v61  ;;  %v2512_v37 = vld [vmem:[#allocation8 + $0x7b0] sm:$0xff]  ;;  %v2509_v34 = vld [vmem:[#allocation8 + $0x798] sm:$0xff]  ;;  %v20816_v61 = vld [vmem:[#allocation71_spill] sm:$0xff] }
 0x396   : > { %7134 = vmatprep.subr.bf16.mxu0 %v12820_v54  ;;  %7906 = vmatprep.subr.bf16.mxu1 %v12822_v26  ;;  %v12844_v54 = vcombine.high %v2492_v42, %v2496_v2  ;;  %v12846_v26 = vcombine.high %v2493_v9, %v2497_v0  ;;  %v2513_v4 = vld [vmem:[#allocation8 + $0x7b8] sm:$0xff]  ;;  %v2516_v42 = vld [vmem:[#allocation8 + $0x7d0] sm:$0xff] }
 0x397   : > { %v2517_v2 = vld [vmem:[#allocation8 + $0x7d8] sm:$0xff] }
 0x398   : > { %v2521_v9 = vld [vmem:[#allocation8 + $0x7f8] sm:$0xff] }
 0x399   : > { %7135 = vmatpush1.bf16.msra.mxu0 %v12819_v25  ;;  %7907 = vmatpush1.bf16.msra.mxu1 %v12821_v55  ;;  %v12852_v25 = vcombine.high %v2500_v46, %v2504_v15  ;;  %v12854_v55 = vcombine.high %v2501_v11, %v2505_v6 }
 0x39a   : > { %7136 = vmatprep.subr.bf16.mxu0 %v12828_v33  ;;  %7908 = vmatprep.subr.bf16.mxu1 %v12830_v23  ;;  %v2508_v33 = vld [vmem:[#allocation8 + $0x790] sm:$0xff]  ;;  %v20815_v23 = vld [vmem:[#allocation66_spill] sm:$0xff] }
 0x39b   : > { %7006 = vmatmul.mubr.bf16.gmra.mrb[84].mxu0 %v20813_v13  ;;  %7778 = vmatmul.mubr.bf16.gmra.mrb[84].mxu1 %v20813_v13  ;;  %v2520_v13 = vld [vmem:[#allocation8 + $0x7f0] sm:$0xff]  ;;  %v12859_v0 = vcombine.low %v2508_v33, %v2512_v37 }
 0x39c   : > { %7015 = vmatprep.mubr.bf16.mxu0 %v20814_v63  ;;  %7787 = vmatprep.mubr.bf16.mxu1 %v20814_v63  ;;  %v12861_v63 = vcombine.low %v2509_v34, %v2513_v4 }
 0x39d   : > { %7137 = vmatpush1.bf16.msra.mxu0 %v12827_v59  ;;  %7909 = vmatpush1.bf16.msra.mxu1 %v12829_v7  ;;  %v12851_v59 = vcombine.low %v2500_v46, %v2504_v15  ;;  %v12853_v7 = vcombine.low %v2501_v11, %v2505_v6  ;;  %v12867_v46 = vcombine.low %v2516_v42, %v2520_v13 }
 0x39e   : > { %7138 = vmatprep.subr.bf16.mxu0 %v12836_v17  ;;  %7910 = vmatprep.subr.bf16.mxu1 %v12838_v39  ;;  %v12860_v17 = vcombine.high %v2508_v33, %v2512_v37  ;;  %v12862_v39 = vcombine.high %v2509_v34, %v2513_v4  ;;  %v12869_v15 = vcombine.low %v2517_v2, %v2521_v9  ;;  %v17472_v33 = vld [vmem:[#allocation8 + $0x850] sm:$0xff]  ;;  %v17478_v34 = vld [vmem:[#allocation8 + $0x858] sm:$0xff] }
 0x39f   : > { %v12876_v11 = vcombine.high %v17428_v48, %v17430_v1  ;;  %v12878_v6 = vcombine.high %v17432_v58, %v17436_v52  ;;  %v17476_v37 = vld [vmem:[#allocation8 + $0x870] sm:$0xff]  ;;  %v17480_v4 = vld [vmem:[#allocation8 + $0x878] sm:$0xff] }
 0x3a1   : > { %7139 = vmatpush1.bf16.msra.mxu0 %v12835_v14  ;;  %7911 = vmatpush1.bf16.msra.mxu1 %v12837_v22  ;;  %v12868_v14 = vcombine.high %v2516_v42, %v2520_v13  ;;  %v12870_v22 = vcombine.high %v2517_v2, %v2521_v9  ;;  %v17496_v2 = vld [vmem:[#allocation8 + $0x8b8] sm:$0xff]  ;;  %v17498_v9 = vld [vmem:[#allocation8 + $0x8d0] sm:$0xff] }
 0x3a2   : > { %7140 = vmatprep.subr.bf16.mxu0 %v12844_v54  ;;  %7912 = vmatprep.subr.bf16.mxu1 %v12846_v26  ;;  %v20817_v54 = vld [vmem:[#allocation72_spill] sm:$0xff]  ;;  %v20818_v26 = vld [vmem:[#allocation77_spill] sm:$0xff] }
 0x3a3   : > { %7016 = vmatmul.mubr.bf16.gmra.mrb[88].mxu0 %v20815_v23  ;;  %7788 = vmatmul.mubr.bf16.gmra.mrb[88].mxu1 %v20815_v23  ;;  %v20821_v23 = vld [vmem:[#allocation83_spill] sm:$0xff] }
 0x3a4   : > { %7025 = vmatprep.mubr.bf16.mxu0 %v20816_v61  ;;  %7797 = vmatprep.mubr.bf16.mxu1 %v20816_v61  ;;  %v20822_v61 = vld [vmem:[#allocation89_spill] sm:$0xff] }
 0x3a5   : > { %7141 = vmatpush1.bf16.msra.mxu0 %v12843_v43  ;;  %7913 = vmatpush1.bf16.msra.mxu1 %v12845_v41  ;;  %v20819_v43 = vld [vmem:[#allocation78_spill] sm:$0xff] }
 0x3a6   : > { %7142 = vmatprep.subr.bf16.mxu0 %v12852_v25  ;;  %7914 = vmatprep.subr.bf16.mxu1 %v12854_v55  ;;  %v20820_v41 = vld [vmem:[#allocation82_spill] sm:$0xff]  ;;  %v8723_v55 = vld [vmem:[#allocation11] sm:$0xff] }
 0x3a7   : > { %v379_v25 = vld [vmem:[#allocation9] sm:$0xff] }
 0x3a9   : > { %7143 = vmatpush1.bf16.msra.mxu0 %v12851_v59  ;;  %7915 = vmatpush1.bf16.msra.mxu1 %v12853_v7  ;;  %v17484_v59 = vld [vmem:[#allocation8 + $0x890] sm:$0xff] }
 0x3aa   : > { %7144 = vmatprep.subr.bf16.mxu0 %v12860_v17  ;;  %7916 = vmatprep.subr.bf16.mxu1 %v12862_v39  ;;  %v17486_v7 = vld [vmem:[#allocation8 + $0x8b0] sm:$0xff]  ;;  %v17488_v17 = vld [vmem:[#allocation8 + $0x898] sm:$0xff] }
 0x3ab   : > { %7026 = vmatmul.mubr.bf16.gmra.mrb[92].mxu0 %v20817_v54  ;;  %7798 = vmatmul.mubr.bf16.gmra.mrb[92].mxu1 %v20817_v54  ;;  %v20823_v39 = vld [vmem:[#allocation18_spill] sm:$0xff]  ;;  %v20825_v54 = vld [vmem:[#allocation20_spill] sm:$0xff] }
 0x3ac   : > { %7035 = vmatprep.mubr.bf16.mxu0 %v20818_v26  ;;  %7807 = vmatprep.mubr.bf16.mxu1 %v20818_v26  ;;  %v17491_v42 = vrot.slane %v379_v25, %v20823_v39  ;;  %v17494_v13 = vrot.slane %v8723_v55, %v20823_v39  ;;  %v17509_v26 = vrot.slane %v379_v25, %v20825_v54  ;;  %v17600_v39 = vld [vmem:[#allocation8 + $0xa10] sm:$0xff] }
 0x3ad   : > { %7145 = vmatpush1.bf16.msra.mxu0 %v12859_v0  ;;  %7917 = vmatpush1.bf16.msra.mxu1 %v12861_v63  ;;  %v17500_v0 = vld [vmem:[#allocation8 + $0x8f0] sm:$0xff]  ;;  %v20824_v63 = vld [vmem:[#allocation19_spill] sm:$0xff]  ;;  %20833 = vst [vmem:[#allocation96_spill] sm:$0xff] %v17600_v39 }
 0x3ae   : > { %7146 = vmatprep.subr.bf16.mxu0 %v12868_v14  ;;  %7918 = vmatprep.subr.bf16.mxu1 %v12870_v22  ;;  %v17503_v14 = vrot.slane %v379_v25, %v20824_v63  ;;  %v17506_v22 = vrot.slane %v8723_v55, %v20824_v63  ;;  %v17532_v63 = vld [vmem:[#allocation8 + $0x918] sm:$0xff] }
 0x3b1   : > { %7147 = vmatpush1.bf16.msra.mxu0 %v12867_v46  ;;  %7919 = vmatpush1.bf16.msra.mxu1 %v12869_v15  ;;  %v17512_v46 = vrot.slane %v8723_v55, %v20825_v54  ;;  %v17514_v15 = vld [vmem:[#allocation8 + $0x8d8] sm:$0xff] }
 0x3b2   : > { %7309 = vmatprep.subr.bf16.mxu0 %v12876_v11  ;;  %8081 = vmatprep.subr.bf16.mxu1 %v12878_v6  ;;  %v17516_v11 = vld [vmem:[#allocation8 + $0x8f8] sm:$0xff]  ;;  %v17518_v6 = vld [vmem:[#allocation8 + $0x910] sm:$0xff] }
 0x3b3   : > { %7036 = vmatmul.mubr.bf16.gmra.mrb[96].mxu0 %v20819_v43  ;;  %7808 = vmatmul.mubr.bf16.gmra.mrb[96].mxu1 %v20819_v43  ;;  %v20826_v43 = vld [vmem:[#allocation21_spill] sm:$0xff] }
 0x3b4   : > { %7045 = vmatprep.mubr.bf16.mxu0 %v20820_v41  ;;  %7817 = vmatprep.mubr.bf16.mxu1 %v20820_v41  ;;  %v17521_v41 = vrot.slane %v379_v25, %v20826_v43  ;;  %v17534_v54 = vld [vmem:[#allocation8 + $0x938] sm:$0xff]  ;;  %v17586_v25 = vld [vmem:[#allocation8 + $0x9f0] sm:$0xff] }
 0x3b5   : > { %20829 = vst [vmem:[#allocation97_spill] sm:$0xff] %v17586_v25 }
 0x3bb   : > { %7046 = vmatmul.mubr.bf16.gmra.mrb[100].mxu0 %v20821_v23  ;;  %7818 = vmatmul.mubr.bf16.gmra.mrb[100].mxu1 %v20821_v23  ;;  %v17524_v23 = vrot.slane %v8723_v55, %v20826_v43  ;;  %v17544_v43 = vld [vmem:[#allocation8 + $0x950] sm:$0xff]  ;;  %v17574_v55 = vld [vmem:[#allocation8 + $0x9b8] sm:$0xff] }
 0x3bc   : > { %7055 = vmatprep.mubr.bf16.mxu0 %v20822_v61  ;;  %7827 = vmatprep.mubr.bf16.mxu1 %v20822_v61  ;;  %v17560_v61 = vld [vmem:[#allocation8 + $0x990] sm:$0xff] }
 0x3c3   : > { %7056 = vmatmul.mubr.bf16.gmra.mrb[104].mxu0 %v20828_v31  ;;  %7828 = vmatmul.mubr.bf16.gmra.mrb[104].mxu1 %v20828_v31 }
 0x3c4   : > { %7065 = vmatprep.mubr.bf16.mxu0 %v20832_v60  ;;  %7837 = vmatprep.mubr.bf16.mxu1 %v20832_v60 }
 0x3c6   : > { %v5992_v3 = vpop.f32.mrb[0].mxu0  ;;  %v6764_v62 = vpop.f32.mrb[0].mxu1 }
 0x3c7   : > { %v13165_v31 = vadd.f32 %v5992_v3, %v17491_v42  ;;  %v13229_v28 = vadd.f32 %v6764_v62, %v17503_v14  ;;  %v5994_v12 = vpop.f32.mrb[1].mxu0  ;;  %v6766_v21 = vpop.f32.mrb[1].mxu1  ;;  %v17636_v3 = vld [vmem:[#allocation8 + $0xa50] sm:$0xff]  ;;  %v17646_v62 = vld [vmem:[#allocation8 + $0xa78] sm:$0xff] }
 0x3c8   : > { %v13166_v53 = vadd.f32 %v5994_v12, %v17509_v26  ;;  %v13230_v35 = vadd.f32 %v6766_v21, %v17521_v41  ;;  %v5996_v44 = vpop.f32.mrb[2].mxu0  ;;  %v6768_v8 = vpop.f32.mrb[2].mxu1  ;;  %20837 = vst [vmem:[#allocation113_spill] sm:$0xff] %v17636_v3  ;;  %20840 = vst [vmem:[#allocation119_spill] sm:$0xff] %v17646_v62 }
 0x3c9   : > { %v8467_v27 = vmax.f32 %v13165_v31, 0.0  ;;  %v8469_v32 = vmax.f32 %v13229_v28, 0.0  ;;  %v13167_v47 = vadd.f32 %v5996_v44, %v17491_v42  ;;  %v13231_v12 = vadd.f32 %v6768_v8, %v17503_v14  ;;  %v5998_v56 = vpop.f32.mrb[3].mxu0  ;;  %v6770_v21 = vpop.f32.mrb[3].mxu1 }
 0x3ca   : > { %v8468_v10 = vmax.f32 %v13166_v53, 0.0  ;;  %v8470_v57 = vmax.f32 %v13230_v35, 0.0  ;;  %v13168_v20 = vadd.f32 %v5998_v56, %v17509_v26  ;;  %v13232_v60 = vadd.f32 %v6770_v21, %v17521_v41  ;;  %v20842_v53 = vld [vmem:[#allocation102_spill] sm:$0xff] }
 0x3cb   : > { %v8765_v45 = vmul.f32 %v17494_v13, %v8467_v27  ;;  %v8475_v31 = vmax.f32 %v13167_v47, 0.0  ;;  %v8477_v28 = vmax.f32 %v13231_v12, 0.0  ;;  %7066 = vmatmul.mubr.bf16.gmra.mrb[108].mxu0 %v20841_v5  ;;  %7838 = vmatmul.mubr.bf16.gmra.mrb[108].mxu1 %v20841_v5  ;;  %v8767_v47 = vmul.f32 %v17506_v22, %v8469_v32  ;;  %v17667_v27 = vld [vmem:[#allocation8 + $0xa90] sm:$0xff] }
 0x3cc   : > { %v8766_v35 = vmul.f32 %v17512_v46, %v8468_v10  ;;  %v8476_v56 = vmax.f32 %v13168_v20, 0.0  ;;  %v8478_v44 = vmax.f32 %v13232_v60, 0.0  ;;  %7075 = vmatprep.mubr.bf16.mxu0 %v20842_v53  ;;  %7847 = vmatprep.mubr.bf16.mxu1 %v20842_v53  ;;  %v8768_v20 = vmul.f32 %v17524_v23, %v8470_v57  ;;  %20843 = vst [vmem:[#allocation112_spill] sm:$0xff] %v17667_v27  ;;  %v17669_v32 = vld [vmem:[#allocation8 + $0xab0] sm:$0xff]  ;;  %v17729_v27 = vld [vmem:[#allocation8 + $0xaf8] sm:$0xff] }
 0x3cd   : > { %v8773_v12 = vmul.f32 %v17494_v13, %v8475_v31  ;;  %v8775_v60 = vmul.f32 %v17506_v22, %v8477_v28  ;;  %20844 = vst [vmem:[#allocation116_spill] sm:$0xff] %v17669_v32  ;;  %20855 = vst [vmem:[#allocation47_spill] sm:$0xff] %v17729_v27 }
 0x3ce   : > { %v9021_v10 = vadd.f32 %v8766_v35, %v8765_v45  ;;  %v8774_v53 = vmul.f32 %v17512_v46, %v8476_v56  ;;  %v6002_v8 = vpop.f32.mrb[4].mxu0  ;;  %v6774_v24 = vpop.f32.mrb[4].mxu1  ;;  %v8776_v31 = vmul.f32 %v17524_v23, %v8478_v44 }
 0x3cf   : > { %v13169_v5 = vadd.f32 %v6002_v8, %v17491_v42  ;;  %v13233_v29 = vadd.f32 %v6774_v24, %v17503_v14  ;;  %v6004_v21 = vpop.f32.mrb[5].mxu0  ;;  %v6776_v45 = vpop.f32.mrb[5].mxu1 }
 0x3d0   : > { %v9022_v28 = vadd.f32 %v9021_v10, %v8767_v47  ;;  %v9030_v35 = vadd.f32 %v8774_v53, %v8773_v12  ;;  %v13170_v56 = vadd.f32 %v6004_v21, %v17509_v26  ;;  %v13234_v62 = vadd.f32 %v6776_v45, %v17521_v41  ;;  %v6006_v38 = vpop.f32.mrb[6].mxu0  ;;  %v6778_v3 = vpop.f32.mrb[6].mxu1  ;;  %v20846_v53 = vld [vmem:[#allocation103_spill] sm:$0xff]  ;;  %v17697_v45 = vld [vmem:[#allocation8 + $0xad0] sm:$0xff] }
 0x3d1   : > { %v8483_v39 = vmax.f32 %v13169_v5, 0.0  ;;  %v8485_v50 = vmax.f32 %v13233_v29, 0.0  ;;  %v13171_v44 = vadd.f32 %v6006_v38, %v17491_v42  ;;  %v13235_v8 = vadd.f32 %v6778_v3, %v17503_v14  ;;  %v6008_v24 = vpop.f32.mrb[7].mxu0  ;;  %v6780_v49 = vpop.f32.mrb[7].mxu1  ;;  %v17687_v29 = vld [vmem:[#allocation8 + $0xa98] sm:$0xff] }
 0x3d2   : > { %v17680_v25 = vadd.f32 %v9022_v28, %v8768_v20  ;;  %v9031_v30 = vadd.f32 %v9030_v35, %v8775_v60  ;;  %v8484_v57 = vmax.f32 %v13170_v56, 0.0  ;;  %v8486_v47 = vmax.f32 %v13234_v62, 0.0  ;;  %20847 = vst [vmem:[#allocation29_spill] sm:$0xff] %v17687_v29  ;;  %v17689_v3 = vld [vmem:[#allocation8 + $0xab8] sm:$0xff]  ;;  %v17699_v28 = vld [vmem:[#allocation8 + $0xaf0] sm:$0xff] }
 0x3d3   : > { %v8781_v12 = vmul.f32 %v17494_v13, %v8483_v39  ;;  %v8491_v21 = vmax.f32 %v13171_v44, 0.0  ;;  %v8493_v10 = vmax.f32 %v13235_v8, 0.0  ;;  %7076 = vmatmul.mubr.bf16.gmra.mrb[112].mxu0 %v20846_v53  ;;  %7848 = vmatmul.mubr.bf16.gmra.mrb[112].mxu1 %v20846_v53  ;;  %20848 = vst [vmem:[#allocation31_spill] sm:$0xff] %v17689_v3  ;;  %v8783_v20 = vmul.f32 %v17506_v22, %v8485_v50  ;;  %v20850_v60 = vld [vmem:[#allocation110_spill] sm:$0xff] }
 0x3d4   : > { %20845 = vst [vmem:[#allocation115_spill] sm:$0xff] %v17680_v25  ;;  %v17691_v5 = vadd.f32 %v9031_v30, %v8776_v31  ;;  %v8782_v62 = vmul.f32 %v17512_v46, %v8484_v57  ;;  %v13172_v39 = vadd.f32 %v6008_v24, %v17509_v26  ;;  %7085 = vmatprep.mubr.bf16.mxu0 %v20850_v60  ;;  %20851 = vst [vmem:[#allocation35_spill] sm:$0xff] %v17699_v28 }
 0x3d5   : > { %v8784_v35 = vmul.f32 %v17524_v23, %v8486_v47  ;;  %v8789_v56 = vmul.f32 %v17494_v13, %v8491_v21  ;;  %v8791_v44 = vmul.f32 %v17506_v22, %v8493_v10  ;;  %v13236_v30 = vadd.f32 %v6780_v49, %v17521_v41  ;;  %7857 = vmatprep.mubr.bf16.mxu1 %v20850_v60 }
 0x3d6   : > { %20849 = vst [vmem:[#allocation34_spill] sm:$0xff] %v17691_v5  ;;  %v9039_v50 = vadd.f32 %v8782_v62, %v8781_v12  ;;  %v8492_v31 = vmax.f32 %v13172_v39, 0.0  ;;  %v6012_v57 = vpop.f32.mrb[8].mxu0  ;;  %v6784_v8 = vpop.f32.mrb[8].mxu1 }
 0x3d7   : > { %v8494_v38 = vmax.f32 %v13236_v30, 0.0  ;;  %v13173_v47 = vadd.f32 %v6012_v57, %v17491_v42  ;;  %v13237_v21 = vadd.f32 %v6784_v8, %v17503_v14  ;;  %v6014_v10 = vpop.f32.mrb[9].mxu0  ;;  %v6786_v5 = vpop.f32.mrb[9].mxu1 }
 0x3d8   : > { %v9040_v12 = vadd.f32 %v9039_v50, %v8783_v20  ;;  %v8790_v62 = vmul.f32 %v17512_v46, %v8492_v31  ;;  %v13174_v39 = vadd.f32 %v6014_v10, %v17509_v26  ;;  %v13238_v60 = vadd.f32 %v6786_v5, %v17521_v41  ;;  %v6016_v24 = vpop.f32.mrb[10].mxu0  ;;  %v6788_v25 = vpop.f32.mrb[10].mxu1 }
 0x3d9   : > { %v8499_v53 = vmax.f32 %v13173_v47, 0.0  ;;  %v8501_v30 = vmax.f32 %v13237_v21, 0.0  ;;  %v13175_v57 = vadd.f32 %v6016_v24, %v17491_v42  ;;  %v6018_v3 = vpop.f32.mrb[11].mxu0  ;;  %v6790_v8 = vpop.f32.mrb[11].mxu1  ;;  %v8792_v10 = vmul.f32 %v17524_v23, %v8494_v38  ;;  %v20853_v21 = vld [vmem:[#allocation111_spill] sm:$0xff]  ;;  %v17727_v24 = vld [vmem:[#allocation8 + $0xad8] sm:$0xff] }
 0x3da   : > { %v17720_v32 = vadd.f32 %v9040_v12, %v8784_v35  ;;  %v9048_v20 = vadd.f32 %v8790_v62, %v8789_v56  ;;  %v8500_v50 = vmax.f32 %v13174_v39, 0.0  ;;  %v8502_v31 = vmax.f32 %v13238_v60, 0.0  ;;  %20854 = vst [vmem:[#allocation42_spill] sm:$0xff] %v17727_v24  ;;  %v20856_v62 = vld [vmem:[#allocation117_spill] sm:$0xff]  ;;  %v20859_v24 = vld [vmem:[#allocation118_spill] sm:$0xff] }
 0x3db   : > { %v8797_v5 = vmul.f32 %v17494_v13, %v8499_v53  ;;  %v8507_v49 = vmax.f32 %v13175_v57, 0.0  ;;  %v13239_v47 = vadd.f32 %v6788_v25, %v17503_v14  ;;  %7086 = vmatmul.mubr.bf16.gmra.mrb[116].mxu0 %v20853_v21  ;;  %7858 = vmatmul.mubr.bf16.gmra.mrb[116].mxu1 %v20853_v21  ;;  %v8799_v56 = vmul.f32 %v17506_v22, %v8501_v30 }
 0x3dc   : > { %20852 = vst [vmem:[#allocation41_spill] sm:$0xff] %v17720_v32  ;;  %v9049_v35 = vadd.f32 %v9048_v20, %v8791_v44  ;;  %v8798_v12 = vmul.f32 %v17512_v46, %v8500_v50  ;;  %v13176_v38 = vadd.f32 %v6018_v3, %v17509_v26  ;;  %7095 = vmatprep.mubr.bf16.mxu0 %v20856_v62 }
 0x3dd   : > { %v8800_v53 = vmul.f32 %v17524_v23, %v8502_v31  ;;  %v8805_v25 = vmul.f32 %v17494_v13, %v8507_v49  ;;  %v8509_v39 = vmax.f32 %v13239_v47, 0.0  ;;  %v13240_v60 = vadd.f32 %v6790_v8, %v17521_v41  ;;  %7867 = vmatprep.mubr.bf16.mxu1 %v20856_v62 }
 0x3de   : > { %v17739_v57 = vadd.f32 %v9049_v35, %v8792_v10  ;;  %v9057_v44 = vadd.f32 %v8798_v12, %v8797_v5  ;;  %v8508_v20 = vmax.f32 %v13176_v38, 0.0  ;;  %v6022_v30 = vpop.f32.mrb[12].mxu0  ;;  %v6794_v21 = vpop.f32.mrb[12].mxu1 }
 0x3df   : > { %v8510_v50 = vmax.f32 %v13240_v60, 0.0  ;;  %v13177_v29 = vadd.f32 %v6022_v30, %v17491_v42  ;;  %v13241_v31 = vadd.f32 %v6794_v21, %v17503_v14  ;;  %v6024_v49 = vpop.f32.mrb[13].mxu0  ;;  %v6796_v47 = vpop.f32.mrb[13].mxu1  ;;  %v8807_v60 = vmul.f32 %v17506_v22, %v8509_v39  ;;  %v17761_v39 = vld [vmem:[#allocation8 + $0xb30] sm:$0xff] }
 0x3e0   : > { %20857 = vst [vmem:[#allocation48_spill] sm:$0xff] %v17739_v57  ;;  %v9058_v62 = vadd.f32 %v9057_v44, %v8799_v56  ;;  %v8806_v10 = vmul.f32 %v17512_v46, %v8508_v20  ;;  %v13178_v5 = vadd.f32 %v6024_v49, %v17509_v26  ;;  %v13242_v35 = vadd.f32 %v6796_v47, %v17521_v41  ;;  %v6026_v12 = vpop.f32.mrb[14].mxu0  ;;  %v6798_v38 = vpop.f32.mrb[14].mxu1 }
 0x3e1   : > { %v8515_v3 = vmax.f32 %v13177_v29, 0.0  ;;  %v8517_v30 = vmax.f32 %v13241_v31, 0.0  ;;  %v13179_v21 = vadd.f32 %v6026_v12, %v17491_v42  ;;  %v6028_v57 = vpop.f32.mrb[15].mxu0  ;;  %v6800_v32 = vpop.f32.mrb[15].mxu1  ;;  %v8808_v20 = vmul.f32 %v17524_v23, %v8510_v50  ;;  %v17759_v29 = vld [vmem:[#allocation8 + $0xb10] sm:$0xff]  ;;  %20861 = vst [vmem:[#allocation59_spill] sm:$0xff] %v17761_v39 }
 0x3e2   : > { %v17752_v28 = vadd.f32 %v9058_v62, %v8800_v53  ;;  %v9066_v8 = vadd.f32 %v8806_v10, %v8805_v25  ;;  %v8516_v56 = vmax.f32 %v13178_v5, 0.0  ;;  %v8518_v44 = vmax.f32 %v13242_v35, 0.0  ;;  %20860 = vst [vmem:[#allocation54_spill] sm:$0xff] %v17759_v29  ;;  %v20862_v62 = vld [vmem:[#allocation121_spill] sm:$0xff]  ;;  %v20865_v29 = vld [vmem:[#allocation122_spill] sm:$0xff] }
 0x3e3   : > { %v8813_v49 = vmul.f32 %v17494_v13, %v8515_v3  ;;  %v8523_v47 = vmax.f32 %v13179_v21, 0.0  ;;  %v13243_v27 = vadd.f32 %v6798_v38, %v17503_v14  ;;  %7096 = vmatmul.mubr.bf16.gmra.mrb[120].mxu0 %v20859_v24  ;;  %7868 = vmatmul.mubr.bf16.gmra.mrb[120].mxu1 %v20859_v24  ;;  %v8815_v25 = vmul.f32 %v17506_v22, %v8517_v30 }
 0x3e4   : > { %20858 = vst [vmem:[#allocation53_spill] sm:$0xff] %v17752_v28  ;;  %v9067_v53 = vadd.f32 %v9066_v8, %v8807_v60  ;;  %v8814_v31 = vmul.f32 %v17512_v46, %v8516_v56  ;;  %v13180_v50 = vadd.f32 %v6028_v57, %v17509_v26  ;;  %7105 = vmatprep.mubr.bf16.mxu0 %v20862_v62 }
 0x3e5   : > { %v8816_v3 = vmul.f32 %v17524_v23, %v8518_v44  ;;  %v8821_v10 = vmul.f32 %v17494_v13, %v8523_v47  ;;  %v8525_v5 = vmax.f32 %v13243_v27, 0.0  ;;  %v13244_v24 = vadd.f32 %v6800_v32, %v17521_v41  ;;  %7877 = vmatprep.mubr.bf16.mxu1 %v20862_v62 }
 0x3e6   : > { %v17771_v35 = vadd.f32 %v9067_v53, %v8808_v20  ;;  %v9075_v8 = vadd.f32 %v8814_v31, %v8813_v49  ;;  %v8524_v12 = vmax.f32 %v13180_v50, 0.0  ;;  %v6032_v38 = vpop.f32.mrb[16].mxu0  ;;  %v6804_v60 = vpop.f32.mrb[16].mxu1 }
 0x3e7   : > { %v8526_v30 = vmax.f32 %v13244_v24, 0.0  ;;  %v13181_v21 = vadd.f32 %v6032_v38, %v17491_v42  ;;  %v13245_v56 = vadd.f32 %v6804_v60, %v17503_v14  ;;  %v6034_v44 = vpop.f32.mrb[17].mxu0  ;;  %v6806_v27 = vpop.f32.mrb[17].mxu1  ;;  %v8823_v62 = vmul.f32 %v17506_v22, %v8525_v5  ;;  %v17791_v5 = vld [vmem:[#allocation8 + $0xb18] sm:$0xff] }
 0x3e8   : > { %20863 = vst [vmem:[#allocation60_spill] sm:$0xff] %v17771_v35  ;;  %v9076_v47 = vadd.f32 %v9075_v8, %v8815_v25  ;;  %v8822_v20 = vmul.f32 %v17512_v46, %v8524_v12  ;;  %v13182_v49 = vadd.f32 %v6034_v44, %v17509_v26  ;;  %v13246_v53 = vadd.f32 %v6806_v27, %v17521_v41  ;;  %v6036_v31 = vpop.f32.mrb[18].mxu0  ;;  %v6808_v50 = vpop.f32.mrb[18].mxu1 }
 0x3e9   : > { %v8531_v24 = vmax.f32 %v13181_v21, 0.0  ;;  %v8533_v38 = vmax.f32 %v13245_v56, 0.0  ;;  %v13183_v60 = vadd.f32 %v6036_v31, %v17491_v42  ;;  %v6038_v57 = vpop.f32.mrb[19].mxu0  ;;  %v6810_v35 = vpop.f32.mrb[19].mxu1  ;;  %v8824_v12 = vmul.f32 %v17524_v23, %v8526_v30  ;;  %20866 = vst [vmem:[#allocation66_spill] sm:$0xff] %v17791_v5  ;;  %v17793_v21 = vld [vmem:[#allocation8 + $0xb38] sm:$0xff] }
 0x3ea   : > { %v17784_v28 = vadd.f32 %v9076_v47, %v8816_v3  ;;  %v9084_v32 = vadd.f32 %v8822_v20, %v8821_v10  ;;  %v8532_v25 = vmax.f32 %v13182_v49, 0.0  ;;  %v8534_v8 = vmax.f32 %v13246_v53, 0.0  ;;  %20867 = vst [vmem:[#allocation71_spill] sm:$0xff] %v17793_v21  ;;  %v20868_v47 = vld [vmem:[#allocation120_spill] sm:$0xff]  ;;  %v20870_v5 = vld [vmem:[#allocation123_spill] sm:$0xff] }
 0x3eb   : > { %v8829_v44 = vmul.f32 %v17494_v13, %v8531_v24  ;;  %v8539_v27 = vmax.f32 %v13183_v60, 0.0  ;;  %v13247_v39 = vadd.f32 %v6808_v50, %v17503_v14  ;;  %7106 = vmatmul.mubr.bf16.gmra.mrb[124].mxu0 %v20865_v29  ;;  %7878 = vmatmul.mubr.bf16.gmra.mrb[124].mxu1 %v20865_v29  ;;  %v8831_v10 = vmul.f32 %v17506_v22, %v8533_v38 }
 0x3ec   : > { %20864 = vst [vmem:[#allocation65_spill] sm:$0xff] %v17784_v28  ;;  %v9085_v3 = vadd.f32 %v9084_v32, %v8823_v62  ;;  %v8830_v56 = vmul.f32 %v17512_v46, %v8532_v25  ;;  %v13184_v30 = vadd.f32 %v6038_v57, %v17509_v26  ;;  %7148 = vmatprep.mubr.bf16.mxu0 %v20868_v47 }
 0x3ed   : > { %v8832_v20 = vmul.f32 %v17524_v23, %v8534_v8  ;;  %v8837_v49 = vmul.f32 %v17494_v13, %v8539_v27  ;;  %v8541_v53 = vmax.f32 %v13247_v39, 0.0  ;;  %v13248_v29 = vadd.f32 %v6810_v35, %v17521_v41  ;;  %7920 = vmatprep.mubr.bf16.mxu1 %v20868_v47 }
 0x3ee   : > { %v17803_v31 = vadd.f32 %v9085_v3, %v8824_v12  ;;  %v9093_v32 = vadd.f32 %v8830_v56, %v8829_v44  ;;  %v8540_v50 = vmax.f32 %v13184_v30, 0.0  ;;  %v6042_v62 = vpop.f32.mrb[20].mxu0  ;;  %v6814_v24 = vpop.f32.mrb[20].mxu1 }
 0x3ef   : > { %v8542_v38 = vmax.f32 %v13248_v29, 0.0  ;;  %v13185_v60 = vadd.f32 %v6042_v62, %v17491_v42  ;;  %v13249_v25 = vadd.f32 %v6814_v24, %v17503_v14  ;;  %v6044_v8 = vpop.f32.mrb[21].mxu0  ;;  %v6816_v39 = vpop.f32.mrb[21].mxu1  ;;  %v8839_v47 = vmul.f32 %v17506_v22, %v8541_v53  ;;  %v17823_v53 = vld [vmem:[#allocation8 + $0xb50] sm:$0xff] }
 0x3f0   : > { %20869 = vst [vmem:[#allocation72_spill] sm:$0xff] %v17803_v31  ;;  %v9094_v27 = vadd.f32 %v9093_v32, %v8831_v10  ;;  %v8838_v12 = vmul.f32 %v17512_v46, %v8540_v50  ;;  %v13186_v44 = vadd.f32 %v6044_v8, %v17509_v26  ;;  %v13250_v3 = vadd.f32 %v6816_v39, %v17521_v41  ;;  %v6046_v56 = vpop.f32.mrb[22].mxu0  ;;  %v6818_v30 = vpop.f32.mrb[22].mxu1 }
 0x3f1   : > { %v8547_v29 = vmax.f32 %v13185_v60, 0.0  ;;  %v8549_v62 = vmax.f32 %v13249_v25, 0.0  ;;  %v13187_v24 = vadd.f32 %v6046_v56, %v17491_v42  ;;  %v6048_v57 = vpop.f32.mrb[23].mxu0  ;;  %v6820_v31 = vpop.f32.mrb[23].mxu1  ;;  %v8840_v50 = vmul.f32 %v17524_v23, %v8542_v38  ;;  %v17825_v60 = vld [vmem:[#allocation8 + $0xb70] sm:$0xff] }
 0x3f2   : > { %v17816_v28 = vadd.f32 %v9094_v27, %v8832_v20  ;;  %v9102_v35 = vadd.f32 %v8838_v12, %v8837_v49  ;;  %v8548_v10 = vmax.f32 %v13186_v44, 0.0  ;;  %v8550_v32 = vmax.f32 %v13250_v3, 0.0  ;;  %v20872_v56 = vld [vmem:[#allocation124_spill] sm:$0xff] }
 0x3f3   : > { %v8845_v8 = vmul.f32 %v17494_v13, %v8547_v29  ;;  %v8555_v39 = vmax.f32 %v13187_v24, 0.0  ;;  %v13251_v21 = vadd.f32 %v6818_v30, %v17503_v14  ;;  %7149 = vmatmul.mubr.bf16.vlgmr.msra.gmra.mrb[64].mxu0 %v20870_v5  ;;  %7921 = vmatmul.mubr.bf16.vlgmr.msra.gmra.mrb[64].mxu1 %v20870_v5  ;;  %v8847_v49 = vmul.f32 %v17506_v22, %v8549_v62 }
 0x3f4   : > { %v9103_v20 = vadd.f32 %v9102_v35, %v8839_v47  ;;  %v8846_v25 = vmul.f32 %v17512_v46, %v8548_v10  ;;  %v13188_v38 = vadd.f32 %v6048_v57, %v17509_v26  ;;  %v20871_v27 = vcombine.low %v17428_v48, %v17430_v1  ;;  %7158 = vmatprep.mubr.bf16.mxu0 %v20872_v56 }
 0x3f5   : > { %v8848_v12 = vmul.f32 %v17524_v23, %v8550_v32  ;;  %v8853_v44 = vmul.f32 %v17494_v13, %v8555_v39  ;;  %v8557_v5 = vmax.f32 %v13251_v21, 0.0  ;;  %v13252_v3 = vadd.f32 %v6820_v31, %v17521_v41  ;;  %7930 = vmatprep.mubr.bf16.mxu1 %v20872_v56 }
 0x3f6   : > { %7310 = vmatpush1.bf16.msra.mxu0 %v20871_v27  ;;  %v17838_v35 = vadd.f32 %v9103_v20, %v8840_v50  ;;  %v9111_v30 = vadd.f32 %v8846_v25, %v8845_v8  ;;  %v8556_v47 = vmax.f32 %v13188_v38, 0.0  ;;  %v6052_v57 = vpop.f32.mrb[24].mxu0  ;;  %v6824_v29 = vpop.f32.mrb[24].mxu1  ;;  %v20873_v48 = vcombine.low %v17432_v58, %v17436_v52 }
 0x3f7   : > { %v20874_v1 = vcombine.high %v17472_v33, %v17476_v37  ;;  %v8558_v31 = vmax.f32 %v13252_v3, 0.0  ;;  %v13189_v62 = vadd.f32 %v6052_v57, %v17491_v42  ;;  %v13253_v24 = vadd.f32 %v6824_v29, %v17503_v14  ;;  %v6054_v10 = vpop.f32.mrb[25].mxu0  ;;  %v6826_v32 = vpop.f32.mrb[25].mxu1 }
 0x3f8   : > { %8082 = vmatpush1.bf16.msra.mxu1 %v20873_v48  ;;  %v20875_v50 = vcombine.high %v17478_v34, %v17480_v4  ;;  %v12980_v58 = vcombine.high %v17823_v53, %v17825_v60  ;;  %v9112_v52 = vadd.f32 %v9111_v30, %v8847_v49  ;;  %v8854_v8 = vmul.f32 %v17512_v46, %v8556_v47  ;;  %v6056_v25 = vpop.f32.mrb[26].mxu0  ;;  %v6828_v38 = vpop.f32.mrb[26].mxu1 }
 0x3f9   : > { %7311 = vmatprep.subr.bf16.mxu0 %v20874_v1  ;;  %v13190_v39 = vadd.f32 %v6054_v10, %v17509_v26  ;;  %v13254_v20 = vadd.f32 %v6826_v32, %v17521_v41  ;;  %v20876_v27 = vcombine.low %v17472_v33, %v17476_v37  ;;  %v8855_v3 = vmul.f32 %v17506_v22, %v8557_v5  ;;  %v6058_v48 = vpop.f32.mrb[27].mxu0  ;;  %v6830_v49 = vpop.f32.mrb[27].mxu1 }
 0x3fa   : > { %8083 = vmatprep.subr.bf16.mxu1 %v20875_v50  ;;  %v8563_v56 = vmax.f32 %v13189_v62, 0.0  ;;  %v8565_v57 = vmax.f32 %v13253_v24, 0.0  ;;  %v13191_v29 = vadd.f32 %v6056_v25, %v17491_v42  ;;  %v20877_v30 = vcombine.high %v17484_v59, %v17486_v7  ;;  %v20879_v50 = vld [vmem:[#allocation125_spill] sm:$0xff] }
 0x3fb   : > { %7312 = vmatpush1.bf16.msra.mxu0 %v20876_v27  ;;  %v17866_v47 = vadd.f32 %v9112_v52, %v8848_v12  ;;  %v9120_v1 = vadd.f32 %v8854_v8, %v8853_v44  ;;  %v8564_v10 = vmax.f32 %v13190_v39, 0.0  ;;  %v8566_v32 = vmax.f32 %v13254_v20, 0.0  ;;  %7931 = vmatmul.mubr.bf16.gmra.mrb[68].mxu1 %v20879_v50  ;;  %v17876_v12 = vld [vmem:[#allocation8 + $0xb58] sm:$0xff] }
 0x3fc   : > { %7313 = vmatprep.subr.bf16.mxu0 %v20877_v30  ;;  %v20878_v33 = vcombine.low %v17478_v34, %v17480_v4  ;;  %v8856_v37 = vmul.f32 %v17524_v23, %v8558_v31  ;;  %v8861_v5 = vmul.f32 %v17494_v13, %v8563_v56  ;;  %v8571_v62 = vmax.f32 %v13191_v29, 0.0  ;;  %7159 = vmatmul.mubr.bf16.gmra.mrb[68].mxu0 %v20879_v50  ;;  %v17878_v44 = vld [vmem:[#allocation8 + $0xb78] sm:$0xff] }
 0x3fd   : > { %v13255_v24 = vadd.f32 %v6828_v38, %v17503_v14  ;;  %v9121_v52 = vadd.f32 %v9120_v1, %v8855_v3  ;;  %v8863_v8 = vmul.f32 %v17506_v22, %v8565_v57  ;;  %v8862_v34 = vmul.f32 %v17512_v46, %v8564_v10  ;;  %v20880_v31 = vld [vmem:[#allocation126_spill] sm:$0xff] }
 0x3fe   : > { %8084 = vmatpush1.bf16.msra.mxu1 %v20878_v33  ;;  %v13192_v4 = vadd.f32 %v6058_v48, %v17509_v26  ;;  %7168 = vmatprep.mubr.bf16.mxu0 %v20880_v31  ;;  %v8864_v39 = vmul.f32 %v17524_v23, %v8566_v32  ;;  %v8869_v20 = vmul.f32 %v17494_v13, %v8571_v62  ;;  %v6062_v29 = vpop.f32.mrb[28].mxu0  ;;  %v6834_v48 = vpop.f32.mrb[28].mxu1 }
 0x3ff   : > { %v8573_v25 = vmax.f32 %v13255_v24, 0.0  ;;  %v13256_v38 = vadd.f32 %v6830_v49, %v17521_v41  ;;  %7940 = vmatprep.mubr.bf16.mxu1 %v20880_v31  ;;  %v20881_v27 = vcombine.low %v17484_v59, %v17486_v7  ;;  %v17891_v3 = vadd.f32 %v9121_v52, %v8856_v37  ;;  %v6064_v32 = vpop.f32.mrb[29].mxu0  ;;  %v6836_v33 = vpop.f32.mrb[29].mxu1 }
 0x400   : > { %v9129_v56 = vadd.f32 %v8862_v34, %v8861_v5  ;;  %v8572_v57 = vmax.f32 %v13192_v4, 0.0  ;;  %v20882_v30 = vcombine.high %v17488_v17, %v17496_v2  ;;  %v20883_v1 = vcombine.high %v17498_v9, %v17500_v0  ;;  %v6066_v34 = vpop.f32.mrb[30].mxu0  ;;  %v6838_v4 = vpop.f32.mrb[30].mxu1 }
 0x401   : > { %7314 = vmatpush1.bf16.msra.mxu0 %v20881_v27  ;;  %v8574_v10 = vmax.f32 %v13256_v38, 0.0  ;;  %v13193_v59 = vadd.f32 %v6062_v29, %v17491_v42  ;;  %v13257_v7 = vadd.f32 %v6834_v48, %v17503_v14  ;;  %v20884_v37 = vcombine.low %v17488_v17, %v17496_v2  ;;  %v6068_v29 = vpop.f32.mrb[31].mxu0 }
 0x402   : > { %8085 = vmatprep.subr.bf16.mxu1 %v20882_v30  ;;  %7315 = vmatprep.subr.bf16.mxu0 %v20883_v1  ;;  %v12982_v5 = vcombine.high %v17876_v12, %v17878_v44  ;;  %v9130_v62 = vadd.f32 %v9129_v56, %v8863_v8  ;;  %v8870_v24 = vmul.f32 %v17512_v46, %v8572_v57  ;;  %v6840_v8 = vpop.f32.mrb[31].mxu1 }
 0x403   : > { %8086 = vmatpush1.bf16.msra.mxu1 %v20884_v37  ;;  %v13194_v50 = vadd.f32 %v6064_v32, %v17509_v26  ;;  %v13258_v52 = vadd.f32 %v6836_v33, %v17521_v41  ;;  %v20885_v31 = vcombine.high %v17514_v15, %v17516_v11  ;;  %v8871_v38 = vmul.f32 %v17506_v22, %v8573_v25  ;;  %v20888_v37 = vld [vmem:[#allocation127_spill] sm:$0xff] }
 0x404   : > { %v8579_v17 = vmax.f32 %v13193_v59, 0.0  ;;  %v8581_v2 = vmax.f32 %v13257_v7, 0.0  ;;  %v13195_v27 = vadd.f32 %v6066_v34, %v17491_v42  ;;  %v20886_v56 = vcombine.low %v17498_v9, %v17500_v0  ;;  %7169 = vmatmul.mubr.bf16.gmra.mrb[72].mxu0 %v20888_v37  ;;  %7941 = vmatmul.mubr.bf16.gmra.mrb[72].mxu1 %v20888_v37  ;;  %v17929_v9 = vld [vmem:[#allocation8 + $0xb90] sm:$0xff] }
 0x405   : > { %8087 = vmatprep.subr.bf16.mxu1 %v20885_v31  ;;  %v17919_v57 = vadd.f32 %v9130_v62, %v8864_v39  ;;  %v9138_v48 = vadd.f32 %v8870_v24, %v8869_v20  ;;  %v8580_v30 = vmax.f32 %v13194_v50, 0.0  ;;  %v8582_v1 = vmax.f32 %v13258_v52, 0.0  ;;  %v17931_v0 = vld [vmem:[#allocation8 + $0xbb0] sm:$0xff] }
 0x406   : > { %7316 = vmatpush1.bf16.msra.mxu0 %v20886_v56  ;;  %v20887_v32 = vcombine.high %v17518_v6, %v17530_v40  ;;  %v8872_v25 = vmul.f32 %v17524_v23, %v8574_v10  ;;  %v8877_v59 = vmul.f32 %v17494_v13, %v8579_v17  ;;  %v8587_v7 = vmax.f32 %v13195_v27, 0.0  ;;  %v20889_v24 = vld [vmem:[#allocation128_spill] sm:$0xff]  ;;  %v6072_v27 = vpop.f32.mrb[32].mxu0 }
 0x407   : > { %v13259_v33 = vadd.f32 %v6838_v4, %v17503_v14  ;;  %v9139_v39 = vadd.f32 %v9138_v48, %v8871_v38  ;;  %v8879_v20 = vmul.f32 %v17506_v22, %v8581_v2  ;;  %v8878_v62 = vmul.f32 %v17512_v46, %v8580_v30  ;;  %7178 = vmatprep.mubr.bf16.mxu0 %v20889_v24 }
 0x408   : > { %7317 = vmatprep.subr.bf16.mxu0 %v20887_v32  ;;  %v13196_v10 = vadd.f32 %v6068_v29, %v17509_v26  ;;  %v8880_v50 = vmul.f32 %v17524_v23, %v8582_v1  ;;  %v8885_v52 = vmul.f32 %v17494_v13, %v8587_v7  ;;  %v13260_v4 = vadd.f32 %v6840_v8, %v17521_v41  ;;  %v6844_v29 = vpop.f32.mrb[32].mxu1  ;;  %v6074_v1 = vpop.f32.mrb[33].mxu0 }
 0x409   : > { %v8589_v34 = vmax.f32 %v13259_v33, 0.0  ;;  %7950 = vmatprep.mubr.bf16.mxu1 %v20889_v24  ;;  %v20890_v31 = vcombine.low %v17514_v15, %v17516_v11  ;;  %v17944_v38 = vadd.f32 %v9139_v39, %v8872_v25  ;;  %v9147_v17 = vadd.f32 %v8878_v62, %v8877_v59  ;;  %v6846_v32 = vpop.f32.mrb[33].mxu1  ;;  %v6076_v37 = vpop.f32.mrb[34].mxu0 }
 0x40a   : > { %v8588_v2 = vmax.f32 %v13196_v10, 0.0  ;;  %v20891_v56 = vcombine.low %v17518_v6, %v17530_v40  ;;  %v20892_v48 = vcombine.high %v17532_v63, %v17534_v54  ;;  %v8590_v30 = vmax.f32 %v13260_v4, 0.0  ;;  %v6848_v39 = vpop.f32.mrb[34].mxu1 }
 0x40b   : > { %8088 = vmatpush1.bf16.msra.mxu1 %v20890_v31  ;;  %v13197_v15 = vadd.f32 %v6072_v27, %v17491_v42  ;;  %v13261_v11 = vadd.f32 %v6844_v29, %v17503_v14  ;;  %v20893_v25 = vcombine.high %v17544_v43, %v17546_v51  ;;  %v9148_v6 = vadd.f32 %v9147_v17, %v8879_v20  ;;  %v6078_v31 = vpop.f32.mrb[35].mxu0  ;;  %v6850_v27 = vpop.f32.mrb[35].mxu1 }
 0x40c   : > { %7318 = vmatpush1.bf16.msra.mxu0 %v20891_v56  ;;  %8089 = vmatprep.subr.bf16.mxu1 %v20892_v48  ;;  %v8886_v59 = vmul.f32 %v17512_v46, %v8588_v2  ;;  %v13198_v7 = vadd.f32 %v6074_v1, %v17509_v26  ;;  %v13262_v33 = vadd.f32 %v6846_v32, %v17521_v41 }
 0x40d   : > { %7319 = vmatprep.subr.bf16.mxu0 %v20893_v25  ;;  %v8887_v62 = vmul.f32 %v17506_v22, %v8589_v34  ;;  %v8595_v10 = vmax.f32 %v13197_v15, 0.0  ;;  %v8597_v24 = vmax.f32 %v13261_v11, 0.0  ;;  %v13199_v4 = vadd.f32 %v6076_v37, %v17491_v42  ;;  %v20898_v25 = vld [vmem:[#allocation130_spill] sm:$0xff] }
 0x40e   : > { %v20894_v29 = vcombine.low %v17532_v63, %v17534_v54  ;;  %v17969_v20 = vadd.f32 %v9148_v6, %v8880_v50  ;;  %v9156_v17 = vadd.f32 %v8886_v59, %v8885_v52  ;;  %v8596_v2 = vmax.f32 %v13198_v7, 0.0  ;;  %v20897_v54 = vld [vmem:[#allocation129_spill] sm:$0xff] }
 0x40f   : > { %v8598_v56 = vmax.f32 %v13262_v33, 0.0  ;;  %v20895_v48 = vcombine.low %v17544_v43, %v17546_v51  ;;  %v20896_v34 = vcombine.high %v17548_v18, %v17558_v16  ;;  %v8888_v15 = vmul.f32 %v17524_v23, %v8590_v30  ;;  %7179 = vmatmul.mubr.bf16.gmra.mrb[76].mxu0 %v20897_v54  ;;  %7951 = vmatmul.mubr.bf16.gmra.mrb[76].mxu1 %v20897_v54  ;;  %v17982_v50 = vld [vmem:[#allocation8 + $0xb98] sm:$0xff] }
 0x410   : > { %8090 = vmatpush1.bf16.msra.mxu1 %v20894_v29  ;;  %v8893_v11 = vmul.f32 %v17494_v13, %v8595_v10  ;;  %v8603_v1 = vmax.f32 %v13199_v4, 0.0  ;;  %v13263_v63 = vadd.f32 %v6848_v39, %v17503_v14  ;;  %v17984_v52 = vld [vmem:[#allocation8 + $0xbb8] sm:$0xff]  ;;  %v9157_v51 = vadd.f32 %v9156_v17, %v8887_v62  ;;  %7188 = vmatprep.mubr.bf16.mxu0 %v20898_v25  ;;  %v6854_v4 = vpop.f32.mrb[36].mxu1 }
 0x411   : > { %7320 = vmatpush1.bf16.msra.mxu0 %v20895_v48  ;;  %8091 = vmatprep.subr.bf16.mxu1 %v20896_v34  ;;  %v8895_v43 = vmul.f32 %v17506_v22, %v8597_v24  ;;  %v8894_v32 = vmul.f32 %v17512_v46, %v8596_v2  ;;  %v13200_v30 = vadd.f32 %v6078_v31, %v17509_v26  ;;  %v6082_v24 = vpop.f32.mrb[36].mxu0  ;;  %v20936_v34 = vld [vmem:[#allocation31_spill] sm:$0xff] }
 0x412   : > { %v8896_v6 = vmul.f32 %v17524_v23, %v8598_v56  ;;  %v8901_v59 = vmul.f32 %v17494_v13, %v8603_v1  ;;  %v8605_v7 = vmax.f32 %v13263_v63, 0.0  ;;  %v13264_v33 = vadd.f32 %v6850_v27, %v17521_v41  ;;  %7960 = vmatprep.mubr.bf16.mxu1 %v20898_v25  ;;  %v6084_v2 = vpop.f32.mrb[37].mxu0  ;;  %v6856_v56 = vpop.f32.mrb[37].mxu1 }
 0x413   : > { %v20899_v37 = vcombine.low %v17548_v18, %v17558_v16  ;;  %v17997_v39 = vadd.f32 %v9157_v51, %v8888_v15  ;;  %v9165_v62 = vadd.f32 %v8894_v32, %v8893_v11  ;;  %v8604_v10 = vmax.f32 %v13200_v30, 0.0  ;;  %v6086_v54 = vpop.f32.mrb[38].mxu0  ;;  %v6858_v51 = vpop.f32.mrb[38].mxu1  ;;  %v20903_v32 = vld [vmem:[#allocation93_spill] sm:$0xff] }
 0x414   : > { %v20900_v31 = vcombine.high %v17560_v61, %v17562_v19  ;;  %v20901_v29 = vcombine.high %v17572_v36, %v17574_v55  ;;  %v8606_v17 = vmax.f32 %v13264_v33, 0.0  ;;  %v13201_v16 = vadd.f32 %v6082_v24, %v17491_v42  ;;  %v20904_v30 = vld [vmem:[#allocation97_spill] sm:$0xff]  ;;  %v6088_v24 = vpop.f32.mrb[39].mxu0 }
 0x415   : > { %8092 = vmatpush1.bf16.msra.mxu1 %v20899_v37  ;;  %v13265_v18 = vadd.f32 %v6854_v4, %v17503_v14  ;;  %v20902_v48 = vcombine.low %v17560_v61, %v17562_v19  ;;  %v9166_v15 = vadd.f32 %v9165_v62, %v8895_v43  ;;  %v8902_v11 = vmul.f32 %v17512_v46, %v8604_v10  ;;  %v6860_v43 = vpop.f32.mrb[39].mxu1 }
 0x416   : > { %7321 = vmatprep.subr.bf16.mxu0 %v20900_v31  ;;  %8093 = vmatprep.subr.bf16.mxu1 %v20901_v29  ;;  %v13202_v1 = vadd.f32 %v6084_v2, %v17509_v26  ;;  %v13266_v63 = vadd.f32 %v6856_v56, %v17521_v41  ;;  %v20905_v25 = vcombine.high %v20903_v32, %v20904_v30  ;;  %v8611_v19 = vmax.f32 %v13201_v16, 0.0  ;;  %v20907_v2 = vld [vmem:[#allocation92_spill] sm:$0xff]  ;;  %v20908_v56 = vld [vmem:[#allocation99_spill] sm:$0xff] }
 0x417   : > { %7322 = vmatpush1.bf16.msra.mxu0 %v20902_v48  ;;  %v8903_v33 = vmul.f32 %v17506_v22, %v8605_v7  ;;  %v8613_v61 = vmax.f32 %v13265_v18, 0.0  ;;  %v13203_v37 = vadd.f32 %v6086_v54, %v17491_v42  ;;  %v20906_v62 = vcombine.low %v17572_v36, %v17574_v55 }
 0x418   : > { %7323 = vmatprep.subr.bf16.mxu0 %v20905_v25  ;;  %v18025_v10 = vadd.f32 %v9166_v15, %v8896_v6  ;;  %v9174_v4 = vadd.f32 %v8902_v11, %v8901_v59  ;;  %v8612_v31 = vmax.f32 %v13202_v1, 0.0  ;;  %v8614_v29 = vmax.f32 %v13266_v63, 0.0  ;;  %v20910_v25 = vld [vmem:[#allocation131_spill] sm:$0xff]  ;;  %v20911_v15 = vld [vmem:[#allocation132_spill] sm:$0xff] }
 0x419   : > { %8094 = vmatpush1.bf16.msra.mxu1 %v20906_v62  ;;  %v20909_v48 = vcombine.high %v20907_v2, %v20908_v56  ;;  %v8904_v7 = vmul.f32 %v17524_v23, %v8606_v17  ;;  %v8909_v16 = vmul.f32 %v17494_v13, %v8611_v19  ;;  %v8619_v18 = vmax.f32 %v13203_v37, 0.0  ;;  %7189 = vmatmul.mubr.bf16.gmra.mrb[80].mxu0 %v20910_v25  ;;  %v18039_v11 = vld [vmem:[#allocation8 + $0xbd0] sm:$0xff]  ;;  %v6092_v62 = vpop.f32.mrb[40].mxu0 }
 0x41a   : > { %v13267_v54 = vadd.f32 %v6858_v51, %v17503_v14  ;;  %7961 = vmatmul.mubr.bf16.gmra.mrb[80].mxu1 %v20910_v25  ;;  %v9175_v36 = vadd.f32 %v9174_v4, %v8903_v33  ;;  %v8911_v55 = vmul.f32 %v17506_v22, %v8613_v61  ;;  %v8910_v6 = vmul.f32 %v17512_v46, %v8612_v31  ;;  %v18041_v17 = vld [vmem:[#allocation8 + $0xbf0] sm:$0xff]  ;;  %v6864_v4 = vpop.f32.mrb[40].mxu1 }
 0x41b   : > { %8095 = vmatprep.subr.bf16.mxu1 %v20909_v48  ;;  %v13204_v59 = vadd.f32 %v6088_v24, %v17509_v26  ;;  %7198 = vmatprep.mubr.bf16.mxu0 %v20911_v15  ;;  %v8912_v1 = vmul.f32 %v17524_v23, %v8614_v29  ;;  %v8917_v63 = vmul.f32 %v17494_v13, %v8619_v18  ;;  %v20914_v29 = vld [vmem:[#allocation96_spill] sm:$0xff] }
 0x41c   : > { %v13268_v51 = vadd.f32 %v6860_v43, %v17521_v41  ;;  %7970 = vmatprep.mubr.bf16.mxu1 %v20911_v15  ;;  %v20912_v33 = vcombine.low %v20903_v32, %v20904_v30  ;;  %v18050_v19 = vadd.f32 %v9175_v36, %v8904_v7  ;;  %v9183_v61 = vadd.f32 %v8910_v6, %v8909_v16  ;;  %v20915_v48 = vld [vmem:[#allocation104_spill] sm:$0xff]  ;;  %v6094_v30 = vpop.f32.mrb[41].mxu0  ;;  %v6866_v7 = vpop.f32.mrb[41].mxu1 }
 0x41d   : > { %v8621_v37 = vmax.f32 %v13267_v54, 0.0  ;;  %v8620_v24 = vmax.f32 %v13204_v59, 0.0  ;;  %v20913_v31 = vcombine.low %v20907_v2, %v20908_v56  ;;  %v20916_v43 = vcombine.high %v20914_v29, %v20915_v48  ;;  %v20917_v16 = vld [vmem:[#allocation100_spill] sm:$0xff]  ;;  %v20918_v54 = vld [vmem:[#allocation114_spill] sm:$0xff] }
 0x41e   : > { %7324 = vmatpush1.bf16.msra.mxu0 %v20912_v33  ;;  %v8622_v18 = vmax.f32 %v13268_v51, 0.0  ;;  %v13205_v25 = vadd.f32 %v6092_v62, %v17491_v42  ;;  %v13269_v32 = vadd.f32 %v6864_v4, %v17503_v14  ;;  %v20919_v36 = vcombine.high %v20917_v16, %v20918_v54  ;;  %v6096_v51 = vpop.f32.mrb[42].mxu0  ;;  %v6868_v33 = vpop.f32.mrb[42].mxu1 }
 0x41f   : > { %8096 = vmatpush1.bf16.msra.mxu1 %v20913_v31  ;;  %7325 = vmatprep.subr.bf16.mxu0 %v20916_v43  ;;  %v9184_v2 = vadd.f32 %v9183_v61, %v8911_v55  ;;  %v8918_v56 = vmul.f32 %v17512_v46, %v8620_v24  ;;  %v13206_v59 = vadd.f32 %v6094_v30, %v17509_v26  ;;  %v6098_v43 = vpop.f32.mrb[43].mxu0  ;;  %v6870_v27 = vpop.f32.mrb[43].mxu1 }
 0x420   : > { %8097 = vmatprep.subr.bf16.mxu1 %v20919_v36  ;;  %v13270_v15 = vadd.f32 %v6866_v7, %v17521_v41  ;;  %v8627_v62 = vmax.f32 %v13205_v25, 0.0  ;;  %v8629_v4 = vmax.f32 %v13269_v32, 0.0  ;;  %v13207_v31 = vadd.f32 %v6096_v51, %v17491_v42  ;;  %v20922_v32 = vld [vmem:[#allocation113_spill] sm:$0xff]  ;;  %v20923_v51 = vld [vmem:[#allocation107_spill] sm:$0xff] }
 0x421   : > { %v20920_v36 = vcombine.low %v20914_v29, %v20915_v48  ;;  %v18074_v61 = vadd.f32 %v9184_v2, %v8912_v1  ;;  %v8919_v24 = vmul.f32 %v17506_v22, %v8621_v37  ;;  %v9192_v30 = vadd.f32 %v8918_v56, %v8917_v63  ;;  %v20925_v1 = vld [vmem:[#allocation133_spill] sm:$0xff]  ;;  %v20926_v2 = vld [vmem:[#allocation134_spill] sm:$0xff] }
 0x422   : > { %v8628_v7 = vmax.f32 %v13206_v59, 0.0  ;;  %v20921_v25 = vcombine.low %v20917_v16, %v20918_v54  ;;  %v20924_v6 = vcombine.high %v20922_v32, %v20923_v51  ;;  %v8925_v29 = vmul.f32 %v17494_v13, %v8627_v62  ;;  %7199 = vmatmul.mubr.bf16.gmra.mrb[84].mxu0 %v20925_v1  ;;  %7971 = vmatmul.mubr.bf16.gmra.mrb[84].mxu1 %v20925_v1  ;;  %v18106_v1 = vld [vmem:[#allocation8 + $0xbd8] sm:$0xff] }
 0x423   : > { %7326 = vmatpush1.bf16.msra.mxu0 %v20920_v36  ;;  %v8630_v48 = vmax.f32 %v13270_v15, 0.0  ;;  %v8635_v36 = vmax.f32 %v13207_v31, 0.0  ;;  %v13271_v55 = vadd.f32 %v6868_v33, %v17503_v14  ;;  %v8920_v63 = vmul.f32 %v17524_v23, %v8622_v18  ;;  %7208 = vmatprep.mubr.bf16.mxu0 %v20926_v2 }
 0x424   : > { %8098 = vmatpush1.bf16.msra.mxu1 %v20921_v25  ;;  %7327 = vmatprep.subr.bf16.mxu0 %v20924_v6  ;;  %v9193_v37 = vadd.f32 %v9192_v30, %v8919_v24  ;;  %v8926_v16 = vmul.f32 %v17512_v46, %v8628_v7  ;;  %v13208_v54 = vadd.f32 %v6098_v43, %v17509_v26  ;;  %v6102_v43 = vpop.f32.mrb[44].mxu0  ;;  %v6874_v24 = vpop.f32.mrb[44].mxu1  ;;  %v20928_v30 = vld [vmem:[#allocation108_spill] sm:$0xff]  ;;  %v20929_v7 = vld [vmem:[#allocation119_spill] sm:$0xff] }
 0x425   : > { %v8927_v6 = vmul.f32 %v17506_v22, %v8629_v4  ;;  %v8933_v56 = vmul.f32 %v17494_v13, %v8635_v36  ;;  %v13272_v59 = vadd.f32 %v6870_v27, %v17521_v41  ;;  %7980 = vmatprep.mubr.bf16.mxu1 %v20926_v2  ;;  %v20927_v15 = vcombine.low %v20922_v32, %v20923_v51  ;;  %v20931_v25 = vld [vmem:[#allocation112_spill] sm:$0xff]  ;;  %v18108_v2 = vld [vmem:[#allocation8 + $0xbf8] sm:$0xff] }
 0x426   : > { %v18098_v18 = vadd.f32 %v9193_v37, %v8920_v63  ;;  %v9201_v33 = vadd.f32 %v8926_v16, %v8925_v29  ;;  %v8637_v62 = vmax.f32 %v13271_v55, 0.0  ;;  %v8636_v31 = vmax.f32 %v13208_v54, 0.0  ;;  %v20932_v36 = vld [vmem:[#allocation116_spill] sm:$0xff]  ;;  %v6104_v63 = vpop.f32.mrb[45].mxu0  ;;  %v6876_v37 = vpop.f32.mrb[45].mxu1 }
 0x427   : > { %7328 = vmatpush1.bf16.msra.mxu0 %v20927_v15  ;;  %v20930_v4 = vcombine.high %v20928_v30, %v20929_v7  ;;  %v20933_v27 = vcombine.high %v20931_v25, %v20932_v36  ;;  %v8928_v32 = vmul.f32 %v17524_v23, %v8630_v48  ;;  %v8638_v51 = vmax.f32 %v13272_v59, 0.0  ;;  %v6106_v8 = vpop.f32.mrb[46].mxu0  ;;  %v6878_v48 = vpop.f32.mrb[46].mxu1  ;;  %v20935_v59 = vld [vmem:[#allocation29_spill] sm:$0xff] }
 0x428   : > { %v13209_v55 = vadd.f32 %v6102_v43, %v17491_v42  ;;  %v13273_v29 = vadd.f32 %v6874_v24, %v17503_v14  ;;  %v20934_v16 = vcombine.low %v20928_v30, %v20929_v7  ;;  %v9202_v54 = vadd.f32 %v9201_v33, %v8927_v6  ;;  %v6108_v21 = vpop.f32.mrb[47].mxu0  ;;  %v6880_v30 = vpop.f32.mrb[47].mxu1 }
 0x429   : > { %8099 = vmatprep.subr.bf16.mxu1 %v20930_v4  ;;  %7329 = vmatprep.subr.bf16.mxu0 %v20933_v27  ;;  %v8934_v15 = vmul.f32 %v17512_v46, %v8636_v31  ;;  %v13210_v4 = vadd.f32 %v6104_v63, %v17509_v26  ;;  %v13274_v27 = vadd.f32 %v6876_v37, %v17521_v41 }
 0x42a   : > { %8100 = vmatpush1.bf16.msra.mxu1 %v20934_v16  ;;  %v20937_v43 = vcombine.high %v20935_v59, %v20936_v34  ;;  %v8643_v24 = vmax.f32 %v13209_v55, 0.0  ;;  %v8645_v49 = vmax.f32 %v13273_v29, 0.0  ;;  %v13211_v40 = vadd.f32 %v6106_v8, %v17491_v42  ;;  %v20939_v55 = vld [vmem:[#allocation35_spill] sm:$0xff] }
 0x42b   : > { %v20938_v6 = vcombine.low %v20931_v25, %v20932_v36  ;;  %v18128_v31 = vadd.f32 %v9202_v54, %v8928_v32  ;;  %v8935_v7 = vmul.f32 %v17506_v22, %v8637_v62  ;;  %v9210_v63 = vadd.f32 %v8934_v15, %v8933_v56  ;;  %v20941_v36 = vld [vmem:[#allocation135_spill] sm:$0xff]  ;;  %v20942_v15 = vld [vmem:[#allocation70_spill] sm:$0xff] }
 0x42c   : > { %8101 = vmatprep.subr.bf16.mxu1 %v20937_v43  ;;  %v8644_v37 = vmax.f32 %v13210_v4, 0.0  ;;  %v20940_v29 = vcombine.high %v17697_v45, %v20939_v55  ;;  %v8941_v8 = vmul.f32 %v17494_v13, %v8643_v24  ;;  %v8646_v16 = vmax.f32 %v13274_v27, 0.0  ;;  %7209 = vmatmul.mubr.bf16.gmra.mrb[88].mxu0 %v20941_v36 }
 0x42d   : > { %7330 = vmatpush1.bf16.msra.mxu0 %v20938_v6  ;;  %v8651_v43 = vmax.f32 %v13211_v40, 0.0  ;;  %v13275_v25 = vadd.f32 %v6878_v48, %v17503_v14  ;;  %7981 = vmatmul.mubr.bf16.gmra.mrb[88].mxu1 %v20941_v36  ;;  %v8936_v32 = vmul.f32 %v17524_v23, %v8638_v51  ;;  %v9211_v54 = vadd.f32 %v9210_v63, %v8935_v7  ;;  %v6884_v63 = vpop.f32.mrb[48].mxu1 }
 0x42e   : > { %7331 = vmatprep.subr.bf16.mxu0 %v20940_v29  ;;  %v8942_v56 = vmul.f32 %v17512_v46, %v8644_v37  ;;  %v13212_v62 = vadd.f32 %v6108_v21, %v17509_v26  ;;  %7218 = vmatprep.mubr.bf16.mxu0 %v20942_v15  ;;  %v8943_v4 = vmul.f32 %v17506_v22, %v8645_v49  ;;  %v6112_v21 = vpop.f32.mrb[48].mxu0  ;;  %v20945_v37 = vld [vmem:[#allocation42_spill] sm:$0xff]  ;;  %v20946_v29 = vld [vmem:[#allocation47_spill] sm:$0xff] }
 0x42f   : > { %v8949_v27 = vmul.f32 %v17494_v13, %v8651_v43  ;;  %v13276_v40 = vadd.f32 %v6880_v30, %v17521_v41  ;;  %7990 = vmatprep.mubr.bf16.mxu1 %v20942_v15  ;;  %v20943_v48 = vcombine.low %v20935_v59, %v20936_v34  ;;  %v18149_v51 = vadd.f32 %v9211_v54, %v8936_v32  ;;  %v20948_v32 = vld [vmem:[#allocation54_spill] sm:$0xff]  ;;  %v20949_v54 = vld [vmem:[#allocation59_spill] sm:$0xff] }
 0x430   : > { %v9219_v24 = vadd.f32 %v8942_v56, %v8941_v8  ;;  %v8653_v6 = vmax.f32 %v13275_v25, 0.0  ;;  %v8652_v7 = vmax.f32 %v13212_v62, 0.0  ;;  %v20944_v49 = vcombine.low %v17697_v45, %v20939_v55  ;;  %v6114_v8 = vpop.f32.mrb[49].mxu0  ;;  %v6886_v25 = vpop.f32.mrb[49].mxu1 }
 0x431   : > { %8102 = vmatpush1.bf16.msra.mxu1 %v20943_v48  ;;  %v20947_v30 = vcombine.high %v20945_v37, %v20946_v29  ;;  %v8944_v43 = vmul.f32 %v17524_v23, %v8646_v16  ;;  %v8654_v36 = vmax.f32 %v13276_v40, 0.0  ;;  %v13213_v34 = vadd.f32 %v6112_v21, %v17491_v42  ;;  %v6116_v48 = vpop.f32.mrb[50].mxu0  ;;  %v6888_v16 = vpop.f32.mrb[50].mxu1 }
 0x432   : > { %7332 = vmatpush1.bf16.msra.mxu0 %v20944_v49  ;;  %v13277_v59 = vadd.f32 %v6884_v63, %v17503_v14  ;;  %v20950_v56 = vcombine.high %v20948_v32, %v20949_v54  ;;  %v9220_v62 = vadd.f32 %v9219_v24, %v8943_v4  ;;  %v8950_v45 = vmul.f32 %v17512_v46, %v8652_v7  ;;  %v6118_v63 = vpop.f32.mrb[51].mxu0 }
 0x433   : > { %8103 = vmatprep.subr.bf16.mxu1 %v20947_v30  ;;  %v13214_v55 = vadd.f32 %v6114_v8, %v17509_v26  ;;  %v13278_v15 = vadd.f32 %v6886_v25, %v17521_v41  ;;  %v8659_v40 = vmax.f32 %v13213_v34, 0.0  ;;  %v13215_v21 = vadd.f32 %v6116_v48, %v17491_v42  ;;  %v6890_v30 = vpop.f32.mrb[51].mxu1 }
 0x434   : > { %7333 = vmatprep.subr.bf16.mxu0 %v20950_v56  ;;  %v8661_v49 = vmax.f32 %v13277_v59, 0.0  ;;  %v20951_v33 = vcombine.low %v20945_v37, %v20946_v29  ;;  %v18172_v24 = vadd.f32 %v9220_v62, %v8944_v43  ;;  %v8951_v7 = vmul.f32 %v17506_v22, %v8653_v6  ;;  %v20953_v59 = vld [vmem:[#allocation66_spill] sm:$0xff]  ;;  %v20954_v56 = vld [vmem:[#allocation71_spill] sm:$0xff] }
 0x435   : > { %v9228_v8 = vadd.f32 %v8950_v45, %v8949_v27  ;;  %v8660_v25 = vmax.f32 %v13214_v55, 0.0  ;;  %v20952_v34 = vcombine.low %v20948_v32, %v20949_v54  ;;  %v20955_v48 = vcombine.high %v20953_v59, %v20954_v56  ;;  %v20956_v43 = vld [vmem:[#allocation74_spill] sm:$0xff]  ;;  %v20957_v62 = vld [vmem:[#allocation79_spill] sm:$0xff] }
 0x436   : > { %8104 = vmatpush1.bf16.msra.mxu1 %v20951_v33  ;;  %v8957_v37 = vmul.f32 %v17494_v13, %v8659_v40  ;;  %v8662_v33 = vmax.f32 %v13278_v15, 0.0  ;;  %v8667_v29 = vmax.f32 %v13215_v21, 0.0  ;;  %v13279_v4 = vadd.f32 %v6888_v16, %v17503_v14  ;;  %7219 = vmatmul.mubr.bf16.gmra.mrb[92].mxu0 %v20956_v43 }
 0x437   : > { %7334 = vmatpush1.bf16.msra.mxu0 %v20952_v34  ;;  %8105 = vmatprep.subr.bf16.mxu1 %v20955_v48  ;;  %v8952_v27 = vmul.f32 %v17524_v23, %v8654_v36  ;;  %v9229_v6 = vadd.f32 %v9228_v8, %v8951_v7  ;;  %v8958_v32 = vmul.f32 %v17512_v46, %v8660_v25  ;;  %v6894_v8 = vpop.f32.mrb[52].mxu1 }
 0x438   : > { %7991 = vmatmul.mubr.bf16.gmra.mrb[92].mxu1 %v20956_v43  ;;  %v13216_v54 = vadd.f32 %v6118_v63, %v17509_v26  ;;  %7228 = vmatprep.mubr.bf16.mxu0 %v20957_v62  ;;  %v8959_v45 = vmul.f32 %v17506_v22, %v8661_v49  ;;  %v8965_v55 = vmul.f32 %v17494_v13, %v8667_v29  ;;  %v8669_v21 = vmax.f32 %v13279_v4, 0.0  ;;  %v6122_v63 = vpop.f32.mrb[52].mxu0  ;;  %v18204_v49 = vld [vmem:[#allocation8 + $0xc10] sm:$0xff]  ;;  %v6896_v48 = vpop.f32.mrb[53].mxu1 }
 0x439   : > { %v13280_v15 = vadd.f32 %v6890_v30, %v17521_v41  ;;  %8000 = vmatprep.mubr.bf16.mxu1 %v20957_v62  ;;  %v20958_v16 = vcombine.low %v20953_v59, %v20954_v56  ;;  %v18196_v36 = vadd.f32 %v9229_v6, %v8952_v27  ;;  %v9237_v40 = vadd.f32 %v8958_v32, %v8957_v37  ;;  %v18206_v30 = vld [vmem:[#allocation8 + $0xc30] sm:$0xff]  ;;  %v6124_v56 = vpop.f32.mrb[53].mxu0 }
 0x43a   : > { %v8668_v7 = vmax.f32 %v13216_v54, 0.0  ;;  %7335 = vmatprep.subr.bf16.mxu0 %v12980_v58  ;;  %v8960_v25 = vmul.f32 %v17524_v23, %v8662_v33  ;;  %v13217_v4 = vadd.f32 %v6122_v63, %v17491_v42  ;;  %v13281_v59 = vadd.f32 %v6894_v8, %v17503_v14  ;;  %v6126_v27 = vpop.f32.mrb[54].mxu0  ;;  %v6898_v33 = vpop.f32.mrb[54].mxu1 }
 0x43b   : > { %8106 = vmatpush1.bf16.msra.mxu1 %v20958_v16  ;;  %v8670_v34 = vmax.f32 %v13280_v15, 0.0  ;;  %v20959_v58 = vcombine.low %v17823_v53, %v17825_v60  ;;  %v9238_v37 = vadd.f32 %v9237_v40, %v8959_v45  ;;  %v13218_v29 = vadd.f32 %v6124_v56, %v17509_v26  ;;  %v6128_v15 = vpop.f32.mrb[55].mxu0  ;;  %v6900_v53 = vpop.f32.mrb[55].mxu1 }
 0x43c   : > { %8107 = vmatprep.subr.bf16.mxu1 %v12982_v5  ;;  %v8966_v5 = vmul.f32 %v17512_v46, %v8668_v7  ;;  %v13282_v43 = vadd.f32 %v6896_v48, %v17521_v41  ;;  %v20960_v6 = vcombine.high %v17929_v9, %v17931_v0  ;;  %v8675_v32 = vmax.f32 %v13217_v4, 0.0 }
 0x43d   : > { %7336 = vmatpush1.bf16.msra.mxu0 %v20959_v58  ;;  %v8677_v54 = vmax.f32 %v13281_v59, 0.0  ;;  %v13219_v62 = vadd.f32 %v6126_v27, %v17491_v42  ;;  %v20961_v60 = vcombine.low %v17876_v12, %v17878_v44  ;;  %v13004_v45 = vcombine.high %v18204_v49, %v18206_v30  ;;  %v20963_v44 = vld [vmem:[#allocation76_spill] sm:$0xff] }
 0x43e   : > { %7337 = vmatprep.subr.bf16.mxu0 %v20960_v6  ;;  %v18226_v16 = vadd.f32 %v9238_v37, %v8960_v25  ;;  %v8967_v40 = vmul.f32 %v17506_v22, %v8669_v21  ;;  %v9246_v7 = vadd.f32 %v8966_v5, %v8965_v55  ;;  %v8676_v63 = vmax.f32 %v13218_v29, 0.0  ;;  %7229 = vmatmul.mubr.bf16.gmra.mrb[96].mxu0 %v20963_v44  ;;  %v20964_v58 = vld [vmem:[#allocation84_spill] sm:$0xff] }
 0x43f   : > { %8108 = vmatpush1.bf16.msra.mxu1 %v20961_v60  ;;  %v20962_v8 = vcombine.high %v17982_v50, %v17984_v52  ;;  %v8973_v4 = vmul.f32 %v17494_v13, %v8675_v32  ;;  %v8678_v59 = vmax.f32 %v13282_v43, 0.0  ;;  %v8683_v56 = vmax.f32 %v13219_v62, 0.0  ;;  %7238 = vmatprep.mubr.bf16.mxu0 %v20964_v58  ;;  %v6132_v32 = vpop.f32.mrb[56].mxu0  ;;  %v6904_v62 = vpop.f32.mrb[56].mxu1  ;;  %v18257_v60 = vld [vmem:[#allocation8 + $0xc38] sm:$0xff] }
 0x440   : > { %v13283_v12 = vadd.f32 %v6898_v33, %v17503_v14  ;;  %8001 = vmatmul.mubr.bf16.gmra.mrb[96].mxu1 %v20963_v44  ;;  %v8968_v25 = vmul.f32 %v17524_v23, %v8670_v34  ;;  %v9247_v48 = vadd.f32 %v9246_v7, %v8967_v40  ;;  %v8974_v55 = vmul.f32 %v17512_v46, %v8676_v63  ;;  %v6134_v63 = vpop.f32.mrb[57].mxu0 }
 0x441   : > { %8109 = vmatprep.subr.bf16.mxu1 %v20962_v8  ;;  %v13220_v21 = vadd.f32 %v6128_v15, %v17509_v26  ;;  %v8975_v37 = vmul.f32 %v17506_v22, %v8677_v54  ;;  %v8981_v5 = vmul.f32 %v17494_v13, %v8683_v56  ;;  %v13284_v29 = vadd.f32 %v6900_v53, %v17521_v41  ;;  %v18255_v53 = vld [vmem:[#allocation8 + $0xc18] sm:$0xff]  ;;  %v6906_v8 = vpop.f32.mrb[57].mxu1  ;;  %v6136_v44 = vpop.f32.mrb[58].mxu0 }
 0x442   : > { %8010 = vmatprep.mubr.bf16.mxu1 %v20964_v58  ;;  %v20965_v43 = vcombine.low %v17929_v9, %v17931_v0  ;;  %v18247_v34 = vadd.f32 %v9247_v48, %v8968_v25  ;;  %v9255_v27 = vadd.f32 %v8974_v55, %v8973_v4  ;;  %v8685_v33 = vmax.f32 %v13283_v12, 0.0 }
 0x443   : > { %v8684_v6 = vmax.f32 %v13220_v21, 0.0  ;;  %v20966_v54 = vcombine.low %v17982_v50, %v17984_v52  ;;  %v20967_v15 = vcombine.high %v18039_v11, %v18041_v17  ;;  %v8976_v9 = vmul.f32 %v17524_v23, %v8678_v59  ;;  %v6908_v59 = vpop.f32.mrb[58].mxu1  ;;  %v6138_v21 = vpop.f32.mrb[59].mxu0 }
 0x444   : > { %7338 = vmatpush1.bf16.msra.mxu0 %v20965_v43  ;;  %v8686_v0 = vmax.f32 %v13284_v29, 0.0  ;;  %v13221_v40 = vadd.f32 %v6132_v32, %v17491_v42  ;;  %v13285_v7 = vadd.f32 %v6904_v62, %v17503_v14  ;;  %v20968_v50 = vcombine.high %v18106_v1, %v18108_v2  ;;  %v6910_v58 = vpop.f32.mrb[59].mxu1 }
 0x445   : > { %8110 = vmatpush1.bf16.msra.mxu1 %v20966_v54  ;;  %7339 = vmatprep.subr.bf16.mxu0 %v20967_v15  ;;  %v9256_v52 = vadd.f32 %v9255_v27, %v8975_v37  ;;  %v8982_v4 = vmul.f32 %v17512_v46, %v8684_v6  ;;  %v13222_v56 = vadd.f32 %v6134_v63, %v17509_v26 }
 0x446   : > { %8111 = vmatprep.subr.bf16.mxu1 %v20968_v50  ;;  %v13286_v12 = vadd.f32 %v6906_v8, %v17521_v41  ;;  %v8691_v25 = vmax.f32 %v13221_v40, 0.0  ;;  %v8693_v48 = vmax.f32 %v13285_v7, 0.0  ;;  %v13223_v55 = vadd.f32 %v6136_v44, %v17491_v42 }
 0x447   : > { %v20969_v29 = vcombine.low %v18039_v11, %v18041_v17  ;;  %v13006_v37 = vcombine.high %v18255_v53, %v18257_v60  ;;  %v18274_v43 = vadd.f32 %v9256_v52, %v8976_v9  ;;  %v8983_v27 = vmul.f32 %v17506_v22, %v8685_v33  ;;  %v20971_v17 = vld [vmem:[#allocation87_spill] sm:$0xff] }
 0x448   : > { %v9264_v6 = vadd.f32 %v8982_v4, %v8981_v5  ;;  %v8692_v32 = vmax.f32 %v13222_v56, 0.0  ;;  %v20970_v62 = vcombine.low %v18106_v1, %v18108_v2  ;;  %v8989_v54 = vmul.f32 %v17494_v13, %v8691_v25  ;;  %7239 = vmatmul.mubr.bf16.gmra.mrb[100].mxu0 %v20971_v17  ;;  %8011 = vmatmul.mubr.bf16.gmra.mrb[100].mxu1 %v20971_v17  ;;  %v20972_v1 = vld [vmem:[#allocation136_spill] sm:$0xff]  ;;  %v6142_v4 = vpop.f32.mrb[60].mxu0  ;;  %v6914_v56 = vpop.f32.mrb[60].mxu1 }
 0x449   : > { %7340 = vmatpush1.bf16.msra.mxu0 %v20969_v29  ;;  %v8694_v15 = vmax.f32 %v13286_v12, 0.0  ;;  %v8699_v40 = vmax.f32 %v13223_v55, 0.0  ;;  %v13287_v11 = vadd.f32 %v6908_v59, %v17503_v14  ;;  %v8984_v9 = vmul.f32 %v17524_v23, %v8686_v0  ;;  %7248 = vmatprep.mubr.bf16.mxu0 %v20972_v1  ;;  %v6916_v55 = vpop.f32.mrb[61].mxu1 }
 0x44a   : > { %8112 = vmatpush1.bf16.msra.mxu1 %v20970_v62  ;;  %7502 = vmatprep.subr.bf16.mxu0 %v13004_v45  ;;  %v9265_v33 = vadd.f32 %v9264_v6, %v8983_v27  ;;  %v8990_v5 = vmul.f32 %v17512_v46, %v8692_v32  ;;  %v13224_v7 = vadd.f32 %v6138_v21, %v17509_v26  ;;  %v6918_v6 = vpop.f32.mrb[62].mxu1 }
 0x44b   : > { %v8991_v2 = vmul.f32 %v17506_v22, %v8693_v48  ;;  %v8997_v45 = vmul.f32 %v17494_v13, %v8699_v40  ;;  %v13288_v63 = vadd.f32 %v6910_v58, %v17521_v41  ;;  %8020 = vmatprep.mubr.bf16.mxu1 %v20972_v1  ;;  %8274 = vmatprep.subr.bf16.mxu1 %v13006_v37  ;;  %v8701_v0 = vmax.f32 %v13287_v11, 0.0  ;;  %v6144_v48 = vpop.f32.mrb[61].mxu0  ;;  %v6920_v40 = vpop.f32.mrb[63].mxu1 }
 0x44c   : > { %v18292_v8 = vadd.f32 %v9265_v33, %v8984_v9  ;;  %v9273_v50 = vadd.f32 %v8990_v5, %v8989_v54  ;;  %v8700_v52 = vmax.f32 %v13224_v7, 0.0  ;;  %v8992_v12 = vmul.f32 %v17524_v23, %v8694_v15  ;;  %v6146_v27 = vpop.f32.mrb[62].mxu0 }
 0x44d   : > { %v8702_v44 = vmax.f32 %v13288_v63, 0.0  ;;  %v13225_v59 = vadd.f32 %v6142_v4, %v17491_v42  ;;  %v13289_v25 = vadd.f32 %v6914_v56, %v17503_v14  ;;  %v13226_v29 = vadd.f32 %v6144_v48, %v17509_v26  ;;  %v6148_v15 = vpop.f32.mrb[63].mxu0  ;;  %v20973_v63 = vld [vmem:[#allocation137_spill] sm:$0xff] }
 0x44e   : > { %v9274_v21 = vadd.f32 %v9273_v50, %v8991_v2  ;;  %v8998_v58 = vmul.f32 %v17512_v46, %v8700_v52  ;;  %v13290_v37 = vadd.f32 %v6916_v55, %v17521_v41  ;;  %v13227_v54 = vadd.f32 %v6146_v27, %v17491_v42 }
 0x44f   : > { %v8707_v32 = vmax.f32 %v13225_v59, 0.0  ;;  %v8709_v62 = vmax.f32 %v13289_v25, 0.0  ;;  %v8999_v17 = vmul.f32 %v17506_v22, %v8701_v0  ;;  %v8708_v33 = vmax.f32 %v13226_v29, 0.0  ;;  %v20974_v0 = vld [vmem:[#allocation138_spill] sm:$0xff] }
 0x450   : > { %v18301_v11 = vadd.f32 %v9274_v21, %v8992_v12  ;;  %v9282_v9 = vadd.f32 %v8998_v58, %v8997_v45  ;;  %v9000_v5 = vmul.f32 %v17524_v23, %v8702_v44  ;;  %v8715_v1 = vmax.f32 %v13227_v54, 0.0  ;;  %7249 = vmatmul.mubr.bf16.gmra.mrb[104].mxu0 %v20973_v63  ;;  %8021 = vmatmul.mubr.bf16.gmra.mrb[104].mxu1 %v20973_v63  ;;  %v20981_v54 = vld [vmem:[#allocation145_spill] sm:$0xff] }
 0x451   : > { %v9005_v7 = vmul.f32 %v17494_v13, %v8707_v32  ;;  %v13291_v2 = vadd.f32 %v6918_v6, %v17503_v14  ;;  %v9006_v50 = vmul.f32 %v17512_v46, %v8708_v33  ;;  %v8710_v52 = vmax.f32 %v13290_v37, 0.0  ;;  %7258 = vmatprep.mubr.bf16.mxu0 %v20974_v0  ;;  %8030 = vmatprep.mubr.bf16.mxu1 %v20974_v0  ;;  %v20975_v37 = vld [vmem:[#allocation139_spill] sm:$0xff]  ;;  %v20976_v6 = vld [vmem:[#allocation140_spill] sm:$0xff]  ;;  %v2669_v0 = vld [vmem:[#allocation8 + $0xc98] sm:$0xff] }
 0x452   : > { %v9283_v42 = vadd.f32 %v9282_v9, %v8999_v17  ;;  %v13228_v4 = vadd.f32 %v6148_v15, %v17509_v26  ;;  %v9007_v45 = vmul.f32 %v17506_v22, %v8709_v62  ;;  %v9013_v56 = vmul.f32 %v17494_v13, %v8715_v1  ;;  %v20978_v62 = vld [vmem:[#allocation142_spill] sm:$0xff]  ;;  %v20984_v17 = vld [vmem:[#allocation148_spill] sm:$0xff] }
 0x453   : > { %v13292_v12 = vadd.f32 %v6920_v40, %v17521_v41  ;;  %v9291_v44 = vadd.f32 %v9006_v50, %v9005_v7  ;;  %v8717_v59 = vmax.f32 %v13291_v2, 0.0  ;;  %v9008_v48 = vmul.f32 %v17524_v23, %v8710_v52  ;;  %v20982_v15 = vld [vmem:[#allocation146_spill] sm:$0xff]  ;;  %v20983_v40 = vld [vmem:[#allocation147_spill] sm:$0xff]  ;;  %v2660_v9 = vld [vmem:[#allocation8 + $0xc50] sm:$0xff] }
 0x454   : > { %v18316_v14 = vadd.f32 %v9283_v42, %v9000_v5  ;;  %v8716_v25 = vmax.f32 %v13228_v4, 0.0  ;;  %v2664_v33 = vld [vmem:[#allocation8 + $0xc70] sm:$0xff]  ;;  %v2661_v5 = vld [vmem:[#allocation8 + $0xc58] sm:$0xff]  ;;  %v13003_v1 = vcombine.low %v18204_v49, %v18206_v30  ;;  %v13005_v2 = vcombine.low %v18255_v53, %v18257_v60 }
 0x455   : > { %v9292_v55 = vadd.f32 %v9291_v44, %v9007_v45  ;;  %v8718_v21 = vmax.f32 %v13292_v12, 0.0  ;;  %v9015_v29 = vmul.f32 %v17506_v22, %v8717_v59  ;;  %v20979_v22 = vld [vmem:[#allocation143_spill] sm:$0xff]  ;;  %v2665_v7 = vld [vmem:[#allocation8 + $0xc78] sm:$0xff]  ;;  %v13012_v63 = vcombine.high %v2660_v9, %v2664_v33  ;;  %v2668_v50 = vld [vmem:[#allocation8 + $0xc90] sm:$0xff] }
 0x456   : > { %v9014_v26 = vmul.f32 %v17512_v46, %v8716_v25  ;;  %v20977_v46 = vld [vmem:[#allocation141_spill] sm:$0xff]  ;;  %v13014_v42 = vcombine.high %v2661_v5, %v2665_v7  ;;  %v13011_v12 = vcombine.low %v2660_v9, %v2664_v33  ;;  %v13013_v49 = vcombine.low %v2661_v5, %v2665_v7 }
 0x457   : > { %v18320_v58 = vadd.f32 %v9292_v55, %v9008_v48  ;;  %v9016_v41 = vmul.f32 %v17524_v23, %v8718_v21  ;;  %v20980_v23 = vld [vmem:[#allocation144_spill] sm:$0xff]  ;;  %v20985_v4 = vld [vmem:[#allocation149_spill] sm:$0xff] }
 0x458   : > { %v9300_v13 = vadd.f32 %v9014_v26, %v9013_v56  ;;  %7259 = vmatmul.mubr.bf16.gmra.mrb[108].mxu0 %v20975_v37  ;;  %8031 = vmatmul.mubr.bf16.gmra.mrb[108].mxu1 %v20975_v37  ;;  %v2672_v52 = vld [vmem:[#allocation8 + $0xcb0] sm:$0xff]  ;;  %v2673_v45 = vld [vmem:[#allocation8 + $0xcb8] sm:$0xff] }
 0x459   : > { %7268 = vmatprep.mubr.bf16.mxu0 %v20976_v6  ;;  %8040 = vmatprep.mubr.bf16.mxu1 %v20976_v6  ;;  %v20986_v56 = vld [vmem:[#allocation150_spill] sm:$0xff]  ;;  %v13020_v30 = vcombine.high %v2668_v50, %v2672_v52  ;;  %v13022_v53 = vcombine.high %v2669_v0, %v2673_v45  ;;  %v2676_v60 = vld [vmem:[#allocation8 + $0xcd0] sm:$0xff]  ;;  %v13019_v48 = vcombine.low %v2668_v50, %v2672_v52 }
 0x45a   : > { %v9301_v27 = vadd.f32 %v9300_v13, %v9015_v29  ;;  %v2680_v44 = vld [vmem:[#allocation8 + $0xcf0] sm:$0xff]  ;;  %v2677_v59 = vld [vmem:[#allocation8 + $0xcd8] sm:$0xff]  ;;  %v13021_v55 = vcombine.low %v2669_v0, %v2673_v45  ;;  %v20987_v13 = vld [vmem:[#allocation151_spill] sm:$0xff] }
 0x45b   : > { %v2681_v25 = vld [vmem:[#allocation8 + $0xcf8] sm:$0xff]  ;;  %v13028_v26 = vcombine.high %v2676_v60, %v2680_v44  ;;  %v2684_v29 = vld [vmem:[#allocation8 + $0xd10] sm:$0xff] }
 0x45c   : > { %v18328_v32 = vadd.f32 %v9301_v27, %v9016_v41  ;;  %v13030_v21 = vcombine.high %v2677_v59, %v2681_v25  ;;  %v2688_v37 = vld [vmem:[#allocation8 + $0xd30] sm:$0xff]  ;;  %v2685_v41 = vld [vmem:[#allocation8 + $0xd18] sm:$0xff] }
 0x45d   : > { %v2689_v27 = vld [vmem:[#allocation8 + $0xd38] sm:$0xff]  ;;  %v20988_v6 = vld [vmem:[#allocation152_spill] sm:$0xff]  ;;  %v13035_v9 = vcombine.low %v2684_v29, %v2688_v37 }
 0x45e   : > { %v13037_v33 = vcombine.low %v2685_v41, %v2689_v27  ;;  %v2705_v50 = vld [vmem:[#allocation8 + $0xdb8] sm:$0xff] }
 0x45f   : > { %v20990_v52 = vld [vmem:[#allocation154_spill] sm:$0xff] }
 0x460   : > { %7269 = vmatmul.mubr.bf16.gmra.mrb[112].mxu0 %v20977_v46  ;;  %8041 = vmatmul.mubr.bf16.gmra.mrb[112].mxu1 %v20977_v46  ;;  %v13027_v46 = vcombine.low %v2676_v60, %v2680_v44 }
 0x461   : > { %7278 = vmatprep.mubr.bf16.mxu0 %v20978_v62  ;;  %8050 = vmatprep.mubr.bf16.mxu1 %v20978_v62  ;;  %v13029_v62 = vcombine.low %v2677_v59, %v2681_v25 }
 0x468   : > { %7279 = vmatmul.mubr.bf16.gmra.mrb[116].mxu0 %v20979_v22  ;;  %8051 = vmatmul.mubr.bf16.gmra.mrb[116].mxu1 %v20979_v22  ;;  %v13036_v22 = vcombine.high %v2684_v29, %v2688_v37  ;;  %v2721_v29 = vld [vmem:[#allocation8 + $0xe38] sm:$0xff] }
 0x469   : > { %7288 = vmatprep.mubr.bf16.mxu0 %v20980_v23  ;;  %8060 = vmatprep.mubr.bf16.mxu1 %v20980_v23  ;;  %v13038_v23 = vcombine.high %v2685_v41, %v2689_v27 }
 0x470   : > { %7289 = vmatmul.mubr.bf16.gmra.mrb[120].mxu0 %v20981_v54  ;;  %8061 = vmatmul.mubr.bf16.gmra.mrb[120].mxu1 %v20981_v54  ;;  %v2692_v54 = vld [vmem:[#allocation8 + $0xd50] sm:$0xff] }
 0x471   : > { %7298 = vmatprep.mubr.bf16.mxu0 %v20982_v15  ;;  %8070 = vmatprep.mubr.bf16.mxu1 %v20982_v15  ;;  %v2696_v15 = vld [vmem:[#allocation8 + $0xd70] sm:$0xff] }
 0x472   : > { %v13044_v5 = vcombine.high %v2692_v54, %v2696_v15 }
 0x478   : > { %7299 = vmatmul.mubr.bf16.gmra.mrb[124].mxu0 %v20983_v40  ;;  %8071 = vmatmul.mubr.bf16.gmra.mrb[124].mxu1 %v20983_v40  ;;  %v2693_v40 = vld [vmem:[#allocation8 + $0xd58] sm:$0xff] }
 0x479   : > { %7341 = vmatprep.mubr.bf16.mxu0 %v20984_v17  ;;  %8113 = vmatprep.mubr.bf16.mxu1 %v20984_v17  ;;  %v2697_v17 = vld [vmem:[#allocation8 + $0xd78] sm:$0xff] }
 0x47a   : > { %v13046_v7 = vcombine.high %v2693_v40, %v2697_v17  ;;  %v13045_v0 = vcombine.low %v2693_v40, %v2697_v17 }
 0x480   : > { %7342 = vmatmul.mubr.bf16.vlgmr.msra.gmra.mrb[64].mxu0 %v20985_v4  ;;  %8114 = vmatmul.mubr.bf16.vlgmr.msra.gmra.mrb[64].mxu1 %v20985_v4  ;;  %v13043_v4 = vcombine.low %v2692_v54, %v2696_v15 }
 0x481   : > { %7503 = vmatpush1.bf16.msra.mxu0 %v13003_v1  ;;  %7351 = vmatprep.mubr.bf16.mxu0 %v20986_v56  ;;  %v2700_v1 = vld [vmem:[#allocation8 + $0xd90] sm:$0xff] }
 0x482   : > { %8123 = vmatprep.mubr.bf16.mxu1 %v20986_v56  ;;  %8275 = vmatpush1.bf16.msra.mxu1 %v13005_v2  ;;  %v20989_v2 = vld [vmem:[#allocation153_spill] sm:$0xff] }
 0x483   : > { %7504 = vmatprep.subr.bf16.mxu0 %v13012_v63  ;;  %8276 = vmatprep.subr.bf16.mxu1 %v13014_v42  ;;  %v2704_v63 = vld [vmem:[#allocation8 + $0xdb0] sm:$0xff]  ;;  %v2701_v42 = vld [vmem:[#allocation8 + $0xd98] sm:$0xff] }
 0x484   : > { %v13052_v45 = vcombine.high %v2700_v1, %v2704_v63  ;;  %v13054_v56 = vcombine.high %v2701_v42, %v2705_v50  ;;  %v13051_v60 = vcombine.low %v2700_v1, %v2704_v63  ;;  %v13053_v44 = vcombine.low %v2701_v42, %v2705_v50  ;;  %v2737_v1 = vld [vmem:[#allocation8 + $0xeb8] sm:$0xff] }
 0x485   : > { %7505 = vmatpush1.bf16.msra.mxu0 %v13011_v12  ;;  %v2708_v12 = vld [vmem:[#allocation8 + $0xdd0] sm:$0xff] }
 0x486   : > { %8277 = vmatpush1.bf16.msra.mxu1 %v13013_v49  ;;  %7506 = vmatprep.subr.bf16.mxu0 %v13020_v30  ;;  %v2712_v49 = vld [vmem:[#allocation8 + $0xdf0] sm:$0xff]  ;;  %v2709_v30 = vld [vmem:[#allocation8 + $0xdd8] sm:$0xff] }
 0x487   : > { %8278 = vmatprep.subr.bf16.mxu1 %v13022_v53  ;;  %v2713_v53 = vld [vmem:[#allocation8 + $0xdf8] sm:$0xff]  ;;  %v13060_v59 = vcombine.high %v2708_v12, %v2712_v49  ;;  %v13059_v37 = vcombine.low %v2708_v12, %v2712_v49 }
 0x488   : > { %7352 = vmatmul.mubr.bf16.gmra.mrb[68].mxu0 %v20987_v13  ;;  %8124 = vmatmul.mubr.bf16.gmra.mrb[68].mxu1 %v20987_v13  ;;  %v13062_v25 = vcombine.high %v2709_v30, %v2713_v53  ;;  %v20992_v13 = vld [vmem:[#allocation156_spill] sm:$0xff]  ;;  %v13061_v41 = vcombine.low %v2709_v30, %v2713_v53 }
 0x489   : > { %7361 = vmatprep.mubr.bf16.mxu0 %v20988_v6  ;;  %8133 = vmatprep.mubr.bf16.mxu1 %v20988_v6 }
 0x48a   : > { %7507 = vmatpush1.bf16.msra.mxu0 %v13019_v48  ;;  %8279 = vmatpush1.bf16.msra.mxu1 %v13021_v55  ;;  %v2716_v48 = vld [vmem:[#allocation8 + $0xe10] sm:$0xff]  ;;  %v20991_v55 = vld [vmem:[#allocation155_spill] sm:$0xff] }
 0x48b   : > { %7508 = vmatprep.subr.bf16.mxu0 %v13028_v26  ;;  %8280 = vmatprep.subr.bf16.mxu1 %v13030_v21  ;;  %v2720_v26 = vld [vmem:[#allocation8 + $0xe30] sm:$0xff]  ;;  %v2717_v21 = vld [vmem:[#allocation8 + $0xe18] sm:$0xff] }
 0x48c   : > { %v13068_v27 = vcombine.high %v2716_v48, %v2720_v26  ;;  %v13070_v6 = vcombine.high %v2717_v21, %v2721_v29  ;;  %v13067_v54 = vcombine.low %v2716_v48, %v2720_v26  ;;  %v13069_v15 = vcombine.low %v2717_v21, %v2721_v29  ;;  %v2753_v48 = vld [vmem:[#allocation8 + $0xf38] sm:$0xff] }
 0x48e   : > { %7509 = vmatpush1.bf16.msra.mxu0 %v13027_v46  ;;  %8281 = vmatpush1.bf16.msra.mxu1 %v13029_v62  ;;  %v2724_v46 = vld [vmem:[#allocation8 + $0xe50] sm:$0xff] }
 0x48f   : > { %7510 = vmatprep.subr.bf16.mxu0 %v13036_v22  ;;  %8282 = vmatprep.subr.bf16.mxu1 %v13038_v23  ;;  %v2728_v62 = vld [vmem:[#allocation8 + $0xe70] sm:$0xff]  ;;  %v2725_v22 = vld [vmem:[#allocation8 + $0xe58] sm:$0xff] }
 0x490   : > { %7362 = vmatmul.mubr.bf16.gmra.mrb[72].mxu0 %v20989_v2  ;;  %8134 = vmatmul.mubr.bf16.gmra.mrb[72].mxu1 %v20989_v2  ;;  %v2729_v23 = vld [vmem:[#allocation8 + $0xe78] sm:$0xff]  ;;  %v13076_v40 = vcombine.high %v2724_v46, %v2728_v62  ;;  %v20994_v2 = vld [vmem:[#allocation56_spill] sm:$0xff]  ;;  %v13075_v63 = vcombine.low %v2724_v46, %v2728_v62 }
 0x491   : > { %7371 = vmatprep.mubr.bf16.mxu0 %v20990_v52  ;;  %8143 = vmatprep.mubr.bf16.mxu1 %v20990_v52  ;;  %v13078_v17 = vcombine.high %v2725_v22, %v2729_v23  ;;  %v13077_v42 = vcombine.low %v2725_v22, %v2729_v23 }
 0x492   : > { %7511 = vmatpush1.bf16.msra.mxu0 %v13035_v9  ;;  %8283 = vmatpush1.bf16.msra.mxu1 %v13037_v33  ;;  %v2732_v9 = vld [vmem:[#allocation8 + $0xe90] sm:$0xff]  ;;  %v20993_v33 = vld [vmem:[#allocation62_spill] sm:$0xff] }
 0x493   : > { %7512 = vmatprep.subr.bf16.mxu0 %v13044_v5  ;;  %8284 = vmatprep.subr.bf16.mxu1 %v13046_v7  ;;  %v2736_v5 = vld [vmem:[#allocation8 + $0xeb0] sm:$0xff]  ;;  %v2733_v7 = vld [vmem:[#allocation8 + $0xe98] sm:$0xff] }
 0x494   : > { %v13084_v50 = vcombine.high %v2732_v9, %v2736_v5  ;;  %v13086_v52 = vcombine.high %v2733_v7, %v2737_v1  ;;  %v13083_v12 = vcombine.low %v2732_v9, %v2736_v5  ;;  %v13085_v49 = vcombine.low %v2733_v7, %v2737_v1  ;;  %v2769_v9 = vld [vmem:[#allocation8 + $0xfb8] sm:$0xff] }
 0x496   : > { %7513 = vmatpush1.bf16.msra.mxu0 %v13043_v4  ;;  %8285 = vmatpush1.bf16.msra.mxu1 %v13045_v0  ;;  %v2740_v4 = vld [vmem:[#allocation8 + $0xed0] sm:$0xff] }
 0x497   : > { %7514 = vmatprep.subr.bf16.mxu0 %v13052_v45  ;;  %8286 = vmatprep.subr.bf16.mxu1 %v13054_v56  ;;  %v2744_v0 = vld [vmem:[#allocation8 + $0xef0] sm:$0xff]  ;;  %v2741_v45 = vld [vmem:[#allocation8 + $0xed8] sm:$0xff] }
 0x498   : > { %7372 = vmatmul.mubr.bf16.gmra.mrb[76].mxu0 %v20991_v55  ;;  %8144 = vmatmul.mubr.bf16.gmra.mrb[76].mxu1 %v20991_v55  ;;  %v2745_v56 = vld [vmem:[#allocation8 + $0xef8] sm:$0xff]  ;;  %v13092_v30 = vcombine.high %v2740_v4, %v2744_v0  ;;  %v20996_v55 = vld [vmem:[#allocation64_spill] sm:$0xff]  ;;  %v13091_v26 = vcombine.low %v2740_v4, %v2744_v0 }
 0x499   : > { %7381 = vmatprep.mubr.bf16.mxu0 %v20992_v13  ;;  %8153 = vmatprep.mubr.bf16.mxu1 %v20992_v13  ;;  %v13094_v53 = vcombine.high %v2741_v45, %v2745_v56  ;;  %v13093_v21 = vcombine.low %v2741_v45, %v2745_v56 }
 0x49a   : > { %7515 = vmatpush1.bf16.msra.mxu0 %v13051_v60  ;;  %8287 = vmatpush1.bf16.msra.mxu1 %v13053_v44  ;;  %v2748_v60 = vld [vmem:[#allocation8 + $0xf10] sm:$0xff]  ;;  %v20995_v44 = vld [vmem:[#allocation67_spill] sm:$0xff] }
 0x49b   : > { %7516 = vmatprep.subr.bf16.mxu0 %v13060_v59  ;;  %8288 = vmatprep.subr.bf16.mxu1 %v13062_v25  ;;  %v2752_v59 = vld [vmem:[#allocation8 + $0xf30] sm:$0xff]  ;;  %v2749_v25 = vld [vmem:[#allocation8 + $0xf18] sm:$0xff] }
 0x49c   : > { %v13100_v29 = vcombine.high %v2748_v60, %v2752_v59  ;;  %v13102_v13 = vcombine.high %v2749_v25, %v2753_v48  ;;  %v13099_v46 = vcombine.low %v2748_v60, %v2752_v59  ;;  %v13101_v62 = vcombine.low %v2749_v25, %v2753_v48  ;;  %v21001_v60 = vld [vmem:[#allocation157_spill] sm:$0xff]  ;;  %v21003_v59 = vld [vmem:[#allocation159_spill] sm:$0xff]  ;;  %v21004_v25 = vld [vmem:[#allocation160_spill] sm:$0xff] }
 0x49d   : > { %v21005_v48 = vld [vmem:[#allocation161_spill] sm:$0xff] }
 0x49e   : > { %7517 = vmatpush1.bf16.msra.mxu0 %v13059_v37  ;;  %8289 = vmatpush1.bf16.msra.mxu1 %v13061_v41  ;;  %v2756_v37 = vld [vmem:[#allocation8 + $0xf50] sm:$0xff] }
 0x49f   : > { %7518 = vmatprep.subr.bf16.mxu0 %v13068_v27  ;;  %8290 = vmatprep.subr.bf16.mxu1 %v13070_v6  ;;  %v2760_v41 = vld [vmem:[#allocation8 + $0xf70] sm:$0xff]  ;;  %v2757_v27 = vld [vmem:[#allocation8 + $0xf58] sm:$0xff] }
 0x4a0   : > { %7382 = vmatmul.mubr.bf16.gmra.mrb[80].mxu0 %v20993_v33  ;;  %8154 = vmatmul.mubr.bf16.gmra.mrb[80].mxu1 %v20993_v33  ;;  %v2761_v6 = vld [vmem:[#allocation8 + $0xf78] sm:$0xff]  ;;  %v13108_v22 = vcombine.high %v2756_v37, %v2760_v41  ;;  %v20998_v33 = vld [vmem:[#allocation75_spill] sm:$0xff]  ;;  %v13107_v5 = vcombine.low %v2756_v37, %v2760_v41  ;;  %v21012_v41 = vld [vmem:[#allocation168_spill] sm:$0xff] }
 0x4a1   : > { %7391 = vmatprep.mubr.bf16.mxu0 %v20994_v2  ;;  %8163 = vmatprep.mubr.bf16.mxu1 %v20994_v2  ;;  %v13110_v23 = vcombine.high %v2757_v27, %v2761_v6  ;;  %v13109_v7 = vcombine.low %v2757_v27, %v2761_v6  ;;  %v21011_v37 = vld [vmem:[#allocation167_spill] sm:$0xff]  ;;  %v21014_v6 = vld [vmem:[#allocation25_spill] sm:$0xff] }
 0x4a2   : > { %7519 = vmatpush1.bf16.msra.mxu0 %v13067_v54  ;;  %8291 = vmatpush1.bf16.msra.mxu1 %v13069_v15  ;;  %v2764_v54 = vld [vmem:[#allocation8 + $0xf90] sm:$0xff]  ;;  %v21013_v27 = vld [vmem:[#allocation23_spill] sm:$0xff] }
 0x4a3   : > { %7520 = vmatprep.subr.bf16.mxu0 %v13076_v40  ;;  %8292 = vmatprep.subr.bf16.mxu1 %v13078_v17  ;;  %v20997_v15 = vld [vmem:[#allocation68_spill] sm:$0xff]  ;;  %v2765_v17 = vld [vmem:[#allocation8 + $0xf98] sm:$0xff] }
 0x4a4   : > { %v2768_v40 = vld [vmem:[#allocation8 + $0xfb0] sm:$0xff]  ;;  %v13118_v2 = vcombine.high %v2765_v17, %v2769_v9  ;;  %v13117_v0 = vcombine.low %v2765_v17, %v2769_v9  ;;  %v21023_v9 = vld [vmem:[#allocation38_spill] sm:$0xff] }
 0x4a5   : > { %v13116_v1 = vcombine.high %v2764_v54, %v2768_v40  ;;  %v13115_v4 = vcombine.low %v2764_v54, %v2768_v40  ;;  %v21019_v54 = vld [vmem:[#allocation36_spill] sm:$0xff]  ;;  %v21021_v40 = vld [vmem:[#allocation37_spill] sm:$0xff] }
 0x4a6   : > { %7521 = vmatpush1.bf16.msra.mxu0 %v13075_v63  ;;  %8293 = vmatpush1.bf16.msra.mxu1 %v13077_v42  ;;  %v2772_v63 = vld [vmem:[#allocation8 + $0xfd0] sm:$0xff] }
 0x4a7   : > { %7522 = vmatprep.subr.bf16.mxu0 %v13084_v50  ;;  %8294 = vmatprep.subr.bf16.mxu1 %v13086_v52  ;;  %v2776_v42 = vld [vmem:[#allocation8 + $0xff0] sm:$0xff]  ;;  %v2773_v50 = vld [vmem:[#allocation8 + $0xfd8] sm:$0xff] }
 0x4a8   : > { %7392 = vmatmul.mubr.bf16.gmra.mrb[84].mxu0 %v20995_v44  ;;  %8164 = vmatmul.mubr.bf16.gmra.mrb[84].mxu1 %v20995_v44  ;;  %v2777_v52 = vld [vmem:[#allocation8 + $0xff8] sm:$0xff]  ;;  %v13124_v45 = vcombine.high %v2772_v63, %v2776_v42 }
 0x4a9   : > { %7401 = vmatprep.mubr.bf16.mxu0 %v20996_v55  ;;  %8173 = vmatprep.mubr.bf16.mxu1 %v20996_v55  ;;  %v13126_v56 = vcombine.high %v2773_v50, %v2777_v52  ;;  %v21002_v44 = vld [vmem:[#allocation158_spill] sm:$0xff]  ;;  %v21022_v17 = vld [vmem:[#allocation33_spill] sm:$0xff] }
 0x4aa   : > { %7523 = vmatpush1.bf16.msra.mxu0 %v13083_v12  ;;  %8295 = vmatpush1.bf16.msra.mxu1 %v13085_v49  ;;  %v20999_v12 = vld [vmem:[#allocation73_spill] sm:$0xff]  ;;  %v21006_v55 = vld [vmem:[#allocation162_spill] sm:$0xff] }
 0x4ab   : > { %7524 = vmatprep.subr.bf16.mxu0 %v13092_v30  ;;  %8296 = vmatprep.subr.bf16.mxu1 %v13094_v53  ;;  %v21000_v49 = vld [vmem:[#allocation69_spill] sm:$0xff]  ;;  %v13123_v30 = vcombine.low %v2772_v63, %v2776_v42  ;;  %v13125_v53 = vcombine.low %v2773_v50, %v2777_v52  ;;  %v21031_v50 = vld [vmem:[#allocation46_spill] sm:$0xff] }
 0x4ac   : > { %v21029_v63 = vld [vmem:[#allocation49_spill] sm:$0xff]  ;;  %v21032_v52 = vld [vmem:[#allocation50_spill] sm:$0xff] }
 0x4ad   : > { %v21030_v42 = vld [vmem:[#allocation45_spill] sm:$0xff] }
 0x4ae   : > { %7525 = vmatpush1.bf16.msra.mxu0 %v13091_v26  ;;  %8297 = vmatpush1.bf16.msra.mxu1 %v13093_v21  ;;  %v21007_v26 = vld [vmem:[#allocation163_spill] sm:$0xff]  ;;  %v21008_v21 = vld [vmem:[#allocation164_spill] sm:$0xff] }
 0x4af   : > { %7526 = vmatprep.subr.bf16.mxu0 %v13100_v29  ;;  %8298 = vmatprep.subr.bf16.mxu1 %v13102_v13  ;;  %v21009_v29 = vld [vmem:[#allocation165_spill] sm:$0xff]  ;;  %v21010_v13 = vld [vmem:[#allocation166_spill] sm:$0xff] }
 0x4b0   : > { %7402 = vmatmul.mubr.bf16.gmra.mrb[88].mxu0 %v20997_v15  ;;  %8174 = vmatmul.mubr.bf16.gmra.mrb[88].mxu1 %v20997_v15  ;;  %v21020_v15 = vld [vmem:[#allocation39_spill] sm:$0xff] }
 0x4b1   : > { %7411 = vmatprep.mubr.bf16.mxu0 %v20998_v33  ;;  %8183 = vmatprep.mubr.bf16.mxu1 %v20998_v33  ;;  %v21024_v33 = vld [vmem:[#allocation32_spill] sm:$0xff] }
 0x4b2   : > { %7527 = vmatpush1.bf16.msra.mxu0 %v13099_v46  ;;  %8299 = vmatpush1.bf16.msra.mxu1 %v13101_v62  ;;  %v21015_v46 = vld [vmem:[#allocation22_spill] sm:$0xff]  ;;  %v21016_v62 = vld [vmem:[#allocation24_spill] sm:$0xff] }
 0x4b3   : > { %7528 = vmatprep.subr.bf16.mxu0 %v13108_v22  ;;  %8300 = vmatprep.subr.bf16.mxu1 %v13110_v23  ;;  %v21017_v22 = vld [vmem:[#allocation26_spill] sm:$0xff]  ;;  %v21018_v23 = vld [vmem:[#allocation28_spill] sm:$0xff] }
 0x4b6   : > { %7529 = vmatpush1.bf16.msra.mxu0 %v13107_v5  ;;  %8301 = vmatpush1.bf16.msra.mxu1 %v13109_v7  ;;  %v21025_v5 = vld [vmem:[#allocation43_spill] sm:$0xff]  ;;  %v21026_v7 = vld [vmem:[#allocation40_spill] sm:$0xff] }
 0x4b7   : > { %7530 = vmatprep.subr.bf16.mxu0 %v13116_v1  ;;  %8302 = vmatprep.subr.bf16.mxu1 %v13118_v2  ;;  %v21027_v1 = vld [vmem:[#allocation44_spill] sm:$0xff]  ;;  %v21028_v2 = vld [vmem:[#allocation51_spill] sm:$0xff] }
 0x4b8   : > { %7412 = vmatmul.mubr.bf16.gmra.mrb[92].mxu0 %v20999_v12  ;;  %8184 = vmatmul.mubr.bf16.gmra.mrb[92].mxu1 %v20999_v12  ;;  %v21037_v12 = vld [vmem:[#allocation63_spill] sm:$0xff] }
 0x4b9   : > { %7421 = vmatprep.mubr.bf16.mxu0 %v21000_v49  ;;  %8193 = vmatprep.mubr.bf16.mxu1 %v21000_v49  ;;  %v21038_v49 = vld [vmem:[#allocation61_spill] sm:$0xff] }
 0x4ba   : > { %7531 = vmatpush1.bf16.msra.mxu0 %v13115_v4  ;;  %8303 = vmatpush1.bf16.msra.mxu1 %v13117_v0  ;;  %v21033_v4 = vld [vmem:[#allocation55_spill] sm:$0xff]  ;;  %v21034_v0 = vld [vmem:[#allocation52_spill] sm:$0xff] }
 0x4bb   : > { %7532 = vmatprep.subr.bf16.mxu0 %v13124_v45  ;;  %8304 = vmatprep.subr.bf16.mxu1 %v13126_v56  ;;  %v21035_v45 = vld [vmem:[#allocation57_spill] sm:$0xff]  ;;  %v21036_v56 = vld [vmem:[#allocation58_spill] sm:$0xff] }
 0x4be   : > { %7533 = vmatpush1.bf16.msra.mxu0 %v13123_v30  ;;  %8305 = vmatpush1.bf16.msra.mxu1 %v13125_v53  ;;  %v21039_v30 = vld [vmem:[#allocation85_spill] sm:$0xff] }
 0x4bf   : > { %v21040_v53 = vld [vmem:[#allocation81_spill] sm:$0xff] }
 0x4c0   : > { %7422 = vmatmul.mubr.bf16.gmra.mrb[96].mxu0 %v21001_v60  ;;  %8194 = vmatmul.mubr.bf16.gmra.mrb[96].mxu1 %v21001_v60  ;;  %v21041_v60 = vld [vmem:[#allocation27_spill] sm:$0xff] }
 0x4c1   : > { %7431 = vmatprep.mubr.bf16.mxu0 %v21002_v44  ;;  %8203 = vmatprep.mubr.bf16.mxu1 %v21002_v44  ;;  %v21042_v44 = vld [vmem:[#allocation30_spill] sm:$0xff] }
 0x4c8   : > { %7432 = vmatmul.mubr.bf16.gmra.mrb[100].mxu0 %v21003_v59  ;;  %8204 = vmatmul.mubr.bf16.gmra.mrb[100].mxu1 %v21003_v59  ;;  %v21043_v59 = vld [vmem:[#allocation86_spill] sm:$0xff] }
 0x4c9   : > { %7441 = vmatprep.mubr.bf16.mxu0 %v21004_v25  ;;  %8213 = vmatprep.mubr.bf16.mxu1 %v21004_v25  ;;  %v21044_v25 = vld [vmem:[#allocation80_spill] sm:$0xff] }
 0x4d0   : > { %7442 = vmatmul.mubr.bf16.gmra.mrb[104].mxu0 %v21005_v48  ;;  %8214 = vmatmul.mubr.bf16.gmra.mrb[104].mxu1 %v21005_v48  ;;  %v21045_v48 = vld [vmem:[#allocation91_spill] sm:$0xff] }
 0x4d1   : > { %7451 = vmatprep.mubr.bf16.mxu0 %v21006_v55  ;;  %8223 = vmatprep.mubr.bf16.mxu1 %v21006_v55  ;;  %v21046_v55 = vld [vmem:[#allocation88_spill] sm:$0xff] }
 0x4d8   : > { %7452 = vmatmul.mubr.bf16.gmra.mrb[108].mxu0 %v21007_v26  ;;  %8224 = vmatmul.mubr.bf16.gmra.mrb[108].mxu1 %v21007_v26  ;;  %v21047_v26 = vld [vmem:[#allocation98_spill] sm:$0xff] }
 0x4d9   : > { %7461 = vmatprep.mubr.bf16.mxu0 %v21008_v21  ;;  %8233 = vmatprep.mubr.bf16.mxu1 %v21008_v21  ;;  %v14460_v21 = vld [vmem:[#allocation9] sm:$0xff] }
 0x4e0   : > { %7462 = vmatmul.mubr.bf16.gmra.mrb[112].mxu0 %v21009_v29  ;;  %8234 = vmatmul.mubr.bf16.gmra.mrb[112].mxu1 %v21009_v29  ;;  %v21048_v29 = vld [vmem:[#allocation106_spill] sm:$0xff] }
 0x4e1   : > { %7471 = vmatprep.mubr.bf16.mxu0 %v21010_v13  ;;  %8243 = vmatprep.mubr.bf16.mxu1 %v21010_v13  ;;  %v18477_v13 = vrot.slane %v14460_v21, %v21048_v29 }
 0x4e8   : > { %7472 = vmatmul.mubr.bf16.gmra.mrb[116].mxu0 %v21011_v37  ;;  %8244 = vmatmul.mubr.bf16.gmra.mrb[116].mxu1 %v21011_v37  ;;  %v21049_v37 = vld [vmem:[#allocation101_spill] sm:$0xff] }
 0x4e9   : > { %7481 = vmatprep.mubr.bf16.mxu0 %v21012_v41  ;;  %8253 = vmatprep.mubr.bf16.mxu1 %v21012_v41  ;;  %v18480_v41 = vrot.slane %v14460_v21, %v21049_v37 }
 0x4f0   : > { %7482 = vmatmul.mubr.bf16.gmra.mrb[120].mxu0 %v21013_v27  ;;  %8254 = vmatmul.mubr.bf16.gmra.mrb[120].mxu1 %v21013_v27  ;;  %v21050_v27 = vld [vmem:[#allocation109_spill] sm:$0xff] }
 0x4f1   : > { %7491 = vmatprep.mubr.bf16.mxu0 %v21014_v6  ;;  %8263 = vmatprep.mubr.bf16.mxu1 %v21014_v6  ;;  %v18483_v6 = vrot.slane %v14460_v21, %v21050_v27 }
 0x4f8   : > { %7492 = vmatmul.mubr.bf16.gmra.mrb[124].mxu0 %v21015_v46  ;;  %8264 = vmatmul.mubr.bf16.gmra.mrb[124].mxu1 %v21015_v46 }
 0x4f9   : > { %7534 = vmatprep.mubr.bf16.mxu0 %v21016_v62  ;;  %8306 = vmatprep.mubr.bf16.mxu1 %v21016_v62 }
 0x500   : > { %7535 = vmatmul.mubr.bf16.vlgmr.msra.gmra.mrb[64].mxu0 %v21017_v22  ;;  %8307 = vmatmul.mubr.bf16.vlgmr.msra.gmra.mrb[64].mxu1 %v21017_v22 }
 0x501   : > { %7544 = vmatprep.mubr.bf16.mxu0 %v21018_v23  ;;  %8316 = vmatprep.mubr.bf16.mxu1 %v21018_v23  ;;  %v14461_v23 = vld [vmem:[#allocation11] sm:$0xff] }
 0x508   : > { %7545 = vmatmul.mubr.bf16.gmra.mrb[68].mxu0 %v21019_v54  ;;  %8317 = vmatmul.mubr.bf16.gmra.mrb[68].mxu1 %v21019_v54  ;;  %v18487_v54 = vrot.slane %v14461_v23, %v21048_v29 }
 0x509   : > { %7554 = vmatprep.mubr.bf16.mxu0 %v21020_v15  ;;  %8326 = vmatprep.mubr.bf16.mxu1 %v21020_v15 }
 0x510   : > { %7555 = vmatmul.mubr.bf16.gmra.mrb[72].mxu0 %v21021_v40  ;;  %8327 = vmatmul.mubr.bf16.gmra.mrb[72].mxu1 %v21021_v40  ;;  %v21051_v40 = vld [vmem:[#allocation105_spill] sm:$0xff] }
 0x511   : > { %7564 = vmatprep.mubr.bf16.mxu0 %v21022_v17  ;;  %8336 = vmatprep.mubr.bf16.mxu1 %v21022_v17  ;;  %v18490_v17 = vrot.slane %v14460_v21, %v21051_v40 }
 0x518   : > { %7565 = vmatmul.mubr.bf16.gmra.mrb[76].mxu0 %v21023_v9  ;;  %8337 = vmatmul.mubr.bf16.gmra.mrb[76].mxu1 %v21023_v9 }
 0x519   : > { %7574 = vmatprep.mubr.bf16.mxu0 %v21024_v33  ;;  %8346 = vmatprep.mubr.bf16.mxu1 %v21024_v33 }
 0x520   : > { %7575 = vmatmul.mubr.bf16.gmra.mrb[80].mxu0 %v21025_v5  ;;  %8347 = vmatmul.mubr.bf16.gmra.mrb[80].mxu1 %v21025_v5 }
 0x521   : > { %7584 = vmatprep.mubr.bf16.mxu0 %v21026_v7  ;;  %8356 = vmatprep.mubr.bf16.mxu1 %v21026_v7  ;;  %v18495_v7 = vrot.slane %v14461_v23, %v21050_v27 }
 0x528   : > { %7585 = vmatmul.mubr.bf16.gmra.mrb[84].mxu0 %v21027_v1  ;;  %8357 = vmatmul.mubr.bf16.gmra.mrb[84].mxu1 %v21027_v1 }
 0x529   : > { %7594 = vmatprep.mubr.bf16.mxu0 %v21028_v2  ;;  %8366 = vmatprep.mubr.bf16.mxu1 %v21028_v2 }
 0x530   : > { %7595 = vmatmul.mubr.bf16.gmra.mrb[88].mxu0 %v21029_v63  ;;  %8367 = vmatmul.mubr.bf16.gmra.mrb[88].mxu1 %v21029_v63 }
 0x531   : > { %7604 = vmatprep.mubr.bf16.mxu0 %v21030_v42  ;;  %8376 = vmatprep.mubr.bf16.mxu1 %v21030_v42 }
 0x538   : > { %7605 = vmatmul.mubr.bf16.gmra.mrb[92].mxu0 %v21031_v50  ;;  %8377 = vmatmul.mubr.bf16.gmra.mrb[92].mxu1 %v21031_v50 }
 0x539   : > { %7614 = vmatprep.mubr.bf16.mxu0 %v21032_v52  ;;  %8386 = vmatprep.mubr.bf16.mxu1 %v21032_v52 }
 0x540   : > { %7615 = vmatmul.mubr.bf16.gmra.mrb[96].mxu0 %v21033_v4  ;;  %8387 = vmatmul.mubr.bf16.gmra.mrb[96].mxu1 %v21033_v4 }
 0x541   : > { %7624 = vmatprep.mubr.bf16.mxu0 %v21034_v0  ;;  %8396 = vmatprep.mubr.bf16.mxu1 %v21034_v0 }
 0x548   : > { %7625 = vmatmul.mubr.bf16.gmra.mrb[100].mxu0 %v21035_v45  ;;  %8397 = vmatmul.mubr.bf16.gmra.mrb[100].mxu1 %v21035_v45 }
 0x549   : > { %7634 = vmatprep.mubr.bf16.mxu0 %v21036_v56  ;;  %8406 = vmatprep.mubr.bf16.mxu1 %v21036_v56  ;;  %v18501_v56 = vrot.slane %v14461_v23, %v21049_v37  ;;  %v21055_v37 = vld [vmem:[#allocation48_spill] sm:$0xff] }
 0x550   : > { %7635 = vmatmul.mubr.bf16.gmra.mrb[104].mxu0 %v21037_v12  ;;  %8407 = vmatmul.mubr.bf16.gmra.mrb[104].mxu1 %v21037_v12 }
 0x551   : > { %7644 = vmatprep.mubr.bf16.mxu0 %v21038_v49  ;;  %8416 = vmatprep.mubr.bf16.mxu1 %v21038_v49 }
 0x558   : > { %7645 = vmatmul.mubr.bf16.gmra.mrb[108].mxu0 %v21039_v30  ;;  %8417 = vmatmul.mubr.bf16.gmra.mrb[108].mxu1 %v21039_v30 }
 0x559   : > { %7654 = vmatprep.mubr.bf16.mxu0 %v21040_v53  ;;  %8426 = vmatprep.mubr.bf16.mxu1 %v21040_v53 }
 0x560   : > { %7655 = vmatmul.mubr.bf16.gmra.mrb[112].mxu0 %v21041_v60  ;;  %8427 = vmatmul.mubr.bf16.gmra.mrb[112].mxu1 %v21041_v60 }
 0x561   : > { %7664 = vmatprep.mubr.bf16.mxu0 %v21042_v44  ;;  %8436 = vmatprep.mubr.bf16.mxu1 %v21042_v44 }
 0x568   : > { %7665 = vmatmul.mubr.bf16.gmra.mrb[116].mxu0 %v21043_v59  ;;  %8437 = vmatmul.mubr.bf16.gmra.mrb[116].mxu1 %v21043_v59  ;;  %v21052_v59 = vld [vmem:[#allocation115_spill] sm:$0xff] }
 0x569   : > { %7674 = vmatprep.mubr.bf16.mxu0 %v21044_v25  ;;  %8446 = vmatprep.mubr.bf16.mxu1 %v21044_v25 }
 0x570   : > { %7675 = vmatmul.mubr.bf16.gmra.mrb[120].mxu0 %v21045_v48  ;;  %8447 = vmatmul.mubr.bf16.gmra.mrb[120].mxu1 %v21045_v48 }
 0x571   : > { %7684 = vmatprep.mubr.bf16.mxu0 %v21046_v55  ;;  %8456 = vmatprep.mubr.bf16.mxu1 %v21046_v55 }
 0x578   : > { %7685 = vmatmul.mubr.bf16.gmra.mrb[124].mxu0 %v21047_v26  ;;  %8457 = vmatmul.mubr.bf16.gmra.mrb[124].mxu1 %v21047_v26  ;;  %v18510_v26 = vrot.slane %v14461_v23, %v21051_v40 }
 0x5d3   : > { %v7536_v46 = vpop.f32.mrb[64].mxu0  ;;  %v8308_v62 = vpop.f32.mrb[64].mxu1 }
 0x5d4   : > { %v13293_v22 = vadd.f32 %v7536_v46, %v18477_v13  ;;  %v7538_v15 = vpop.f32.mrb[65].mxu0  ;;  %v8310_v9 = vpop.f32.mrb[65].mxu1  ;;  %v13357_v33 = vadd.f32 %v8308_v62, %v18480_v41 }
 0x5d5   : > { %v13294_v5 = vadd.f32 %v7538_v15, %v18483_v6  ;;  %v7540_v1 = vpop.f32.mrb[66].mxu0  ;;  %v8312_v2 = vpop.f32.mrb[66].mxu1  ;;  %v13358_v12 = vadd.f32 %v8310_v9, %v18490_v17  ;;  %v21053_v9 = vld [vmem:[#allocation34_spill] sm:$0xff] }
 0x5d6   : > { %v8471_v63 = vmax.f32 %v13293_v22, 0.0  ;;  %v13295_v42 = vadd.f32 %v7540_v1, %v18477_v13  ;;  %v7542_v50 = vpop.f32.mrb[67].mxu0  ;;  %v8314_v52 = vpop.f32.mrb[67].mxu1  ;;  %v8473_v30 = vmax.f32 %v13357_v33, 0.0  ;;  %v13359_v60 = vadd.f32 %v8312_v2, %v18480_v41 }
 0x5d7   : > { %v8472_v4 = vmax.f32 %v13294_v5, 0.0  ;;  %v13296_v0 = vadd.f32 %v7542_v50, %v18483_v6  ;;  %v13360_v55 = vadd.f32 %v8314_v52, %v18490_v17  ;;  %v8474_v15 = vmax.f32 %v13358_v12, 0.0 }
 0x5d8   : > { %v8769_v45 = vmul.f32 %v18487_v54, %v8471_v63  ;;  %v8479_v49 = vmax.f32 %v13295_v42, 0.0  ;;  %v8771_v63 = vmul.f32 %v18501_v56, %v8473_v30  ;;  %v8481_v42 = vmax.f32 %v13359_v60, 0.0 }
 0x5d9   : > { %v8770_v53 = vmul.f32 %v18495_v7, %v8472_v4  ;;  %v8480_v44 = vmax.f32 %v13296_v0, 0.0  ;;  %v8482_v0 = vmax.f32 %v13360_v55, 0.0  ;;  %v8772_v30 = vmul.f32 %v18510_v26, %v8474_v15 }
 0x5da   : > { %v9024_v25 = vadd.f32 %v21052_v59, %v8769_v45  ;;  %v8777_v48 = vmul.f32 %v18487_v54, %v8479_v49  ;;  %v8779_v55 = vmul.f32 %v18501_v56, %v8481_v42 }
 0x5db   : > { %v8778_v21 = vmul.f32 %v18495_v7, %v8480_v44  ;;  %v7546_v46 = vpop.f32.mrb[68].mxu0  ;;  %v8318_v62 = vpop.f32.mrb[68].mxu1 }
 0x5dc   : > { %v9025_v22 = vadd.f32 %v9024_v25, %v8770_v53  ;;  %v9033_v33 = vadd.f32 %v21053_v9, %v8777_v48  ;;  %v13297_v5 = vadd.f32 %v7546_v46, %v18477_v13  ;;  %v7548_v1 = vpop.f32.mrb[69].mxu0  ;;  %v8320_v2 = vpop.f32.mrb[69].mxu1  ;;  %v13361_v44 = vadd.f32 %v8318_v62, %v18480_v41 }
 0x5dd   : > { %v13298_v50 = vadd.f32 %v7548_v1, %v18483_v6  ;;  %v7550_v52 = vpop.f32.mrb[70].mxu0  ;;  %v8322_v23 = vpop.f32.mrb[70].mxu1  ;;  %v13362_v25 = vadd.f32 %v8320_v2, %v18490_v17  ;;  %v8780_v62 = vmul.f32 %v18510_v26, %v8482_v0  ;;  %v21054_v1 = vld [vmem:[#allocation41_spill] sm:$0xff] }
 0x5de   : > { %v9034_v4 = vadd.f32 %v9033_v33, %v8778_v21  ;;  %v8487_v45 = vmax.f32 %v13297_v5, 0.0  ;;  %v13299_v49 = vadd.f32 %v7550_v52, %v18477_v13  ;;  %v7552_v53 = vpop.f32.mrb[71].mxu0  ;;  %v8324_v12 = vpop.f32.mrb[71].mxu1  ;;  %v13363_v21 = vadd.f32 %v8322_v23, %v18480_v41 }
 0x5df   : > { %v8488_v59 = vmax.f32 %v13298_v50, 0.0  ;;  %v13300_v48 = vadd.f32 %v7552_v53, %v18483_v6  ;;  %v13364_v5 = vadd.f32 %v8324_v12, %v18490_v17  ;;  %v9026_v52 = vadd.f32 %v9025_v22, %v8771_v63 }
 0x5e0   : > { %v8785_v60 = vmul.f32 %v18487_v54, %v8487_v45  ;;  %v8495_v46 = vmax.f32 %v13299_v49, 0.0  ;;  %v8489_v15 = vmax.f32 %v13361_v44, 0.0  ;;  %v8490_v53 = vmax.f32 %v13362_v25, 0.0 }
 0x5e1   : > { %v8786_v9 = vmul.f32 %v18495_v7, %v8488_v59  ;;  %v8496_v33 = vmax.f32 %v13300_v48, 0.0  ;;  %v9035_v40 = vadd.f32 %v9034_v4, %v8779_v55  ;;  %v8497_v48 = vmax.f32 %v13363_v21, 0.0 }
 0x5e2   : > { %v9042_v2 = vadd.f32 %v21054_v1, %v8785_v60  ;;  %v8793_v50 = vmul.f32 %v18487_v54, %v8495_v46  ;;  %v9027_v27 = vadd.f32 %v9026_v52, %v8772_v30  ;;  %v8498_v0 = vmax.f32 %v13364_v5, 0.0 }
 0x5e3   : > { %v8794_v45 = vmul.f32 %v18495_v7, %v8496_v33  ;;  %v7556_v49 = vpop.f32.mrb[72].mxu0  ;;  %v8328_v23 = vpop.f32.mrb[72].mxu1  ;;  %v9036_v55 = vadd.f32 %v9035_v40, %v8780_v62 }
 0x5e4   : > { %v9043_v42 = vadd.f32 %v9042_v2, %v8786_v9  ;;  %v9051_v59 = vadd.f32 %v21055_v37, %v8793_v50  ;;  %v7558_v12 = vpop.f32.mrb[73].mxu0  ;;  %v8330_v29 = vpop.f32.mrb[73].mxu1  ;;  %v13301_v60 = vadd.f32 %v7556_v49, %v18477_v13  ;;  %v13365_v46 = vadd.f32 %v8328_v23, %v18480_v41  ;;  %9028 = vadd.xlane.f32.xlu1 %v9027_v27 }
 0x5e5   : > { %v13302_v22 = vadd.f32 %v7558_v12, %v18483_v6  ;;  %v7560_v63 = vpop.f32.mrb[74].mxu0  ;;  %v8332_v44 = vpop.f32.mrb[74].mxu1  ;;  %v13366_v4 = vadd.f32 %v8330_v29, %v18490_v17  ;;  %v8787_v9 = vmul.f32 %v18501_v56, %v8489_v15  ;;  %v8788_v2 = vmul.f32 %v18510_v26, %v8490_v53  ;;  %9037 = vadd.xlane.f32.xlu0 %v9036_v55  ;;  %v21056_v53 = vld [vmem:[#allocation53_spill] sm:$0xff] }
 0x5e6   : > { %v9052_v25 = vadd.f32 %v9051_v59, %v8794_v45  ;;  %v13303_v37 = vadd.f32 %v7560_v63, %v18477_v13  ;;  %v7562_v21 = vpop.f32.mrb[75].mxu0  ;;  %v8334_v30 = vpop.f32.mrb[75].mxu1  ;;  %v8503_v33 = vmax.f32 %v13301_v60, 0.0  ;;  %v13367_v1 = vadd.f32 %v8332_v44, %v18480_v41 }
 0x5e7   : > { %v8504_v5 = vmax.f32 %v13302_v22, 0.0  ;;  %v13304_v52 = vadd.f32 %v7562_v21, %v18483_v6  ;;  %v13368_v27 = vadd.f32 %v8334_v30, %v18490_v17  ;;  %v8795_v29 = vmul.f32 %v18501_v56, %v8497_v48 }
 0x5e8   : > { %v8511_v50 = vmax.f32 %v13303_v37, 0.0  ;;  %v8796_v40 = vmul.f32 %v18510_v26, %v8498_v0  ;;  %v8801_v62 = vmul.f32 %v18487_v54, %v8503_v33  ;;  %v8505_v45 = vmax.f32 %v13365_v46, 0.0  ;;  %v21057_v37 = vld [vmem:[#allocation60_spill] sm:$0xff] }
 0x5e9   : > { %v8802_v15 = vmul.f32 %v18495_v7, %v8504_v5  ;;  %v8506_v49 = vmax.f32 %v13366_v4, 0.0  ;;  %v8512_v59 = vmax.f32 %v13304_v52, 0.0  ;;  %v8513_v60 = vmax.f32 %v13367_v1, 0.0 }
 0x5ea   : > { %v8809_v23 = vmul.f32 %v18487_v54, %v8511_v50  ;;  %v9060_v12 = vadd.f32 %v21056_v53, %v8801_v62  ;;  %v9044_v22 = vadd.f32 %v9043_v42, %v8787_v9  ;;  %v9053_v55 = vadd.f32 %v9052_v25, %v8795_v29 }
 0x5eb   : > { %v7566_v63 = vpop.f32.mrb[76].mxu0  ;;  %v8338_v44 = vpop.f32.mrb[76].mxu1  ;;  %v8810_v0 = vmul.f32 %v18495_v7, %v8512_v59  ;;  %v8514_v21 = vmax.f32 %v13368_v27, 0.0  ;;  %v8803_v27 = vmul.f32 %v18501_v56, %v8505_v45 }
 0x5ec   : > { %v9069_v48 = vadd.f32 %v21057_v37, %v8809_v23  ;;  %v13305_v30 = vadd.f32 %v7566_v63, %v18477_v13  ;;  %v7568_v33 = vpop.f32.mrb[77].mxu0  ;;  %v8340_v46 = vpop.f32.mrb[77].mxu1  ;;  %v9061_v4 = vadd.f32 %v9060_v12, %v8802_v15  ;;  %v9045_v5 = vadd.f32 %v9044_v22, %v8788_v2 }
 0x5ed   : > { %v13369_v50 = vadd.f32 %v8338_v44, %v18480_v41  ;;  %v13306_v52 = vadd.f32 %v7568_v33, %v18483_v6  ;;  %v7570_v1 = vpop.f32.mrb[78].mxu0  ;;  %v8342_v42 = vpop.f32.mrb[78].mxu1  ;;  %v13370_v25 = vadd.f32 %v8340_v46, %v18490_v17  ;;  %v9054_v29 = vadd.f32 %v9053_v55, %v8796_v40 }
 0x5ee   : > { %v9070_v9 = vadd.f32 %v9069_v48, %v8810_v0  ;;  %v8519_v62 = vmax.f32 %v13305_v30, 0.0  ;;  %v7572_v23 = vpop.f32.mrb[79].mxu0  ;;  %v8344_v59 = vpop.f32.mrb[79].mxu1  ;;  %9046 = vadd.xlane.f32.xlu0 %v9045_v5  ;;  %v13307_v2 = vadd.f32 %v7570_v1, %v18477_v13  ;;  %v8804_v15 = vmul.f32 %v18510_v26, %v8506_v49  ;;  %v21058_v0 = vld [vmem:[#allocation65_spill] sm:$0xff] }
 0x5ef   : > { %v8521_v53 = vmax.f32 %v13369_v50, 0.0  ;;  %v8520_v63 = vmax.f32 %v13306_v52, 0.0  ;;  %9055 = vadd.xlane.f32.xlu1 %v9054_v29  ;;  %v13371_v22 = vadd.f32 %v8342_v42, %v18480_v41  ;;  %v13308_v44 = vadd.f32 %v7572_v23, %v18483_v6 }
 0x5f0   : > { %v8817_v12 = vmul.f32 %v18487_v54, %v8519_v62  ;;  %v8811_v40 = vmul.f32 %v18501_v56, %v8513_v60  ;;  %v8527_v37 = vmax.f32 %v13307_v2, 0.0  ;;  %v13372_v45 = vadd.f32 %v8344_v59, %v18490_v17 }
 0x5f1   : > { %v8818_v55 = vmul.f32 %v18495_v7, %v8520_v63  ;;  %v8812_v48 = vmul.f32 %v18510_v26, %v8514_v21  ;;  %v8522_v33 = vmax.f32 %v13370_v25, 0.0  ;;  %v8528_v49 = vmax.f32 %v13308_v44, 0.0  ;;  %v21059_v63 = vld [vmem:[#allocation72_spill] sm:$0xff] }
 0x5f2   : > { %v9078_v30 = vadd.f32 %v21058_v0, %v8817_v12  ;;  %v8819_v46 = vmul.f32 %v18501_v56, %v8521_v53  ;;  %v8825_v5 = vmul.f32 %v18487_v54, %v8527_v37  ;;  %v9062_v50 = vadd.f32 %v9061_v4, %v8803_v27 }
 0x5f3   : > { %v7576_v52 = vpop.f32.mrb[80].mxu0  ;;  %v8348_v1 = vpop.f32.mrb[80].mxu1  ;;  %v9071_v42 = vadd.f32 %v9070_v9, %v8811_v40  ;;  %v8529_v62 = vmax.f32 %v13371_v22, 0.0  ;;  %v8826_v29 = vmul.f32 %v18495_v7, %v8528_v49  ;;  %v8530_v25 = vmax.f32 %v13372_v45, 0.0 }
 0x5f4   : > { %v9079_v60 = vadd.f32 %v9078_v30, %v8818_v55  ;;  %v13309_v23 = vadd.f32 %v7576_v52, %v18477_v13  ;;  %v7578_v59 = vpop.f32.mrb[81].mxu0  ;;  %v8350_v21 = vpop.f32.mrb[81].mxu1  ;;  %v9087_v2 = vadd.f32 %v21059_v63, %v8825_v5  ;;  %v9063_v12 = vadd.f32 %v9062_v50, %v8804_v15 }
 0x5f5   : > { %v13310_v53 = vadd.f32 %v7578_v59, %v18483_v6  ;;  %v7580_v44 = vpop.f32.mrb[82].mxu0  ;;  %v8352_v37 = vpop.f32.mrb[82].mxu1  ;;  %v13373_v27 = vadd.f32 %v8348_v1, %v18480_v41  ;;  %v9072_v9 = vadd.f32 %v9071_v42, %v8812_v48  ;;  %v13374_v49 = vadd.f32 %v8350_v21, %v18490_v17 }
 0x5f6   : > { %v8535_v4 = vmax.f32 %v13309_v23, 0.0  ;;  %v13311_v22 = vadd.f32 %v7580_v44, %v18477_v13  ;;  %v7582_v40 = vpop.f32.mrb[83].mxu0  ;;  %v8354_v55 = vpop.f32.mrb[83].mxu1  ;;  %v9088_v0 = vadd.f32 %v9087_v2, %v8826_v29  ;;  %9064 = vadd.xlane.f32.xlu0 %v9063_v12  ;;  %v13375_v45 = vadd.f32 %v8352_v37, %v18480_v41 }
 0x5f7   : > { %v8536_v30 = vmax.f32 %v13310_v53, 0.0  ;;  %v8820_v15 = vmul.f32 %v18510_v26, %v8522_v33  ;;  %9073 = vadd.xlane.f32.xlu1 %v9072_v9  ;;  %v13312_v52 = vadd.f32 %v7582_v40, %v18483_v6  ;;  %v8827_v48 = vmul.f32 %v18501_v56, %v8529_v62 }
 0x5f8   : > { %v8833_v5 = vmul.f32 %v18487_v54, %v8535_v4  ;;  %v8543_v50 = vmax.f32 %v13311_v22, 0.0  ;;  %v8828_v1 = vmul.f32 %v18510_v26, %v8530_v25  ;;  %v13376_v29 = vadd.f32 %v8354_v55, %v18490_v17 }
 0x5f9   : > { %v8834_v42 = vmul.f32 %v18495_v7, %v8536_v30  ;;  %v8537_v59 = vmax.f32 %v13373_v27, 0.0  ;;  %v8544_v33 = vmax.f32 %v13312_v52, 0.0  ;;  %v8538_v63 = vmax.f32 %v13374_v49, 0.0 }
 0x5fa   : > { %v9096_v23 = vadd.f32 %v17816_v28, %v8833_v5  ;;  %v8841_v21 = vmul.f32 %v18487_v54, %v8543_v50  ;;  %v8545_v2 = vmax.f32 %v13375_v45, 0.0  ;;  %v9080_v12 = vadd.f32 %v9079_v60, %v8819_v46 }
 0x5fb   : > { %v7586_v53 = vpop.f32.mrb[84].mxu0  ;;  %v8358_v44 = vpop.f32.mrb[84].mxu1  ;;  %v9089_v37 = vadd.f32 %v9088_v0, %v8827_v48  ;;  %v8842_v25 = vmul.f32 %v18495_v7, %v8544_v33  ;;  %v8546_v28 = vmax.f32 %v13376_v29, 0.0  ;;  %v8835_v52 = vmul.f32 %v18501_v56, %v8537_v59 }
 0x5fc   : > { %v9097_v4 = vadd.f32 %v9096_v23, %v8834_v42  ;;  %v9105_v62 = vadd.f32 %v17838_v35, %v8841_v21  ;;  %v13313_v9 = vadd.f32 %v7586_v53, %v18477_v13  ;;  %v7588_v22 = vpop.f32.mrb[85].mxu0  ;;  %v8360_v40 = vpop.f32.mrb[85].mxu1  ;;  %v9081_v27 = vadd.f32 %v9080_v12, %v8820_v15 }
 0x5fd   : > { %v13377_v55 = vadd.f32 %v8358_v44, %v18480_v41  ;;  %v13314_v30 = vadd.f32 %v7588_v22, %v18483_v6  ;;  %v7590_v49 = vpop.f32.mrb[86].mxu0  ;;  %v8362_v46 = vpop.f32.mrb[86].mxu1  ;;  %v13378_v45 = vadd.f32 %v8360_v40, %v18490_v17  ;;  %v8836_v29 = vmul.f32 %v18510_v26, %v8538_v63 }
 0x5fe   : > { %v18589_v60 = vadd.f32 %v9105_v62, %v8842_v25  ;;  %v8551_v0 = vmax.f32 %v13313_v9, 0.0  ;;  %v13315_v35 = vadd.f32 %v7590_v49, %v18477_v13  ;;  %v7592_v5 = vpop.f32.mrb[87].mxu0  ;;  %v8364_v50 = vpop.f32.mrb[87].mxu1  ;;  %9082 = vadd.xlane.f32.xlu0 %v9081_v27  ;;  %v13379_v15 = vadd.f32 %v8362_v46, %v18480_v41 }
 0x5ff   : > { %v8552_v48 = vmax.f32 %v13314_v30, 0.0  ;;  %v13316_v42 = vadd.f32 %v7592_v5, %v18483_v6  ;;  %v13380_v33 = vadd.f32 %v8364_v50, %v18490_v17  ;;  %v8843_v12 = vmul.f32 %v18501_v56, %v8545_v2 }
 0x600   : > { %v8849_v23 = vmul.f32 %v18487_v54, %v8551_v0  ;;  %v8559_v21 = vmax.f32 %v13315_v35, 0.0  ;;  %v18601_v53 = vmul.f32 %v18510_v26, %v8546_v28  ;;  %v8553_v25 = vmax.f32 %v13377_v55, 0.0 }
 0x601   : > { %v8850_v59 = vmul.f32 %v18495_v7, %v8552_v48  ;;  %v8560_v44 = vmax.f32 %v13316_v42, 0.0  ;;  %v8554_v9 = vmax.f32 %v13378_v45, 0.0  ;;  %v8561_v63 = vmax.f32 %v13379_v15, 0.0 }
 0x602   : > { %v9114_v62 = vadd.f32 %v17866_v47, %v8849_v23  ;;  %v8857_v22 = vmul.f32 %v18487_v54, %v8559_v21  ;;  %v18607_v49 = vadd.f32 %v9089_v37, %v8828_v1  ;;  %v9098_v2 = vadd.f32 %v9097_v4, %v8835_v52 }
 0x603   : > { %v8858_v40 = vmul.f32 %v18495_v7, %v8560_v44  ;;  %v7596_v27 = vpop.f32.mrb[88].mxu0  ;;  %v8368_v30 = vpop.f32.mrb[88].mxu1  ;;  %v8562_v0 = vmax.f32 %v13380_v33, 0.0  ;;  %v8851_v21 = vmul.f32 %v18501_v56, %v8553_v25  ;;  %v8852_v33 = vmul.f32 %v18510_v26, %v8554_v9 }
 0x604   : > { %v9115_v46 = vadd.f32 %v9114_v62, %v8850_v59  ;;  %v9123_v28 = vadd.f32 %v17891_v3, %v8857_v22  ;;  %v13317_v35 = vadd.f32 %v7596_v27, %v18477_v13  ;;  %v7598_v5 = vpop.f32.mrb[89].mxu0  ;;  %v8370_v47 = vpop.f32.mrb[89].mxu1  ;;  %v13381_v55 = vadd.f32 %v8368_v30, %v18480_v41 }
 0x605   : > { %v13318_v45 = vadd.f32 %v7598_v5, %v18483_v6  ;;  %v13382_v50 = vadd.f32 %v8370_v47, %v18490_v17  ;;  %v7600_v48 = vpop.f32.mrb[90].mxu0  ;;  %v8372_v15 = vpop.f32.mrb[90].mxu1  ;;  %v18614_v42 = vadd.f32 %v9098_v2, %v8836_v29  ;;  %v8859_v62 = vmul.f32 %v18501_v56, %v8561_v63 }
 0x606   : > { %v9124_v1 = vadd.f32 %v9123_v28, %v8858_v40  ;;  %v8567_v37 = vmax.f32 %v13317_v35, 0.0  ;;  %v13319_v4 = vadd.f32 %v7600_v48, %v18477_v13  ;;  %v13383_v3 = vadd.f32 %v8372_v15, %v18480_v41  ;;  %v7602_v52 = vpop.f32.mrb[91].mxu0  ;;  %v8374_v23 = vpop.f32.mrb[91].mxu1 }
 0x607   : > { %v8568_v59 = vmax.f32 %v13318_v45, 0.0  ;;  %v13320_v44 = vadd.f32 %v7602_v52, %v18483_v6  ;;  %v13384_v40 = vadd.f32 %v8374_v23, %v18490_v17  ;;  %v8860_v27 = vmul.f32 %v18510_v26, %v8562_v0 }
 0x608   : > { %v8865_v29 = vmul.f32 %v18487_v54, %v8567_v37  ;;  %v8575_v22 = vmax.f32 %v13319_v4, 0.0  ;;  %v8569_v30 = vmax.f32 %v13381_v55, 0.0  ;;  %v8570_v35 = vmax.f32 %v13382_v50, 0.0 }
 0x609   : > { %v8866_v2 = vmul.f32 %v18495_v7, %v8568_v59  ;;  %v8576_v28 = vmax.f32 %v13320_v44, 0.0  ;;  %v8577_v5 = vmax.f32 %v13383_v3, 0.0  ;;  %v9107_v48 = vadd.f32 %v18589_v60, %v8843_v12 }
 0x60a   : > { %v9132_v25 = vadd.f32 %v17919_v57, %v8865_v29  ;;  %v8873_v9 = vmul.f32 %v18487_v54, %v8575_v22  ;;  %v9116_v15 = vadd.f32 %v9115_v46, %v8851_v21  ;;  %v9125_v37 = vadd.f32 %v9124_v1, %v8859_v62 }
 0x60b   : > { %v8874_v47 = vmul.f32 %v18495_v7, %v8576_v28  ;;  %v7606_v63 = vpop.f32.mrb[92].mxu0  ;;  %v8378_v45 = vpop.f32.mrb[92].mxu1  ;;  %v8578_v55 = vmax.f32 %v13384_v40, 0.0  ;;  %v18636_v60 = vadd.f32 %v9107_v48, %v18601_v53  ;;  %v8867_v22 = vmul.f32 %v18501_v56, %v8569_v30 }
 0x60c   : > { %v9133_v4 = vadd.f32 %v9132_v25, %v8866_v2  ;;  %v9141_v0 = vadd.f32 %v17944_v38, %v8873_v9  ;;  %v13321_v52 = vadd.f32 %v7606_v63, %v18477_v13  ;;  %v7608_v23 = vpop.f32.mrb[93].mxu0  ;;  %v8380_v57 = vpop.f32.mrb[93].mxu1  ;;  %v13385_v50 = vadd.f32 %v8378_v45, %v18480_v41 }
 0x60d   : > { %v13322_v3 = vadd.f32 %v7608_v23, %v18483_v6  ;;  %v13386_v59 = vadd.f32 %v8380_v57, %v18490_v17  ;;  %v7610_v44 = vpop.f32.mrb[94].mxu0  ;;  %v8382_v29 = vpop.f32.mrb[94].mxu1  ;;  %v8868_v40 = vmul.f32 %v18510_v26, %v8570_v35  ;;  %v8875_v25 = vmul.f32 %v18501_v56, %v8577_v5 }
 0x60e   : > { %v18638_v12 = vadd.f32 %v9141_v0, %v8874_v47  ;;  %v8583_v46 = vmax.f32 %v13321_v52, 0.0  ;;  %v13323_v38 = vadd.f32 %v7610_v44, %v18477_v13  ;;  %v13387_v1 = vadd.f32 %v8382_v29, %v18480_v41  ;;  %v7612_v21 = vpop.f32.mrb[95].mxu0  ;;  %v8384_v62 = vpop.f32.mrb[95].mxu1 }
 0x60f   : > { %v8584_v2 = vmax.f32 %v13322_v3, 0.0  ;;  %v13324_v28 = vadd.f32 %v7612_v21, %v18483_v6  ;;  %v13388_v47 = vadd.f32 %v8384_v62, %v18490_v17  ;;  %v18649_v63 = vmul.f32 %v18510_v26, %v8578_v55 }
 0x610   : > { %v8881_v53 = vmul.f32 %v18487_v54, %v8583_v46  ;;  %v8591_v9 = vmax.f32 %v13323_v38, 0.0  ;;  %v8585_v45 = vmax.f32 %v13385_v50, 0.0  ;;  %v8586_v35 = vmax.f32 %v13386_v59, 0.0 }
 0x611   : > { %v8882_v48 = vmul.f32 %v18495_v7, %v8584_v2  ;;  %v8592_v0 = vmax.f32 %v13324_v28, 0.0  ;;  %v8593_v23 = vmax.f32 %v13387_v1, 0.0  ;;  %v18655_v44 = vadd.f32 %v9116_v15, %v8852_v33 }
 0x612   : > { %v9150_v30 = vadd.f32 %v17969_v20, %v8881_v53  ;;  %v8889_v52 = vmul.f32 %v18487_v54, %v8591_v9  ;;  %v18657_v29 = vadd.f32 %v9125_v37, %v8860_v27  ;;  %v9134_v55 = vadd.f32 %v9133_v4, %v8867_v22 }
 0x613   : > { %v8890_v5 = vmul.f32 %v18495_v7, %v8592_v0  ;;  %v7616_v57 = vpop.f32.mrb[96].mxu0  ;;  %v8388_v3 = vpop.f32.mrb[96].mxu1  ;;  %v8594_v38 = vmax.f32 %v13388_v47, 0.0  ;;  %v8883_v9 = vmul.f32 %v18501_v56, %v8585_v45  ;;  %v8884_v47 = vmul.f32 %v18510_v26, %v8586_v35 }
 0x614   : > { %v9151_v46 = vadd.f32 %v9150_v30, %v8882_v48  ;;  %v9159_v50 = vadd.f32 %v17997_v39, %v8889_v52  ;;  %v13325_v21 = vadd.f32 %v7616_v57, %v18477_v13  ;;  %v7618_v20 = vpop.f32.mrb[97].mxu0  ;;  %v8390_v59 = vpop.f32.mrb[97].mxu1  ;;  %v13389_v62 = vadd.f32 %v8388_v3, %v18480_v41 }
 0x615   : > { %v13326_v1 = vadd.f32 %v7618_v20, %v18483_v6  ;;  %v13390_v2 = vadd.f32 %v8390_v59, %v18490_v17  ;;  %v7620_v28 = vpop.f32.mrb[98].mxu0  ;;  %v8392_v33 = vpop.f32.mrb[98].mxu1  ;;  %v18664_v15 = vadd.f32 %v9134_v55, %v8868_v40  ;;  %v8891_v30 = vmul.f32 %v18501_v56, %v8593_v23 }
 0x616   : > { %v9160_v27 = vadd.f32 %v9159_v50, %v8890_v5  ;;  %v8599_v37 = vmax.f32 %v13325_v21, 0.0  ;;  %v13327_v4 = vadd.f32 %v7620_v28, %v18477_v13  ;;  %v13391_v39 = vadd.f32 %v8392_v33, %v18480_v41  ;;  %v7622_v22 = vpop.f32.mrb[99].mxu0  ;;  %v8394_v53 = vpop.f32.mrb[99].mxu1 }
 0x617   : > { %v8600_v48 = vmax.f32 %v13326_v1, 0.0  ;;  %v13328_v0 = vadd.f32 %v7622_v22, %v18483_v6  ;;  %v13392_v5 = vadd.f32 %v8394_v53, %v18490_v17  ;;  %v18675_v57 = vmul.f32 %v18510_v26, %v8594_v38 }
 0x618   : > { %v8897_v40 = vmul.f32 %v18487_v54, %v8599_v37  ;;  %v8607_v52 = vmax.f32 %v13327_v4, 0.0  ;;  %v8601_v3 = vmax.f32 %v13389_v62, 0.0  ;;  %v8602_v35 = vmax.f32 %v13390_v2, 0.0 }
 0x619   : > { %v8898_v55 = vmul.f32 %v18495_v7, %v8600_v48  ;;  %v8608_v50 = vmax.f32 %v13328_v0, 0.0  ;;  %v8609_v20 = vmax.f32 %v13391_v39, 0.0  ;;  %v9143_v28 = vadd.f32 %v18638_v12, %v8875_v25 }
 0x61a   : > { %v9168_v45 = vadd.f32 %v18025_v10, %v8897_v40  ;;  %v8905_v21 = vmul.f32 %v18487_v54, %v8607_v52  ;;  %v9152_v33 = vadd.f32 %v9151_v46, %v8883_v9  ;;  %v18682_v37 = vadd.f32 %v9160_v27, %v8891_v30 }
 0x61b   : > { %v8906_v23 = vmul.f32 %v18495_v7, %v8608_v50  ;;  %v7626_v59 = vpop.f32.mrb[100].mxu0  ;;  %v8398_v1 = vpop.f32.mrb[100].mxu1  ;;  %v8610_v4 = vmax.f32 %v13392_v5, 0.0  ;;  %v18690_v12 = vadd.f32 %v9143_v28, %v18649_v63  ;;  %v8899_v52 = vmul.f32 %v18501_v56, %v8601_v3 }
 0x61c   : > { %v9169_v38 = vadd.f32 %v9168_v45, %v8898_v55  ;;  %v9177_v62 = vadd.f32 %v18050_v19, %v8905_v21  ;;  %v13329_v22 = vadd.f32 %v7626_v59, %v18477_v13  ;;  %v7628_v10 = vpop.f32.mrb[101].mxu0  ;;  %v8400_v2 = vpop.f32.mrb[101].mxu1  ;;  %v13393_v53 = vadd.f32 %v8398_v1, %v18480_v41 }
 0x61d   : > { %v13330_v39 = vadd.f32 %v7628_v10, %v18483_v6  ;;  %v13394_v48 = vadd.f32 %v8400_v2, %v18490_v17  ;;  %v7630_v0 = vpop.f32.mrb[102].mxu0  ;;  %v8402_v40 = vpop.f32.mrb[102].mxu1  ;;  %v8900_v5 = vmul.f32 %v18510_v26, %v8602_v35  ;;  %v8907_v45 = vmul.f32 %v18501_v56, %v8609_v20 }
 0x61e   : > { %v9178_v25 = vadd.f32 %v9177_v62, %v8906_v23  ;;  %v8615_v46 = vmax.f32 %v13329_v22, 0.0  ;;  %v13331_v19 = vadd.f32 %v7630_v0, %v18477_v13  ;;  %v13395_v27 = vadd.f32 %v8402_v40, %v18480_v41  ;;  %v7632_v9 = vpop.f32.mrb[103].mxu0  ;;  %v8404_v30 = vpop.f32.mrb[103].mxu1 }
 0x61f   : > { %v8616_v55 = vmax.f32 %v13330_v39, 0.0  ;;  %v13332_v50 = vadd.f32 %v7632_v9, %v18483_v6  ;;  %v13396_v23 = vadd.f32 %v8404_v30, %v18490_v17  ;;  %v8908_v59 = vmul.f32 %v18510_v26, %v8610_v4 }
 0x620   : > { %v8913_v63 = vmul.f32 %v18487_v54, %v8615_v46  ;;  %v8623_v21 = vmax.f32 %v13331_v19, 0.0  ;;  %v8617_v1 = vmax.f32 %v13393_v53, 0.0  ;;  %v8618_v22 = vmax.f32 %v13394_v48, 0.0 }
 0x621   : > { %v8914_v28 = vmul.f32 %v18495_v7, %v8616_v55  ;;  %v8624_v62 = vmax.f32 %v13332_v50, 0.0  ;;  %v8625_v10 = vmax.f32 %v13395_v27, 0.0  ;;  %v9170_v20 = vadd.f32 %v9169_v38, %v8899_v52 }
 0x622   : > { %v9186_v3 = vadd.f32 %v18074_v61, %v8913_v63  ;;  %v8921_v35 = vmul.f32 %v18487_v54, %v8623_v21  ;;  %v9179_v40 = vadd.f32 %v9178_v25, %v8907_v45  ;;  %v18705_v46 = vadd.f32 %v9152_v33, %v8884_v47 }
 0x623   : > { %v8922_v2 = vmul.f32 %v18495_v7, %v8624_v62  ;;  %v7636_v39 = vpop.f32.mrb[104].mxu0  ;;  %v8408_v0 = vpop.f32.mrb[104].mxu1  ;;  %v8626_v53 = vmax.f32 %v13396_v23, 0.0  ;;  %v9171_v48 = vadd.f32 %v9170_v20, %v8900_v5  ;;  %v8915_v21 = vmul.f32 %v18501_v56, %v8617_v1 }
 0x624   : > { %v9187_v19 = vadd.f32 %v9186_v3, %v8914_v28  ;;  %v9195_v4 = vadd.f32 %v18098_v18, %v8921_v35  ;;  %v13333_v9 = vadd.f32 %v7636_v39, %v18477_v13  ;;  %v7638_v30 = vpop.f32.mrb[105].mxu0  ;;  %v8410_v61 = vpop.f32.mrb[105].mxu1  ;;  %v13397_v55 = vadd.f32 %v8408_v0, %v18480_v41 }
 0x625   : > { %v13334_v27 = vadd.f32 %v7638_v30, %v18483_v6  ;;  %v13398_v38 = vadd.f32 %v8410_v61, %v18490_v17  ;;  %v7640_v52 = vpop.f32.mrb[106].mxu0  ;;  %v8412_v50 = vpop.f32.mrb[106].mxu1  ;;  %v9180_v33 = vadd.f32 %v9179_v40, %v8908_v59  ;;  %v8916_v23 = vmul.f32 %v18510_v26, %v8618_v22  ;;  %9172 = vadd.xlane.f32.xlu1 %v9171_v48 }
 0x626   : > { %v9196_v25 = vadd.f32 %v9195_v4, %v8922_v2  ;;  %v8631_v47 = vmax.f32 %v13333_v9, 0.0  ;;  %v13335_v45 = vadd.f32 %v7640_v52, %v18477_v13  ;;  %v7642_v18 = vpop.f32.mrb[107].mxu0  ;;  %v8414_v63 = vpop.f32.mrb[107].mxu1  ;;  %v13399_v28 = vadd.f32 %v8412_v50, %v18480_v41 }
 0x627   : > { %v8632_v5 = vmax.f32 %v13334_v27, 0.0  ;;  %9181 = vadd.xlane.f32.xlu0 %v9180_v33  ;;  %v13336_v35 = vadd.f32 %v7642_v18, %v18483_v6  ;;  %v13400_v59 = vadd.f32 %v8414_v63, %v18490_v17  ;;  %v8923_v2 = vmul.f32 %v18501_v56, %v8625_v10 }
 0x628   : > { %v8929_v62 = vmul.f32 %v18487_v54, %v8631_v47  ;;  %v8639_v3 = vmax.f32 %v13335_v45, 0.0  ;;  %v8924_v20 = vmul.f32 %v18510_v26, %v8626_v53  ;;  %v8633_v39 = vmax.f32 %v13397_v55, 0.0 }
 0x629   : > { %v8930_v1 = vmul.f32 %v18495_v7, %v8632_v5  ;;  %v8634_v0 = vmax.f32 %v13398_v38, 0.0  ;;  %v8640_v4 = vmax.f32 %v13336_v35, 0.0  ;;  %v8641_v9 = vmax.f32 %v13399_v28, 0.0 }
 0x62a   : > { %v9204_v22 = vadd.f32 %v18128_v31, %v8929_v62  ;;  %v8937_v40 = vmul.f32 %v18487_v54, %v8639_v3  ;;  %v9188_v30 = vadd.f32 %v9187_v19, %v8915_v21  ;;  %v9197_v27 = vadd.f32 %v9196_v25, %v8923_v2 }
 0x62b   : > { %v7646_v61 = vpop.f32.mrb[108].mxu0  ;;  %v8418_v48 = vpop.f32.mrb[108].mxu1  ;;  %v18726_v52 = vadd.f32 %v18682_v37, %v18675_v57  ;;  %v8938_v55 = vmul.f32 %v18495_v7, %v8640_v4  ;;  %v8642_v50 = vmax.f32 %v13400_v59, 0.0  ;;  %v8931_v28 = vmul.f32 %v18501_v56, %v8633_v39 }
 0x62c   : > { %v9205_v10 = vadd.f32 %v9204_v22, %v8930_v1  ;;  %v9213_v53 = vadd.f32 %v18149_v51, %v8937_v40  ;;  %v7648_v31 = vpop.f32.mrb[109].mxu0  ;;  %v8420_v38 = vpop.f32.mrb[109].mxu1  ;;  %v9189_v47 = vadd.f32 %v9188_v30, %v8916_v23  ;;  %v13337_v33 = vadd.f32 %v7646_v61, %v18477_v13 }
 0x62d   : > { %v13401_v19 = vadd.f32 %v8418_v48, %v18480_v41  ;;  %v13338_v45 = vadd.f32 %v7648_v31, %v18483_v6  ;;  %v7650_v25 = vpop.f32.mrb[110].mxu0  ;;  %v8422_v18 = vpop.f32.mrb[110].mxu1  ;;  %v13402_v57 = vadd.f32 %v8420_v38, %v18490_v17  ;;  %v9198_v37 = vadd.f32 %v9197_v27, %v8924_v20 }
 0x62e   : > { %v9214_v63 = vadd.f32 %v9213_v53, %v8938_v55  ;;  %v13339_v51 = vadd.f32 %v7650_v25, %v18477_v13  ;;  %v7652_v21 = vpop.f32.mrb[111].mxu0  ;;  %v8424_v5 = vpop.f32.mrb[111].mxu1  ;;  %9190 = vadd.xlane.f32.xlu1 %v9189_v47  ;;  %v8647_v23 = vmax.f32 %v13337_v33, 0.0  ;;  %v13403_v3 = vadd.f32 %v8422_v18, %v18480_v41 }
 0x62f   : > { %v8648_v62 = vmax.f32 %v13338_v45, 0.0  ;;  %v8932_v35 = vmul.f32 %v18510_v26, %v8634_v0  ;;  %9199 = vadd.xlane.f32.xlu0 %v9198_v37  ;;  %v13340_v2 = vadd.f32 %v7652_v21, %v18483_v6  ;;  %v13404_v1 = vadd.f32 %v8424_v5, %v18490_v17 }
 0x630   : > { %v8655_v59 = vmax.f32 %v13339_v51, 0.0  ;;  %v8939_v20 = vmul.f32 %v18501_v56, %v8641_v9  ;;  %v8940_v22 = vmul.f32 %v18510_v26, %v8642_v50  ;;  %v8945_v40 = vmul.f32 %v18487_v54, %v8647_v23 }
 0x631   : > { %v8946_v39 = vmul.f32 %v18495_v7, %v8648_v62  ;;  %v8649_v4 = vmax.f32 %v13401_v19, 0.0  ;;  %v8650_v30 = vmax.f32 %v13402_v57, 0.0  ;;  %v8656_v48 = vmax.f32 %v13340_v2, 0.0 }
 0x632   : > { %v8953_v61 = vmul.f32 %v18487_v54, %v8655_v59  ;;  %v9222_v0 = vadd.f32 %v18172_v24, %v8945_v40  ;;  %v8657_v27 = vmax.f32 %v13403_v3, 0.0  ;;  %v9206_v53 = vadd.f32 %v9205_v10, %v8931_v28 }
 0x633   : > { %v7656_v55 = vpop.f32.mrb[112].mxu0  ;;  %v8428_v31 = vpop.f32.mrb[112].mxu1  ;;  %v9215_v38 = vadd.f32 %v9214_v63, %v8939_v20  ;;  %v8954_v50 = vmul.f32 %v18495_v7, %v8656_v48  ;;  %v8658_v47 = vmax.f32 %v13404_v1, 0.0  ;;  %v8947_v23 = vmul.f32 %v18501_v56, %v8649_v4 }
 0x634   : > { %v9231_v9 = vadd.f32 %v18196_v36, %v8953_v61  ;;  %v13341_v33 = vadd.f32 %v7656_v55, %v18477_v13  ;;  %v7658_v45 = vpop.f32.mrb[113].mxu0  ;;  %v8430_v19 = vpop.f32.mrb[113].mxu1  ;;  %v9223_v25 = vadd.f32 %v9222_v0, %v8946_v39  ;;  %v9207_v18 = vadd.f32 %v9206_v53, %v8932_v35 }
 0x635   : > { %v13405_v57 = vadd.f32 %v8428_v31, %v18480_v41  ;;  %v13342_v24 = vadd.f32 %v7658_v45, %v18483_v6  ;;  %v7660_v37 = vpop.f32.mrb[114].mxu0  ;;  %v8432_v10 = vpop.f32.mrb[114].mxu1  ;;  %v13406_v63 = vadd.f32 %v8430_v19, %v18490_v17  ;;  %v9216_v36 = vadd.f32 %v9215_v38, %v8940_v22 }
 0x636   : > { %v9232_v51 = vadd.f32 %v9231_v9, %v8954_v50  ;;  %v8663_v21 = vmax.f32 %v13341_v33, 0.0  ;;  %v7662_v5 = vpop.f32.mrb[115].mxu0  ;;  %v8434_v28 = vpop.f32.mrb[115].mxu1  ;;  %9208 = vadd.xlane.f32.xlu1 %v9207_v18  ;;  %v13343_v35 = vadd.f32 %v7660_v37, %v18477_v13  ;;  %v8948_v59 = vmul.f32 %v18510_v26, %v8650_v30 }
 0x637   : > { %v8665_v62 = vmax.f32 %v13405_v57, 0.0  ;;  %v8664_v3 = vmax.f32 %v13342_v24, 0.0  ;;  %9217 = vadd.xlane.f32.xlu0 %v9216_v36  ;;  %v13407_v1 = vadd.f32 %v8432_v10, %v18480_v41  ;;  %v13344_v20 = vadd.f32 %v7662_v5, %v18483_v6 }
 0x638   : > { %v8961_v2 = vmul.f32 %v18487_v54, %v8663_v21  ;;  %v8955_v22 = vmul.f32 %v18501_v56, %v8657_v27  ;;  %v8671_v39 = vmax.f32 %v13343_v35, 0.0  ;;  %v13408_v4 = vadd.f32 %v8434_v28, %v18490_v17 }
 0x639   : > { %v8962_v40 = vmul.f32 %v18495_v7, %v8664_v3  ;;  %v8956_v61 = vmul.f32 %v18510_v26, %v8658_v47  ;;  %v8666_v0 = vmax.f32 %v13406_v63, 0.0  ;;  %v8672_v30 = vmax.f32 %v13344_v20, 0.0 }
 0x63a   : > { %v9240_v48 = vadd.f32 %v18226_v16, %v8961_v2  ;;  %v8963_v53 = vmul.f32 %v18501_v56, %v8665_v62  ;;  %v8969_v55 = vmul.f32 %v18487_v54, %v8671_v39  ;;  %9091 = vadd.xlane.f32.xlu1 %v18607_v49  ;;  %v9224_v27 = vadd.f32 %v9223_v25, %v8947_v23 }
 0x63b   : > { %v7666_v31 = vpop.f32.mrb[116].mxu0  ;;  %v8438_v38 = vpop.f32.mrb[116].mxu1  ;;  %v9233_v9 = vadd.f32 %v9232_v51, %v8955_v22  ;;  %v8673_v33 = vmax.f32 %v13407_v1, 0.0  ;;  %v8970_v45 = vmul.f32 %v18495_v7, %v8672_v30  ;;  %v8674_v57 = vmax.f32 %v13408_v4, 0.0 }
 0x63c   : > { %v9241_v50 = vadd.f32 %v9240_v48, %v8962_v40  ;;  %v13345_v47 = vadd.f32 %v7666_v31, %v18477_v13  ;;  %v7668_v19 = vpop.f32.mrb[117].mxu0  ;;  %v8440_v16 = vpop.f32.mrb[117].mxu1  ;;  %v9249_v18 = vadd.f32 %v18247_v34, %v8969_v55  ;;  %v13409_v24 = vadd.f32 %v8438_v38, %v18480_v41 }
 0x63d   : > { %v13346_v37 = vadd.f32 %v7668_v19, %v18483_v6  ;;  %v7670_v49 = vpop.f32.mrb[118].mxu0  ;;  %v8442_v10 = vpop.f32.mrb[118].mxu1  ;;  %v13410_v25 = vadd.f32 %v8440_v16, %v18490_v17  ;;  %v18773_v5 = vadd.f32 %v9224_v27, %v8948_v59  ;;  %v18776_v28 = vmul.f32 %v18510_v26, %v8666_v0 }
 0x63e   : > { %v8679_v21 = vmax.f32 %v13345_v47, 0.0  ;;  %v13347_v51 = vadd.f32 %v7670_v49, %v18477_v13  ;;  %v7672_v63 = vpop.f32.mrb[119].mxu0  ;;  %v8444_v36 = vpop.f32.mrb[119].mxu1  ;;  %v9250_v34 = vadd.f32 %v9249_v18, %v8970_v45  ;;  %9100 = vadd.xlane.f32.xlu1 %v18614_v42  ;;  %v13411_v62 = vadd.f32 %v8442_v10, %v18480_v41 }
 0x63f   : > { %v8680_v23 = vmax.f32 %v13346_v37, 0.0  ;;  %v8971_v3 = vmul.f32 %v18501_v56, %v8673_v33  ;;  %v13348_v1 = vadd.f32 %v7672_v63, %v18483_v6  ;;  %v8972_v20 = vmul.f32 %v18510_v26, %v8674_v57 }
 0x640   : > { %v8977_v35 = vmul.f32 %v18487_v54, %v8679_v21  ;;  %v8687_v2 = vmax.f32 %v13347_v51, 0.0  ;;  %v8681_v59 = vmax.f32 %v13409_v24, 0.0  ;;  %v13412_v40 = vadd.f32 %v8444_v36, %v18490_v17 }
 0x641   : > { %v8978_v22 = vmul.f32 %v18495_v7, %v8680_v23  ;;  %v8682_v42 = vmax.f32 %v13410_v25, 0.0  ;;  %v8688_v48 = vmax.f32 %v13348_v1, 0.0  ;;  %v8689_v0 = vmax.f32 %v13411_v62, 0.0 }
 0x642   : > { %v9258_v39 = vadd.f32 %v18274_v43, %v8977_v35  ;;  %v8985_v4 = vmul.f32 %v18487_v54, %v8687_v2  ;;  %9109 = vadd.xlane.f32.xlu1 %v18636_v60  ;;  %v18789_v31 = vadd.f32 %v9233_v9, %v8956_v61  ;;  %v9242_v38 = vadd.f32 %v9241_v50, %v8963_v53 }
 0x643   : > { %v7676_v30 = vpop.f32.mrb[120].mxu0  ;;  %v8448_v55 = vpop.f32.mrb[120].mxu1  ;;  %v9251_v27 = vadd.f32 %v9250_v34, %v8971_v3  ;;  %v8986_v47 = vmul.f32 %v18495_v7, %v8688_v48  ;;  %v8690_v18 = vmax.f32 %v13412_v40, 0.0  ;;  %v8979_v21 = vmul.f32 %v18501_v56, %v8681_v59 }
 0x644   : > { %v9259_v33 = vadd.f32 %v9258_v39, %v8978_v22  ;;  %v9267_v45 = vadd.f32 %v18292_v8, %v8985_v4  ;;  %v13349_v43 = vadd.f32 %v7676_v30, %v18477_v13  ;;  %v7678_v19 = vpop.f32.mrb[121].mxu0  ;;  %v8450_v16 = vpop.f32.mrb[121].mxu1  ;;  %v13413_v57 = vadd.f32 %v8448_v55, %v18480_v41 }
 0x645   : > { %v13350_v60 = vadd.f32 %v7678_v19, %v18483_v6  ;;  %v13414_v24 = vadd.f32 %v8450_v16, %v18490_v17  ;;  %v7680_v61 = vpop.f32.mrb[122].mxu0  ;;  %v8452_v9 = vpop.f32.mrb[122].mxu1  ;;  %v8980_v25 = vmul.f32 %v18510_v26, %v8682_v42  ;;  %v8987_v36 = vmul.f32 %v18501_v56, %v8689_v0  ;;  %v9309_v42 = vld [vmem:[#allocation2] sm:$0x1] }
 0x646   : > { %v18797_v53 = vadd.f32 %v9267_v45, %v8986_v47  ;;  %v8695_v50 = vmax.f32 %v13349_v43, 0.0  ;;  %v13351_v8 = vadd.f32 %v7680_v61, %v18477_v13  ;;  %v13415_v37 = vadd.f32 %v8452_v9, %v18480_v41  ;;  %v7682_v49 = vpop.f32.mrb[123].mxu0  ;;  %v8454_v10 = vpop.f32.mrb[123].mxu1  ;;  %9118 = vadd.xlane.f32.xlu1 %v18655_v44 }
 0x647   : > { %v8696_v51 = vmax.f32 %v13350_v60, 0.0  ;;  %v13352_v63 = vadd.f32 %v7682_v49, %v18483_v6  ;;  %v13416_v62 = vadd.f32 %v8454_v10, %v18490_v17  ;;  %v8988_v3 = vmul.f32 %v18510_v26, %v8690_v18 }
 0x648   : > { %v8993_v34 = vmul.f32 %v18487_v54, %v8695_v50  ;;  %v8703_v23 = vmax.f32 %v13351_v8, 0.0  ;;  %v8697_v35 = vmax.f32 %v13413_v57, 0.0  ;;  %v8698_v22 = vmax.f32 %v13414_v24, 0.0 }
 0x649   : > { %v8994_v2 = vmul.f32 %v18495_v7, %v8696_v51  ;;  %v8704_v1 = vmax.f32 %v13352_v63, 0.0  ;;  %v8705_v40 = vmax.f32 %v13415_v37, 0.0  ;;  %v9243_v0 = vadd.f32 %v9242_v38, %v18776_v28 }
 0x64a   : > { %v9276_v59 = vadd.f32 %v18301_v11, %v8993_v34  ;;  %v9001_v44 = vmul.f32 %v18487_v54, %v8703_v23  ;;  %9127 = vadd.xlane.f32.xlu1 %v18657_v29  ;;  %v9252_v30 = vadd.f32 %v9251_v27, %v8972_v20  ;;  %v9260_v55 = vadd.f32 %v9259_v33, %v8979_v21 }
 0x64b   : > { %v9002_v39 = vmul.f32 %v18495_v7, %v8704_v1  ;;  %v7686_v4 = vpop.f32.mrb[124].mxu0  ;;  %v8458_v48 = vpop.f32.mrb[124].mxu1  ;;  %v8706_v43 = vmax.f32 %v13416_v62, 0.0  ;;  %v8995_v9 = vmul.f32 %v18501_v56, %v8697_v35  ;;  %v8996_v50 = vmul.f32 %v18510_v26, %v8698_v22 }
 0x64c   : > { %v9277_v45 = vadd.f32 %v9276_v59, %v8994_v2  ;;  %v9285_v47 = vadd.f32 %v18316_v14, %v9001_v44  ;;  %v13353_v11 = vadd.f32 %v7686_v4, %v18477_v13  ;;  %v7688_v19 = vpop.f32.mrb[125].mxu0  ;;  %v8460_v16 = vpop.f32.mrb[125].mxu1  ;;  %v13417_v18 = vadd.f32 %v8458_v48, %v18480_v41 }
 0x64d   : > { %v13354_v57 = vadd.f32 %v7688_v19, %v18483_v6  ;;  %v13418_v29 = vadd.f32 %v8460_v16, %v18490_v17  ;;  %v7690_v60 = vpop.f32.mrb[126].mxu0  ;;  %v8462_v24 = vpop.f32.mrb[126].mxu1  ;;  %v9261_v61 = vadd.f32 %v9260_v55, %v8980_v25  ;;  %9312 = vperm.xlu0 %14325, %v9309_v42   ;;  %v9269_v35 = vadd.f32 %v18797_v53, %v8987_v36 }
 0x64e   : > { %v9286_v28 = vadd.f32 %v9285_v47, %v9002_v39  ;;  %v8711_v20 = vmax.f32 %v13353_v11, 0.0  ;;  %v13355_v38 = vadd.f32 %v7690_v60, %v18477_v13  ;;  %v13419_v14 = vadd.f32 %v8462_v24, %v18480_v41  ;;  %v7692_v27 = vpop.f32.mrb[127].mxu0  ;;  %v8464_v33 = vpop.f32.mrb[127].mxu1  ;;  %9136 = vadd.xlane.f32.xlu1 %v18664_v15 }
 0x64f   : > { %v8712_v8 = vmax.f32 %v13354_v57, 0.0  ;;  %v13356_v37 = vadd.f32 %v7692_v27, %v18483_v6  ;;  %v8713_v10 = vmax.f32 %v13417_v18, 0.0  ;;  %v13420_v25 = vadd.f32 %v8464_v33, %v18490_v17 }
 0x650   : > { %v9009_v49 = vmul.f32 %v18487_v54, %v8711_v20  ;;  %v8719_v21 = vmax.f32 %v13355_v38, 0.0  ;;  %v9003_v13 = vmul.f32 %v18501_v56, %v8705_v40  ;;  %v9004_v41 = vmul.f32 %v18510_v26, %v8706_v43 }
 0x651   : > { %v9010_v51 = vmul.f32 %v18495_v7, %v8712_v8  ;;  %v8720_v63 = vmax.f32 %v13356_v37, 0.0  ;;  %v8714_v23 = vmax.f32 %v13418_v29, 0.0  ;;  %v8721_v62 = vmax.f32 %v13419_v14, 0.0 }
 0x652   : > { %v9294_v34 = vadd.f32 %v18320_v58, %v9009_v49  ;;  %v9017_v15 = vmul.f32 %v18487_v54, %v8719_v21  ;;  %9226 = vadd.xlane.f32.xlu1 %v18773_v5  ;;  %v9278_v17 = vadd.f32 %v9277_v45, %v8995_v9  ;;  %v9287_v2 = vadd.f32 %v9286_v28, %v9003_v13 }
 0x653   : > { %v9018_v6 = vmul.f32 %v18495_v7, %v8720_v63  ;;  %v9011_v1 = vmul.f32 %v18501_v56, %v8713_v10  ;;  %v8722_v44 = vmax.f32 %v13420_v25, 0.0  ;;  %v9270_v40 = vadd.f32 %v9269_v35, %v8988_v3 }
 0x654   : > { %v9295_v59 = vadd.f32 %v9294_v34, %v9010_v51  ;;  %v9303_v22 = vadd.f32 %v18328_v32, %v9017_v15  ;;  %v9279_v58 = vadd.f32 %v9278_v17, %v8996_v50  ;;  %v9288_v39 = vadd.f32 %v9287_v2, %v9004_v41 }
 0x655   : > { %v9012_v54 = vmul.f32 %v18510_v26, %v8714_v23  ;;  %v9019_v42 = vmul.f32 %v18501_v56, %v8721_v62  ;;  %v9020_v5 = vmul.f32 %v18510_v26, %v8722_v44 }
 0x656   : > { %v9304_v7 = vadd.f32 %v9303_v22, %v9018_v6  ;;  %v9296_v4 = vadd.f32 %v9295_v59, %v9011_v1  ;;  %9235 = vadd.xlane.f32.xlu1 %v18789_v31 }
 0x658   : > { %v9297_v53 = vadd.f32 %v9296_v4, %v9012_v54  ;;  %v9305_v36 = vadd.f32 %v9304_v7, %v9019_v42 }
 0x65a   : > { %v9306_v48 = vadd.f32 %v9305_v36, %v9020_v5  ;;  %9244 = vadd.xlane.f32.xlu1 %v9243_v0 }
 0x65e   : > { %9253 = vadd.xlane.f32.xlu1 %v9252_v30 }
 0x662   : > { %9262 = vadd.xlane.f32.xlu1 %v9261_v61 }
 0x666   : > { %9271 = vadd.xlane.f32.xlu1 %v9270_v40 }
 0x66a   : > { %9145 = vadd.xlane.f32.xlu1 %v18690_v12 }
 0x66c   : > { %9280 = vadd.xlane.f32.xlu0 %v9279_v58 }
 0x66e   : > { %9154 = vadd.xlane.f32.xlu1 %v18705_v46 }
 0x671   : > { %v9029_v32 = vpop.xlane.xlu1 %9028 }
 0x672   : > { %9163 = vadd.xlane.f32.xlu1 %v18726_v52  ;;  %v9038_v56 = vpop.xlane.xlu0 %9037  ;;  %v21060_v52 = vld [vmem:[#allocation18_spill] sm:$0xff] }
 0x676   : > { %9289 = vadd.xlane.f32.xlu1 %v9288_v39 }
 0x67a   : > { %9298 = vadd.xlane.f32.xlu1 %v9297_v53 }
 0x67b   : > { %v9047_v31 = vpop.xlane.xlu0 %9046 }
 0x67c   : > { %v9056_v26 = vpop.xlane.xlu1 %9055 }
 0x67e   : > { %9307 = vadd.xlane.f32.xlu1 %v9306_v48 }
 0x683   : > { %v9065_v55 = vpop.xlane.xlu0 %9064 }
 0x684   : > { %v9074_v3 = vpop.xlane.xlu1 %9073 }
 0x68b   : > { %v9083_v30 = vpop.xlane.xlu0 %9082 }
 0x6b2   : > { %v9173_v0 = vpop.xlane.xlu1 %9172 }
 0x6b4   : > { %v9182_v47 = vpop.xlane.xlu0 %9181 }
 0x6bb   : > { %v9191_v45 = vpop.xlane.xlu1 %9190 }
 0x6bc   : > { %v9200_v12 = vpop.xlane.xlu0 %9199 }
 0x6c3   : > { %v9209_v43 = vpop.xlane.xlu1 %9208 }
 0x6c4   : > { %v9218_v19 = vpop.xlane.xlu0 %9217 }
 0x6c7   : > { %v9092_v11 = vpop.xlane.xlu1 %9091 }
 0x6cb   : > { %v9101_v46 = vpop.xlane.xlu1 %9100 }
 0x6cc   : > { %v9313_v16 = vpop.permute.xlu0 %9312 }
 0x6cd   : > { %v18846_v18 = vrot.slane %v9313_v16, %v21060_v52 }
 0x6cf   : > { %v9319_v57 = vadd.f32 %v18846_v18, %v9029_v32  ;;  %v9320_v29 = vadd.f32 %v18846_v18, %v9038_v56  ;;  %v9110_v60 = vpop.xlane.xlu1 %9109  ;;  %v9321_v24 = vadd.f32 %v18846_v18, %v9047_v31  ;;  %v9322_v61 = vadd.f32 %v18846_v18, %v9056_v26 }
 0x6d0   : > { %v9328_v28 = vadd.f32 %v18846_v18, %v9110_v60  ;;  %v9323_v20 = vadd.f32 %v18846_v18, %v9065_v55  ;;  %v9324_v33 = vadd.f32 %v18846_v18, %v9074_v3  ;;  %v9325_v37 = vadd.f32 %v18846_v18, %v9083_v30 }
 0x6d1   : > { %v13127_v38 = vmul.f32 -1.442695, %v9319_v57  ;;  %v13128_v14 = vmul.f32 -1.442695, %v9320_v29  ;;  %v13129_v50 = vmul.f32 -1.442695, %v9321_v24  ;;  %v9326_v10 = vadd.f32 %v18846_v18, %v9092_v11 }
 0x6d2   : > { %v13136_v9 = vmul.f32 -1.442695, %v9328_v28  ;;  %v13130_v49 = vmul.f32 -1.442695, %v9322_v61  ;;  %v9327_v21 = vadd.f32 %v18846_v18, %v9101_v46  ;;  %v13131_v25 = vmul.f32 -1.442695, %v9323_v20 }
 0x6d3   : > { %v9119_v27 = vpop.xlane.xlu1 %9118  ;;  %14327 = vpow2.f32 %v13127_v38  ;;  %v9335_v41 = vadd.f32 %v18846_v18, %v9173_v0  ;;  %v13132_v51 = vmul.f32 -1.442695, %v9324_v33  ;;  %v9336_v34 = vadd.f32 %v18846_v18, %v9182_v47 }
 0x6d4   : > { %v9329_v8 = vadd.f32 %v18846_v18, %v9119_v27  ;;  %14329 = vpow2.f32 %v13136_v9  ;;  %v13133_v23 = vmul.f32 -1.442695, %v9325_v37  ;;  %v9337_v15 = vadd.f32 %v18846_v18, %v9191_v45  ;;  %v21061_v27 = vld [vmem:[#allocation17_spill] sm:$0xff] }
 0x6d5   : > { %14331 = vpow2.f32 %v13128_v14  ;;  %v13134_v62 = vmul.f32 -1.442695, %v9326_v10  ;;  %v13135_v6 = vmul.f32 -1.442695, %v9327_v21  ;;  %v9338_v17 = vadd.f32 %v18846_v18, %v9200_v12 }
 0x6d6   : > { %v13137_v63 = vmul.f32 -1.442695, %v9329_v8  ;;  %14333 = vpow2.f32 %v13129_v50  ;;  %v13143_v2 = vmul.f32 -1.442695, %v9335_v41  ;;  %v9339_v1 = vadd.f32 %v18846_v18, %v9209_v43 }
 0x6d7   : > { %v9128_v13 = vpop.xlane.xlu1 %9127  ;;  %14335 = vpow2.f32 %v13130_v49  ;;  %v13144_v59 = vmul.f32 -1.442695, %v9336_v34  ;;  %v9340_v22 = vadd.f32 %v18846_v18, %v9218_v19  ;;  %v13145_v44 = vmul.f32 -1.442695, %v9337_v15 }
 0x6d8   : > { %14337 = vpow2.f32 %v13137_v63  ;;  %v13146_v54 = vmul.f32 -1.442695, %v9338_v17  ;;  %v9330_v42 = vadd.f32 %v18846_v18, %v9128_v13  ;;  %v13147_v5 = vmul.f32 -1.442695, %v9339_v1 }
 0x6d9   : > { %14339 = vpow2.f32 %v13131_v25  ;;  %v13148_v48 = vmul.f32 -1.442695, %v9340_v22  ;;  %v14687_v32 = vmov 1966171168  }
 0x6da   : > { %14341 = vpow2.f32 %v13132_v51  ;;  %v10604_v56 = vunpack.c.l.s4 %v14687_v32  ;;  %v13138_v55 = vmul.f32 -1.442695, %v9330_v42  ;;  %v21065_v42 = vld [vmem:[#allocation106_spill] sm:$0xff] }
 0x6db   : > { %v9137_v35 = vpop.xlane.xlu1 %9136  ;;  %14343 = vpow2.f32 %v13133_v23 }
 0x6dc   : > { %14345 = vpow2.f32 %v13134_v62  ;;  %v9331_v53 = vadd.f32 %v18846_v18, %v9137_v35  ;;  %v10605_v11 = vunpack.c.0.s8 %v10604_v56 }
 0x6dd   : > { %v14328_v40 = vpop.eup %14327  ;;  %14347 = vpow2.f32 %v13135_v6 }
 0x6de   : > { %v14330_v39 = vpop.eup %14329  ;;  %14349 = vpow2.f32 %v13143_v2  ;;  %v13139_v45 = vmul.f32 -1.442695, %v9331_v53  ;;  %v9447_v43 = vadd.f32 1.0, %v14328_v40  ;;  %v18873_v33 = vsub.s32 %v10605_v11, %v21061_v27  ;;  %v21062_v2 = vld [vmem:[#allocation20_spill] sm:$0xff] }
 0x6df   : > { %v9227_v58 = vpop.xlane.xlu1 %9226  ;;  %v14332_v7 = vpop.eup %14331  ;;  %v9456_v4 = vadd.f32 1.0, %v14330_v39  ;;  %14351 = vpow2.f32 %v13144_v59  ;;  %v21063_v59 = vld [vmem:[#allocation19_spill] sm:$0xff] }
 0x6e0   : > { %v14334_v36 = vpop.eup %14333  ;;  %14353 = vpow2.f32 %v13145_v44  ;;  %v9341_v12 = vadd.f32 %v18846_v18, %v9227_v58  ;;  %v9448_v46 = vadd.f32 1.0, %v14332_v7  ;;  %v21064_v44 = vld [vmem:[#allocation21_spill] sm:$0xff] }
 0x6e1   : > { %v14336_v26 = vpop.eup %14335  ;;  %14355 = vrcp.f32 %v9456_v4  ;;  %v9449_v60 = vadd.f32 1.0, %v14334_v36  ;;  %v21066_v36 = vld [vmem:[#allocation109_spill] sm:$0xff] }
 0x6e2   : > { %v14338_v3 = vpop.eup %14337  ;;  %14357 = vpow2.f32 %v13146_v54  ;;  %v9450_v61 = vadd.f32 1.0, %v14336_v26  ;;  %v18870_v14 = vmul.f32 -1.442695, %v9341_v12  ;;  %v21067_v26 = vld [vmem:[#allocation101_spill] sm:$0xff] }
 0x6e3   : > { %v9236_v31 = vpop.xlane.xlu1 %9235  ;;  %v14340_v0 = vpop.eup %14339  ;;  %v9457_v30 = vadd.f32 1.0, %v14338_v3  ;;  %14359 = vpow2.f32 %v13147_v5  ;;  %v21068_v3 = vld [vmem:[#allocation105_spill] sm:$0xff] }
 0x6e4   : > { %v14342_v47 = vpop.eup %14341  ;;  %14361 = vpow2.f32 %v13148_v48  ;;  %v9342_v16 = vadd.f32 %v18846_v18, %v9236_v31  ;;  %v9451_v38 = vadd.f32 1.0, %v14340_v0 }
 0x6e5   : > { %v14344_v19 = vpop.eup %14343  ;;  %14363 = vrcp.f32 %v9457_v30  ;;  %v9452_v50 = vadd.f32 1.0, %v14342_v47 }
 0x6e6   : > { %v14346_v29 = vpop.eup %14345  ;;  %14365 = vpow2.f32 %v13138_v55  ;;  %v9453_v8 = vadd.f32 1.0, %v14344_v19  ;;  %v18875_v37 = vmul.f32 -1.442695, %v9342_v16 }
 0x6e7   : > { %v9245_v57 = vpop.xlane.xlu1 %9244  ;;  %v14348_v24 = vpop.eup %14347  ;;  %14367 = vpow2.f32 %v13139_v45  ;;  %v9454_v21 = vadd.f32 1.0, %v14346_v29 }
 0x6e8   : > { %v9343_v28 = vadd.f32 %v18846_v18, %v9245_v57  ;;  %v14350_v20 = vpop.eup %14349  ;;  %14369 = vrcp.f32 %v9447_v43  ;;  %v9455_v25 = vadd.f32 1.0, %v14348_v24 }
 0x6e9   : > { %v14352_v9 = vpop.eup %14351  ;;  %14371 = vrcp.f32 %v9448_v46  ;;  %v9463_v51 = vadd.f32 1.0, %v14350_v20 }
 0x6ea   : > { %v14354_v10 = vpop.eup %14353  ;;  %14373 = vrcp.f32 %v9449_v60  ;;  %v9464_v63 = vadd.f32 1.0, %v14352_v9  ;;  %v18880_v34 = vmul.f32 -1.442695, %v9343_v28 }
 0x6eb   : > { %v9254_v49 = vpop.xlane.xlu1 %9253  ;;  %v18878_v41 = vpop.eup %14355  ;;  %14375 = vrcp.f32 %v9450_v61  ;;  %v9465_v15 = vadd.f32 1.0, %v14354_v10 }
 0x6ec   : > { %v9344_v13 = vadd.f32 %v18846_v18, %v9254_v49  ;;  %v14358_v23 = vpop.eup %14357  ;;  %14377 = vrcp.f32 %v9451_v38  ;;  %v9866_v6 = vrot.slane %v18878_v41, %v21060_v52  ;;  %v9870_v1 = vrot.slane %v18878_v41, %v21062_v2 }
 0x6ed   : > { %v14360_v35 = vpop.eup %14359  ;;  %14379 = vrcp.f32 %v9452_v50  ;;  %v9874_v22 = vrot.slane %v18878_v41, %v21063_v59  ;;  %v9878_v40 = vrot.slane %v18878_v41, %v21064_v44  ;;  %v9466_v39 = vadd.f32 1.0, %v14358_v23 }
 0x6ee   : > { %v18882_v62 = vmul.f32 -1.442695, %v9344_v13  ;;  %v14362_v58 = vpop.eup %14361  ;;  %14381 = vrcp.f32 %v9453_v8  ;;  %v9882_v7 = vrot.slane %v18878_v41, %v21065_v42  ;;  %v9467_v5 = vadd.f32 1.0, %v14360_v35 }
 0x6ef   : > { %v9263_v17 = vpop.xlane.xlu1 %9262  ;;  %v18895_v4 = vpop.eup %14363  ;;  %v9468_v53 = vadd.f32 1.0, %v14362_v58  ;;  %14383 = vrcp.f32 %v9454_v21  ;;  %v9886_v48 = vrot.slane %v18878_v41, %v21066_v36  ;;  %v9890_v31 = vrot.slane %v18878_v41, %v21067_v26 }
 0x6f0   : > { %v9345_v54 = vadd.f32 %v18846_v18, %v9263_v17  ;;  %v14366_v32 = vpop.eup %14365  ;;  %14385 = vrcp.f32 %v9455_v25  ;;  %v9894_v55 = vrot.slane %v18878_v41, %v21068_v3  ;;  %v18905_v47 = vcombine.low %v9866_v6, %v9870_v1 }
 0x6f1   : > { %v14368_v0 = vpop.eup %14367  ;;  %v9458_v30 = vadd.f32 1.0, %v14366_v32  ;;  %14387 = vrcp.f32 %v9463_v51  ;;  %v18907_v43 = vcombine.low %v9874_v22, %v9878_v40  ;;  %v18912_v46 = vcombine.low %v9882_v7, %v9886_v48 }
 0x6f2   : > { %v18899_v56 = vmul.f32 -1.442695, %v9345_v54  ;;  %v18909_v12 = vpop.eup %14369  ;;  %v9459_v11 = vadd.f32 1.0, %v14368_v0  ;;  %14389 = vrcp.f32 %v9464_v63 }
 0x6f3   : > { %v9272_v45 = vpop.xlane.xlu1 %9271  ;;  %v14372_v16 = vpop.eup %14371  ;;  %14391 = vrcp.f32 %v9458_v30  ;;  %v9578_v57 = vrot.slane %v18909_v12, %v21060_v52  ;;  %v9582_v29 = vrot.slane %v18909_v12, %v21062_v2  ;;  %v9586_v60 = vrot.slane %v18909_v12, %v21063_v59 }
 0x6f4   : > { %v9346_v19 = vadd.f32 %v18846_v18, %v9272_v45  ;;  %v18920_v24 = vpop.eup %14373  ;;  %14393 = vrcp.f32 %v9459_v11  ;;  %v9610_v28 = vrot.slane %v14372_v16, %v21060_v52  ;;  %v9614_v20 = vrot.slane %v14372_v16, %v21062_v2 }
 0x6f5   : > { %v18924_v38 = vpop.eup %14375  ;;  %14395 = vrcp.f32 %v9465_v15  ;;  %v9618_v50 = vrot.slane %v14372_v16, %v21063_v59  ;;  %v9622_v8 = vrot.slane %v14372_v16, %v21064_v44  ;;  %v9626_v49 = vrot.slane %v14372_v16, %v21065_v42 }
 0x6f6   : > { %v13154_v61 = vmul.f32 -1.442695, %v9346_v19  ;;  %v18929_v10 = vpop.eup %14377  ;;  %14397 = vrcp.f32 %v9466_v39  ;;  %v9630_v25 = vrot.slane %v14372_v16, %v21066_v36  ;;  %v9634_v13 = vrot.slane %v14372_v16, %v21067_v26 }
 0x6f7   : > { %v9146_v9 = vpop.xlane.xlu1 %9145  ;;  %v18934_v51 = vpop.eup %14379  ;;  %14399 = vrcp.f32 %v9467_v5  ;;  %v9638_v63 = vrot.slane %v14372_v16, %v21068_v3  ;;  %v10648_v23 = vcombine.low %v9610_v28, %v9614_v20  ;;  %v10649_v15 = vcombine.low %v9618_v50, %v9622_v8 }
 0x6f8   : > { %v9332_v21 = vadd.f32 %v18846_v18, %v9146_v9  ;;  %v18937_v6 = vpop.eup %14381  ;;  %14401 = vrcp.f32 %v9468_v53  ;;  %v10650_v17 = vcombine.low %v9626_v49, %v9630_v25  ;;  %v9590_v1 = vrot.slane %v18909_v12, %v21064_v44 }
 0x6f9   : > { %v18941_v22 = vpop.eup %14383  ;;  %14403 = vpow2.f32 %v18870_v14  ;;  %v10651_v40 = vcombine.low %v9634_v13, %v9638_v63  ;;  %v10658_v58 = vrot.slane %v10648_v23, %v18873_v33  ;;  %v10665_v39 = vrot.slane %v10649_v15, %v18873_v33  ;;  %v9281_v19 = vpop.xlane.xlu0 %9280 }
 0x6fa   : > { %v13140_v35 = vmul.f32 -1.442695, %v9332_v21  ;;  %v18946_v54 = vpop.eup %14385  ;;  %14405 = vpow2.f32 %v18875_v37  ;;  %v10672_v7 = vrot.slane %v10650_v17, %v18873_v33  ;;  %v9594_v5 = vrot.slane %v18909_v12, %v21065_v42 }
 0x6fb   : > { %v9598_v53 = vrot.slane %v18909_v12, %v21066_v36  ;;  %v18954_v48 = vpop.eup %14387  ;;  %14407 = vpow2.f32 %v18880_v34  ;;  %v10679_v14 = vrot.slane %v10651_v40, %v18873_v33  ;;  %v10680_v32 = vcombine.low %v10658_v58, %v10665_v39  ;;  %v9155_v9 = vpop.xlane.xlu1 %9154 }
 0x6fc   : > { %v9602_v0 = vrot.slane %v18909_v12, %v21067_v26  ;;  %v18960_v30 = vpop.eup %14389  ;;  %14409 = vpow2.f32 %v18882_v62  ;;  %v9606_v37 = vrot.slane %v18909_v12, %v21068_v3  ;;  %v10599_v45 = vcombine.low %v9578_v57, %v9582_v29 }
 0x6fd   : > { %v10600_v11 = vcombine.low %v9586_v60, %v9590_v1  ;;  %v18965_v16 = vpop.eup %14391  ;;  %14411 = vpow2.f32 %v18899_v56  ;;  %v10681_v34 = vcombine.low %v10672_v7, %v10679_v14  ;;  %v10688_v28 = vrot.slane %v10680_v32, %v18873_v33 }
 0x6fe   : > { %v10601_v20 = vcombine.low %v9594_v5, %v9598_v53  ;;  %v18969_v50 = vpop.eup %14393  ;;  %14413 = vpow2.f32 %v13154_v61  ;;  %v10602_v8 = vcombine.low %v9602_v0, %v9606_v37  ;;  %v10609_v62 = vrot.slane %v10599_v45, %v18873_v33 }
 0x6ff   : > { %v10616_v12 = vrot.slane %v10600_v11, %v18873_v33  ;;  %v18973_v57 = vpop.eup %14395  ;;  %14415 = vpow2.f32 %v13140_v35  ;;  %v10695_v29 = vrot.slane %v10681_v34, %v18873_v33  ;;  %v9347_v60 = vadd.f32 %v18846_v18, %v9281_v19 }
 0x700   : > { %v10623_v56 = vrot.slane %v10601_v20, %v18873_v33  ;;  %v18978_v49 = vpop.eup %14397  ;;  %v10630_v21 = vrot.slane %v10602_v8, %v18873_v33  ;;  %v9333_v61 = vadd.f32 %v18846_v18, %v9155_v9  ;;  %v9642_v13 = vrot.slane %v18920_v24, %v21060_v52 }
 0x701   : > { %v10631_v25 = vcombine.low %v10609_v62, %v10616_v12  ;;  %v18984_v63 = vpop.eup %14399  ;;  %v10696_v23 = vcombine.low %v10688_v28, %v10695_v29  ;;  %v13155_v15 = vmul.f32 -1.442695, %v9347_v60  ;;  %v9646_v35 = vrot.slane %v18920_v24, %v21062_v2 }
 0x702   : > { %v9650_v17 = vrot.slane %v18920_v24, %v21063_v59  ;;  %v18990_v1 = vpop.eup %14401  ;;  %v10632_v40 = vcombine.low %v10623_v56, %v10630_v21  ;;  %v13141_v39 = vmul.f32 -1.442695, %v9333_v61  ;;  %v9654_v7 = vrot.slane %v18920_v24, %v21064_v44 }
 0x703   : > { %v10639_v58 = vrot.slane %v10631_v25, %v18873_v33  ;;  %v14404_v5 = vpop.eup %14403  ;;  %12171 = vperm.xlu0 %14325, %v10696_v23   ;;  %14417 = vpow2.f32 %v13155_v15  ;;  %v9658_v53 = vrot.slane %v18920_v24, %v21065_v42  ;;  %v9662_v14 = vrot.slane %v18920_v24, %v21066_v36 }
 0x704   : > { %v9666_v32 = vrot.slane %v18920_v24, %v21067_v26  ;;  %v14406_v0 = vpop.eup %14405  ;;  %v9469_v37 = vadd.f32 1.0, %v14404_v5  ;;  %v10646_v45 = vrot.slane %v10632_v40, %v18873_v33  ;;  %14419 = vpow2.f32 %v13141_v39 }
 0x705   : > { %v9670_v11 = vrot.slane %v18920_v24, %v21068_v3  ;;  %v14408_v19 = vpop.eup %14407  ;;  %v9470_v34 = vadd.f32 1.0, %v14406_v0  ;;  %v10697_v28 = vcombine.low %v9642_v13, %v9646_v35  ;;  %v10698_v20 = vcombine.low %v9650_v17, %v9654_v7 }
 0x706   : > { %v10699_v9 = vcombine.low %v9658_v53, %v9662_v14  ;;  %v14410_v8 = vpop.eup %14409  ;;  %14421 = vrcp.f32 %v9469_v37  ;;  %v9471_v62 = vadd.f32 1.0, %v14408_v19  ;;  %v10647_v12 = vcombine.low %v10639_v58, %v10646_v45 }
 0x707   : > { %v10700_v29 = vcombine.low %v9666_v32, %v9670_v11  ;;  %v14412_v56 = vpop.eup %14411  ;;  %14423 = vrcp.f32 %v9470_v34  ;;  %v9472_v60 = vadd.f32 1.0, %v14410_v8  ;;  %v10707_v21 = vrot.slane %v10697_v28, %v18873_v33  ;;  %v9164_v32 = vpop.xlane.xlu1 %9163 }
 0x708   : > { %v10714_v25 = vrot.slane %v10698_v20, %v18873_v33  ;;  %v14414_v61 = vpop.eup %14413  ;;  %14425 = vrcp.f32 %v9471_v62  ;;  %v9473_v24 = vadd.f32 1.0, %v14412_v56  ;;  %12168 = vperm.xlu1 %14326, %v10647_v12   ;;  %v10721_v13 = vrot.slane %v10699_v9, %v18873_v33 }
 0x709   : > { %v10728_v23 = vrot.slane %v10700_v29, %v18873_v33  ;;  %v14416_v15 = vpop.eup %14415  ;;  %14427 = vrcp.f32 %v9472_v60  ;;  %v9474_v35 = vadd.f32 1.0, %v14414_v61  ;;  %v10154_v40 = vrot.slane %v18973_v57, %v21060_v52 }
 0x70a   : > { %v10729_v17 = vcombine.low %v10707_v21, %v10714_v25  ;;  %14429 = vrcp.f32 %v9473_v24  ;;  %v9460_v58 = vadd.f32 1.0, %v14416_v15  ;;  %v10158_v7 = vrot.slane %v18973_v57, %v21062_v2 }
 0x70b   : > { %v10730_v39 = vcombine.low %v10721_v13, %v10728_v23  ;;  %14431 = vrcp.f32 %v9474_v35  ;;  %v10162_v53 = vrot.slane %v18973_v57, %v21063_v59  ;;  %v10166_v14 = vrot.slane %v18973_v57, %v21064_v44 }
 0x70c   : > { %v10737_v5 = vrot.slane %v10729_v17, %v18873_v33  ;;  %14433 = vrcp.f32 %v9460_v58  ;;  %v10170_v37 = vrot.slane %v18973_v57, %v21065_v42  ;;  %v10174_v45 = vrot.slane %v18973_v57, %v21066_v36 }
 0x70d   : > { %v10744_v0 = vrot.slane %v10730_v39, %v18873_v33  ;;  %v14418_v11 = vpop.eup %14417  ;;  %v10178_v19 = vrot.slane %v18973_v57, %v21067_v26  ;;  %v10182_v34 = vrot.slane %v18973_v57, %v21068_v3  ;;  %v11481_v28 = vcombine.low %v10154_v40, %v10158_v7 }
 0x70e   : > { %v11482_v20 = vcombine.low %v10162_v53, %v10166_v14  ;;  %v14420_v9 = vpop.eup %14419  ;;  %v9475_v8 = vadd.f32 1.0, %v14418_v11  ;;  %v11483_v12 = vcombine.low %v10170_v37, %v10174_v45  ;;  %v9334_v29 = vadd.f32 %v18846_v18, %v9164_v32 }
 0x70f   : > { %v10745_v62 = vcombine.low %v10737_v5, %v10744_v0  ;;  %v9461_v56 = vadd.f32 1.0, %v14420_v9  ;;  %v11484_v60 = vcombine.low %v10178_v19, %v10182_v34  ;;  %v11491_v21 = vrot.slane %v11481_v28, %v18873_v33 }
 0x710   : > { %v11498_v25 = vrot.slane %v11482_v20, %v18873_v33  ;;  %v19029_v61 = vpop.eup %14421  ;;  %14435 = vrcp.f32 %v9475_v8  ;;  %v11505_v57 = vrot.slane %v11483_v12, %v18873_v33  ;;  %v13142_v24 = vmul.f32 -1.442695, %v9334_v29 }
 0x711   : > { %12174 = vperm.xlu1 %14326, %v10745_v62   ;;  %v9674_v13 = vrot.slane %v18924_v38, %v21060_v52  ;;  %v19034_v23 = vpop.eup %14423  ;;  %14437 = vrcp.f32 %v9461_v56  ;;  %v11512_v15 = vrot.slane %v11484_v60, %v18873_v33  ;;  %v9678_v17 = vrot.slane %v18924_v38, %v21062_v2 }
 0x712   : > { %v11513_v35 = vcombine.low %v11491_v21, %v11498_v25  ;;  %v19039_v40 = vpop.eup %14425  ;;  %14439 = vpow2.f32 %v13142_v24  ;;  %v9682_v58 = vrot.slane %v18924_v38, %v21063_v59  ;;  %v9686_v39 = vrot.slane %v18924_v38, %v21064_v44  ;;  %v9290_v21 = vpop.xlane.xlu1 %9289 }
 0x713   : > { %v9690_v7 = vrot.slane %v18924_v38, %v21065_v42  ;;  %v19047_v5 = vpop.eup %14427  ;;  %v11514_v53 = vcombine.low %v11505_v57, %v11512_v15  ;;  %v9694_v32 = vrot.slane %v18924_v38, %v21066_v36  ;;  %v9698_v0 = vrot.slane %v18924_v38, %v21067_v26 }
 0x714   : > { %v11521_v14 = vrot.slane %v11513_v35, %v18873_v33  ;;  %v19054_v37 = vpop.eup %14429  ;;  %v9702_v45 = vrot.slane %v18924_v38, %v21068_v3  ;;  %v10746_v11 = vcombine.low %v9674_v13, %v9678_v17  ;;  %v10747_v19 = vcombine.low %v9682_v58, %v9686_v39 }
 0x715   : > { %v10186_v34 = vrot.slane %v18978_v49, %v21060_v52  ;;  %v19060_v28 = vpop.eup %14431  ;;  %v11528_v20 = vrot.slane %v11514_v53, %v18873_v33  ;;  %v10748_v9 = vcombine.low %v9690_v7, %v9694_v32  ;;  %v10190_v8 = vrot.slane %v18978_v49, %v21062_v2 }
 0x716   : > { %v10194_v62 = vrot.slane %v18978_v49, %v21063_v59  ;;  %v19067_v12 = vpop.eup %14433  ;;  %v10749_v29 = vcombine.low %v9698_v0, %v9702_v45  ;;  %v10756_v38 = vrot.slane %v10746_v11, %v18873_v33  ;;  %v10763_v56 = vrot.slane %v10747_v19, %v18873_v33 }
 0x717   : > { %v10198_v60 = vrot.slane %v18978_v49, %v21064_v44  ;;  %v11529_v25 = vcombine.low %v11521_v14, %v11528_v20  ;;  %v10770_v57 = vrot.slane %v10748_v9, %v18873_v33  ;;  %v10202_v24 = vrot.slane %v18978_v49, %v21065_v42 }
 0x718   : > { %v10206_v13 = vrot.slane %v18978_v49, %v21066_v36  ;;  %v10777_v15 = vrot.slane %v10749_v29, %v18873_v33  ;;  %v10778_v35 = vcombine.low %v10756_v38, %v10763_v56  ;;  %v10210_v17 = vrot.slane %v18978_v49, %v21067_v26 }
 0x719   : > { %v10214_v58 = vrot.slane %v18978_v49, %v21068_v3  ;;  %12222 = vperm.xlu0 %14325, %v11529_v25   ;;  %v11530_v39 = vcombine.low %v10186_v34, %v10190_v8  ;;  %v11531_v7 = vcombine.low %v10194_v62, %v10198_v60  ;;  %v9348_v14 = vadd.f32 %v18846_v18, %v9290_v21 }
 0x71a   : > { %v11532_v53 = vcombine.low %v10202_v24, %v10206_v13  ;;  %v19084_v32 = vpop.eup %14435  ;;  %v10779_v0 = vcombine.low %v10770_v57, %v10777_v15  ;;  %v10786_v45 = vrot.slane %v10778_v35, %v18873_v33  ;;  %v9706_v19 = vrot.slane %v18929_v10, %v21060_v52 }
 0x71b   : > { %v11533_v11 = vcombine.low %v10210_v17, %v10214_v58  ;;  %v19089_v20 = vpop.eup %14437  ;;  %v11540_v9 = vrot.slane %v11530_v39, %v18873_v33  ;;  %v11547_v49 = vrot.slane %v11531_v7, %v18873_v33  ;;  %v13156_v8 = vmul.f32 -1.442695, %v9348_v14 }
 0x71c   : > { %v11554_v34 = vrot.slane %v11532_v53, %v18873_v33  ;;  %v14440_v62 = vpop.eup %14439  ;;  %v10793_v29 = vrot.slane %v10779_v0, %v18873_v33  ;;  %v9710_v56 = vrot.slane %v18929_v10, %v21062_v2  ;;  %v9714_v60 = vrot.slane %v18929_v10, %v21063_v59 }
 0x71d   : > { %v11561_v38 = vrot.slane %v11533_v11, %v18873_v33  ;;  %v11562_v21 = vcombine.low %v11540_v9, %v11547_v49  ;;  %14441 = vpow2.f32 %v13156_v8  ;;  %v9718_v25 = vrot.slane %v18929_v10, %v21064_v44 }
 0x71e   : > { %v19108_v57 = vcombine.low %v9890_v31, %v9894_v55  ;;  %v10794_v24 = vcombine.low %v10786_v45, %v10793_v29  ;;  %v9722_v15 = vrot.slane %v18929_v10, %v21065_v42  ;;  %v9726_v35 = vrot.slane %v18929_v10, %v21066_v36 }
 0x71f   : > { %v11563_v13 = vcombine.low %v11554_v34, %v11561_v38  ;;  %v9462_v17 = vadd.f32 1.0, %v14440_v62  ;;  %v11570_v58 = vrot.slane %v11562_v21, %v18873_v33  ;;  %v9730_v39 = vrot.slane %v18929_v10, %v21067_v26 }
 0x720   : > { %v9734_v7 = vrot.slane %v18929_v10, %v21068_v3  ;;  %12177 = vperm.xlu1 %14326, %v10794_v24   ;;  %v10795_v31 = vcombine.low %v9706_v19, %v9710_v56  ;;  %v10796_v55 = vcombine.low %v9714_v60, %v9718_v25  ;;  %v10797_v53 = vcombine.low %v9722_v15, %v9726_v35  ;;  %v9299_v19 = vpop.xlane.xlu1 %9298 }
 0x721   : > { %v11577_v41 = vrot.slane %v11563_v13, %v18873_v33  ;;  %v10218_v0 = vrot.slane %v18984_v63, %v21060_v52  ;;  %v10222_v45 = vrot.slane %v18984_v63, %v21062_v2  ;;  %v10226_v11 = vrot.slane %v18984_v63, %v21063_v59 }
 0x722   : > { %v10798_v14 = vcombine.low %v9730_v39, %v9734_v7  ;;  %v10805_v49 = vrot.slane %v10795_v31, %v18873_v33  ;;  %v10812_v10 = vrot.slane %v10796_v55, %v18873_v33  ;;  %v10819_v34 = vrot.slane %v10797_v53, %v18873_v33 }
 0x723   : > { %v11578_v9 = vcombine.low %v11570_v58, %v11577_v41  ;;  %v10230_v62 = vrot.slane %v18984_v63, %v21064_v44  ;;  %v10234_v29 = vrot.slane %v18984_v63, %v21065_v42  ;;  %v10238_v38 = vrot.slane %v18984_v63, %v21066_v36 }
 0x724   : > { %v10826_v8 = vrot.slane %v10798_v14, %v18873_v33  ;;  %v10827_v56 = vcombine.low %v10805_v49, %v10812_v10  ;;  %v10242_v60 = vrot.slane %v18984_v63, %v21067_v26  ;;  %v10246_v21 = vrot.slane %v18984_v63, %v21068_v3 }
 0x725   : > { %12225 = vperm.xlu0 %14325, %v11578_v9   ;;  %v11579_v25 = vcombine.low %v10218_v0, %v10222_v45  ;;  %v11580_v13 = vcombine.low %v10226_v11, %v10230_v62  ;;  %v11581_v15 = vcombine.low %v10234_v29, %v10238_v38  ;;  %v9349_v35 = vadd.f32 %v18846_v18, %v9299_v19 }
 0x726   : > { %v10828_v24 = vcombine.low %v10819_v34, %v10826_v8  ;;  %v10835_v58 = vrot.slane %v10827_v56, %v18873_v33  ;;  %v11582_v39 = vcombine.low %v10242_v60, %v10246_v21  ;;  %v9738_v41 = vrot.slane %v18934_v51, %v21060_v52 }
 0x727   : > { %v11589_v7 = vrot.slane %v11579_v25, %v18873_v33  ;;  %v14442_v31 = vpop.eup %14441  ;;  %v11596_v53 = vrot.slane %v11580_v13, %v18873_v33  ;;  %v11603_v63 = vrot.slane %v11581_v15, %v18873_v33  ;;  %v13157_v14 = vmul.f32 -1.442695, %v9349_v35 }
 0x728   : > { %v10842_v55 = vrot.slane %v10828_v24, %v18873_v33  ;;  %14443 = vrcp.f32 %v9462_v17  ;;  %v11610_v0 = vrot.slane %v11582_v39, %v18873_v33  ;;  %v9742_v45 = vrot.slane %v18934_v51, %v21062_v2 }
 0x729   : > { %v9746_v11 = vrot.slane %v18934_v51, %v21063_v59  ;;  %v11611_v49 = vcombine.low %v11589_v7, %v11596_v53  ;;  %14445 = vpow2.f32 %v13157_v14  ;;  %v9750_v10 = vrot.slane %v18934_v51, %v21064_v44 }
 0x72a   : > { %v10843_v9 = vcombine.low %v10835_v58, %v10842_v55  ;;  %v9476_v34 = vadd.f32 1.0, %v14442_v31  ;;  %v11612_v19 = vcombine.low %v11603_v63, %v11610_v0  ;;  %v9754_v8 = vrot.slane %v18934_v51, %v21065_v42  ;;  %v9308_v31 = vpop.xlane.xlu1 %9307 }
 0x72b   : > { %v9758_v17 = vrot.slane %v18934_v51, %v21066_v36  ;;  %v11619_v62 = vrot.slane %v11611_v49, %v18873_v33  ;;  %v9762_v29 = vrot.slane %v18934_v51, %v21067_v26  ;;  %v9766_v38 = vrot.slane %v18934_v51, %v21068_v3 }
 0x72c   : > { %12180 = vperm.xlu1 %14326, %v10843_v9   ;;  %v10844_v56 = vcombine.low %v9738_v41, %v9742_v45  ;;  %v11626_v60 = vrot.slane %v11612_v19, %v18873_v33  ;;  %v10845_v21 = vcombine.low %v9746_v11, %v9750_v10  ;;  %v10250_v24 = vrot.slane %v18990_v1, %v21060_v52 }
 0x72d   : > { %v10846_v25 = vcombine.low %v9754_v8, %v9758_v17  ;;  %v10847_v13 = vcombine.low %v9762_v29, %v9766_v38  ;;  %v10254_v35 = vrot.slane %v18990_v1, %v21062_v2  ;;  %v10258_v58 = vrot.slane %v18990_v1, %v21063_v59 }
 0x72e   : > { %v10854_v15 = vrot.slane %v10844_v56, %v18873_v33  ;;  %v11627_v39 = vcombine.low %v11619_v62, %v11626_v60  ;;  %v10861_v51 = vrot.slane %v10845_v21, %v18873_v33  ;;  %v10262_v41 = vrot.slane %v18990_v1, %v21064_v44 }
 0x72f   : > { %v10868_v7 = vrot.slane %v10846_v25, %v18873_v33  ;;  %v10875_v55 = vrot.slane %v10847_v13, %v18873_v33  ;;  %v10266_v53 = vrot.slane %v18990_v1, %v21065_v42  ;;  %v10270_v63 = vrot.slane %v18990_v1, %v21066_v36 }
 0x730   : > { %v10274_v14 = vrot.slane %v18990_v1, %v21067_v26  ;;  %12228 = vperm.xlu0 %14325, %v11627_v39   ;;  %v10876_v0 = vcombine.low %v10854_v15, %v10861_v51  ;;  %v10278_v45 = vrot.slane %v18990_v1, %v21068_v3  ;;  %v11628_v11 = vcombine.low %v10250_v24, %v10254_v35 }
 0x731   : > { %v11629_v9 = vcombine.low %v10258_v58, %v10262_v41  ;;  %v10877_v49 = vcombine.low %v10868_v7, %v10875_v55  ;;  %v11630_v10 = vcombine.low %v10266_v53, %v10270_v63  ;;  %v9350_v19 = vadd.f32 %v18846_v18, %v9308_v31 }
 0x732   : > { %v9770_v8 = vrot.slane %v18937_v6, %v21060_v52  ;;  %v19188_v17 = vpop.eup %14443  ;;  %v10884_v62 = vrot.slane %v10876_v0, %v18873_v33  ;;  %v11631_v29 = vcombine.low %v10274_v14, %v10278_v45  ;;  %v11638_v38 = vrot.slane %v11628_v11, %v18873_v33 }
 0x733   : > { %v11645_v56 = vrot.slane %v11629_v9, %v18873_v33  ;;  %v14446_v60 = vpop.eup %14445  ;;  %v10891_v1 = vrot.slane %v10877_v49, %v18873_v33  ;;  %v11652_v21 = vrot.slane %v11630_v10, %v18873_v33  ;;  %v13158_v25 = vmul.f32 -1.442695, %v9350_v19 }
 0x734   : > { %v9774_v18 = vrot.slane %v18937_v6, %v21062_v2  ;;  %14447 = vrcp.f32 %v9476_v34  ;;  %v11659_v24 = vrot.slane %v11631_v29, %v18873_v33  ;;  %v9778_v15 = vrot.slane %v18937_v6, %v21063_v59 }
 0x735   : > { %v11660_v13 = vcombine.low %v11638_v38, %v11645_v56  ;;  %v10892_v35 = vcombine.low %v10884_v62, %v10891_v1  ;;  %14449 = vpow2.f32 %v13158_v25  ;;  %v9782_v58 = vrot.slane %v18937_v6, %v21064_v44 }
 0x736   : > { %v9786_v39 = vrot.slane %v18937_v6, %v21065_v42  ;;  %v9477_v51 = vadd.f32 1.0, %v14446_v60  ;;  %v11661_v7 = vcombine.low %v11652_v21, %v11659_v24  ;;  %v9790_v34 = vrot.slane %v18937_v6, %v21066_v36 }
 0x737   : > { %v11668_v41 = vrot.slane %v11660_v13, %v18873_v33  ;;  %12183 = vperm.xlu1 %14326, %v10892_v35   ;;  %v9794_v31 = vrot.slane %v18937_v6, %v21067_v26  ;;  %v9798_v55 = vrot.slane %v18937_v6, %v21068_v3  ;;  %v10893_v53 = vcombine.low %v9770_v8, %v9774_v18 }
 0x738   : > { %v10894_v63 = vcombine.low %v9778_v15, %v9782_v58  ;;  %v11675_v14 = vrot.slane %v11661_v7, %v18873_v33  ;;  %v10895_v0 = vcombine.low %v9786_v39, %v9790_v34  ;;  %v10282_v45 = vrot.slane %v19029_v61, %v21060_v52 }
 0x739   : > { %v10286_v11 = vrot.slane %v19029_v61, %v21062_v2  ;;  %v10896_v9 = vcombine.low %v9794_v31, %v9798_v55  ;;  %v10903_v49 = vrot.slane %v10893_v53, %v18873_v33  ;;  %v10290_v19 = vrot.slane %v19029_v61, %v21063_v59 }
 0x73a   : > { %v10910_v10 = vrot.slane %v10894_v63, %v18873_v33  ;;  %v11676_v6 = vcombine.low %v11668_v41, %v11675_v14  ;;  %v10917_v8 = vrot.slane %v10895_v0, %v18873_v33  ;;  %v10294_v62 = vrot.slane %v19029_v61, %v21064_v44 }
 0x73b   : > { %v10298_v29 = vrot.slane %v19029_v61, %v21065_v42  ;;  %v10924_v38 = vrot.slane %v10896_v9, %v18873_v33  ;;  %v10302_v60 = vrot.slane %v19029_v61, %v21066_v36  ;;  %v10306_v1 = vrot.slane %v19029_v61, %v21067_v26 }
 0x73c   : > { %v10925_v56 = vcombine.low %v10903_v49, %v10910_v10  ;;  %12231 = vperm.xlu0 %14325, %v11676_v6   ;;  %v10310_v21 = vrot.slane %v19029_v61, %v21068_v3  ;;  %v11677_v25 = vcombine.low %v10282_v45, %v10286_v11  ;;  %v11678_v18 = vcombine.low %v10290_v19, %v10294_v62 }
 0x73d   : > { %v9802_v24 = vrot.slane %v18941_v22, %v21060_v52  ;;  %v10926_v13 = vcombine.low %v10917_v8, %v10924_v38  ;;  %v11679_v35 = vcombine.low %v10298_v29, %v10302_v60  ;;  %v9806_v58 = vrot.slane %v18941_v22, %v21062_v2 }
 0x73e   : > { %v10933_v15 = vrot.slane %v10925_v56, %v18873_v33  ;;  %v19237_v39 = vpop.eup %14447  ;;  %v11680_v7 = vcombine.low %v10306_v1, %v10310_v21  ;;  %v11687_v41 = vrot.slane %v11677_v25, %v18873_v33  ;;  %v11694_v34 = vrot.slane %v11678_v18, %v18873_v33 }
 0x73f   : > { %v9810_v61 = vrot.slane %v18941_v22, %v21063_v59  ;;  %v14450_v31 = vpop.eup %14449  ;;  %v10940_v55 = vrot.slane %v10926_v13, %v18873_v33  ;;  %v11701_v53 = vrot.slane %v11679_v35, %v18873_v33  ;;  %v9814_v63 = vrot.slane %v18941_v22, %v21064_v44 }
 0x740   : > { %v9818_v14 = vrot.slane %v18941_v22, %v21065_v42  ;;  %14451 = vrcp.f32 %v9477_v51  ;;  %v11708_v0 = vrot.slane %v11680_v7, %v18873_v33  ;;  %v11709_v45 = vcombine.low %v11687_v41, %v11694_v34 }
 0x741   : > { %v9822_v11 = vrot.slane %v18941_v22, %v21066_v36  ;;  %v10941_v9 = vcombine.low %v10933_v15, %v10940_v55  ;;  %v9826_v49 = vrot.slane %v18941_v22, %v21067_v26  ;;  %v9830_v10 = vrot.slane %v18941_v22, %v21068_v3 }
 0x742   : > { %v10942_v19 = vcombine.low %v9802_v24, %v9806_v58  ;;  %v19256_v6 = vadd.f32 1.0, %v14450_v31  ;;  %v11710_v8 = vcombine.low %v11701_v53, %v11708_v0  ;;  %v11717_v62 = vrot.slane %v11709_v45, %v18873_v33 }
 0x743   : > { %v10943_v51 = vcombine.low %v9810_v61, %v9814_v63  ;;  %12186 = vperm.xlu1 %14326, %v10941_v9   ;;  %v10944_v29 = vcombine.low %v9818_v14, %v9822_v11  ;;  %v10945_v38 = vcombine.low %v9826_v49, %v9830_v10  ;;  %v10314_v60 = vrot.slane %v19034_v23, %v21060_v52 }
 0x744   : > { %v10952_v56 = vrot.slane %v10942_v19, %v18873_v33  ;;  %v11724_v1 = vrot.slane %v11710_v8, %v18873_v33  ;;  %v10318_v22 = vrot.slane %v19034_v23, %v21062_v2  ;;  %v10322_v25 = vrot.slane %v19034_v23, %v21063_v59 }
 0x745   : > { %v10959_v21 = vrot.slane %v10943_v51, %v18873_v33  ;;  %v10966_v18 = vrot.slane %v10944_v29, %v18873_v33  ;;  %v10973_v24 = vrot.slane %v10945_v38, %v18873_v33  ;;  %v10326_v13 = vrot.slane %v19034_v23, %v21064_v44 }
 0x746   : > { %v10330_v15 = vrot.slane %v19034_v23, %v21065_v42  ;;  %v11725_v35 = vcombine.low %v11717_v62, %v11724_v1  ;;  %v10334_v7 = vrot.slane %v19034_v23, %v21066_v36  ;;  %v10338_v41 = vrot.slane %v19034_v23, %v21067_v26 }
 0x747   : > { %v10974_v58 = vcombine.low %v10952_v56, %v10959_v21  ;;  %v10975_v34 = vcombine.low %v10966_v18, %v10973_v24  ;;  %v10342_v61 = vrot.slane %v19034_v23, %v21068_v3  ;;  %v11726_v31 = vcombine.low %v10314_v60, %v10318_v22 }
 0x748   : > { %v11727_v55 = vcombine.low %v10322_v25, %v10326_v13  ;;  %12234 = vperm.xlu0 %14325, %v11725_v35   ;;  %v11728_v63 = vcombine.low %v10330_v15, %v10334_v7  ;;  %v9834_v14 = vrot.slane %v18946_v54, %v21060_v52  ;;  %v9838_v0 = vrot.slane %v18946_v54, %v21062_v2 }
 0x749   : > { %v10982_v53 = vrot.slane %v10974_v58, %v18873_v33  ;;  %v10989_v45 = vrot.slane %v10975_v34, %v18873_v33  ;;  %v11729_v11 = vcombine.low %v10338_v41, %v10342_v61  ;;  %v11736_v9 = vrot.slane %v11726_v31, %v18873_v33 }
 0x74a   : > { %v11743_v49 = vrot.slane %v11727_v55, %v18873_v33  ;;  %v19288_v23 = vpop.eup %14451  ;;  %v11750_v10 = vrot.slane %v11728_v63, %v18873_v33  ;;  %v9842_v19 = vrot.slane %v18946_v54, %v21063_v59  ;;  %v9846_v8 = vrot.slane %v18946_v54, %v21064_v44 }
 0x74b   : > { %v9850_v62 = vrot.slane %v18946_v54, %v21065_v42  ;;  %v10990_v51 = vcombine.low %v10982_v53, %v10989_v45  ;;  %v11757_v29 = vrot.slane %v11729_v11, %v18873_v33  ;;  %v9854_v56 = vrot.slane %v18946_v54, %v21066_v36 }
 0x74c   : > { %v11758_v38 = vcombine.low %v11736_v9, %v11743_v49  ;;  %v9858_v60 = vrot.slane %v18946_v54, %v21067_v26  ;;  %v9862_v1 = vrot.slane %v18946_v54, %v21068_v3  ;;  %v10991_v21 = vcombine.low %v9834_v14, %v9838_v0 }
 0x74d   : > { %v10992_v22 = vcombine.low %v9842_v19, %v9846_v8  ;;  %12189 = vperm.xlu1 %14326, %v10990_v51   ;;  %v11759_v25 = vcombine.low %v11750_v10, %v11757_v29  ;;  %v10993_v24 = vcombine.low %v9850_v62, %v9854_v56  ;;  %v10346_v13 = vrot.slane %v19039_v40, %v21060_v52 }
 0x74e   : > { %v11766_v18 = vrot.slane %v11758_v38, %v18873_v33  ;;  %v10994_v15 = vcombine.low %v9858_v60, %v9862_v1  ;;  %v11001_v35 = vrot.slane %v10991_v21, %v18873_v33  ;;  %v10350_v7 = vrot.slane %v19039_v40, %v21062_v2 }
 0x74f   : > { %v11008_v58 = vrot.slane %v10992_v22, %v18873_v33  ;;  %v11773_v54 = vrot.slane %v11759_v25, %v18873_v33  ;;  %v11015_v41 = vrot.slane %v10993_v24, %v18873_v33  ;;  %v10354_v34 = vrot.slane %v19039_v40, %v21063_v59 }
 0x750   : > { %v10358_v61 = vrot.slane %v19039_v40, %v21064_v44  ;;  %v11022_v31 = vrot.slane %v10994_v15, %v18873_v33  ;;  %v10362_v53 = vrot.slane %v19039_v40, %v21065_v42  ;;  %v10366_v63 = vrot.slane %v19039_v40, %v21066_v36 }
 0x751   : > { %v11023_v55 = vcombine.low %v11001_v35, %v11008_v58  ;;  %v11774_v14 = vcombine.low %v11766_v18, %v11773_v54  ;;  %v10370_v0 = vrot.slane %v19039_v40, %v21067_v26  ;;  %v10374_v45 = vrot.slane %v19039_v40, %v21068_v3 }
 0x752   : > { %v11775_v11 = vcombine.low %v10346_v13, %v10350_v7  ;;  %v11024_v9 = vcombine.low %v11015_v41, %v11022_v31  ;;  %v11776_v10 = vcombine.low %v10354_v34, %v10358_v61  ;;  %v11777_v19 = vcombine.low %v10362_v53, %v10366_v63 }
 0x753   : > { %v11031_v49 = vrot.slane %v11023_v55, %v18873_v33  ;;  %12237 = vperm.xlu0 %14325, %v11774_v14   ;;  %v11778_v8 = vcombine.low %v10370_v0, %v10374_v45  ;;  %v11050_v51 = vrot.slane %v18905_v47, %v18873_v33  ;;  %v11057_v29 = vrot.slane %v18907_v43, %v18873_v33 }
 0x754   : > { %v11785_v62 = vrot.slane %v11775_v11, %v18873_v33  ;;  %v11038_v38 = vrot.slane %v11024_v9, %v18873_v33  ;;  %v11792_v40 = vrot.slane %v11776_v10, %v18873_v33  ;;  %v11799_v56 = vrot.slane %v11777_v19, %v18873_v33 }
 0x755   : > { %v11064_v60 = vrot.slane %v18912_v46, %v18873_v33  ;;  %v11806_v1 = vrot.slane %v11778_v8, %v18873_v33  ;;  %v11071_v21 = vrot.slane %v19108_v57, %v18873_v33  ;;  %v11072_v22 = vcombine.low %v11050_v51, %v11057_v29 }
 0x756   : > { %v10378_v47 = vrot.slane %v19047_v5, %v21060_v52  ;;  %v11039_v25 = vcombine.low %v11031_v49, %v11038_v38  ;;  %v11807_v43 = vcombine.low %v11785_v62, %v11792_v40  ;;  %v10382_v18 = vrot.slane %v19047_v5, %v21062_v2 }
 0x757   : > { %v10386_v24 = vrot.slane %v19047_v5, %v21063_v59  ;;  %v11808_v13 = vcombine.low %v11799_v56, %v11806_v1  ;;  %v11073_v15 = vcombine.low %v11064_v60, %v11071_v21  ;;  %v11080_v46 = vrot.slane %v11072_v22, %v18873_v33 }
 0x758   : > { %v10390_v35 = vrot.slane %v19047_v5, %v21064_v44  ;;  %12192 = vperm.xlu1 %14326, %v11039_v25   ;;  %v11815_v57 = vrot.slane %v11807_v43, %v18873_v33  ;;  %v10394_v58 = vrot.slane %v19047_v5, %v21065_v42  ;;  %v10398_v7 = vrot.slane %v19047_v5, %v21066_v36 }
 0x759   : > { %v10402_v54 = vrot.slane %v19047_v5, %v21067_v26  ;;  %v11822_v41 = vrot.slane %v11808_v13, %v18873_v33  ;;  %v11087_v34 = vrot.slane %v11073_v15, %v18873_v33  ;;  %v10406_v61 = vrot.slane %v19047_v5, %v21068_v3 }
 0x75a   : > { %v11824_v31 = vcombine.low %v10378_v47, %v10382_v18  ;;  %v11825_v55 = vcombine.low %v10386_v24, %v10390_v35  ;;  %v11826_v53 = vcombine.low %v10394_v58, %v10398_v7  ;;  %v9898_v63 = vrot.slane %v18895_v4, %v21060_v52 }
 0x75b   : > { %v9902_v14 = vrot.slane %v18895_v4, %v21062_v2  ;;  %v11823_v0 = vcombine.low %v11815_v57, %v11822_v41  ;;  %v11088_v45 = vcombine.low %v11080_v46, %v11087_v34  ;;  %v11827_v11 = vcombine.low %v10402_v54, %v10406_v61 }
 0x75c   : > { %v11834_v9 = vrot.slane %v11824_v31, %v18873_v33  ;;  %v11841_v49 = vrot.slane %v11825_v55, %v18873_v33  ;;  %v11848_v10 = vrot.slane %v11826_v53, %v18873_v33  ;;  %v9906_v5 = vrot.slane %v18895_v4, %v21063_v59 }
 0x75d   : > { %v9910_v19 = vrot.slane %v18895_v4, %v21064_v44  ;;  %14453 = vrcp.f32 %v19256_v6  ;;  %12240 = vperm.xlu0 %14325, %v11823_v0   ;;  %12195 = vperm.xlu1 %14326, %v11088_v45   ;;  %v11855_v8 = vrot.slane %v11827_v11, %v18873_v33  ;;  %v9914_v62 = vrot.slane %v18895_v4, %v21065_v42 }
 0x75e   : > { %v9918_v51 = vrot.slane %v18895_v4, %v21066_v36  ;;  %v11856_v29 = vcombine.low %v11834_v9, %v11841_v49  ;;  %v9922_v38 = vrot.slane %v18895_v4, %v21067_v26  ;;  %v9926_v40 = vrot.slane %v18895_v4, %v21068_v3 }
 0x75f   : > { %v11089_v56 = vcombine.low %v9898_v63, %v9902_v14  ;;  %v11857_v60 = vcombine.low %v11848_v10, %v11855_v8  ;;  %v11090_v6 = vcombine.low %v9906_v5, %v9910_v19  ;;  %v10410_v21 = vrot.slane %v19054_v37, %v21060_v52 }
 0x760   : > { %v11091_v1 = vcombine.low %v9914_v62, %v9918_v51  ;;  %v11864_v22 = vrot.slane %v11856_v29, %v18873_v33  ;;  %v11092_v47 = vcombine.low %v9922_v38, %v9926_v40  ;;  %v10414_v43 = vrot.slane %v19054_v37, %v21062_v2 }
 0x761   : > { %v11099_v25 = vrot.slane %v11089_v56, %v18873_v33  ;;  %v11871_v18 = vrot.slane %v11857_v60, %v18873_v33  ;;  %v11106_v24 = vrot.slane %v11090_v6, %v18873_v33  ;;  %v10418_v13 = vrot.slane %v19054_v37, %v21063_v59 }
 0x762   : > { %v11113_v4 = vrot.slane %v11091_v1, %v18873_v33  ;;  %v11120_v15 = vrot.slane %v11092_v47, %v18873_v33  ;;  %v10422_v46 = vrot.slane %v19054_v37, %v21064_v44  ;;  %v10426_v35 = vrot.slane %v19054_v37, %v21065_v42 }
 0x763   : > { %v10430_v57 = vrot.slane %v19054_v37, %v21066_v36  ;;  %v11872_v58 = vcombine.low %v11864_v22, %v11871_v18  ;;  %v11121_v7 = vcombine.low %v11099_v25, %v11106_v24  ;;  %v10434_v54 = vrot.slane %v19054_v37, %v21067_v26 }
 0x764   : > { %v10438_v41 = vrot.slane %v19054_v37, %v21068_v3  ;;  %v11122_v34 = vcombine.low %v11113_v4, %v11120_v15  ;;  %v11873_v61 = vcombine.low %v10410_v21, %v10414_v43  ;;  %v11874_v31 = vcombine.low %v10418_v13, %v10422_v46 }
 0x765   : > { %v11875_v55 = vcombine.low %v10426_v35, %v10430_v57  ;;  %12243 = vperm.xlu0 %14325, %v11872_v58   ;;  %v11129_v53 = vrot.slane %v11121_v7, %v18873_v33  ;;  %v9930_v14 = vrot.slane %v18965_v16, %v21060_v52  ;;  %v9934_v0 = vrot.slane %v18965_v16, %v21062_v2 }
 0x766   : > { %v11876_v63 = vcombine.low %v10434_v54, %v10438_v41  ;;  %v11136_v45 = vrot.slane %v11122_v34, %v18873_v33  ;;  %v11883_v11 = vrot.slane %v11873_v61, %v18873_v33  ;;  %v11890_v37 = vrot.slane %v11874_v31, %v18873_v33 }
 0x767   : > { %v11897_v9 = vrot.slane %v11875_v55, %v18873_v33  ;;  %v19412_v49 = vpop.eup %14453  ;;  %v9938_v5 = vrot.slane %v18965_v16, %v21063_v59  ;;  %v9942_v19 = vrot.slane %v18965_v16, %v21064_v44  ;;  %v9946_v8 = vrot.slane %v18965_v16, %v21065_v42 }
 0x768   : > { %v11904_v10 = vrot.slane %v11876_v63, %v18873_v33  ;;  %v11137_v62 = vcombine.low %v11129_v53, %v11136_v45  ;;  %v11905_v51 = vcombine.low %v11883_v11, %v11890_v37  ;;  %v9950_v29 = vrot.slane %v18965_v16, %v21066_v36 }
 0x769   : > { %v9954_v38 = vrot.slane %v18965_v16, %v21067_v26  ;;  %v9958_v56 = vrot.slane %v18965_v16, %v21068_v3  ;;  %v11138_v60 = vcombine.low %v9930_v14, %v9934_v0  ;;  %v11139_v6 = vcombine.low %v9938_v5, %v9942_v19 }
 0x76a   : > { %v11906_v40 = vcombine.low %v11897_v9, %v11904_v10  ;;  %12198 = vperm.xlu1 %14326, %v11137_v62   ;;  %v11913_v1 = vrot.slane %v11905_v51, %v18873_v33  ;;  %v11140_v21 = vcombine.low %v9946_v8, %v9950_v29  ;;  %v10442_v22 = vrot.slane %v19060_v28, %v21060_v52 }
 0x76b   : > { %v10446_v47 = vrot.slane %v19060_v28, %v21062_v2  ;;  %v11141_v43 = vcombine.low %v9954_v38, %v9958_v56  ;;  %v11148_v18 = vrot.slane %v11138_v60, %v18873_v33  ;;  %v11155_v24 = vrot.slane %v11139_v6, %v18873_v33 }
 0x76c   : > { %v11920_v25 = vrot.slane %v11906_v40, %v18873_v33  ;;  %v11162_v16 = vrot.slane %v11140_v21, %v18873_v33  ;;  %v10450_v4 = vrot.slane %v19060_v28, %v21063_v59  ;;  %v10454_v13 = vrot.slane %v19060_v28, %v21064_v44 }
 0x76d   : > { %v10458_v15 = vrot.slane %v19060_v28, %v21065_v42  ;;  %v11169_v35 = vrot.slane %v11141_v43, %v18873_v33  ;;  %v11170_v57 = vcombine.low %v11148_v18, %v11155_v24  ;;  %v10462_v58 = vrot.slane %v19060_v28, %v21066_v36 }
 0x76e   : > { %v11921_v46 = vcombine.low %v11913_v1, %v11920_v25  ;;  %v10466_v7 = vrot.slane %v19060_v28, %v21067_v26  ;;  %v10470_v54 = vrot.slane %v19060_v28, %v21068_v3  ;;  %v11922_v41 = vcombine.low %v10442_v22, %v10446_v47 }
 0x76f   : > { %v11923_v34 = vcombine.low %v10450_v4, %v10454_v13  ;;  %v11171_v61 = vcombine.low %v11162_v16, %v11169_v35  ;;  %v11178_v31 = vrot.slane %v11170_v57, %v18873_v33  ;;  %v11924_v55 = vcombine.low %v10458_v15, %v10462_v58 }
 0x770   : > { %12246 = vperm.xlu0 %14325, %v11921_v46   ;;  %v10090_v53 = vrot.slane %v18954_v48, %v21060_v52  ;;  %v11925_v63 = vcombine.low %v10466_v7, %v10470_v54  ;;  %v11932_v14 = vrot.slane %v11922_v41, %v18873_v33  ;;  %v10094_v45 = vrot.slane %v18954_v48, %v21062_v2 }
 0x771   : > { %v11939_v0 = vrot.slane %v11923_v34, %v18873_v33  ;;  %v11185_v28 = vrot.slane %v11171_v61, %v18873_v33  ;;  %v11946_v11 = vrot.slane %v11924_v55, %v18873_v33  ;;  %v10098_v37 = vrot.slane %v18954_v48, %v21063_v59 }
 0x772   : > { %v10102_v9 = vrot.slane %v18954_v48, %v21064_v44  ;;  %v11953_v10 = vrot.slane %v11925_v63, %v18873_v33  ;;  %v10106_v19 = vrot.slane %v18954_v48, %v21065_v42  ;;  %v10110_v8 = vrot.slane %v18954_v48, %v21066_v36 }
 0x773   : > { %v11954_v5 = vcombine.low %v11932_v14, %v11939_v0  ;;  %v11186_v62 = vcombine.low %v11178_v31, %v11185_v28  ;;  %v10114_v51 = vrot.slane %v18954_v48, %v21067_v26  ;;  %v10118_v29 = vrot.slane %v18954_v48, %v21068_v3 }
 0x774   : > { %v11383_v38 = vcombine.low %v10090_v53, %v10094_v45  ;;  %v11955_v40 = vcombine.low %v11946_v11, %v11953_v10  ;;  %v11384_v60 = vcombine.low %v10098_v37, %v10102_v9  ;;  %v11385_v6 = vcombine.low %v10106_v19, %v10110_v8 }
 0x775   : > { %v11962_v56 = vrot.slane %v11954_v5, %v18873_v33  ;;  %12201 = vperm.xlu1 %14326, %v11186_v62   ;;  %v11386_v1 = vcombine.low %v10114_v51, %v10118_v29  ;;  %v10474_v22 = vrot.slane %v19084_v32, %v21060_v52  ;;  %v10478_v47 = vrot.slane %v19084_v32, %v21062_v2 }
 0x776   : > { %v11393_v21 = vrot.slane %v11383_v38, %v18873_v33  ;;  %v11969_v25 = vrot.slane %v11955_v40, %v18873_v33  ;;  %v11400_v48 = vrot.slane %v11384_v60, %v18873_v33  ;;  %v11407_v43 = vrot.slane %v11385_v6, %v18873_v33 }
 0x777   : > { %v10482_v18 = vrot.slane %v19084_v32, %v21063_v59  ;;  %v11414_v24 = vrot.slane %v11386_v1, %v18873_v33  ;;  %v10486_v16 = vrot.slane %v19084_v32, %v21064_v44  ;;  %v10490_v4 = vrot.slane %v19084_v32, %v21065_v42 }
 0x778   : > { %v10494_v13 = vrot.slane %v19084_v32, %v21066_v36  ;;  %v11970_v15 = vcombine.low %v11962_v56, %v11969_v25  ;;  %v11415_v46 = vcombine.low %v11393_v21, %v11400_v48  ;;  %v10498_v35 = vrot.slane %v19084_v32, %v21067_v26 }
 0x779   : > { %v10502_v57 = vrot.slane %v19084_v32, %v21068_v3  ;;  %v11416_v58 = vcombine.low %v11407_v43, %v11414_v24  ;;  %v11971_v7 = vcombine.low %v10474_v22, %v10478_v47  ;;  %v11972_v54 = vcombine.low %v10482_v18, %v10486_v16 }
 0x77a   : > { %v11973_v41 = vcombine.low %v10490_v4, %v10494_v13  ;;  %12249 = vperm.xlu0 %14325, %v11970_v15   ;;  %v11423_v34 = vrot.slane %v11415_v46, %v18873_v33  ;;  %v10122_v31 = vrot.slane %v18960_v30, %v21060_v52  ;;  %v10126_v55 = vrot.slane %v18960_v30, %v21062_v2 }
 0x77b   : > { %v11974_v61 = vcombine.low %v10498_v35, %v10502_v57  ;;  %v11430_v53 = vrot.slane %v11416_v58, %v18873_v33  ;;  %v11981_v63 = vrot.slane %v11971_v7, %v18873_v33  ;;  %v11988_v32 = vrot.slane %v11972_v54, %v18873_v33 }
 0x77c   : > { %v11995_v14 = vrot.slane %v11973_v41, %v18873_v33  ;;  %v10130_v45 = vrot.slane %v18960_v30, %v21063_v59  ;;  %v10134_v28 = vrot.slane %v18960_v30, %v21064_v44  ;;  %v10138_v11 = vrot.slane %v18960_v30, %v21065_v42 }
 0x77d   : > { %v12002_v0 = vrot.slane %v11974_v61, %v18873_v33  ;;  %v11431_v37 = vcombine.low %v11423_v34, %v11430_v53  ;;  %v12003_v9 = vcombine.low %v11981_v63, %v11988_v32  ;;  %v10142_v10 = vrot.slane %v18960_v30, %v21066_v36 }
 0x77e   : > { %v10146_v5 = vrot.slane %v18960_v30, %v21067_v26  ;;  %v10150_v8 = vrot.slane %v18960_v30, %v21068_v3  ;;  %v11432_v62 = vcombine.low %v10122_v31, %v10126_v55  ;;  %v11433_v51 = vcombine.low %v10130_v45, %v10134_v28 }
 0x77f   : > { %v12004_v19 = vcombine.low %v11995_v14, %v12002_v0  ;;  %12216 = vperm.xlu1 %14326, %v11431_v37   ;;  %v12011_v29 = vrot.slane %v12003_v9, %v18873_v33  ;;  %v11434_v38 = vcombine.low %v10138_v11, %v10142_v10  ;;  %v9962_v40 = vrot.slane %v18969_v50, %v21060_v52 }
 0x780   : > { %v9966_v56 = vrot.slane %v18969_v50, %v21062_v2  ;;  %v11435_v6 = vcombine.low %v10146_v5, %v10150_v8  ;;  %v11442_v1 = vrot.slane %v11432_v62, %v18873_v33  ;;  %v11449_v21 = vrot.slane %v11433_v51, %v18873_v33 }
 0x781   : > { %v12018_v60 = vrot.slane %v12004_v19, %v18873_v33  ;;  %v11456_v30 = vrot.slane %v11434_v38, %v18873_v33  ;;  %v9970_v22 = vrot.slane %v18969_v50, %v21063_v59  ;;  %v9974_v47 = vrot.slane %v18969_v50, %v21064_v44 }
 0x782   : > { %v9978_v25 = vrot.slane %v18969_v50, %v21065_v42  ;;  %v11463_v43 = vrot.slane %v11435_v6, %v18873_v33  ;;  %v11464_v18 = vcombine.low %v11442_v1, %v11449_v21  ;;  %v9982_v24 = vrot.slane %v18969_v50, %v21066_v36 }
 0x783   : > { %v12019_v48 = vcombine.low %v12011_v29, %v12018_v60  ;;  %v9986_v16 = vrot.slane %v18969_v50, %v21067_v26  ;;  %v9990_v4 = vrot.slane %v18969_v50, %v21068_v3  ;;  %v11187_v13 = vcombine.low %v9962_v40, %v9966_v56 }
 0x784   : > { %v11188_v15 = vcombine.low %v9970_v22, %v9974_v47  ;;  %v11465_v46 = vcombine.low %v11456_v30, %v11463_v43  ;;  %v11472_v35 = vrot.slane %v11464_v18, %v18873_v33  ;;  %v11189_v57 = vcombine.low %v9978_v25, %v9982_v24 }
 0x785   : > { %12252 = vperm.xlu0 %14325, %v12019_v48   ;;  %v10506_v58 = vrot.slane %v19237_v39, %v21060_v52  ;;  %v11190_v7 = vcombine.low %v9986_v16, %v9990_v4  ;;  %v11197_v54 = vrot.slane %v11187_v13, %v18873_v33  ;;  %v10510_v34 = vrot.slane %v19237_v39, %v21062_v2 }
 0x786   : > { %v11204_v41 = vrot.slane %v11188_v15, %v18873_v33  ;;  %v11479_v50 = vrot.slane %v11465_v46, %v18873_v33  ;;  %v11211_v61 = vrot.slane %v11189_v57, %v18873_v33  ;;  %v10514_v31 = vrot.slane %v19237_v39, %v21063_v59 }
 0x787   : > { %v10518_v55 = vrot.slane %v19237_v39, %v21064_v44  ;;  %v11218_v53 = vrot.slane %v11190_v7, %v18873_v33  ;;  %v10522_v32 = vrot.slane %v19237_v39, %v21065_v42  ;;  %v10526_v14 = vrot.slane %v19237_v39, %v21066_v36 }
 0x788   : > { %v11219_v63 = vcombine.low %v11197_v54, %v11204_v41  ;;  %v11480_v0 = vcombine.low %v11472_v35, %v11479_v50  ;;  %v10530_v45 = vrot.slane %v19237_v39, %v21067_v26  ;;  %v10534_v28 = vrot.slane %v19237_v39, %v21068_v3 }
 0x789   : > { %v12020_v11 = vcombine.low %v10506_v58, %v10510_v34  ;;  %v11220_v37 = vcombine.low %v11211_v61, %v11218_v53  ;;  %v12021_v10 = vcombine.low %v10514_v31, %v10518_v55  ;;  %v12022_v5 = vcombine.low %v10522_v32, %v10526_v14 }
 0x78a   : > { %v11227_v9 = vrot.slane %v11219_v63, %v18873_v33  ;;  %12219 = vperm.xlu1 %14326, %v11480_v0   ;;  %v12023_v19 = vcombine.low %v10530_v45, %v10534_v28  ;;  %v9994_v62 = vrot.slane %v19067_v12, %v21060_v52  ;;  %v9998_v51 = vrot.slane %v19067_v12, %v21062_v2 }
 0x78b   : > { %v12030_v8 = vrot.slane %v12020_v11, %v18873_v33  ;;  %v11234_v29 = vrot.slane %v11220_v37, %v18873_v33  ;;  %v12037_v39 = vrot.slane %v12021_v10, %v18873_v33  ;;  %v12044_v38 = vrot.slane %v12022_v5, %v18873_v33 }
 0x78c   : > { %v10002_v40 = vrot.slane %v19067_v12, %v21063_v59  ;;  %v12051_v56 = vrot.slane %v12023_v19, %v18873_v33  ;;  %v10006_v60 = vrot.slane %v19067_v12, %v21064_v44  ;;  %v10010_v6 = vrot.slane %v19067_v12, %v21065_v42 }
 0x78d   : > { %v10014_v1 = vrot.slane %v19067_v12, %v21066_v36  ;;  %v11235_v21 = vcombine.low %v11227_v9, %v11234_v29  ;;  %v12052_v30 = vcombine.low %v12030_v8, %v12037_v39  ;;  %v10018_v22 = vrot.slane %v19067_v12, %v21067_v26 }
 0x78e   : > { %v10022_v47 = vrot.slane %v19067_v12, %v21068_v3  ;;  %v12053_v25 = vcombine.low %v12044_v38, %v12051_v56  ;;  %v11236_v48 = vcombine.low %v9994_v62, %v9998_v51  ;;  %v11237_v43 = vcombine.low %v10002_v40, %v10006_v60 }
 0x78f   : > { %v11238_v18 = vcombine.low %v10010_v6, %v10014_v1  ;;  %12204 = vperm.xlu1 %14326, %v11235_v21   ;;  %v12060_v24 = vrot.slane %v12052_v30, %v18873_v33  ;;  %v10538_v4 = vrot.slane %v19288_v23, %v21060_v52  ;;  %v10542_v13 = vrot.slane %v19288_v23, %v21062_v2 }
 0x790   : > { %v11239_v16 = vcombine.low %v10018_v22, %v10022_v47  ;;  %v12067_v15 = vrot.slane %v12053_v25, %v18873_v33  ;;  %v11246_v46 = vrot.slane %v11236_v48, %v18873_v33  ;;  %v11253_v12 = vrot.slane %v11237_v43, %v18873_v33 }
 0x791   : > { %v11260_v35 = vrot.slane %v11238_v18, %v18873_v33  ;;  %v10546_v58 = vrot.slane %v19288_v23, %v21063_v59  ;;  %v10550_v7 = vrot.slane %v19288_v23, %v21064_v44  ;;  %v10554_v54 = vrot.slane %v19288_v23, %v21065_v42 }
 0x792   : > { %v11267_v57 = vrot.slane %v11239_v16, %v18873_v33  ;;  %v12068_v41 = vcombine.low %v12060_v24, %v12067_v15  ;;  %v11268_v34 = vcombine.low %v11246_v46, %v11253_v12  ;;  %v10558_v50 = vrot.slane %v19288_v23, %v21066_v36 }
 0x793   : > { %v10562_v61 = vrot.slane %v19288_v23, %v21067_v26  ;;  %v10566_v55 = vrot.slane %v19288_v23, %v21068_v3  ;;  %v12069_v53 = vcombine.low %v10538_v4, %v10542_v13  ;;  %v12070_v63 = vcombine.low %v10546_v58, %v10550_v7 }
 0x794   : > { %v11269_v31 = vcombine.low %v11260_v35, %v11267_v57  ;;  %12255 = vperm.xlu0 %14325, %v12068_v41   ;;  %v11276_v32 = vrot.slane %v11268_v34, %v18873_v33  ;;  %v12071_v14 = vcombine.low %v10554_v54, %v10558_v50  ;;  %v10026_v0 = vrot.slane %v19089_v20, %v21060_v52 }
 0x795   : > { %v10030_v45 = vrot.slane %v19089_v20, %v21062_v2  ;;  %v12072_v11 = vcombine.low %v10562_v61, %v10566_v55  ;;  %v12079_v37 = vrot.slane %v12069_v53, %v18873_v33  ;;  %v12086_v9 = vrot.slane %v12070_v63, %v18873_v33 }
 0x796   : > { %v11283_v28 = vrot.slane %v11269_v31, %v18873_v33  ;;  %v12093_v23 = vrot.slane %v12071_v14, %v18873_v33  ;;  %v10034_v10 = vrot.slane %v19089_v20, %v21063_v59  ;;  %v10038_v5 = vrot.slane %v19089_v20, %v21064_v44 }
 0x797   : > { %v10042_v19 = vrot.slane %v19089_v20, %v21065_v42  ;;  %v12100_v62 = vrot.slane %v12072_v11, %v18873_v33  ;;  %v12101_v51 = vcombine.low %v12079_v37, %v12086_v9  ;;  %v10046_v29 = vrot.slane %v19089_v20, %v21066_v36 }
 0x798   : > { %v11284_v8 = vcombine.low %v11276_v32, %v11283_v28  ;;  %v10050_v39 = vrot.slane %v19089_v20, %v21067_v26  ;;  %v10054_v38 = vrot.slane %v19089_v20, %v21068_v3  ;;  %v11285_v40 = vcombine.low %v10026_v0, %v10030_v45 }
 0x799   : > { %v11286_v56 = vcombine.low %v10034_v10, %v10038_v5  ;;  %v12102_v60 = vcombine.low %v12093_v23, %v12100_v62  ;;  %v12109_v6 = vrot.slane %v12101_v51, %v18873_v33  ;;  %v11287_v1 = vcombine.low %v10042_v19, %v10046_v29  ;;  %v19677_v29 = vpop.permute.xlu1 %12168 }
 0x79a   : > { %12207 = vperm.xlu1 %14326, %v11284_v8   ;;  %v10570_v21 = vrot.slane %v19412_v49, %v21060_v52  ;;  %v11288_v30 = vcombine.low %v10050_v39, %v10054_v38  ;;  %v11295_v22 = vrot.slane %v11285_v40, %v18873_v33  ;;  %v10574_v25 = vrot.slane %v19412_v49, %v21062_v2 }
 0x79b   : > { %v11302_v47 = vrot.slane %v11286_v56, %v18873_v33  ;;  %v12116_v20 = vrot.slane %v12102_v60, %v18873_v33  ;;  %v11309_v48 = vrot.slane %v11287_v1, %v18873_v33  ;;  %v10578_v43 = vrot.slane %v19412_v49, %v21063_v59  ;;  %v19685_v56 = vpop.permute.xlu0 %12171 }
 0x79c   : > { %v10582_v18 = vrot.slane %v19412_v49, %v21064_v44  ;;  %v11316_v24 = vrot.slane %v11288_v30, %v18873_v33  ;;  %v10586_v4 = vrot.slane %v19412_v49, %v21065_v42  ;;  %v10590_v13 = vrot.slane %v19412_v49, %v21066_v36 }
 0x79d   : > { %v11317_v16 = vcombine.low %v11295_v22, %v11302_v47  ;;  %v12117_v15 = vcombine.low %v12109_v6, %v12116_v20  ;;  %v10594_v46 = vrot.slane %v19412_v49, %v21067_v26  ;;  %v10598_v12 = vrot.slane %v19412_v49, %v21068_v3  ;;  %v19679_v39 = vpop.permute.xlu1 %12174 }
 0x79e   : > { %v12118_v35 = vcombine.low %v10570_v21, %v10574_v25  ;;  %v11318_v57 = vcombine.low %v11309_v48, %v11316_v24  ;;  %v12119_v7 = vcombine.low %v10578_v43, %v10582_v18  ;;  %v12120_v54 = vcombine.low %v10586_v4, %v10590_v13 }
 0x79f   : > { %v11325_v58 = vrot.slane %v11317_v16, %v18873_v33  ;;  %12258 = vperm.xlu0 %14325, %v12117_v15   ;;  %v12121_v41 = vcombine.low %v10594_v46, %v10598_v12  ;;  %v10058_v50 = vrot.slane %v19188_v17, %v21060_v52  ;;  %v10062_v61 = vrot.slane %v19188_v17, %v21062_v2  ;;  %v12223_v6 = vpop.permute.xlu0 %12222 }
 0x7a0   : > { %v12128_v34 = vrot.slane %v12118_v35, %v18873_v33  ;;  %v11332_v31 = vrot.slane %v11318_v57, %v18873_v33  ;;  %v12135_v49 = vrot.slane %v12119_v7, %v18873_v33  ;;  %v12142_v55 = vrot.slane %v12120_v54, %v18873_v33 }
 0x7a1   : > { %v10066_v53 = vrot.slane %v19188_v17, %v21063_v59  ;;  %v12149_v63 = vrot.slane %v12121_v41, %v18873_v33  ;;  %v10070_v32 = vrot.slane %v19188_v17, %v21064_v44  ;;  %v10074_v52 = vrot.slane %v19188_v17, %v21065_v42  ;;  %v19681_v38 = vpop.permute.xlu1 %12177 }
 0x7a2   : > { %v10078_v2 = vrot.slane %v19188_v17, %v21066_v36  ;;  %v11333_v14 = vcombine.low %v11325_v58, %v11332_v31  ;;  %v12150_v0 = vcombine.low %v12128_v34, %v12135_v49  ;;  %v10082_v45 = vrot.slane %v19188_v17, %v21067_v26 }
 0x7a3   : > { %v10086_v28 = vrot.slane %v19188_v17, %v21068_v3  ;;  %v12151_v59 = vcombine.low %v12142_v55, %v12149_v63  ;;  %v11334_v11 = vcombine.low %v10058_v50, %v10062_v61  ;;  %v11335_v37 = vcombine.low %v10066_v53, %v10070_v32 }
 0x7a4   : > { %v11336_v9 = vcombine.low %v10074_v52, %v10078_v2  ;;  %12210 = vperm.xlu1 %14326, %v11333_v14   ;;  %v12158_v44 = vrot.slane %v12150_v0, %v18873_v33  ;;  %v12226_v21 = vpop.permute.xlu0 %12225  ;;  %v21069_v16 = vlaneseq }
 0x7a5   : > { %v11337_v23 = vcombine.low %v10082_v45, %v10086_v28  ;;  %v12165_v42 = vrot.slane %v12151_v59, %v18873_v33  ;;  %v11344_v36 = vrot.slane %v11334_v11, %v18873_v33  ;;  %v11351_v10 = vrot.slane %v11335_v37, %v18873_v33 }
 0x7a6   : > { %v11358_v5 = vrot.slane %v11336_v9, %v18873_v33  ;;  %v19702_v4 = vand.u32 127, %v21069_v16  ;;  %vm12471_vm15 = vcmp.lt.s32.totalorder %v21069_v16, 256 }
 0x7a7   : > { %v11365_v26 = vrot.slane %v11337_v23, %v18873_v33  ;;  %v12166_v19 = vcombine.low %v12158_v44, %v12165_v42  ;;  %v11366_v3 = vcombine.low %v11344_v36, %v11351_v10 }
 0x7a8   : > { %v12276_v13 = vadd.s32 4294967280, %v19702_v4  ;;  %v12269_v12 = vadd.s32 4294967288, %v19702_v4  ;;  %v12283_v35 = vadd.s32 4294967272, %v19702_v4  ;;  %v12290_v57 = vadd.s32 4294967264, %v19702_v4 }
 0x7a9   : > { %v11367_v17 = vcombine.low %v11358_v5, %v11365_v26  ;;  %12261 = vperm.xlu0 %14325, %v12166_v19   ;;  %v11374_v8 = vrot.slane %v11366_v3, %v18873_v33  ;;  %v19716_v54 = vsub.s32 %v19702_v4, %v21061_v27  ;;  %v12297_v34 = vadd.s32 4294967256, %v19702_v4 }
 0x7aa   : > { %v19709_v58 = vsub.s32 %v12276_v13, %v21061_v27  ;;  %v19712_v7 = vsub.s32 %v12269_v12, %v21061_v27  ;;  %v19719_v41 = vsub.s32 %v12283_v35, %v21061_v27  ;;  %v19723_v50 = vsub.s32 %v12290_v57, %v21061_v27 }
 0x7ab   : > { %v11381_v62 = vrot.slane %v11367_v17, %v18873_v33  ;;  %v19683_v40 = vpop.permute.xlu1 %12180  ;;  %v12304_v63 = vadd.s32 4294967248, %v19702_v4  ;;  %v19731_v52 = vsub.s32 %v12297_v34, %v21061_v27  ;;  %v12311_v45 = vadd.s32 4294967240, %v19702_v4 }
 0x7ac   : > { %v12386_v53 = vrot.slane %v12223_v6, %v19709_v58  ;;  %v12391_v32 = vrot.slane %v12226_v21, %v19719_v41  ;;  %v12318_v44 = vadd.s32 4294967232, %v19702_v4  ;;  %v12325_v10 = vadd.s32 4294967224, %v19702_v4 }
 0x7ad   : > { %v11382_v51 = vcombine.low %v11374_v8, %v11381_v62  ;;  %v19739_v59 = vsub.s32 %v12304_v63, %v21061_v27  ;;  %v19745_v23 = vsub.s32 %v12311_v45, %v21061_v27  ;;  %v12332_v17 = vadd.s32 4294967216, %v19702_v4 }
 0x7ae   : > { %v12321_v5 = vsub.s32 %v12318_v44, %v21061_v27  ;;  %v12328_v8 = vsub.s32 %v12325_v10, %v21061_v27  ;;  %v12339_v6 = vadd.s32 4294967208, %v19702_v4  ;;  %v12268_v12 = vrot.slane %v19677_v29, %v19716_v54 }
 0x7af   : > { %12213 = vperm.xlu1 %14326, %v11382_v51   ;;  %v12229_v22 = vpop.permute.xlu0 %12228  ;;  %v12335_v21 = vsub.s32 %v12332_v17, %v21061_v27  ;;  %v12280_v57 = vrot.slane %v19679_v39, %v19709_v58  ;;  %v12367_v45 = vadd.s32 4294967176, %v19702_v4 }
 0x7b0   : > { %v12396_v14 = vrot.slane %v12229_v22, %v19723_v50 }
 0x7b6   : > { %v19687_v60 = vpop.permute.xlu1 %12183 }
 0x7b7   : > { %v12301_v39 = vrot.slane %v19687_v60, %v19731_v52 }
 0x7bb   : > { %v12232_v25 = vpop.permute.xlu0 %12231 }
 0x7bc   : > { %v12401_v9 = vrot.slane %v12232_v25, %v19731_v52 }
 0x7c2   : > { %v19689_v1 = vpop.permute.xlu1 %12186 }
 0x7c7   : > { %v12235_v48 = vpop.permute.xlu0 %12234 }
 0x7c8   : > { %v12406_v36 = vrot.slane %v12235_v48, %v19739_v59 }
 0x7cc   : > { %v19691_v30 = vpop.permute.xlu1 %12189 }
 0x7d2   : > { %v12238_v18 = vpop.permute.xlu0 %12237 }
 0x7d3   : > { %v12411_v3 = vrot.slane %v12238_v18, %v19745_v23  ;;  %v12346_v18 = vadd.s32 4294967200, %v19702_v4 }
 0x7d5   : > { %v12349_v29 = vsub.s32 %v12346_v18, %v21061_v27 }
 0x7d7   : > { %v19693_v47 = vpop.permute.xlu1 %12192 }
 0x7d8   : > { %v12322_v52 = vrot.slane %v19693_v47, %v12321_v5 }
 0x7dc   : > { %v19695_v20 = vpop.permute.xlu1 %12195  ;;  %v12241_v15 = vpop.permute.xlu0 %12240 }
 0x7dd   : > { %v12416_v51 = vrot.slane %v12241_v15, %v12321_v5  ;;  %v12342_v15 = vsub.s32 %v12339_v6, %v21061_v27 }
 0x7e4   : > { %v12244_v61 = vpop.permute.xlu0 %12243 }
 0x7e5   : > { %v12421_v13 = vrot.slane %v12244_v61, %v12328_v8  ;;  %v12287_v61 = vrot.slane %v19681_v38, %v19719_v41  ;;  %v12308_v38 = vrot.slane %v19689_v1, %v19739_v59  ;;  %v12360_v41 = vadd.s32 4294967184, %v19702_v4 }
 0x7e9   : > { %v19697_v43 = vpop.permute.xlu1 %12198 }
 0x7ef   : > { %v12247_v11 = vpop.permute.xlu0 %12246 }
 0x7f0   : > { %v12426_v34 = vrot.slane %v12247_v11, %v12335_v21  ;;  %v12363_v11 = vsub.s32 %v12360_v41, %v21061_v27 }
 0x7f4   : > { %v19699_v24 = vpop.permute.xlu1 %12201 }
 0x7f9   : > { %v12250_v26 = vpop.permute.xlu0 %12249 }
 0x7fa   : > { %v12431_v58 = vrot.slane %v12250_v26, %v12342_v15 }
 0x7fe   : > { %v12217_v46 = vpop.permute.xlu1 %12216 }
 0x7ff   : > { %v12377_v49 = vrot.slane %v12217_v46, %v19716_v54  ;;  %v12273_v46 = vrot.slane %v19685_v56, %v19712_v7  ;;  %v12294_v56 = vrot.slane %v19683_v40, %v19723_v50  ;;  %v12315_v50 = vrot.slane %v19691_v30, %v19745_v23 }
 0x804   : > { %v12253_v22 = vpop.permute.xlu0 %12252 }
 0x809   : > { %v12220_v31 = vpop.permute.xlu1 %12219 }
 0x80a   : > { %v12381_v55 = vrot.slane %v12220_v31, %v19712_v7 }
 0x80c   : > { %v12382_v2 = vsel %vm12274_vm0, %v12381_v55, %v12377_v49  ;;  %v12353_v49 = vadd.s32 4294967192, %v19702_v4  ;;  %v12275_v55 = vsel %vm12274_vm0, %v12273_v46, %v12268_v12 }
 0x80d   : > { %v12387_v0 = vsel %vm12281_vm1, %v12386_v53, %v12382_v2  ;;  %v12282_v53 = vsel %vm12281_vm1, %v12280_v57, %v12275_v55  ;;  %v12436_v2 = vrot.slane %v12253_v22, %v12349_v29 }
 0x80e   : > { %v12392_v28 = vsel %vm12288_vm2, %v12391_v32, %v12387_v0  ;;  %v12205_v48 = vpop.permute.xlu1 %12204  ;;  %v12289_v40 = vsel %vm12288_vm2, %v12287_v61, %v12282_v53  ;;  %v12356_v63 = vsub.s32 %v12353_v49, %v21061_v27  ;;  %v12329_v0 = vrot.slane %v19695_v20, %v12328_v8 }
 0x80f   : > { %v12397_v37 = vsel %vm12295_vm3, %v12396_v14, %v12392_v28  ;;  %v12296_v60 = vsel %vm12295_vm3, %v12294_v56, %v12289_v40  ;;  %v12336_v28 = vrot.slane %v19697_v43, %v12335_v21  ;;  %v12350_v23 = vrot.slane %v12205_v48, %v12349_v29 }
 0x810   : > { %v12402_v42 = vsel %vm12302_vm4, %v12401_v9, %v12397_v37  ;;  %v12303_v1 = vsel %vm12302_vm4, %v12301_v39, %v12296_v60  ;;  %v12343_v9 = vrot.slane %v19699_v24, %v12342_v15 }
 0x811   : > { %v12407_v19 = vsel %vm12309_vm5, %v12406_v36, %v12402_v42  ;;  %v12310_v30 = vsel %vm12309_vm5, %v12308_v38, %v12303_v1  ;;  %v12370_v36 = vsub.s32 %v12367_v45, %v21061_v27 }
 0x812   : > { %v12412_v62 = vsel %vm12316_vm6, %v12411_v3, %v12407_v19  ;;  %v12317_v47 = vsel %vm12316_vm6, %v12315_v50, %v12310_v30 }
 0x813   : > { %v12417_v25 = vsel %vm12323_vm7, %v12416_v51, %v12412_v62  ;;  %v12256_v31 = vpop.permute.xlu0 %12255  ;;  %v12324_v20 = vsel %vm12323_vm7, %v12322_v52, %v12317_v47 }
 0x814   : > { %v12422_v35 = vsel %vm12330_vm8, %v12421_v13, %v12417_v25  ;;  %v12441_v44 = vrot.slane %v12256_v31, %v12356_v63  ;;  %v12331_v4 = vsel %vm12330_vm8, %v12329_v0, %v12324_v20 }
 0x815   : > { %v12427_v7 = vsel %vm12337_vm9, %v12426_v34, %v12422_v35  ;;  %v12338_v10 = vsel %vm12337_vm9, %v12336_v28, %v12331_v4 }
 0x816   : > { %v12432_v32 = vsel %vm12344_vm10, %v12431_v58, %v12427_v7  ;;  %v12345_v19 = vsel %vm12344_vm10, %v12343_v9, %v12338_v10 }
 0x817   : > { %v12437_v59 = vsel %vm12351_vm11, %v12436_v2, %v12432_v32  ;;  %v12352_v3 = vsel %vm12351_vm11, %v12350_v23, %v12345_v19 }
 0x818   : > { %v12442_v43 = vsel %vm12358_vm12, %v12441_v44, %v12437_v59 }
 0x819   : > { %v12208_v54 = vpop.permute.xlu1 %12207 }
 0x81a   : > { %v12357_v42 = vrot.slane %v12208_v54, %v12356_v63 }
 0x81c   : > { %v12359_v62 = vsel %vm12358_vm12, %v12357_v42, %v12352_v3 }
 0x81e   : > { %v12259_v14 = vpop.permute.xlu0 %12258 }
 0x81f   : > { %v12446_v5 = vrot.slane %v12259_v14, %v12363_v11 }
 0x821   : > { %v12447_v17 = vsel %vm12365_vm13, %v12446_v5, %v12442_v43 }
 0x823   : > { %v12211_v37 = vpop.permute.xlu1 %12210 }
 0x824   : > { %v12364_v24 = vrot.slane %v12211_v37, %v12363_v11 }
 0x826   : > { %v12366_v6 = vsel %vm12365_vm13, %v12364_v24, %v12359_v62 }
 0x828   : > { %v12262_v26 = vpop.permute.xlu0 %12261 }
 0x829   : > { %v12451_v27 = vrot.slane %v12262_v26, %v12370_v36 }
 0x82b   : > { %v12452_v21 = vsel %vm12372_vm14, %v12451_v27, %v12447_v17 }
 0x82e   : > { %v12214_v8 = vpop.permute.xlu1 %12213 }
 0x82f   : > { %v12371_v51 = vrot.slane %v12214_v8, %v12370_v36 }
 0x831   : > { %v12373_v22 = vsel %vm12372_vm14, %v12371_v51, %v12366_v6 }
 0x832   : > { %v12453_v25 = vcombine.low %v12373_v22, %v12452_v21 }
 0x834   : > { %v12460_v48 = vrot.slane %v12453_v25, %v18873_v33 }
 0x836   : > { %v12467_v13 = vrot.slane %v12460_v48, %v18873_v33 }
 0x838   : > { %12473 = vst.msk [vmem:[%s339_s25] sm:$0x3] %vm12471_vm15, %v12467_v13 }
 0x839   : > { %14615 = shalt.err (!%p14612_p1)
}
 0x83a   : > { %s14616_s1 = scalar_lea.hbm %s19818_s17, 32  ;;  %s14620_s19 = scalar_lea.hbm %s19869_s7, 64 }
 0x83b   : > { %p14617_p0 = scmp.ne.s32.totalorder %s19818_s17, %s14616_s1  ;;  %p14621_p9 = scmp.lt.u32.totalorder %s19818_s17, %s19869_s7 }
 0x83c   : > { %p14622_p12 = scmp.lt.u32.totalorder %s14620_s19, %s14616_s1  ;;  %p14624_p2 = scmp.lt.u32.totalorder %s14616_s1, %s19818_s17 }
 0x83d   : > { %p14618_p6 = pnand %p14617_p0, %p21070_p3 }
 0x83e   : > { %p14623_p10 = por %p14622_p12, %p14621_p9 }
 0x83f   : > { %p14619_p5 = pneg %p14618_p6 }
 0x840   : > { %p14625_p4 = por %p14624_p2, %p14623_p10 }
 0x842   : > { %p14626_p7 = pnand %p14625_p4, %p14619_p5 }
 0x844   : > { %14629 = shalt.err (!%p14626_p7)
}
 0x845   : > { %14209 = dma.vmem_to_hbm [thread:$0]  (%p21070_p3), %s19820_s30, 32, %s19818_s17, %s12475_s18  }
 0x846 PF: > { %p14241_p8 = scmp.ge.s32.totalorder %s14676_s29, 2  ;;  %s12501_s6 = sand.u32 1, %s14664_s26  }
 0x847   : > { %p21071_p11 = scmp.ne.s32.totalorder %s20421_s13, 0  ;;  %s12502_s24 = scalar_lea.sflag [#allocation5], %s12501_s6 }
 0x849   : > { %p14228_p13 = pnand %p14241_p8, %p21071_p11 }
 0x84b   : > { %14659 = dma.done.wait (!%p14228_p13), %s12502_s24, 32  }
 0x84c   : > { %14661 = vsyncadd (!%p14228_p13), %s12502_s24, 4294967264  ;;  %p22_p1 = scmp.ge.s32.totalorder %s14757_s8, 4   ;;  %s21072_s26 = smov %s14668_s27 }
 0x84d   : > { %s21073_s27 = smov %s14672_s28  ;;  %s21074_s28 = smov %s14768_s11 }
 0x84e   : > { %s21075_s29 = smov %s14757_s8  ;;  %24 = sbr.rel (!%p22_p1) target bundleno = 9 (0x9), region = 104 }
 0x855   :  { %12507 = vsyncpa [#allocation4], 1 }
 0x856   :  { %12509 = vsyncpa [#allocation4 + $0x1], 1 }
 0x857   :  { %12510 = vsyncpa [#allocation7], 1 }
 0x858   :  { %12511 = vsyncpa [#allocation10], 1 }
 0x859   :  { %12512 = vsyncpa [#allocation5], 1 }
 0x85a   :  { %12514 = vsyncpa [#allocation5 + $0x1], 1 }

</bundles_post_ra>
